<compile_context>
chip_gen: v6e
topology: v6e:2x2x1
jax: 0.10.0
libtpu: 0.0.40
codegen_flags: <defaults>
</compile_context>

<pallas_src>
import functools

import jax
import jax.numpy as jnp
from jax.experimental import pallas as pl
from jax.experimental.pallas import tpu as pltpu


# ---------------------------------------------------------------------------
# Chip / VMEM configuration (queried once; cached, runs at trace time).
# ---------------------------------------------------------------------------
@functools.lru_cache(maxsize=None)
def _chip_config():
    try:
        cap = int(pltpu.get_tpu_info().vmem_capacity_bytes)
    except Exception:
        cap = 64 * 1024 * 1024                 # conservative (v7x-sized) fallback
    # v7x signature: 64 MiB VMEM per TensorCore and 2 TCs/chip; v5e/v6e: 128 MiB, 1 TC.
    two_tc = cap <= 64 * 1024 * 1024
    vmem_limit = min((cap * 3) // 4, 96 * 1024 * 1024)   # 48 MiB (v7x) / 96 MiB (v5e/v6e)
    return two_tc, vmem_limit


def _round_up(x, m):
    return -(-x // m) * m


def _time_plan(T):
    """Per-layer output lengths, each rounded up to a multiple of 8."""
    t3_valid = T - 14                          # frames surviving all three convs
    t3 = _round_up(t3_valid, 8)
    t2 = t3 + 8                                # >= t3 + 6, multiple of 8
    t1 = t3 + 16                               # >= t2 + 4, multiple of 8
    t_need = t1 + 4                            # layer-1 input frames required
    return t1, t2, t3, t3_valid, t_need


def _pick_batch_block(B, per_batch_bytes, two_tc, vmem_limit):
    """Batch rows per grid step (multiple of 8 unless a single full-batch block)."""
    budget = max(int(vmem_limit * 0.6), 1 << 20)
    cap_blk = max(8, (budget // max(per_batch_bytes, 1)) // 8 * 8)
    if B <= cap_blk and not (two_tc and B >= 16):
        return B, 1                            # one block == full batch dim
    n_blocks = max(2 if two_tc else 1, pl.cdiv(B, cap_blk))
    if two_tc and n_blocks % 2:
        n_blocks += 1                          # even step count: both v7x TCs stay busy
    b_blk = min(cap_blk, _round_up(pl.cdiv(B, n_blocks), 8))
    n_blocks = pl.cdiv(B, b_blk)
    while two_tc and n_blocks > 1 and n_blocks % 2 and b_blk + 8 <= cap_blk:
        b_blk += 8                             # nudge toward an even grid within budget
        n_blocks = pl.cdiv(B, b_blk)
    return b_blk, n_blocks


# ---------------------------------------------------------------------------
# Kernel
# ---------------------------------------------------------------------------
def _conv_relu(h, w_ref, b_ref, *, taps, dilation, t_out):
    """Fused im2col dilated Conv1d + bias + ReLU.

    h:     (b_blk, t_in, c_in) f32, channels-last.
    w_ref: (kc_pad, c_out) bf16 fused tap weights, tap-major rows, zero-padded
           so kc_pad is a multiple of 128.
    b_ref: (1, c_out) f32 bias.
    Requires t_in >= t_out + (taps-1)*dilation and t_out % 8 == 0 (so the
    flatten below is (8,128)-tile aligned).  Returns (b_blk, t_out, c_out) f32.
    """
    b_blk, _, c_in = h.shape
    kc_pad, c_out = w_ref.shape
    kc = taps * c_in
    pieces = [h[:, k * dilation:k * dilation + t_out, :] for k in range(taps)]
    if kc < kc_pad:                                    # pad contraction dim to 128 lanes
        pieces.append(jnp.zeros((b_blk, t_out, kc_pad - kc), h.dtype))
    slab = jnp.concatenate(pieces, axis=-1)            # (b_blk, t_out, kc_pad)
    slab = slab.reshape(b_blk * t_out, kc_pad).astype(jnp.bfloat16)
    y = jnp.dot(slab, w_ref[...], preferred_element_type=jnp.float32)
    y = jnp.maximum(y + b_ref[...], 0.0)               # bias + ReLU in f32
    return y.reshape(b_blk, t_out, c_out)


def tdnn_kernel(x_ref, w1_ref, b1_ref, w2_ref, b2_ref, w3_ref, b3_ref, o_ref,
                *, t1, t2, t3, t_valid):
    # TODO(synk): G=4 batch-in-lanes block-diagonal weight packing (perf review)
    # would lane-fill the VPU/MXU for the 32-channel layers; not implemented here.
    h = x_ref[...].astype(jnp.float32)                 # (b_blk, T, n_mels)
    b_blk, t_in, c_in = h.shape
    t_need = t1 + 4
    if t_need > t_in:                                  # zero-pad time once in VMEM so
        h = jnp.concatenate(                           # every layer's t_out is a mult of 8
            [h, jnp.zeros((b_blk, t_need - t_in, c_in), jnp.float32)], axis=1)

    h = _conv_relu(h, w1_ref, b1_ref, taps=5, dilation=1, t_out=t1)
    h = _conv_relu(h, w2_ref, b2_ref, taps=3, dilation=2, t_out=t2)
    h = _conv_relu(h, w3_ref, b3_ref, taps=3, dilation=3, t_out=t3)   # (b_blk, t3, 32)

    # StatsPool over the t_valid real frames.  Two-pass mean / unbiased std
    # (ddof=1, like torch.std) — cancellation-safe vs sum/sum-of-squares.
    n = float(t_valid)
    tmask = (jax.lax.broadcasted_iota(jnp.int32, (1, t3, 1), 1) < t_valid
             ).astype(jnp.float32)
    mean = jnp.sum(h * tmask, axis=1) / n              # (b_blk, 32)
    d = (h - mean[:, None, :]) * tmask
    var = jnp.sum(d * d, axis=1) / (n - 1.0)
    std = jnp.sqrt(jnp.maximum(var, 0.0))
    stats = jnp.concatenate(                           # lane-dense (b_blk, 128) store
        [mean, std, jnp.zeros((b_blk, 64), jnp.float32)], axis=-1)
    o_ref[...] = jax.nn.sigmoid(stats).astype(o_ref.dtype)


# ---------------------------------------------------------------------------
# Wrapper
# ---------------------------------------------------------------------------
def _prep_conv(w, b):
    """(C_out, C_in, K) PyTorch conv weight -> (round_up(K*C_in, 128), C_out)
    bf16 fused tap matrix (tap-major rows, matching the kernel's im2col channel
    order) plus (1, C_out) f32 bias."""
    c_out, c_in, k = w.shape
    kc = k * c_in
    kc_pad = _round_up(kc, 128)
    wf = jnp.transpose(w, (2, 1, 0)).reshape(kc, c_out)
    wf = jnp.pad(wf, ((0, kc_pad - kc), (0, 0))).astype(jnp.bfloat16)
    return wf, b.reshape(1, c_out).astype(jnp.float32)


@jax.jit
def tdnn_net_forward(x, w1, b1, w2, b2, w3, b3):
    """x: (B, T, n_mels) f32 or bf16; conv weights in PyTorch layout (C_out, C_in, K)."""
    B, T, c_in = x.shape
    assert T >= 15, "need >= 15 frames for the 3-layer TDNN receptive field"
    t1, t2, t3, t3_valid, t_need = _time_plan(T)

    w1f, b1f = _prep_conv(w1, b1)
    w2f, b2f = _prep_conv(w2, b2)
    w3f, b3f = _prep_conv(w3, b3)

    two_tc, vmem_limit = _chip_config()
    # Per-batch-row working set of one grid step: double-buffered input block +
    # zero-padded copy + largest bf16 im2col slab (with copy margin) + the
    # three f32 layer outputs.
    per_batch = (2 * T * c_in * x.dtype.itemsize + t_need * c_in * 4
                 + t1 * max(w1f.shape[0], 128) * 2 * 2
                 + (t1 + t2 + t3) * 32 * 4)
    b_blk, n_blocks = _pick_batch_block(B, per_batch, two_tc, vmem_limit)

    # TODO(synk): pipeline_mode=pl.Buffered(3) on the x BlockSpec and
    # MXU-offloaded stats pooling are deferred pending profiling.
    out = pl.pallas_call(
        functools.partial(tdnn_kernel, t1=t1, t2=t2, t3=t3, t_valid=t3_valid),
        out_shape=jax.ShapeDtypeStruct((B, 128), jnp.float32),
        grid=(n_blocks,),
        in_specs=[
            pl.BlockSpec((b_blk, T, c_in), lambda i: (i, 0, 0)),
            # Weights / biases: whole-array blocks with constant index_map
            # (VMEM-resident across all grid steps).
            pl.BlockSpec(w1f.shape, lambda i: (0, 0)),
            pl.BlockSpec(b1f.shape, lambda i: (0, 0)),
            pl.BlockSpec(w2f.shape, lambda i: (0, 0)),
            pl.BlockSpec(b2f.shape, lambda i: (0, 0)),
            pl.BlockSpec(w3f.shape, lambda i: (0, 0)),
            pl.BlockSpec(b3f.shape, lambda i: (0, 0)),
        ],
        out_specs=pl.BlockSpec((b_blk, 128), lambda i: (i, 0)),
        compiler_params=pltpu.CompilerParams(
            dimension_semantics=("parallel",),
            vmem_limit_bytes=vmem_limit,
        ),
    )(x, w1f, b1f, w2f, b2f, w3f, b3f)
    return out[:, :64]                                  # drop lane-padding columns


# ---------------------------------------------------------------------------
# Reference + demo
# ---------------------------------------------------------------------------
def _ref_forward(x, params):
    """Plain-JAX f32 reference mirroring the PyTorch forward."""
    h = x.astype(jnp.float32)
    for (w, b), d in zip(params, (1, 2, 3)):
        c_out, c_in, k = w.shape
        t_out = h.shape[1] - (k - 1) * d
        acc = jnp.zeros((h.shape[0], t_out, c_out), jnp.float32)
        for i in range(k):
            acc = acc + jnp.einsum('btc,oc->bto',
                                   h[:, i * d:i * d + t_out, :], w[:, :, i])
        h = jax.nn.relu(acc + b[None, None, :])
    mean = jnp.mean(h, axis=1)
    std = jnp.std(h, axis=1, ddof=1)
    return jax.nn.sigmoid(jnp.concatenate([mean, std], axis=1))


if __name__ == "__main__":
    key = jax.random.PRNGKey(0)
    B, T, n_mels = 8, 64, 16            # pooled length T - 14 = 50
    k_x, k1, k2, k3 = jax.random.split(key, 4)

    def conv_init(k, c_out, c_in, ksz):
        kw, kb = jax.random.split(k)
        bound = 1.0 / (c_in * ksz) ** 0.5
        w = jax.random.uniform(kw, (c_out, c_in, ksz), jnp.float32, -bound, bound)
        b = jax.random.uniform(kb, (c_out,), jnp.float32, -bound, bound)
        return w, b

    x = jax.random.normal(k_x, (B, T, n_mels), jnp.float32)
    w1, b1 = conv_init(k1, 32, n_mels, 5)   # frame1: full context [-2, 2] -> k=5, d=1
    w2, b2 = conv_init(k2, 32, 32, 3)       # frame2: context [-2, 0, 2]   -> k=3, d=2
    w3, b3 = conv_init(k3, 32, 32, 3)       # frame3: context [-3, 0, 3]   -> k=3, d=3
    # TODO(synk): final_layer_ (Linear(64, 1)) exists in __init__ but is unused
    # by TDNNNet.forward, so it is intentionally not applied here.

    out = tdnn_net_forward(x, w1, b1, w2, b2, w3, b3)
    out = jax.block_until_ready(out)

    ref = _ref_forward(x, [(w1, b1), (w2, b2), (w3, b3)])
    assert out.shape == (B, 64)
    max_err = float(jnp.max(jnp.abs(out - ref)))
    # Conv matmuls run in bf16 on the MXU (f32 accumulation), so the tolerance
    # is loosened relative to a pure-f32 path (intentional precision trade-off).
    assert max_err < 2e-2, ("max abs err", max_err)
    print("KERNEL_OK")
</pallas_src>

<mosaic_0001>
module attributes {stable_mosaic.version = 11 : i64} {
  func.func @tdnn_kernel(%arg0: i32, %arg1: memref<8x64x16xf32, #tpu.memory_space<vmem>>, %arg2: memref<128x32xbf16, #tpu.memory_space<vmem>>, %arg3: memref<1x32xf32, #tpu.memory_space<vmem>>, %arg4: memref<128x32xbf16, #tpu.memory_space<vmem>>, %arg5: memref<1x32xf32, #tpu.memory_space<vmem>>, %arg6: memref<128x32xbf16, #tpu.memory_space<vmem>>, %arg7: memref<1x32xf32, #tpu.memory_space<vmem>>, %arg8: memref<8x128xf32, #tpu.memory_space<vmem>>) attributes {dimension_semantics = [#tpu.dimension_semantics<parallel>], iteration_bounds = array<i64: 1>, scalar_prefetch = 0 : i64, scratch_operands = 0 : i64, tpu.core_type = #tpu.core_type<tc>, window_params = [{transform_indices = @transform_0, window_bounds = array<i64: 8, 64, 16>}, {pipeline_mode = #tpu.pipeline_mode<synchronous>, transform_indices = @transform_1, window_bounds = array<i64: 128, 32>}, {pipeline_mode = #tpu.pipeline_mode<synchronous>, transform_indices = @transform_2, window_bounds = array<i64: 1, 32>}, {pipeline_mode = #tpu.pipeline_mode<synchronous>, transform_indices = @transform_3, window_bounds = array<i64: 128, 32>}, {pipeline_mode = #tpu.pipeline_mode<synchronous>, transform_indices = @transform_4, window_bounds = array<i64: 1, 32>}, {pipeline_mode = #tpu.pipeline_mode<synchronous>, transform_indices = @transform_5, window_bounds = array<i64: 128, 32>}, {pipeline_mode = #tpu.pipeline_mode<synchronous>, transform_indices = @transform_6, window_bounds = array<i64: 1, 32>}, {transform_indices = @transform_7, window_bounds = array<i64: 8, 128>}]} {
    %c0 = arith.constant 0 : index
    %c0_0 = arith.constant 0 : index
    %c0_1 = arith.constant 0 : index
    %0 = vector.load %arg1[%c0, %c0_0, %c0_1] : memref<8x64x16xf32, #tpu.memory_space<vmem>>, vector<8x64x16xf32>
    %cst = arith.constant 0.000000e+00 : f32
    %1 = vector.broadcast %cst : f32 to vector<8x12x16xf32>
    %2 = tpu.concatenate %0, %1 in 1 : vector<8x64x16xf32>, vector<8x12x16xf32> -> vector<8x76x16xf32>
    %3 = vector.extract_strided_slice %2 {offsets = [0, 0, 0], sizes = [8, 72, 16], strides = [1, 1, 1]} : vector<8x76x16xf32> to vector<8x72x16xf32>
    %4 = vector.extract_strided_slice %2 {offsets = [0, 1, 0], sizes = [8, 72, 16], strides = [1, 1, 1]} : vector<8x76x16xf32> to vector<8x72x16xf32>
    %5 = vector.extract_strided_slice %2 {offsets = [0, 2, 0], sizes = [8, 72, 16], strides = [1, 1, 1]} : vector<8x76x16xf32> to vector<8x72x16xf32>
    %6 = vector.extract_strided_slice %2 {offsets = [0, 3, 0], sizes = [8, 72, 16], strides = [1, 1, 1]} : vector<8x76x16xf32> to vector<8x72x16xf32>
    %7 = vector.extract_strided_slice %2 {offsets = [0, 4, 0], sizes = [8, 72, 16], strides = [1, 1, 1]} : vector<8x76x16xf32> to vector<8x72x16xf32>
    %cst_2 = arith.constant 0.000000e+00 : f32
    %8 = vector.broadcast %cst_2 : f32 to vector<8x72x48xf32>
    %9 = tpu.concatenate %3, %4, %5, %6, %7, %8 in 2 : vector<8x72x16xf32>, vector<8x72x16xf32>, vector<8x72x16xf32>, vector<8x72x16xf32>, vector<8x72x16xf32>, vector<8x72x48xf32> -> vector<8x72x128xf32>
    %10 = vector.shape_cast %9 : vector<8x72x128xf32> to vector<576x128xf32>
    %11 = arith.truncf %10 : vector<576x128xf32> to vector<576x128xbf16>
    %c0_3 = arith.constant 0 : index
    %c0_4 = arith.constant 0 : index
    %12 = vector.load %arg2[%c0_3, %c0_4] : memref<128x32xbf16, #tpu.memory_space<vmem>>, vector<128x32xbf16>
    %cst_5 = arith.constant dense<0.000000e+00> : vector<576x32xf32>
    %13 = tpu.matmul %11, %12, %cst_5 {dimension_numbers = #tpu.dot_dimension_numbers<[1], [0], [0], [1], [0, 0, 1, 1], [], []>} : vector<576x128xbf16>, vector<128x32xbf16>, vector<576x32xf32> -> vector<576x32xf32>
    %c0_6 = arith.constant 0 : index
    %c0_7 = arith.constant 0 : index
    %14 = vector.load %arg3[%c0_6, %c0_7] : memref<1x32xf32, #tpu.memory_space<vmem>>, vector<1x32xf32>
    %15 = vector.broadcast %14 : vector<1x32xf32> to vector<576x32xf32>
    %16 = arith.addf %13, %15 : vector<576x32xf32>
    %cst_8 = arith.constant 0.000000e+00 : f32
    %17 = vector.broadcast %cst_8 : f32 to vector<576x32xf32>
    %18 = arith.maximumf %16, %17 : vector<576x32xf32>
    %19 = vector.shape_cast %18 : vector<576x32xf32> to vector<8x72x32xf32>
    %20 = vector.extract_strided_slice %19 {offsets = [0, 0, 0], sizes = [8, 64, 32], strides = [1, 1, 1]} : vector<8x72x32xf32> to vector<8x64x32xf32>
    %21 = vector.extract_strided_slice %19 {offsets = [0, 2, 0], sizes = [8, 64, 32], strides = [1, 1, 1]} : vector<8x72x32xf32> to vector<8x64x32xf32>
    %22 = vector.extract_strided_slice %19 {offsets = [0, 4, 0], sizes = [8, 64, 32], strides = [1, 1, 1]} : vector<8x72x32xf32> to vector<8x64x32xf32>
    %cst_9 = arith.constant 0.000000e+00 : f32
    %23 = vector.broadcast %cst_9 : f32 to vector<8x64x32xf32>
    %24 = tpu.concatenate %20, %21, %22, %23 in 2 : vector<8x64x32xf32>, vector<8x64x32xf32>, vector<8x64x32xf32>, vector<8x64x32xf32> -> vector<8x64x128xf32>
    %25 = vector.shape_cast %24 : vector<8x64x128xf32> to vector<512x128xf32>
    %26 = arith.truncf %25 : vector<512x128xf32> to vector<512x128xbf16>
    %c0_10 = arith.constant 0 : index
    %c0_11 = arith.constant 0 : index
    %27 = vector.load %arg4[%c0_10, %c0_11] : memref<128x32xbf16, #tpu.memory_space<vmem>>, vector<128x32xbf16>
    %cst_12 = arith.constant dense<0.000000e+00> : vector<512x32xf32>
    %28 = tpu.matmul %26, %27, %cst_12 {dimension_numbers = #tpu.dot_dimension_numbers<[1], [0], [0], [1], [0, 0, 1, 1], [], []>} : vector<512x128xbf16>, vector<128x32xbf16>, vector<512x32xf32> -> vector<512x32xf32>
    %c0_13 = arith.constant 0 : index
    %c0_14 = arith.constant 0 : index
    %29 = vector.load %arg5[%c0_13, %c0_14] : memref<1x32xf32, #tpu.memory_space<vmem>>, vector<1x32xf32>
    %30 = vector.broadcast %29 : vector<1x32xf32> to vector<512x32xf32>
    %31 = arith.addf %28, %30 : vector<512x32xf32>
    %cst_15 = arith.constant 0.000000e+00 : f32
    %32 = vector.broadcast %cst_15 : f32 to vector<512x32xf32>
    %33 = arith.maximumf %31, %32 : vector<512x32xf32>
    %34 = vector.shape_cast %33 : vector<512x32xf32> to vector<8x64x32xf32>
    %35 = vector.extract_strided_slice %34 {offsets = [0, 0, 0], sizes = [8, 56, 32], strides = [1, 1, 1]} : vector<8x64x32xf32> to vector<8x56x32xf32>
    %36 = vector.extract_strided_slice %34 {offsets = [0, 3, 0], sizes = [8, 56, 32], strides = [1, 1, 1]} : vector<8x64x32xf32> to vector<8x56x32xf32>
    %37 = vector.extract_strided_slice %34 {offsets = [0, 6, 0], sizes = [8, 56, 32], strides = [1, 1, 1]} : vector<8x64x32xf32> to vector<8x56x32xf32>
    %cst_16 = arith.constant 0.000000e+00 : f32
    %38 = vector.broadcast %cst_16 : f32 to vector<8x56x32xf32>
    %39 = tpu.concatenate %35, %36, %37, %38 in 2 : vector<8x56x32xf32>, vector<8x56x32xf32>, vector<8x56x32xf32>, vector<8x56x32xf32> -> vector<8x56x128xf32>
    %40 = vector.shape_cast %39 : vector<8x56x128xf32> to vector<448x128xf32>
    %41 = arith.truncf %40 : vector<448x128xf32> to vector<448x128xbf16>
    %c0_17 = arith.constant 0 : index
    %c0_18 = arith.constant 0 : index
    %42 = vector.load %arg6[%c0_17, %c0_18] : memref<128x32xbf16, #tpu.memory_space<vmem>>, vector<128x32xbf16>
    %cst_19 = arith.constant dense<0.000000e+00> : vector<448x32xf32>
    %43 = tpu.matmul %41, %42, %cst_19 {dimension_numbers = #tpu.dot_dimension_numbers<[1], [0], [0], [1], [0, 0, 1, 1], [], []>} : vector<448x128xbf16>, vector<128x32xbf16>, vector<448x32xf32> -> vector<448x32xf32>
    %c0_20 = arith.constant 0 : index
    %c0_21 = arith.constant 0 : index
    %44 = vector.load %arg7[%c0_20, %c0_21] : memref<1x32xf32, #tpu.memory_space<vmem>>, vector<1x32xf32>
    %45 = vector.broadcast %44 : vector<1x32xf32> to vector<448x32xf32>
    %46 = arith.addf %43, %45 : vector<448x32xf32>
    %cst_22 = arith.constant 0.000000e+00 : f32
    %47 = vector.broadcast %cst_22 : f32 to vector<448x32xf32>
    %48 = arith.maximumf %46, %47 : vector<448x32xf32>
    %49 = vector.shape_cast %48 : vector<448x32xf32> to vector<8x56x32xf32>
    %50 = tpu.iota {dimensions = array<i32: 1>} : vector<1x56x1xi32>
    %c50_i32 = arith.constant 50 : i32
    %51 = vector.broadcast %c50_i32 : i32 to vector<1x56x1xi32>
    %52 = arith.cmpi slt, %50, %51 : vector<1x56x1xi32>
    %53 = arith.extui %52 : vector<1x56x1xi1> to vector<1x56x1xi32>
    %54 = arith.sitofp %53 : vector<1x56x1xi32> to vector<1x56x1xf32>
    %55 = vector.broadcast %54 : vector<1x56x1xf32> to vector<8x56x32xf32>
    %56 = arith.mulf %49, %55 : vector<8x56x32xf32>
    %cst_23 = arith.constant dense<0.000000e+00> : vector<8x32xf32>
    %57 = vector.multi_reduction <add>, %56, %cst_23 [1] : vector<8x56x32xf32> to vector<8x32xf32>
    %cst_24 = arith.constant 5.000000e+01 : f32
    %58 = vector.broadcast %cst_24 : f32 to vector<8x32xf32>
    %59 = arith.divf %57, %58 : vector<8x32xf32>
    %60 = vector.shape_cast %59 : vector<8x32xf32> to vector<8x1x32xf32>
    %61 = vector.broadcast %60 : vector<8x1x32xf32> to vector<8x56x32xf32>
    %62 = arith.subf %49, %61 : vector<8x56x32xf32>
    %63 = vector.broadcast %54 : vector<1x56x1xf32> to vector<8x56x32xf32>
    %64 = arith.mulf %62, %63 : vector<8x56x32xf32>
    %65 = arith.mulf %64, %64 : vector<8x56x32xf32>
    %cst_25 = arith.constant dense<0.000000e+00> : vector<8x32xf32>
    %66 = vector.multi_reduction <add>, %65, %cst_25 [1] : vector<8x56x32xf32> to vector<8x32xf32>
    %cst_26 = arith.constant 4.900000e+01 : f32
    %67 = vector.broadcast %cst_26 : f32 to vector<8x32xf32>
    %68 = arith.divf %66, %67 : vector<8x32xf32>
    %cst_27 = arith.constant 0.000000e+00 : f32
    %69 = vector.broadcast %cst_27 : f32 to vector<8x32xf32>
    %70 = arith.maximumf %68, %69 : vector<8x32xf32>
    %71 = math.sqrt %70 : vector<8x32xf32>
    %cst_28 = arith.constant 0.000000e+00 : f32
    %72 = vector.broadcast %cst_28 : f32 to vector<8x64xf32>
    %73 = tpu.concatenate %59, %71, %72 in 1 : vector<8x32xf32>, vector<8x32xf32>, vector<8x64xf32> -> vector<8x128xf32>
    %74 = arith.negf %73 : vector<8x128xf32>
    %75 = math.exp %74 : vector<8x128xf32>
    %cst_29 = arith.constant 1.000000e+00 : f32
    %76 = vector.broadcast %cst_29 : f32 to vector<8x128xf32>
    %77 = arith.addf %76, %75 : vector<8x128xf32>
    %78 = arith.divf %76, %77 : vector<8x128xf32>
    %c0_30 = arith.constant 0 : index
    %c0_31 = arith.constant 0 : index
    %79 = vector.load %arg8[%c0_30, %c0_31] : memref<8x128xf32, #tpu.memory_space<vmem>>, vector<8x128xf32>
    tpu.vector_store %arg8[%c0_30, %c0_31], %78 {strides = array<i32>} : memref<8x128xf32, #tpu.memory_space<vmem>>, vector<8x128xf32>,
    return
  }
  func.func @transform_0(%arg0: i32) -> (i32, i32, i32) {
    %c0_i32 = arith.constant 0 : i32
    %c0_i32_0 = arith.constant 0 : i32
    %c0_i32_1 = arith.constant 0 : i32
    return %arg0, %c0_i32, %c0_i32_0 : i32, i32, i32
  }
  func.func @transform_1(%arg0: i32) -> (i32, i32) {
    %c0_i32 = arith.constant 0 : i32
    %c0_i32_0 = arith.constant 0 : i32
    %c0_i32_1 = arith.constant 0 : i32
    return %c0_i32, %c0_i32_0 : i32, i32
  }
  func.func @transform_2(%arg0: i32) -> (i32, i32) {
    %c0_i32 = arith.constant 0 : i32
    %c0_i32_0 = arith.constant 0 : i32
    %c0_i32_1 = arith.constant 0 : i32
    return %c0_i32, %c0_i32_0 : i32, i32
  }
  func.func @transform_3(%arg0: i32) -> (i32, i32) {
    %c0_i32 = arith.constant 0 : i32
    %c0_i32_0 = arith.constant 0 : i32
    %c0_i32_1 = arith.constant 0 : i32
    return %c0_i32, %c0_i32_0 : i32, i32
  }
  func.func @transform_4(%arg0: i32) -> (i32, i32) {
    %c0_i32 = arith.constant 0 : i32
    %c0_i32_0 = arith.constant 0 : i32
    %c0_i32_1 = arith.constant 0 : i32
    return %c0_i32, %c0_i32_0 : i32, i32
  }
  func.func @transform_5(%arg0: i32) -> (i32, i32) {
    %c0_i32 = arith.constant 0 : i32
    %c0_i32_0 = arith.constant 0 : i32
    %c0_i32_1 = arith.constant 0 : i32
    return %c0_i32, %c0_i32_0 : i32, i32
  }
  func.func @transform_6(%arg0: i32) -> (i32, i32) {
    %c0_i32 = arith.constant 0 : i32
    %c0_i32_0 = arith.constant 0 : i32
    %c0_i32_1 = arith.constant 0 : i32
    return %c0_i32, %c0_i32_0 : i32, i32
  }
  func.func @transform_7(%arg0: i32) -> (i32, i32) {
    %c0_i32 = arith.constant 0 : i32
    %c0_i32_0 = arith.constant 0 : i32
    return %arg0, %c0_i32 : i32, i32
  }
}

</mosaic_0001>

<bundles_post_ra>
// kernel: tdnn_net_forward.1
= control target key start
LH: loop header
LB: loop body
LE: loop exit
PB: predicated region body
PF: predicated region fallthrough
CT: control target
= control target key end

     0   :  { %vm483_vm0 = vcmask 1045504   ;;  %vm157_vm1 = vcmask 1046528   ;;  %s7664_s11 = smov 32   ;;  %vm809_vm2 = vcmask 1044480   ;;  %s7665_s12 = smov 16   ;;  %vm1135_vm3 = vcmask 1043456   ;;  %s12595_s0 = inlined_call_operand.vmem [shape: f32[8,64,16], index: 0, kind: input, shape index: {}]   ;;  %s12596_s1 = inlined_call_operand.vmem [shape: bf16[128,32], index: 1, kind: input, shape index: {}]   ;;  %s12597_s2 = inlined_call_operand.vmem [shape: f32[1,32], index: 2, kind: input, shape index: {}]   ;;  %s12598_s3 = inlined_call_operand.vmem [shape: bf16[128,32], index: 3, kind: input, shape index: {}]   ;;  %s12599_s4 = inlined_call_operand.vmem [shape: f32[1,32], index: 4, kind: input, shape index: {}]   ;;  %s12600_s5 = inlined_call_operand.vmem [shape: bf16[128,32], index: 5, kind: input, shape index: {}]   ;;  %s12601_s6 = inlined_call_operand.vmem [shape: f32[1,32], index: 6, kind: input, shape index: {}]   ;;  %s12602_s7 = inlined_call_operand.hbm [shape: f32[8,128], index: 7, kind: output, shape index: {}]  }
   0x1   :  { %v7713_v0 = vld [vmem:[%s12595_s0] sm:$0xff]  ;;  %v7718_v1 = vld [vmem:[%s12595_s0 + $0x8] sm:$0xff]  ;;  %v7723_v2 = vld [vmem:[%s12595_s0 + $0x10] sm:$0xff]  ;;  %v12603_v54 = vmov 0.0   ;;  %s7667_s21 = smov 48   ;;  %s7668_s26 = smov 64  }
   0x2   :  { %v484_v3 = vrot.slane %v7713_v0, 2  ;;  %v485_v4 = vrot.slane %v7718_v1, 2  ;;  %v487_v5 = vrot.slane %v7723_v2, 2  ;;  %v158_v6 = vrot.slane %v7713_v0, 1  ;;  %v31_v7 = vld [vmem:[%s12595_s0 + $0x18] sm:$0xff]  ;;  %v7737_v10 = vld [vmem:[%s12595_s0 + $0x20] sm:$0xff] }
   0x3   :  { %v159_v8 = vrot.slane %v7718_v1, 1  ;;  %v161_v9 = vrot.slane %v7723_v2, 1  ;;  %v489_v11 = vrot.slane %v31_v7, 2  ;;  %v163_v12 = vrot.slane %v31_v7, 1  ;;  %v7764_v35 = vld [vmem:[%s12595_s0 + $0x30] sm:$0xff]  ;;  %v7775_v40 = vld [vmem:[%s12595_s0 + $0x38] sm:$0xff] }
   0x4   :  { %v486_v13 = vsel %vm483_vm0, %v484_v3, %v485_v4  ;;  %v488_v14 = vsel %vm483_vm0, %v485_v4, %v487_v5  ;;  %v491_v15 = vrot.slane %v7737_v10, 2  ;;  %v165_v16 = vrot.slane %v7737_v10, 1  ;;  %v7780_v41 = vld [vmem:[%s12595_s0 + $0x28] sm:$0xff]  ;;  %v7531_v49 = vld [vmem:[%s12596_s1 + $0x38] sm:$0xff]   ;;  %v7532_v59 = vld [vmem:[%s12596_s1 + $0x30] sm:$0xff]  }
   0x5   :  { %v6301_v17 = vpack.i.bf16 %v488_v14, %v486_v13  ;;  %v160_v18 = vsel %vm157_vm1, %v158_v6, %v159_v8  ;;  %v162_v19 = vsel %vm157_vm1, %v159_v8, %v161_v9  ;;  %v490_v20 = vsel %vm483_vm0, %v487_v5, %v489_v11  ;;  %6029 = vmatprep.subr.bf16.mxu0 %v7531_v49 }
   0x6   :  { %v6291_v21 = vpack.i.bf16 %v162_v19, %v160_v18  ;;  %v492_v22 = vsel %vm483_vm0, %v489_v11, %v491_v15  ;;  %v164_v23 = vsel %vm157_vm1, %v161_v9, %v163_v12  ;;  %v166_v24 = vsel %vm157_vm1, %v163_v12, %v165_v16  ;;  %6030 = vmatpush3.bf16.msra.mxu0 %v7531_v49  ;;  %v7534_v18 = vld [vmem:[%s12596_s1 + $0x20] sm:$0xff]  }
   0x7   :  { %6302 = vrot.lane.b32.xlu1 %v6301_v17, %s7664_s11  ;;  %v6306_v25 = vpack.i.bf16 %v492_v22, %v490_v20  ;;  %v6296_v26 = vpack.i.bf16 %v166_v24, %v164_v23  ;;  %v813_v27 = vrot.slane %v7723_v2, 3  ;;  %v815_v28 = vrot.slane %v31_v7, 3  ;;  %6031 = vmatprep.subr.bf16.mxu0 %v7532_v59  ;;  %v7841_v17 = vld [vmem:[%s12595_s0 + $0x48] sm:$0xff] }
   0x8   :  { %6292 = vrot.lane.b32.xlu0 %v6291_v21, %s7665_s12  ;;  %v817_v29 = vrot.slane %v7737_v10, 3  ;;  %v810_v30 = vrot.slane %v7713_v0, 3  ;;  %v811_v31 = vrot.slane %v7718_v1, 3  ;;  %v1139_v32 = vrot.slane %v7723_v2, 4 }
   0x9   :  { %v1141_v33 = vrot.slane %v31_v7, 4  ;;  %v1143_v34 = vrot.slane %v7737_v10, 4  ;;  %v816_v36 = vsel %vm809_vm2, %v813_v27, %v815_v28  ;;  %v1136_v46 = vrot.slane %v7713_v0, 4  ;;  %v7533_v0 = vld [vmem:[%s12596_s1 + $0x28] sm:$0xff]  }
   0xa   :  { %v818_v37 = vsel %vm809_vm2, %v815_v28, %v817_v29  ;;  %v812_v38 = vsel %vm809_vm2, %v810_v30, %v811_v31  ;;  %v814_v39 = vsel %vm809_vm2, %v811_v31, %v813_v27  ;;  %v1137_v47 = vrot.slane %v7718_v1, 4  ;;  %6032 = vmatpush3.bf16.msra.mxu0 %v7532_v59  ;;  %v7869_v27 = vld [vmem:[%s12595_s0 + $0x40] sm:$0xff] }
   0xb   :  { %6307 = vrot.lane.b32.xlu1 %v6306_v25, %s7664_s11  ;;  %v6316_v42 = vpack.i.bf16 %v818_v37, %v816_v36  ;;  %v6311_v43 = vpack.i.bf16 %v814_v39, %v812_v38  ;;  %v1142_v44 = vsel %vm1135_vm3, %v1139_v32, %v1141_v33  ;;  %v1144_v45 = vsel %vm1135_vm3, %v1141_v33, %v1143_v34  ;;  %v7859_v25 = vld [vmem:[%s12595_s0 + $0x50] sm:$0xff] }
   0xc   :  { %6297 = vrot.lane.b32.xlu0 %v6296_v26, %s7665_s12  ;;  %v169_v48 = vrot.slane %v7764_v35, 1  ;;  %v171_v50 = vrot.slane %v7775_v40, 1  ;;  %v167_v51 = vrot.slane %v7780_v41, 1  ;;  %v1138_v52 = vsel %vm1135_vm3, %v1136_v46, %v1137_v47  ;;  %6033 = vmatprep.subr.bf16.mxu0 %v7533_v0  ;;  %v7864_v26 = vld [vmem:[%s12595_s0 + $0x58] sm:$0xff] }
   0xd   :  { %v1140_v53 = vsel %vm1135_vm3, %v1137_v47, %v1139_v32  ;;  %v7799_v55 = vrot.slane %v12603_v54, 1  ;;  %v6326_v56 = vpack.i.bf16 %v1144_v45, %v1142_v44  ;;  %v495_v58 = vrot.slane %v7764_v35, 2 }
   0xe   :  { %v6321_v57 = vpack.i.bf16 %v1140_v53, %v1138_v52  ;;  %v172_v60 = vsel %vm157_vm1, %v169_v48, %v171_v50  ;;  %v497_v62 = vrot.slane %v7775_v40, 2  ;;  %v7812_v63 = vrot.slane %v12603_v54, 2  ;;  %6034 = vmatpush3.bf16.msra.mxu0 %v7533_v0 }
   0xf   :  { %12650 = vst [vmem:[#allocation5_spill] sm:$0xff] %v7799_v55  ;;  %6317 = vrot.lane.b32.xlu1 %v6316_v42, %s7667_s21  ;;  %v174_v61 = vsel %vm157_vm1, %v171_v50, %v7799_v55  ;;  %v168_v1 = vsel %vm157_vm1, %v165_v16, %v167_v51  ;;  %v170_v2 = vsel %vm157_vm1, %v167_v51, %v169_v48  ;;  %v493_v3 = vrot.slane %v7780_v41, 2  ;;  %v7537_v50 = vld [vmem:[%s12596_s1 + $0x8] sm:$0xff]  }
  0x10   :  { %6312 = vrot.lane.b32.xlu0 %v6311_v43, %s7667_s21  ;;  %12651 = vst [vmem:[#allocation6_spill] sm:$0xff] %v7812_v63  ;;  %v6336_v4 = vpack.i.bf16 %v174_v61, %v172_v60  ;;  %v821_v5 = vrot.slane %v7764_v35, 3  ;;  %v823_v6 = vrot.slane %v7775_v40, 3  ;;  %v6331_v7 = vpack.i.bf16 %v170_v2, %v168_v1  ;;  %6035 = vmatprep.subr.bf16.mxu0 %v7534_v18  ;;  %v7536_v43 = vld [vmem:[%s12596_s1 + $0x10] sm:$0xff]  }
  0x11   :  { %v498_v8 = vsel %vm483_vm0, %v495_v58, %v497_v62  ;;  %v500_v9 = vsel %vm483_vm0, %v497_v62, %v7812_v63  ;;  %v7830_v11 = vrot.slane %v12603_v54, 3  ;;  %v494_v12 = vsel %vm483_vm0, %v491_v15, %v493_v3  ;;  %v7538_v62 = vld [vmem:[%s12596_s1] sm:$0xff]  }
  0x12   :  { %v496_v13 = vsel %vm483_vm0, %v493_v3, %v495_v58  ;;  %v819_v14 = vrot.slane %v7780_v41, 3  ;;  %v1147_v16 = vrot.slane %v7764_v35, 4  ;;  %v1149_v19 = vrot.slane %v7775_v40, 4  ;;  %v7535_v35 = vld [vmem:[%s12596_s1 + $0x18] sm:$0xff]   ;;  %6036 = vmatpush3.bf16.msra.mxu0 %v7534_v18  ;;  %v7929_v3 = vld [vmem:[%s12595_s0 + $0x68] sm:$0xff] }
  0x13   :  { %6327 = vrot.lane.b32.xlu1 %v6326_v56, %s7668_s26  ;;  %12652 = vst [vmem:[#allocation7_spill] sm:$0xff] %v7830_v11  ;;  %v7848_v20 = vrot.slane %v12603_v54, 4  ;;  %v6346_v15 = vpack.i.bf16 %v500_v9, %v498_v8  ;;  %v824_v21 = vsel %vm809_vm2, %v821_v5, %v823_v6  ;;  %v826_v22 = vsel %vm809_vm2, %v823_v6, %v7830_v11  ;;  %v7946_v9 = vld [vmem:[%s12595_s0 + $0x78] sm:$0xff] }
  0x14   :  { %6322 = vrot.lane.b32.xlu0 %v6321_v57, %s7668_s26  ;;  %v6341_v23 = vpack.i.bf16 %v496_v13, %v494_v12  ;;  %v1145_v24 = vrot.slane %v7780_v41, 4  ;;  %v820_v28 = vsel %vm809_vm2, %v817_v29, %v819_v14  ;;  %v822_v30 = vsel %vm809_vm2, %v819_v14, %v821_v5  ;;  %6037 = vmatprep.subr.bf16.mxu0 %v7535_v35 }
  0x15   :  { %12653 = vst [vmem:[#allocation8_spill] sm:$0xff] %v7848_v20  ;;  %v6356_v31 = vpack.i.bf16 %v826_v22, %v824_v21  ;;  %v1150_v32 = vsel %vm1135_vm3, %v1147_v16, %v1149_v19  ;;  %v177_v33 = vrot.slane %v7841_v17, 1  ;;  %v1152_v36 = vsel %vm1135_vm3, %v1149_v19, %v7848_v20 }
  0x16   :  { %v179_v37 = vrot.slane %v7859_v25, 1  ;;  %v181_v29 = vrot.slane %v7864_v26, 1  ;;  %v176_v38 = vrot.slane %v7869_v27, 1  ;;  %v6351_v39 = vpack.i.bf16 %v822_v30, %v820_v28  ;;  %6038 = vmatpush3.bf16.msra.mxu0 %v7535_v35 }
  0x17   :  { %6337 = vrot.lane.b32.xlu1 %v6336_v4, %s7665_s12  ;;  %v1146_v40 = vsel %vm1135_vm3, %v1143_v34, %v1145_v24  ;;  %v1148_v41 = vsel %vm1135_vm3, %v1145_v24, %v1147_v16  ;;  %v6366_v42 = vpack.i.bf16 %v1152_v36, %v1150_v32  ;;  %v503_v46 = vrot.slane %v7841_v17, 2  ;;  %6039 = vmatprep.subr.bf16.mxu0 %v7536_v43  ;;  %v7934_v4 = vld [vmem:[%s12595_s0 + $0x70] sm:$0xff]  ;;  %v7954_v16 = vld [vmem:[%s12595_s0 + $0x60] sm:$0xff] }
  0x18   :  { %6332 = vrot.lane.b32.xlu0 %v6331_v7, %s7665_s12  ;;  %v6361_v44 = vpack.i.bf16 %v1148_v41, %v1146_v40  ;;  %v180_v45 = vsel %vm157_vm1, %v177_v33, %v179_v37  ;;  %v505_v10 = vrot.slane %v7859_v25, 2  ;;  %v182_v34 = vsel %vm157_vm1, %v179_v37, %v181_v29 }
  0x19   :  { %v178_v47 = vsel %vm157_vm1, %v176_v38, %v177_v33  ;;  %v507_v48 = vrot.slane %v7864_v26, 2  ;;  %v502_v49 = vrot.slane %v7869_v27, 2  ;;  %v6376_v51 = vpack.i.bf16 %v182_v34, %v180_v45 }
  0x1a   :  { %v6371_v52 = vpack.i.bf16 %v178_v47, %v7799_v55  ;;  %v829_v53 = vrot.slane %v7841_v17, 3  ;;  %v831_v56 = vrot.slane %v7859_v25, 3  ;;  %v506_v57 = vsel %vm483_vm0, %v503_v46, %v505_v10  ;;  %6040 = vmatpush3.bf16.msra.mxu0 %v7536_v43 }
  0x1b   :  { %6347 = vrot.lane.b32.xlu1 %v6346_v15, %s7664_s11  ;;  %v508_v58 = vsel %vm483_vm0, %v505_v10, %v507_v48  ;;  %v504_v59 = vsel %vm483_vm0, %v502_v49, %v503_v46  ;;  %v833_v60 = vrot.slane %v7864_v26, 3  ;;  %v828_v61 = vrot.slane %v7869_v27, 3  ;;  %6041 = vmatprep.subr.bf16.mxu0 %v7537_v50 }
  0x1c   :  { %6342 = vrot.lane.b32.xlu0 %v6341_v23, %s7664_s11  ;;  %v6386_v0 = vpack.i.bf16 %v508_v58, %v506_v57  ;;  %v6381_v1 = vpack.i.bf16 %v504_v59, %v7812_v63  ;;  %v832_v2 = vsel %vm809_vm2, %v829_v53, %v831_v56  ;;  %v1155_v6 = vrot.slane %v7841_v17, 4 }
  0x1d   :  { %v834_v5 = vsel %vm809_vm2, %v831_v56, %v833_v60  ;;  %v1157_v7 = vrot.slane %v7859_v25, 4  ;;  %v1159_v8 = vrot.slane %v7864_v26, 4  ;;  %v830_v12 = vsel %vm809_vm2, %v828_v61, %v829_v53 }
  0x1e   :  { %v1154_v13 = vrot.slane %v7869_v27, 4  ;;  %6042 = vmatpush3.bf16.msra.mxu0 %v7537_v50  ;;  %v185_v14 = vrot.slane %v7929_v3, 1  ;;  %v6396_v17 = vpack.i.bf16 %v834_v5, %v832_v2  ;;  %v187_v18 = vrot.slane %v7934_v4, 1 }
  0x1f   :  { %6357 = vrot.lane.b32.xlu1 %v6356_v31, %s7667_s21  ;;  %6043 = vmatprep.subr.bf16.mxu0 %v7538_v62  ;;  %v189_v19 = vrot.slane %v7946_v9, 1  ;;  %v6391_v15 = vpack.i.bf16 %v830_v12, %v7830_v11  ;;  %v1158_v21 = vsel %vm1135_vm3, %v1155_v6, %v1157_v7  ;;  %v1160_v22 = vsel %vm1135_vm3, %v1157_v7, %v1159_v8 }
  0x20   :  { %6352 = vrot.lane.b32.xlu0 %v6351_v39, %s7667_s21  ;;  %v1156_v23 = vsel %vm1135_vm3, %v1154_v13, %v1155_v6  ;;  %v183_v24 = vrot.slane %v7954_v16, 1  ;;  %v511_v25 = vrot.slane %v7929_v3, 2  ;;  %v513_v27 = vrot.slane %v7934_v4, 2 }
  0x22   :  { %6044 = vmatpush3.bf16.msra.mxu0 %v7538_v62 }
  0x23   :  { %6367 = vrot.lane.b32.xlu1 %v6366_v42, %s7668_s26 }
  0x24   :  { %6362 = vrot.lane.b32.xlu0 %v6361_v44, %s7668_s26 }
  0x27   :  { %6377 = vrot.lane.b32.xlu1 %v6376_v51, %s7665_s12 }
  0x28   :  { %6372 = vrot.lane.b32.xlu0 %v6371_v52, %s7665_s12 }
  0x2b   :  { %6387 = vrot.lane.b32.xlu1 %v6386_v0, %s7664_s11 }
  0x2c   :  { %6382 = vrot.lane.b32.xlu0 %v6381_v1, %s7664_s11 }
  0x2d   :  { %12 = vsyncpa [#allocation3], 0  ;;  %v6406_v28 = vpack.i.bf16 %v1160_v22, %v1158_v21  ;;  %v188_v30 = vsel %vm157_vm1, %v185_v14, %v187_v18  ;;  %v190_v31 = vsel %vm157_vm1, %v187_v18, %v189_v19  ;;  %v515_v32 = vrot.slane %v7946_v9, 2  ;;  %v8008_v52 = vld [vmem:[%s12595_s0 + $0x88] sm:$0xff]  ;;  %v8013_v53 = vld [vmem:[%s12595_s0 + $0x90] sm:$0xff] }
  0x2e   :  { %v6401_v33 = vpack.i.bf16 %v1156_v23, %v7848_v20  ;;  %v184_v35 = vsel %vm157_vm1, %v181_v29, %v183_v24  ;;  %v186_v36 = vsel %vm157_vm1, %v183_v24, %v185_v14  ;;  %v509_v37 = vrot.slane %v7954_v16, 2  ;;  %v8019_v57 = vld [vmem:[%s12595_s0 + $0x98] sm:$0xff]  ;;  %v8028_v61 = vld [vmem:[%s12595_s0 + $0x80] sm:$0xff] }
  0x2f   :  { %6397 = vrot.lane.b32.xlu1 %v6396_v17, %s7667_s21  ;;  %v6416_v38 = vpack.i.bf16 %v190_v31, %v188_v30  ;;  %v514_v39 = vsel %vm483_vm0, %v511_v25, %v513_v27  ;;  %v516_v40 = vsel %vm483_vm0, %v513_v27, %v515_v32  ;;  %v837_v41 = vrot.slane %v7929_v3, 3 }
  0x30   :  { %6392 = vrot.lane.b32.xlu0 %v6391_v15, %s7667_s21  ;;  %v839_v42 = vrot.slane %v7934_v4, 3  ;;  %v841_v43 = vrot.slane %v7946_v9, 3  ;;  %v6411_v29 = vpack.i.bf16 %v186_v36, %v184_v35  ;;  %v510_v44 = vsel %vm483_vm0, %v507_v48, %v509_v37  ;;  %v8076_v35 = vld [vmem:[%s12595_s0 + $0xb0] sm:$0xff] }
  0x31   :  { %v512_v45 = vsel %vm483_vm0, %v509_v37, %v511_v25  ;;  %v835_v46 = vrot.slane %v7954_v16, 3  ;;  %v6426_v10 = vpack.i.bf16 %v516_v40, %v514_v39  ;;  %v1163_v34 = vrot.slane %v7929_v3, 4  ;;  %v8094_v40 = vld [vmem:[%s12595_s0 + $0xa0] sm:$0xff] }
  0x32   :  { %v1165_v47 = vrot.slane %v7934_v4, 4  ;;  %v840_v49 = vsel %vm809_vm2, %v837_v41, %v839_v42  ;;  %v842_v50 = vsel %vm809_vm2, %v839_v42, %v841_v43  ;;  %v1167_v51 = vrot.slane %v7946_v9, 4 }
  0x33   :  { %6407 = vrot.lane.b32.xlu1 %v6406_v28, %s7668_s26  ;;  %v1161_v48 = vrot.slane %v7954_v16, 4  ;;  %v6421_v56 = vpack.i.bf16 %v512_v45, %v510_v44  ;;  %v836_v58 = vsel %vm809_vm2, %v833_v60, %v835_v46  ;;  %v838_v59 = vsel %vm809_vm2, %v835_v46, %v837_v41 }
  0x34   :  { %6402 = vrot.lane.b32.xlu0 %v6401_v33, %s7668_s26  ;;  %v6436_v62 = vpack.i.bf16 %v842_v50, %v840_v49  ;;  %v1166_v0 = vsel %vm1135_vm3, %v1163_v34, %v1165_v47  ;;  %v193_v1 = vrot.slane %v8008_v52, 1  ;;  %v195_v2 = vrot.slane %v8013_v53, 1  ;;  %v8071_v33 = vld [vmem:[%s12595_s0 + $0xa8] sm:$0xff] }
  0x35   :  { %v1168_v60 = vsel %vm1135_vm3, %v1165_v47, %v1167_v51  ;;  %v1162_v3 = vsel %vm1135_vm3, %v1159_v8, %v1161_v48  ;;  %v1164_v4 = vsel %vm1135_vm3, %v1161_v48, %v1163_v34  ;;  %v197_v5 = vrot.slane %v8019_v57, 1 }
  0x36   :  { %v6431_v6 = vpack.i.bf16 %v838_v59, %v836_v58  ;;  %v192_v7 = vrot.slane %v8028_v61, 1  ;;  %v6446_v12 = vpack.i.bf16 %v1168_v60, %v1166_v0  ;;  %v6441_v13 = vpack.i.bf16 %v1164_v4, %v1162_v3 }
  0x37   :  { %6417 = vrot.lane.b32.xlu1 %v6416_v38, %s7665_s12  ;;  %v196_v14 = vsel %vm157_vm1, %v193_v1, %v195_v2  ;;  %v191_v26 = vsel %vm157_vm1, %v189_v19, %v7799_v55  ;;  %v198_v8 = vsel %vm157_vm1, %v195_v2, %v197_v5  ;;  %v519_v16 = vrot.slane %v8008_v52, 2 }
  0x38   :  { %6412 = vrot.lane.b32.xlu0 %v6411_v29, %s7665_s12  ;;  %v521_v17 = vrot.slane %v8013_v53, 2  ;;  %v523_v18 = vrot.slane %v8019_v57, 2  ;;  %v194_v15 = vsel %vm157_vm1, %v192_v7, %v193_v1  ;;  %v518_v21 = vrot.slane %v8028_v61, 2 }
  0x39   :  { %v845_v22 = vrot.slane %v8008_v52, 3  ;;  %v847_v19 = vrot.slane %v8013_v53, 3  ;;  %v849_v23 = vrot.slane %v8019_v57, 3  ;;  %v844_v24 = vrot.slane %v8028_v61, 3 }
  0x3a   :  { %v517_v25 = vsel %vm483_vm0, %v515_v32, %v7812_v63  ;;  %v6456_v27 = vpack.i.bf16 %v198_v8, %v196_v14  ;;  %v6451_v28 = vpack.i.bf16 %v194_v15, %v191_v26  ;;  %v522_v30 = vsel %vm483_vm0, %v519_v16, %v521_v17  ;;  %v8081_v32 = vld [vmem:[%s12595_s0 + $0xb8] sm:$0xff]  ;;  %v52_v15 = vld [vmem:[%s12595_s0 + $0xc0] sm:$0xff] }
  0x3b   :  { %6427 = vrot.lane.b32.xlu1 %v6426_v10, %s7664_s11  ;;  %v524_v31 = vsel %vm483_vm0, %v521_v17, %v523_v18  ;;  %v520_v36 = vsel %vm483_vm0, %v518_v21, %v519_v16  ;;  %v848_v37 = vsel %vm809_vm2, %v845_v22, %v847_v19  ;;  %v843_v38 = vsel %vm809_vm2, %v841_v43, %v7830_v11  ;;  %v8157_v21 = vld [vmem:[%s12595_s0 + $0xc8] sm:$0xff] }
  0x3c   :  { %6422 = vrot.lane.b32.xlu0 %v6421_v56, %s7664_s11  ;;  %v1171_v39 = vrot.slane %v8008_v52, 4  ;;  %v850_v41 = vsel %vm809_vm2, %v847_v19, %v849_v23  ;;  %v846_v42 = vsel %vm809_vm2, %v844_v24, %v845_v22  ;;  %v1173_v29 = vrot.slane %v8013_v53, 4 }
  0x3d   :  { %v1175_v44 = vrot.slane %v8019_v57, 4  ;;  %v1170_v45 = vrot.slane %v8028_v61, 4  ;;  %v201_v43 = vrot.slane %v8071_v33, 1  ;;  %v203_v46 = vrot.slane %v8076_v35, 1  ;;  %v8230_v57 = vld [vmem:[%s12595_s0 + $0xd0] sm:$0xff] }
  0x3e   :  { %v205_v10 = vrot.slane %v8081_v32, 1  ;;  %v6466_v34 = vpack.i.bf16 %v524_v31, %v522_v30  ;;  %v199_v47 = vrot.slane %v8094_v40, 1  ;;  %v527_v49 = vrot.slane %v8071_v33, 2 }
  0x3f   :  { %6437 = vrot.lane.b32.xlu1 %v6436_v62, %s7667_s21  ;;  %v529_v50 = vrot.slane %v8076_v35, 2  ;;  %v6461_v48 = vpack.i.bf16 %v520_v36, %v517_v25  ;;  %v531_v52 = vrot.slane %v8081_v32, 2  ;;  %v525_v53 = vrot.slane %v8094_v40, 2 }
  0x40   :  { %6432 = vrot.lane.b32.xlu0 %v6431_v6, %s7667_s21  ;;  %v6476_v56 = vpack.i.bf16 %v850_v41, %v848_v37  ;;  %v6471_v58 = vpack.i.bf16 %v846_v42, %v843_v38  ;;  %v1174_v59 = vsel %vm1135_vm3, %v1171_v39, %v1173_v29  ;;  %v1169_v61 = vsel %vm1135_vm3, %v1167_v51, %v7848_v20 }
  0x41   :  { %v1176_v62 = vsel %vm1135_vm3, %v1173_v29, %v1175_v44  ;;  %v1172_v0 = vsel %vm1135_vm3, %v1170_v45, %v1171_v39  ;;  %v204_v1 = vsel %vm157_vm1, %v201_v43, %v203_v46  ;;  %v206_v2 = vsel %vm157_vm1, %v203_v46, %v205_v10  ;;  %v8203_v46 = vld [vmem:[%s12595_s0 + $0xe0] sm:$0xff] }
  0x42   :  { %v200_v60 = vsel %vm157_vm1, %v197_v5, %v199_v47  ;;  %v202_v9 = vsel %vm157_vm1, %v199_v47, %v201_v43  ;;  %v8130_v51 = vsel %vm483_vm0, %v527_v49, %v529_v50  ;;  %v853_v3 = vrot.slane %v8071_v33, 3  ;;  %v8198_v43 = vld [vmem:[%s12595_s0 + $0xd8] sm:$0xff] }
  0x43   :  { %6447 = vrot.lane.b32.xlu1 %v6446_v12, %s7668_s26  ;;  %v8135_v4 = vsel %vm483_vm0, %v529_v50, %v531_v52  ;;  %v8138_v6 = vsel %vm483_vm0, %v523_v18, %v525_v53  ;;  %v8141_v7 = vsel %vm483_vm0, %v525_v53, %v527_v49  ;;  %v855_v5 = vrot.slane %v8076_v35, 3 }
  0x44   :  { %6442 = vrot.lane.b32.xlu0 %v6441_v13, %s7668_s26  ;;  %v857_v12 = vrot.slane %v8081_v32, 3  ;;  %v851_v13 = vrot.slane %v8094_v40, 3  ;;  %v6486_v14 = vpack.i.bf16 %v1176_v62, %v1174_v59  ;;  %v6481_v26 = vpack.i.bf16 %v1172_v0, %v1169_v61 }
  0x45   :  { %v6496_v8 = vpack.i.bf16 %v206_v2, %v204_v1  ;;  %v6491_v16 = vpack.i.bf16 %v202_v9, %v200_v60  ;;  %v6506_v17 = vpack.i.bf16 %v8135_v4, %v8130_v51  ;;  %v6501_v18 = vpack.i.bf16 %v8141_v7, %v8138_v6 }
  0x46   :  { %v8161_v22 = vsel %vm809_vm2, %v853_v3, %v855_v5  ;;  %v1179_v19 = vrot.slane %v8071_v33, 4  ;;  %v1181_v24 = vrot.slane %v8076_v35, 4  ;;  %v1183_v25 = vrot.slane %v8081_v32, 4 }
  0x47   :  { %6457 = vrot.lane.b32.xlu1 %v6456_v27, %s7665_s12  ;;  %v8167_v27 = vsel %vm809_vm2, %v855_v5, %v857_v12  ;;  %v8175_v30 = vsel %vm809_vm2, %v851_v13, %v853_v3  ;;  %v1177_v31 = vrot.slane %v8094_v40, 4  ;;  %v534_v36 = vrot.slane %v52_v15, 2 }
  0x48   :  { %6452 = vrot.lane.b32.xlu0 %v6451_v28, %s7665_s12  ;;  %v8172_v28 = vsel %vm809_vm2, %v849_v23, %v851_v13  ;;  %v535_v33 = vrot.slane %v8157_v21, 2  ;;  %v208_v37 = vrot.slane %v52_v15, 1  ;;  %v209_v35 = vrot.slane %v8157_v21, 1 }
  0x49   :  { %v1186_v38 = vrot.slane %v52_v15, 4  ;;  %v1187_v39 = vrot.slane %v8157_v21, 4  ;;  %v860_v41 = vrot.slane %v52_v15, 3  ;;  %v861_v23 = vrot.slane %v8157_v21, 3  ;;  %v8301_v15 = vld [vmem:[%s12595_s0 + $0xf8] sm:$0xff] }
  0x4a   :  { %v6516_v42 = vpack.i.bf16 %v8167_v27, %v8161_v22  ;;  %v6511_v40 = vpack.i.bf16 %v8175_v30, %v8172_v28  ;;  %v8189_v29 = vsel %vm1135_vm3, %v1179_v19, %v1181_v24  ;;  %v8193_v45 = vsel %vm483_vm0, %v531_v52, %v7812_v63  ;;  %v8325_v27 = vld [vmem:[%s12595_s0 + $0x108] sm:$0xff] }
  0x4b   :  { %6467 = vrot.lane.b32.xlu1 %v6466_v34, %s7664_s11  ;;  %v8206_v34 = vsel %vm1135_vm3, %v1181_v24, %v1183_v25  ;;  %v8211_v47 = vsel %vm1135_vm3, %v1175_v44, %v1177_v31  ;;  %v8214_v49 = vsel %vm1135_vm3, %v1177_v31, %v1179_v19  ;;  %v8220_v50 = vsel %vm157_vm1, %v205_v10, %v7799_v55 }
  0x4c   :  { %6462 = vrot.lane.b32.xlu0 %v6461_v48, %s7664_s11  ;;  %v8225_v48 = vld [vmem:[%s12595_s0 + $0xe8] sm:$0xff]  ;;  %v8233_v44 = vsel %vm483_vm0, %v534_v36, %v535_v33  ;;  %v8236_v52 = vsel %vm157_vm1, %v208_v37, %v209_v35  ;;  %v8240_v32 = vsel %vm1135_vm3, %v1183_v25, %v7848_v20  ;;  %v8244_v10 = vsel %vm809_vm2, %v857_v12, %v7830_v11  ;;  %v8320_v25 = vld [vmem:[%s12595_s0 + $0x100] sm:$0xff] }
  0x4d   :  { %v8250_v53 = vsel %vm1135_vm3, %v1186_v38, %v1187_v39  ;;  %v215_v59 = vrot.slane %v8203_v46, 1  ;;  %v6526_v61 = vpack.i.bf16 %v8206_v34, %v8189_v29  ;;  %v6521_v62 = vpack.i.bf16 %v8214_v49, %v8211_v47 }
  0x4e   :  { %v217_v0 = vrot.slane %v8225_v48, 1  ;;  %v211_v1 = vrot.slane %v8230_v57, 1  ;;  %v539_v2 = vrot.slane %v8198_v43, 2  ;;  %v541_v60 = vrot.slane %v8203_v46, 2 }
  0x4f   :  { %6477 = vrot.lane.b32.xlu1 %v6476_v56, %s7667_s21  ;;  %v8255_v56 = vsel %vm809_vm2, %v860_v41, %v861_v23  ;;  %v543_v9 = vrot.slane %v8225_v48, 2  ;;  %v537_v51 = vrot.slane %v8230_v57, 2  ;;  %v6536_v3 = vpack.i.bf16 %v8233_v44, %v8193_v45 }
  0x50   :  { %6472 = vrot.lane.b32.xlu0 %v6471_v58, %s7667_s21  ;;  %v213_v58 = vrot.slane %v8198_v43, 1  ;;  %v6531_v4 = vpack.i.bf16 %v8236_v52, %v8220_v50  ;;  %v6546_v6 = vpack.i.bf16 %v8250_v53, %v8240_v32  ;;  %v6541_v7 = vpack.i.bf16 %v8255_v56, %v8244_v10 }
  0x51   :  { %v865_v12 = vrot.slane %v8198_v43, 3  ;;  %v867_v13 = vrot.slane %v8203_v46, 3  ;;  %v8309_v22 = vsel %vm483_vm0, %v541_v60, %v543_v9  ;;  %v8312_v19 = vsel %vm483_vm0, %v535_v33, %v537_v51  ;;  %v8334_v33 = vld [vmem:[%s12595_s0 + $0xf0] sm:$0xff] }
  0x52   :  { %v8280_v5 = vsel %vm157_vm1, %v213_v58, %v215_v59  ;;  %v8315_v24 = vsel %vm483_vm0, %v537_v51, %v539_v2  ;;  %v1191_v28 = vrot.slane %v8198_v43, 4  ;;  %v1193_v30 = vrot.slane %v8203_v46, 4 }
  0x53   :  { %6487 = vrot.lane.b32.xlu1 %v6486_v14, %s7668_s26  ;;  %v869_v14 = vrot.slane %v8225_v48, 3  ;;  %v1195_v31 = vrot.slane %v8225_v48, 4  ;;  %v1189_v36 = vrot.slane %v8230_v57, 4  ;;  %v221_v41 = vrot.slane %v8301_v15, 1 }
  0x54   :  { %6482 = vrot.lane.b32.xlu0 %v6481_v26, %s7668_s26  ;;  %v8289_v26 = vsel %vm157_vm1, %v215_v59, %v217_v0  ;;  %v224_v43 = vrot.slane %v8320_v25, 1  ;;  %v225_v46 = vrot.slane %v8325_v27, 1  ;;  %v219_v49 = vrot.slane %v8334_v33, 1 }
  0x55   :  { %v6556_v37 = vpack.i.bf16 %v8289_v26, %v8280_v5  ;;  %v8345_v38 = vsel %vm809_vm2, %v867_v13, %v869_v14  ;;  %v8380_v59 = vsel %vm1135_vm3, %v1189_v36, %v1191_v28  ;;  %v547_v21 = vrot.slane %v8301_v15, 2 }
  0x56   :  { %v551_v51 = vrot.slane %v8325_v27, 2  ;;  %v871_v54 = vrot.slane %v8334_v33, 3  ;;  %vm1461_vm4 = vcmask 130048   ;;  %vm1527_vm5 = vcmask 261120  }
  0x57   :  { %6497 = vrot.lane.b32.xlu1 %v6496_v8, %s7665_s12  ;;  %v8292_v8 = vsel %vm157_vm1, %v209_v35, %v211_v1  ;;  %v8340_v35 = vsel %vm809_vm2, %v865_v12, %v867_v13  ;;  %v1202_v13 = vrot.slane %v8320_v25, 4  ;;  %v8452_v45 = vsel %vm483_vm0, %v547_v21, %v7812_v63 }
  0x58   :  { %6492 = vrot.lane.b32.xlu0 %v6491_v16, %s7665_s12  ;;  %v8295_v16 = vsel %vm157_vm1, %v211_v1, %v213_v58  ;;  %v8377_v58 = vsel %vm1135_vm3, %v1187_v39, %v1189_v36  ;;  %v8396_v39 = vsel %vm157_vm1, %v224_v43, %v225_v46  ;;  %v876_v36 = vrot.slane %v8320_v25, 3  ;;  %v8439_v1 = vld [vmem:[%s12595_s0 + $0x128] sm:$0xff] }
  0x59   :  { %v6551_v34 = vpack.i.bf16 %v8295_v16, %v8292_v8  ;;  %v877_v43 = vrot.slane %v8325_v27, 3  ;;  %v8590_v8 = vld [vmem:[%s12595_s0 + $0x130] sm:$0xff]  ;;  %vm1593_vm6 = vcmask 392192   ;;  %vm1659_vm7 = vcmask 523264  }
  0x5a   :  { %vm1725_vm8 = vcmask 654336   ;;  %vm3147_vm10 = vcmask 785408   ;;  %vm4020_vm12 = vcmask 1041408   ;;  %vm5536_vm14 = vcmask 1041409  }
  0x5b   :  { %6507 = vrot.lane.b32.xlu1 %v6506_v17, %s7664_s11  ;;  %v863_v17 = vrot.slane %v8230_v57, 3  ;;  %v8372_v57 = vsel %vm1135_vm3, %v1193_v30, %v1195_v31  ;;  %vm8856_vm9 = vmpackc.low %vm1725_vm8, %vm1725_vm8  ;;  %vm5538_vm15 = vcmask 1042434  }
  0x5c   :  { %6502 = vrot.lane.b32.xlu0 %v6501_v18, %s7664_s11  ;;  %v8304_v18 = vsel %vm483_vm0, %v539_v2, %v541_v60  ;;  %v8389_v60 = vsel %vm157_vm1, %v221_v41, %v7799_v55  ;;  %v1203_v2 = vrot.slane %v8325_v27, 4  ;;  %v12657_v27 = vrot.slane %v8439_v1, 1  ;;  %vm10660_vm11 = vmpackc.low %vm3147_vm10, %vm3147_vm10 }
  0x5d   :  { %v8352_v29 = vsel %vm809_vm2, %v861_v23, %v863_v17  ;;  %v6566_v47 = vpack.i.bf16 %v8309_v22, %v8304_v18  ;;  %v8367_v23 = vsel %vm1135_vm3, %v1191_v28, %v1193_v30  ;;  %v873_v28 = vrot.slane %v8301_v15, 3 }
  0x5e   :  { %v8412_v30 = vsel %vm157_vm1, %v219_v49, %v221_v41 }
  0x5f   :  { %6517 = vrot.lane.b32.xlu1 %v6516_v42, %s7667_s21  ;;  %v8355_v42 = vsel %vm809_vm2, %v863_v17, %v865_v12  ;;  %v545_v12 = vrot.slane %v8334_v33, 2  ;;  %v8420_v17 = vld [vmem:[%s12595_s0 + $0x118] sm:$0xff]  ;;  %v8470_v50 = vsel %vm809_vm2, %v873_v28, %v7830_v11 }
  0x60   :  { %6512 = vrot.lane.b32.xlu0 %v6511_v40, %s7667_s21  ;;  %v8444_v40 = vld [vmem:[%s12595_s0 + $0x110] sm:$0xff]  ;;  %v229_v52 = vrot.slane %v8420_v17, 1  ;;  %v555_v41 = vrot.slane %v8420_v17, 2  ;;  %v1207_v10 = vrot.slane %v8420_v17, 4 }
  0x63   :  { %6527 = vrot.lane.b32.xlu1 %v6526_v61, %s7668_s26  ;;  %v550_v61 = vrot.slane %v8320_v25, 2  ;;  %v8466_v25 = vsel %vm483_vm0, %v545_v12, %v547_v21  ;;  %v227_v21 = vrot.slane %v8444_v40, 1 }
  0x64   :  { %6522 = vrot.lane.b32.xlu0 %v6521_v62, %s7668_s26  ;;  %v8408_v62 = vsel %vm157_vm1, %v217_v0, %v219_v49  ;;  %v8425_v0 = vld [vmem:[%s12595_s0 + $0x120] sm:$0xff]  ;;  %v1199_v49 = vrot.slane %v8301_v15, 4  ;;  %v1197_v15 = vrot.slane %v8334_v33, 4  ;;  %v12605_v33 = vrot.slane %v8439_v1, 1 }
  0x65   :  { %v8457_v44 = vsel %vm483_vm0, %v550_v61, %v551_v51  ;;  %v8477_v61 = vsel %vm809_vm2, %v876_v36, %v877_v43  ;;  %v557_v53 = vrot.slane %v8425_v0, 2 }
  0x66   :  { %v8495_v36 = vsel %vm1135_vm3, %v1199_v49, %v7848_v20  ;;  %v8513_v32 = vsel %vm1135_vm3, %v1197_v15, %v1199_v49  ;;  %v553_v49 = vrot.slane %v8444_v40, 2 }
  0x67   :  { %6537 = vrot.lane.b32.xlu1 %v6536_v3, %s7664_s11  ;;  %v8462_v3 = vsel %vm483_vm0, %v543_v9, %v545_v12  ;;  %v8482_v9 = vsel %vm809_vm2, %v869_v14, %v871_v54  ;;  %v8491_v12 = vsel %vm809_vm2, %v871_v54, %v873_v28  ;;  %v8500_v14 = vsel %vm1135_vm3, %v1202_v13, %v1203_v2 }
  0x68   :  { %6532 = vrot.lane.b32.xlu0 %v6531_v4, %s7665_s12  ;;  %v231_v4 = vrot.slane %v8425_v0, 1  ;;  %v8510_v54 = vsel %vm1135_vm3, %v1195_v31, %v1197_v15  ;;  %v8537_v31 = vsel %vm157_vm1, %v227_v21, %v229_v52  ;;  %v8557_v5 = vsel %vm483_vm0, %v555_v41, %v557_v53 }
  0x69   :  { %v8595_v16 = vsel %vm483_vm0, %v551_v51, %v553_v49  ;;  %v8598_v15 = vsel %vm483_vm0, %v553_v49, %v555_v41  ;;  %v1209_v28 = vrot.slane %v8425_v0, 4  ;;  %v1205_v51 = vrot.slane %v8444_v40, 4 }
  0x6a   :  { %v8524_v48 = vsel %vm157_vm1, %v229_v52, %v231_v4  ;;  %v8529_v56 = vsel %vm157_vm1, %v231_v4, %v12605_v33  ;;  %v8569_v52 = vld [vmem:[%s12595_s0 + $0x138] sm:$0xff]  ;;  %v8585_v4 = vld [vmem:[%s12595_s0 + $0x148] sm:$0xff] }
  0x6b   :  { %6547 = vrot.lane.b32.xlu1 %v6546_v6, %s7668_s26  ;;  %v12604_v6 = vrot.slane %v8439_v1, 2  ;;  %v237_v33 = vrot.slane %v8569_v52, 1  ;;  %v12607_v22 = vrot.slane %v8585_v4, 1  ;;  %v8636_v49 = vsel %vm1135_vm3, %v1207_v10, %v1209_v28 }
  0x6c   :  { %6542 = vrot.lane.b32.xlu0 %v6541_v7, %s7667_s21  ;;  %v8534_v7 = vsel %vm157_vm1, %v225_v46, %v227_v21  ;;  %v883_v21 = vrot.slane %v8425_v0, 3  ;;  %v8580_v46 = vld [vmem:[%s12595_s0 + $0x140] sm:$0xff] }
  0x6d   :  { %v8562_v26 = vsel %vm483_vm0, %v557_v53, %v12604_v6  ;;  %v879_v53 = vrot.slane %v8444_v40, 3  ;;  %v12608_v6 = vrot.slane %v8439_v1, 4  ;;  %v240_v18 = vrot.slane %v8580_v46, 1 }
  0x6e   :  { %v8660_v13 = vsel %vm157_vm1, %v237_v33, %v7799_v55 }
  0x6f   :  { %6557 = vrot.lane.b32.xlu1 %v6556_v37, %s7665_s12  ;;  %v881_v37 = vrot.slane %v8420_v17, 3  ;;  %v12654_v17 = vpack.i.bf16 %v8315_v24, %v8312_v19  ;;  %v8629_v41 = vsel %vm809_vm2, %v877_v43, %v879_v53  ;;  %v563_v24 = vrot.slane %v8569_v52, 2 }
  0x70   :  { %6552 = vrot.lane.b32.xlu0 %v6551_v34, %s7665_s12  ;;  %v12606_v34 = vrot.slane %v8439_v1, 3  ;;  %v8648_v43 = vsel %vm1135_vm3, %v1209_v28, %v12608_v6 }
  0x71   :  { %v8616_v0 = vsel %vm809_vm2, %v881_v37, %v883_v21  ;;  %v8632_v19 = vsel %vm809_vm2, %v879_v53, %v881_v37  ;;  %v8653_v37 = vsel %vm1135_vm3, %v1203_v2, %v1205_v51  ;;  %v8656_v53 = vsel %vm1135_vm3, %v1205_v51, %v1207_v10 }
  0x72   :  { %v8624_v40 = vsel %vm809_vm2, %v883_v21, %v12606_v34  ;;  %v561_v21 = vrot.slane %v8590_v8, 2  ;;  %v12655_v34 = vpack.i.bf16 %v8345_v38, %v8340_v35  ;;  %v12656_v35 = vpack.i.bf16 %v8355_v42, %v8352_v29 }
  0x73   :  { %6567 = vrot.lane.b32.xlu1 %v6566_v47, %s7664_s11  ;;  %v235_v47 = vrot.slane %v8590_v8, 1  ;;  %v8669_v38 = vsel %vm157_vm1, %v240_v18, %v12607_v22  ;;  %v889_v10 = vrot.slane %v8569_v52, 3  ;;  %v8684_v29 = vsel %vm483_vm0, %v563_v24, %v7812_v63 }
  0x74   :  { %6562 = vrot.lane.b32.xlu0 %v12654_v17, %s7664_s11  ;;  %v566_v17 = vrot.slane %v8580_v46, 2  ;;  %12660 = vst [vmem:[#allocation11_spill] sm:$0xff] %v8684_v29  ;;  %v892_v42 = vrot.slane %v8580_v46, 3  ;;  %v887_v18 = vrot.slane %v8590_v8, 3  ;;  %v8700_v6 = vsel %vm483_vm0, %v561_v21, %v563_v24 }
  0x75   :  { %v8674_v2 = vsel %vm157_vm1, %v12657_v27, %v235_v47  ;;  %v8677_v28 = vsel %vm157_vm1, %v235_v47, %v237_v33  ;;  %v12661_v27 = vrot.slane %v8585_v4, 2  ;;  %v12663_v47 = vrot.slane %v8439_v1, 2  ;;  %12665 = vst [vmem:[#allocation14_spill] sm:$0xff] %v8700_v6 }
  0x76   :  { %12658 = vst [vmem:[#allocation9_spill] sm:$0xff] %v8674_v2  ;;  %12659 = vst [vmem:[#allocation10_spill] sm:$0xff] %v8677_v28  ;;  %v12617_v63 = vrot.slane %v8569_v52, 4  ;;  %v12666_v51 = vpack.i.bf16 %v8372_v57, %v8367_v23  ;;  %v12669_v57 = vrot.slane %v8439_v1, 3  ;;  %v12673_v28 = vpack.i.bf16 %v8466_v25, %v8462_v3 }
  0x77   :  { %6577 = vrot.lane.b32.xlu1 %v12655_v34, %s7667_s21  ;;  %v8692_v33 = vsel %vm483_vm0, %v566_v17, %v12661_v27  ;;  %v8697_v22 = vsel %vm483_vm0, %v12663_v47, %v561_v21  ;;  %v12667_v21 = vpack.i.bf16 %v8380_v59, %v8377_v58  ;;  %v8727_v47 = vsel %vm809_vm2, %v889_v10, %v7830_v11  ;;  %v8746_v27 = vld [vmem:[%s12595_s0 + $0x150] sm:$0xff]  ;;  %v8751_v58 = vld [vmem:[%s12595_s0 + $0x158] sm:$0xff] }
  0x78   :  { %6572 = vrot.lane.b32.xlu0 %v12656_v35, %s7667_s21  ;;  %12662 = vst [vmem:[#allocation12_spill] sm:$0xff] %v8692_v33  ;;  %12664 = vst [vmem:[#allocation13_spill] sm:$0xff] %v8697_v22  ;;  %v12670_v22 = vpack.i.bf16 %v8396_v39, %v8389_v60  ;;  %v7578_v33 = vld [vmem:[%s12595_s0 + $0x10] sm:$0xff]  ;;  %v12677_v25 = vrot.slane %v8585_v4, 2 }
  0x79   :  { %v8680_v34 = vpop.permute.xlu1 %6302 }
  0x7a   :  { %v6293_v35 = vpop.permute.xlu0 %6292  ;;  %v6305_v60 = vunpack.i.h.bf16 %v8680_v34  ;;  %v6304_v39 = vunpack.i.l.bf16 %v8680_v34 }
  0x7b   :  { %6587 = vrot.lane.b32.xlu1 %v12666_v51, %s7668_s26  ;;  %v8741_v51 = vsel %vm809_vm2, %v12669_v57, %v887_v18  ;;  %v6295_v59 = vunpack.i.h.bf16 %v6293_v35  ;;  %v6294_v17 = vunpack.i.l.bf16 %v6293_v35  ;;  %v8760_v57 = vsel %vm1135_vm3, %v12617_v63, %v7848_v20 }
  0x7c   :  { %6582 = vrot.lane.b32.xlu0 %v12667_v21, %s7668_s26  ;;  %v12668_v21 = vrot.slane %v8585_v4, 3  ;;  %v1218_v35 = vrot.slane %v8580_v46, 4  ;;  %v569_v63 = vrot.slane %v8746_v27, 2  ;;  %v243_v20 = vrot.slane %v8746_v27, 1 }
  0x7d   :  { %v6308_v24 = vpop.permute.xlu1 %6307 }
  0x7e   :  { %v8736_v23 = vsel %vm809_vm2, %v892_v42, %v12668_v21  ;;  %v6298_v55 = vpop.permute.xlu0 %6297  ;;  %v8754_v42 = vsel %vm809_vm2, %v887_v18, %v889_v10  ;;  %v12671_v10 = vpack.i.bf16 %v8412_v30, %v8408_v62  ;;  %v1213_v18 = vrot.slane %v8590_v8, 4  ;;  %v7575_v62 = vld [vmem:[%s12595_s0 + $0x8] sm:$0xff]  ;;  %v7576_v8 = vld [vmem:[%s12595_s0] sm:$0xff] }
  0x7f   :  { %v6300_v21 = vunpack.i.h.bf16 %v6298_v55  ;;  %v6299_v11 = vunpack.i.l.bf16 %v6298_v55  ;;  %6597 = vrot.lane.b32.xlu1 %v12670_v22, %s7665_s12  ;;  %v1463_v30 = vsel %vm1461_vm4, %v7575_v62, %v6295_v59  ;;  %v6310_v55 = vunpack.i.h.bf16 %v6308_v24  ;;  %v7577_v22 = vld [vmem:[%s12595_s0 + $0x18] sm:$0xff] }
  0x80   :  { %6592 = vrot.lane.b32.xlu0 %v12671_v10, %s7665_s12  ;;  %v1462_v10 = vsel %vm1461_vm4, %v7576_v8, %v6294_v17  ;;  %v6309_v29 = vunpack.i.l.bf16 %v6308_v24  ;;  %v12672_v17 = vpack.i.bf16 %v8457_v44, %v8452_v45  ;;  %v1529_v44 = vsel %vm1527_vm5, %v1463_v30, %v6305_v60 }
  0x81   :  { %v6318_v46 = vpop.permute.xlu1 %6317  ;;  %v1465_v6 = vsel %vm1461_vm4, %v7577_v22, %v6300_v21  ;;  %v1464_v59 = vsel %vm1461_vm4, %v7578_v33, %v6299_v11  ;;  %v12674_v21 = vrot.slane %v8585_v4, 4  ;;  %v12675_v11 = vrot.slane %v8439_v1, 4 }
  0x82   :  { %v6313_v34 = vpop.permute.xlu0 %6312  ;;  %v6320_v62 = vunpack.i.h.bf16 %v6318_v46  ;;  %v6319_v2 = vunpack.i.l.bf16 %v6318_v46  ;;  %v1528_v45 = vsel %vm1527_vm5, %v1462_v10, %v6304_v39  ;;  %v1530_v1 = vsel %vm1527_vm5, %v1464_v59, %v6309_v29  ;;  %v8845_v59 = vld [vmem:[%s12595_s0 + $0x168] sm:$0xff] }
  0x83   :  { %6607 = vrot.lane.b32.xlu1 %v12672_v17, %s7664_s11  ;;  %v6315_v24 = vunpack.i.h.bf16 %v6313_v34  ;;  %v6314_v8 = vunpack.i.l.bf16 %v6313_v34  ;;  %v8807_v22 = vsel %vm1135_vm3, %v1218_v35, %v12674_v21  ;;  %v8812_v33 = vsel %vm1135_vm3, %v12675_v11, %v1213_v18 }
  0x84   :  { %6602 = vrot.lane.b32.xlu0 %v12673_v28, %s7664_s11  ;;  %v12676_v34 = vrot.slane %v8569_v52, 4  ;;  %v8824_v28 = vsel %vm483_vm0, %v12677_v25, %v569_v63  ;;  %v1531_v35 = vsel %vm1527_vm5, %v1465_v6, %v6310_v55  ;;  %v1596_v39 = vsel %vm1593_vm6, %v1530_v1, %v6319_v2 }
  0x85   :  { %v6328_v46 = vpop.permute.xlu1 %6327  ;;  %v1597_v60 = vsel %vm1593_vm6, %v1531_v35, %v6320_v62  ;;  %v12679_v6 = vpack.i.bf16 %v8491_v12, %v8482_v9  ;;  %v1594_v2 = vsel %vm1593_vm6, %v1528_v45, %v6314_v8  ;;  %v1595_v55 = vsel %vm1593_vm6, %v1529_v44, %v6315_v24  ;;  %v8868_v45 = vld [vmem:[%s12595_s0 + $0x178] sm:$0xff]  ;;  %v8873_v44 = vld [vmem:[%s12595_s0 + $0x160] sm:$0xff] }
  0x86   :  { %v8819_v3 = vsel %vm1135_vm3, %v1213_v18, %v12676_v34  ;;  %v6330_v17 = vunpack.i.h.bf16 %v6328_v46  ;;  %v6329_v21 = vunpack.i.l.bf16 %v6328_v46  ;;  %v6323_v11 = vpop.permute.xlu0 %6322  ;;  %v12678_v18 = vpack.i.bf16 %v8477_v61, %v8470_v50  ;;  %v8850_v50 = vld [vmem:[%s12595_s0 + $0x170] sm:$0xff] }
  0x87   :  { %v6325_v52 = vunpack.i.h.bf16 %v6323_v11  ;;  %v6324_v30 = vunpack.i.l.bf16 %v6323_v11  ;;  %v12682_v8 = vrot.slane %v8751_v58, 2  ;;  %v12683_v1 = vrot.slane %v8585_v4, 1 }
  0x88   :  { %6617 = vrot.lane.b32.xlu1 %v12678_v18, %s7667_s21  ;;  %v1662_v10 = vsel %vm1659_vm7, %v1596_v39, %v6329_v21  ;;  %v1663_v29 = vsel %vm1659_vm7, %v1597_v60, %v6330_v17  ;;  %6612 = vrot.lane.b32.xlu0 %v12679_v6, %s7667_s21  ;;  %v12625_v21 = vrot.slane %v8751_v58, 4  ;;  %v12687_v11 = vpack.i.bf16 %v8500_v14, %v8495_v36 }
  0x89   :  { %v6338_v61 = vpop.permute.xlu1 %6337  ;;  %v1660_v62 = vsel %vm1659_vm7, %v1594_v2, %v6324_v30  ;;  %v1661_v9 = vsel %vm1659_vm7, %v1595_v55, %v6325_v52  ;;  %v5605_v24 = vpack.c.bf16 %v1663_v29, %v1662_v10  ;;  %v8863_v46 = vsel %vm483_vm0, %v569_v63, %v12682_v8 }
  0x8a   :  { %v8875_v34 = vpop.permute.xlu0 %6332  ;;  %v5602_v25 = vpack.c.bf16 %v1661_v9, %v1660_v62  ;;  %v8880_v35 = vsel %vm157_vm1, %v12683_v1, %v243_v20  ;;  %v12685_v63 = vrot.slane %v8751_v58, 1  ;;  %v895_v39 = vrot.slane %v8746_v27, 3 }
  0x8b   :  { %12684 = vst [vmem:[#allocation15_spill] sm:$0xff] %v8880_v35  ;;  %v12626_v60 = vrot.slane %v8751_v58, 3  ;;  %v249_v52 = vrot.slane %v8845_v59, 1  ;;  %v251_v30 = vrot.slane %v8850_v50, 1  ;;  %v12624_v18 = vrot.slane %v8868_v45, 1 }
  0x8c   :  { %v8885_v17 = vsel %vm157_vm1, %v243_v20, %v12685_v63  ;;  %6627 = vrot.lane.b32.xlu1 %v12687_v11, %s7668_s26  ;;  %v12688_v20 = vpack.i.bf16 %v8513_v32, %v8510_v54  ;;  %6045 = vmatprep.mubr.msk.bf16.mxu0 %vm8856_vm9, %v5602_v25  ;;  %v247_v10 = vrot.slane %v8873_v44, 1  ;;  %v12689_v2 = vrot.slane %v8746_v27, 4 }
  0x8d   :  { %12686 = vst [vmem:[#allocation16_spill] sm:$0xff] %v8885_v17  ;;  %6046 = vmatmul.mubr.msk.bf16.vlgmr.msra.gmra.mxu0 %vm8856_vm9, %v5605_v24  ;;  %v6348_v29 = vpop.permute.xlu1 %6347  ;;  %v12690_v55 = vrot.slane %v8585_v4, 4  ;;  %v6340_v9 = vunpack.i.h.bf16 %v6338_v61  ;;  %v6339_v8 = vunpack.i.l.bf16 %v6338_v61  ;;  %v12692_v11 = vpack.i.bf16 %v8529_v56, %v8524_v48 }
  0x8e   :  { %6622 = vrot.lane.b32.xlu0 %v12688_v20, %s7668_s26  ;;  %v6343_v24 = vpop.permute.xlu0 %6342  ;;  %v12691_v1 = vmov %v12689_v2  ;;  %v12693_v20 = vrot.slane %v8585_v4, 3  ;;  %v8947_v27 = vsel %vm157_vm1, %v249_v52, %v251_v30  ;;  %v12694_v48 = vpack.i.bf16 %v8537_v31, %v8534_v7 }
  0x8f   :  { %v8921_v62 = vsel %vm1135_vm3, %v12690_v55, %v12689_v2  ;;  %v8930_v63 = vsel %vm1135_vm3, %v12691_v1, %v12625_v21  ;;  %v8944_v2 = vsel %vm809_vm2, %v895_v39, %v12626_v60  ;;  %v8957_v56 = vsel %vm157_vm1, %v251_v30, %v12624_v18  ;;  %v7579_v30 = vld [vmem:[%s12595_s0 + $0x38] sm:$0xff] }
  0x90   :  { %6637 = vrot.lane.b32.xlu1 %v12692_v11, %s7665_s12  ;;  %v8939_v61 = vsel %vm809_vm2, %v12693_v20, %v895_v39  ;;  %v12695_v4 = vrot.slane %v8751_v58, 1  ;;  %v8965_v1 = vsel %vm157_vm1, %v247_v10, %v249_v52  ;;  %v577_v11 = vrot.slane %v8850_v50, 2  ;;  %v7580_v52 = vld [vmem:[%s12595_s0 + $0x30] sm:$0xff] }
  0x91   :  { %v6335_v20 = vunpack.i.h.bf16 %v8875_v34  ;;  %v6334_v7 = vunpack.i.l.bf16 %v8875_v34  ;;  %v6350_v31 = vunpack.i.h.bf16 %v6348_v29  ;;  %v6358_v25 = vpop.permute.xlu1 %6357  ;;  %v1469_v6 = vsel %vm1461_vm4, %v7579_v30, %v6340_v9 }
  0x92   :  { %6632 = vrot.lane.b32.xlu0 %v12694_v48, %s7665_s12  ;;  %v8962_v39 = vsel %vm157_vm1, %v12695_v4, %v247_v10  ;;  %v6349_v48 = vunpack.i.l.bf16 %v6348_v29  ;;  %v1468_v10 = vsel %vm1461_vm4, %v7580_v52, %v6339_v8  ;;  %v6345_v4 = vunpack.i.h.bf16 %v6343_v24  ;;  %v6353_v54 = vpop.permute.xlu0 %6352  ;;  %v7582_v52 = vld [vmem:[%s12595_s0 + $0x20] sm:$0xff] }
  0x93   :  { %12696 = vst [vmem:[#allocation17_spill] sm:$0xff] %v8962_v39  ;;  %v6344_v32 = vunpack.i.l.bf16 %v6343_v24  ;;  %v6360_v18 = vunpack.i.h.bf16 %v6358_v25  ;;  %v6359_v34 = vunpack.i.l.bf16 %v6358_v25  ;;  %v12697_v29 = vpack.i.bf16 %v8562_v26, %v8557_v5  ;;  %v7581_v5 = vld [vmem:[%s12595_s0 + $0x28] sm:$0xff] }
  0x94   :  { %v573_v9 = vrot.slane %v8873_v44, 2  ;;  %v6355_v30 = vunpack.i.h.bf16 %v6353_v54  ;;  %v6354_v36 = vunpack.i.l.bf16 %v6353_v54  ;;  %v12698_v8 = vpack.i.bf16 %v8598_v15, %v8595_v16 }
  0x95   :  { %6647 = vrot.lane.b32.xlu1 %v12697_v29, %s7664_s11  ;;  %v901_v24 = vrot.slane %v8845_v59, 3  ;;  %v903_v25 = vrot.slane %v8850_v50, 3  ;;  %v1467_v26 = vsel %vm1461_vm4, %v7581_v5, %v6335_v20  ;;  %v1466_v54 = vsel %vm1461_vm4, %v7582_v52, %v6334_v7  ;;  %v6368_v16 = vpop.permute.xlu1 %6367  ;;  %v9047_v52 = vld [vmem:[%s12595_s0 + $0x188] sm:$0xff] }
  0x96   :  { %6642 = vrot.lane.b32.xlu0 %v12698_v8, %s7664_s11  ;;  %v1534_v29 = vsel %vm1527_vm5, %v1468_v10, %v6349_v48  ;;  %v1535_v15 = vsel %vm1527_vm5, %v1469_v6, %v6350_v31  ;;  %v1532_v8 = vsel %vm1527_vm5, %v1466_v54, %v6344_v32  ;;  %v1533_v21 = vsel %vm1527_vm5, %v1467_v26, %v6345_v4  ;;  %v6363_v55 = vpop.permute.xlu0 %6362 }
  0x97   :  { %v6370_v60 = vunpack.i.h.bf16 %v6368_v16  ;;  %v6369_v14 = vunpack.i.l.bf16 %v6368_v16  ;;  %v1600_v20 = vsel %vm1593_vm6, %v1534_v29, %v6359_v34  ;;  %v1601_v5 = vsel %vm1593_vm6, %v1535_v15, %v6360_v18  ;;  %v9062_v16 = vld [vmem:[%s12595_s0 + $0x190] sm:$0xff] }
  0x98   :  { %v6365_v35 = vunpack.i.h.bf16 %v6363_v55  ;;  %v6364_v17 = vunpack.i.l.bf16 %v6363_v55  ;;  %v12699_v7 = vpack.i.bf16 %v8624_v40, %v8616_v0  ;;  %v1598_v6 = vsel %vm1593_vm6, %v1532_v8, %v6354_v36 }
  0x99   :  { %v1599_v32 = vsel %vm1593_vm6, %v1533_v21, %v6355_v30  ;;  %v1666_v31 = vsel %vm1659_vm7, %v1600_v20, %v6369_v14  ;;  %v1667_v48 = vsel %vm1659_vm7, %v1601_v5, %v6370_v60  ;;  %v12700_v10 = vpack.i.bf16 %v8632_v19, %v8629_v41  ;;  %v6378_v4 = vpop.permute.xlu1 %6377 }
  0x9a   :  { %6657 = vrot.lane.b32.xlu1 %v12699_v7, %s7667_s21  ;;  %v1664_v18 = vsel %vm1659_vm7, %v1598_v6, %v6364_v17  ;;  %v1665_v55 = vsel %vm1659_vm7, %v1599_v32, %v6365_v35  ;;  %v5611_v0 = vpack.c.bf16 %v1667_v48, %v1666_v31  ;;  %v12701_v40 = vrot.slane %v8845_v59, 2  ;;  %v9023_v21 = vpop.permute.xlu0 %6372 }
  0x9b   :  { %6652 = vrot.lane.b32.xlu0 %v12700_v10, %s7667_s21  ;;  %v5608_v14 = vpack.c.bf16 %v1665_v55, %v1664_v18  ;;  %v12703_v60 = vrot.slane %v8868_v45, 2  ;;  %v12631_v41 = vrot.slane %v8868_v45, 3  ;;  %v899_v19 = vrot.slane %v8873_v44, 3 }
  0x9c   :  { %v9021_v36 = vsel %vm483_vm0, %v12701_v40, %v577_v11  ;;  %v12705_v35 = vpack.i.bf16 %v8648_v43, %v8636_v49  ;;  %v12706_v49 = vpack.i.bf16 %v8656_v53, %v8653_v37  ;;  %v1227_v43 = vrot.slane %v8845_v59, 4  ;;  %v9067_v37 = vld [vmem:[%s12595_s0 + $0x198] sm:$0xff] }
  0x9d   :  { %12702 = vst [vmem:[#allocation18_spill] sm:$0xff] %v9021_v36  ;;  %v9028_v34 = vsel %vm483_vm0, %v577_v11, %v12703_v60  ;;  %6049 = vmatprep.mubr.msk.bf16.mxu0 %vm8856_vm9, %v5608_v14  ;;  %v1229_v54 = vrot.slane %v8850_v50, 4  ;;  %v12629_v29 = vrot.slane %v8868_v45, 4  ;;  %v1225_v15 = vrot.slane %v8873_v44, 4  ;;  %v6388_v53 = vpop.permute.xlu1 %6387 }
  0x9e   :  { %12704 = vst [vmem:[#allocation19_spill] sm:$0xff] %v9028_v34  ;;  %6667 = vrot.lane.b32.xlu1 %v12705_v35, %s7668_s26  ;;  %6050 = vmatmul.mubr.msk.bf16.gmra.mxu0 %vm8856_vm9, %v5611_v0  ;;  %v12707_v8 = vrot.slane %v8751_v58, 2  ;;  %v12708_v20 = vmov %v12701_v40  ;;  %v9084_v7 = vsel %vm809_vm2, %v901_v24, %v903_v25  ;;  %v6380_v6 = vunpack.i.h.bf16 %v6378_v4  ;;  %v6383_v31 = vpop.permute.xlu0 %6382  ;;  %v12711_v0 = vld [vmem:[#allocation10_spill] sm:$0xff]  ;;  %v12712_v40 = vld [vmem:[#allocation9_spill] sm:$0xff] }
  0x9f   :  { %6662 = vrot.lane.b32.xlu0 %v12706_v49, %s7668_s26  ;;  %v9081_v5 = vsel %vm483_vm0, %v573_v9, %v12708_v20  ;;  %v6379_v32 = vunpack.i.l.bf16 %v6378_v4  ;;  %v9089_v48 = vsel %vm809_vm2, %v903_v25, %v12631_v41  ;;  %v12709_v10 = vrot.slane %v8751_v58, 3 }
  0xa0   :  { %v9076_v44 = vsel %vm483_vm0, %v12707_v8, %v573_v9  ;;  %v12710_v59 = vpack.i.bf16 %v8669_v38, %v8660_v13  ;;  %v9101_v9 = vsel %vm809_vm2, %v899_v19, %v901_v24  ;;  %v257_v55 = vrot.slane %v9047_v52, 1 }
  0xa1   :  { %v9094_v18 = vsel %vm809_vm2, %v12709_v10, %v899_v19  ;;  %v259_v4 = vrot.slane %v9062_v16, 1  ;;  %v12630_v25 = vrot.slane %v9067_v37, 1  ;;  %v12713_v14 = vpack.i.bf16 %v12711_v0, %v12712_v40  ;;  %v6398_v10 = vpop.permute.xlu1 %6397 }
  0xa2   :  { %6677 = vrot.lane.b32.xlu1 %v12710_v59, %s7665_s12  ;;  %v9111_v60 = vsel %vm1135_vm3, %v1227_v43, %v1229_v54  ;;  %v9116_v13 = vsel %vm1135_vm3, %v1229_v54, %v12629_v29  ;;  %v12714_v38 = vrot.slane %v8751_v58, 4  ;;  %v9124_v19 = vsel %vm1135_vm3, %v1225_v15, %v1227_v43  ;;  %v9131_v54 = vld [vmem:[%s12595_s0 + $0x180] sm:$0xff]  ;;  %v7583_v58 = vld [vmem:[%s12595_s0 + $0x50] sm:$0xff]  ;;  %v7584_v43 = vld [vmem:[%s12595_s0 + $0x48] sm:$0xff]  ;;  %v6393_v0 = vpop.permute.xlu0 %6392 }
  0xa3   :  { %6672 = vrot.lane.b32.xlu0 %v12713_v14, %s7665_s12  ;;  %v6375_v35 = vunpack.i.h.bf16 %v9023_v21  ;;  %v6374_v49 = vunpack.i.l.bf16 %v9023_v21  ;;  %v6390_v8 = vunpack.i.h.bf16 %v6388_v53  ;;  %v6389_v20 = vunpack.i.l.bf16 %v6388_v53  ;;  %v12716_v29 = vld [vmem:[#allocation11_spill] sm:$0xff] }
  0xa4   :  { %v9121_v24 = vsel %vm1135_vm3, %v12714_v38, %v1225_v15  ;;  %v1473_v59 = vsel %vm1461_vm4, %v7583_v58, %v6380_v6  ;;  %v1472_v21 = vsel %vm1461_vm4, %v7584_v43, %v6379_v32  ;;  %v6385_v15 = vunpack.i.h.bf16 %v6383_v31  ;;  %v12715_v38 = vld [vmem:[#allocation12_spill] sm:$0xff]  ;;  %v12719_v43 = vld [vmem:[#allocation13_spill] sm:$0xff] }
  0xa5   :  { %v6384_v53 = vunpack.i.l.bf16 %v6383_v31  ;;  %v6400_v40 = vunpack.i.h.bf16 %v6398_v10  ;;  %v6399_v14 = vunpack.i.l.bf16 %v6398_v10  ;;  %v12717_v50 = vpack.i.bf16 %v12715_v38, %v12716_v29  ;;  %v12718_v31 = vld [vmem:[#allocation14_spill] sm:$0xff]  ;;  %v6408_v30 = vpop.permute.xlu1 %6407 }
  0xa6   :  { %v9146_v11 = vsel %vm157_vm1, %v257_v55, %v259_v4  ;;  %v9151_v6 = vsel %vm157_vm1, %v259_v4, %v12630_v25  ;;  %v6395_v58 = vunpack.i.h.bf16 %v6393_v0  ;;  %v6394_v32 = vunpack.i.l.bf16 %v6393_v0  ;;  %v6403_v41 = vpop.permute.xlu0 %6402 }
  0xa7   :  { %6687 = vrot.lane.b32.xlu1 %v12717_v50, %s7664_s11  ;;  %v12720_v26 = vpack.i.bf16 %v12718_v31, %v12719_v43  ;;  %v256_v10 = vrot.slane %v9131_v54, 1  ;;  %v583_v29 = vrot.slane %v9047_v52, 2  ;;  %v7585_v50 = vld [vmem:[%s12595_s0 + $0x40] sm:$0xff]  ;;  %v1470_v4 = vsel %vm1461_vm4, 0.0, %v6374_v49 }
  0xa8   :  { %v1471_v38 = vsel %vm1461_vm4, %v7585_v50, %v6375_v35  ;;  %v1538_v25 = vsel %vm1527_vm5, %v1472_v21, %v6389_v20  ;;  %v1539_v0 = vsel %vm1527_vm5, %v1473_v59, %v6390_v8  ;;  %v1536_v31 = vsel %vm1527_vm5, %v1470_v4, %v6384_v53  ;;  %v9287_v4 = vld [vmem:[%s12595_s0 + $0x1b8] sm:$0xff] }
  0xa9   :  { %6682 = vrot.lane.b32.xlu0 %v12720_v26, %s7664_s11  ;;  %v1537_v26 = vsel %vm1527_vm5, %v1471_v38, %v6385_v15  ;;  %v6410_v43 = vunpack.i.h.bf16 %v6408_v30  ;;  %v6409_v17 = vunpack.i.l.bf16 %v6408_v30  ;;  %v1604_v36 = vsel %vm1593_vm6, %v1538_v25, %v6399_v14 }
  0xaa   :  { %v1605_v34 = vsel %vm1593_vm6, %v1539_v0, %v6400_v40  ;;  %v6405_v39 = vunpack.i.h.bf16 %v6403_v41  ;;  %v6404_v35 = vunpack.i.l.bf16 %v6403_v41  ;;  %v12721_v49 = vpack.i.bf16 %v8736_v23, %v8727_v47  ;;  %v6418_v23 = vpop.permute.xlu1 %6417  ;;  %v9187_v53 = vpop.permute.xlu0 %6412 }
  0xab   :  { %v1602_v8 = vsel %vm1593_vm6, %v1536_v31, %v6394_v32  ;;  %v1603_v20 = vsel %vm1593_vm6, %v1537_v26, %v6395_v58  ;;  %v1670_v59 = vsel %vm1659_vm7, %v1604_v36, %v6409_v17  ;;  %v1671_v30 = vsel %vm1659_vm7, %v1605_v34, %v6410_v43  ;;  %v12723_v17 = vld [vmem:[#allocation5_spill] sm:$0xff] }
  0xac   :  { %6697 = vrot.lane.b32.xlu1 %v12721_v49, %s7667_s21  ;;  %v12722_v25 = vpack.i.bf16 %v8754_v42, %v8741_v51  ;;  %v9183_v41 = vsel %vm1659_vm7, %v1602_v8, %v6404_v35  ;;  %v1669_v21 = vsel %vm1659_vm7, %v1603_v20, %v6405_v39  ;;  %v5617_v47 = vpack.c.bf16 %v1671_v30, %v1670_v59  ;;  %v12727_v49 = vld [vmem:[#allocation6_spill] sm:$0xff] }
  0xad   :  { %v585_v15 = vrot.slane %v9062_v16, 2  ;;  %v5614_v36 = vpack.c.bf16 %v1669_v21, %v9183_v41  ;;  %v12724_v34 = vrot.slane %v8868_v45, 1  ;;  %v9197_v51 = vsel %vm157_vm1, %v256_v10, %v257_v55 }
  0xae   :  { %6692 = vrot.lane.b32.xlu0 %v12722_v25, %s7667_s21  ;;  %v12635_v42 = vrot.slane %v9067_v37, 2  ;;  %v12725_v39 = vpack.i.bf16 %v8807_v22, %v8760_v57  ;;  %v582_v58 = vrot.slane %v9131_v54, 2  ;;  %v12636_v32 = vrot.slane %v9047_v52, 3  ;;  %v6428_v38 = vpop.permute.xlu1 %6427  ;;  %v6423_v43 = vpop.permute.xlu0 %6422 }
  0xaf   :  { %v9194_v40 = vsel %vm157_vm1, %v12724_v34, %v12723_v17  ;;  %v12637_v50 = vrot.slane %v9062_v16, 3  ;;  %v12726_v55 = vpack.i.bf16 %v8819_v3, %v8812_v33  ;;  %6053 = vmatprep.mubr.msk.bf16.mxu0 %vm8856_vm9, %v5614_v36  ;;  %v9230_v0 = vsel %vm483_vm0, %v583_v29, %v585_v15  ;;  %v7586_v3 = vld [vmem:[%s12595_s0 + $0x70] sm:$0xff] }
  0xb0   :  { %6707 = vrot.lane.b32.xlu1 %v12725_v39, %s7668_s26  ;;  %6054 = vmatmul.mubr.msk.bf16.gmra.mxu0 %vm8856_vm9, %v5617_v47  ;;  %v6420_v31 = vunpack.i.h.bf16 %v6418_v23  ;;  %v6419_v26 = vunpack.i.l.bf16 %v6418_v23  ;;  %v9235_v35 = vsel %vm483_vm0, %v585_v15, %v12635_v42  ;;  %v12728_v8 = vrot.slane %v8868_v45, 2  ;;  %v12730_v23 = vld [vmem:[#allocation7_spill] sm:$0xff] }
  0xb1   :  { %v12729_v59 = vpack.i.bf16 %v8863_v46, %v8824_v28  ;;  %v9248_v30 = vsel %vm483_vm0, %v582_v58, %v583_v29  ;;  %v9255_v25 = vsel %vm809_vm2, %v12636_v32, %v12637_v50  ;;  %v12639_v21 = vrot.slane %v9067_v37, 3  ;;  %v12732_v28 = vld [vmem:[#allocation16_spill] sm:$0xff]  ;;  %v12733_v46 = vld [vmem:[#allocation15_spill] sm:$0xff] }
  0xb2   :  { %6702 = vrot.lane.b32.xlu0 %v12726_v55, %s7668_s26  ;;  %v9241_v20 = vsel %vm483_vm0, %v12728_v8, %v12727_v49  ;;  %v12731_v47 = vrot.slane %v8868_v45, 3  ;;  %v12734_v29 = vpack.i.bf16 %v12732_v28, %v12733_v46  ;;  %v9275_v55 = vld [vmem:[%s12595_s0 + $0x1a8] sm:$0xff]  ;;  %v6415_v8 = vunpack.i.h.bf16 %v9187_v53  ;;  %v6438_v46 = vpop.permute.xlu1 %6437  ;;  %v6433_v22 = vpop.permute.xlu0 %6432 }
  0xb3   :  { %v6429_v28 = vunpack.i.l.bf16 %v6428_v38  ;;  %v1477_v33 = vsel %vm1461_vm4, %v7586_v3, %v6420_v31  ;;  %v6425_v10 = vunpack.i.h.bf16 %v6423_v43  ;;  %v6424_v42 = vunpack.i.l.bf16 %v6423_v43 }
  0xb4   :  { %6717 = vrot.lane.b32.xlu1 %v12729_v59, %s7664_s11  ;;  %v9262_v15 = vsel %vm809_vm2, %v12731_v47, %v12730_v23  ;;  %v6414_v59 = vunpack.i.l.bf16 %v9187_v53  ;;  %v6430_v47 = vunpack.i.h.bf16 %v6428_v38  ;;  %v7587_v53 = vld [vmem:[%s12595_s0 + $0x68] sm:$0xff]  ;;  %v6440_v57 = vunpack.i.h.bf16 %v6438_v46 }
  0xb5   :  { %v1476_v38 = vsel %vm1461_vm4, %v7587_v53, %v6419_v26  ;;  %v6439_v58 = vunpack.i.l.bf16 %v6438_v46  ;;  %v12735_v14 = vpack.i.bf16 %v8930_v63, %v8921_v62  ;;  %v1234_v34 = vrot.slane %v9131_v54, 4  ;;  %v7588_v62 = vld [vmem:[%s12595_s0 + $0x60] sm:$0xff] }
  0xb6   :  { %6712 = vrot.lane.b32.xlu0 %v12734_v29, %s7665_s12  ;;  %v9282_v29 = vld [vmem:[%s12595_s0 + $0x1b0] sm:$0xff]  ;;  %v265_v3 = vrot.slane %v9275_v55, 1  ;;  %v6435_v31 = vunpack.i.h.bf16 %v6433_v22  ;;  %v6434_v39 = vunpack.i.l.bf16 %v6433_v22  ;;  %v12736_v26 = vpack.i.bf16 %v8944_v2, %v8939_v61  ;;  %v6448_v2 = vpop.permute.xlu1 %6447  ;;  %v6443_v50 = vpop.permute.xlu0 %6442 }
  0xb7   :  { %v267_v43 = vrot.slane %v9282_v29, 1  ;;  %v1475_v63 = vsel %vm1461_vm4, %v7588_v62, %v6415_v8  ;;  %v1542_v53 = vsel %vm1527_vm5, %v1476_v38, %v6429_v28  ;;  %v1543_v61 = vsel %vm1527_vm5, %v1477_v33, %v6430_v47  ;;  %v9324_v8 = vld [vmem:[%s12595_s0 + $0x1a0] sm:$0xff] }
  0xb8   :  { %6727 = vrot.lane.b32.xlu1 %v12735_v14, %s7668_s26  ;;  %v7589_v14 = vld [vmem:[%s12595_s0 + $0x58] sm:$0xff]  ;;  %v1541_v46 = vsel %vm1527_vm5, %v1475_v63, %v6425_v10  ;;  %v6450_v36 = vunpack.i.h.bf16 %v6448_v2  ;;  %v6449_v32 = vunpack.i.l.bf16 %v6448_v2  ;;  %v1608_v62 = vsel %vm1593_vm6, %v1542_v53, %v6439_v58  ;;  %v12738_v58 = vld [vmem:[#allocation17_spill] sm:$0xff]  ;;  %v12741_v53 = vld [vmem:[#allocation18_spill] sm:$0xff] }
  0xb9   :  { %v1474_v22 = vsel %vm1461_vm4, %v7589_v14, %v6414_v59  ;;  %v1609_v59 = vsel %vm1593_vm6, %v1543_v61, %v6440_v57  ;;  %v6445_v28 = vunpack.i.h.bf16 %v6443_v50  ;;  %v6444_v38 = vunpack.i.l.bf16 %v6443_v50 }
  0xba   :  { %6722 = vrot.lane.b32.xlu0 %v12736_v26, %s7667_s21  ;;  %v1540_v26 = vsel %vm1527_vm5, %v1474_v22, %v6424_v42  ;;  %v12737_v42 = vpack.i.bf16 %v8957_v56, %v8947_v27  ;;  %v1607_v33 = vsel %vm1593_vm6, %v1541_v46, %v6435_v31  ;;  %v1674_v47 = vsel %vm1659_vm7, %v1608_v62, %v6449_v32  ;;  %v9342_v22 = vpop.permute.xlu1 %6457 }
  0xbb   :  { %v1606_v10 = vsel %vm1593_vm6, %v1540_v26, %v6434_v39  ;;  %v1675_v63 = vsel %vm1659_vm7, %v1609_v59, %v6450_v36  ;;  %v12739_v14 = vpack.i.bf16 %v8965_v1, %v12738_v58  ;;  %v1673_v57 = vsel %vm1659_vm7, %v1607_v33, %v6445_v28  ;;  %v9345_v39 = vpop.permute.xlu0 %6452  ;;  %v12740_v1 = vld [vmem:[#allocation19_spill] sm:$0xff]  ;;  %v12748_v33 = vld [vmem:[#allocation8_spill] sm:$0xff] }
  0xbc   :  { %6737 = vrot.lane.b32.xlu1 %v12737_v42, %s7665_s12  ;;  %v1672_v50 = vsel %vm1659_vm7, %v1606_v10, %v6444_v38  ;;  %v5623_v27 = vpack.c.bf16 %v1675_v63, %v1674_v47  ;;  %v263_v56 = vrot.slane %v9324_v8, 1  ;;  %v12641_v32 = vrot.slane %v9275_v55, 2 }
  0xbd   :  { %v5620_v31 = vpack.c.bf16 %v1673_v57, %v1672_v50  ;;  %v593_v36 = vrot.slane %v9282_v29, 2  ;;  %v12638_v46 = vrot.slane %v9287_v4, 2  ;;  %v12742_v61 = vpack.i.bf16 %v12740_v1, %v12741_v53 }
  0xbe   :  { %6732 = vrot.lane.b32.xlu0 %v12739_v14, %s7665_s12  ;;  %v12743_v2 = vrot.slane %v9062_v16, 3  ;;  %v12744_v62 = vrot.slane %v9047_v52, 3  ;;  %v12745_v59 = vrot.slane %v9131_v54, 3  ;;  %v12746_v38 = vrot.slane %v9062_v16, 4 }
  0xbf   :  { %v12747_v42 = vrot.slane %v9047_v52, 4  ;;  %v12749_v47 = vrot.slane %v8868_v45, 4  ;;  %v12750_v54 = vpack.i.bf16 %v9081_v5, %v9076_v44  ;;  %6057 = vmatprep.mubr.msk.bf16.mxu0 %vm8856_vm9, %v5620_v31  ;;  %v12751_v58 = vrot.slane %v9067_v37, 4  ;;  %v9404_v44 = vpop.permute.xlu1 %6467 }
  0xc0   :  { %6747 = vrot.lane.b32.xlu1 %v12742_v61, %s7664_s11  ;;  %v9359_v26 = vsel %vm809_vm2, %v12743_v2, %v12639_v21  ;;  %v9366_v28 = vsel %vm809_vm2, %v12745_v59, %v12744_v62  ;;  %v12752_v14 = vmov %v12746_v38  ;;  %v9400_v1 = vsel %vm157_vm1, %v265_v3, %v267_v43  ;;  %6058 = vmatmul.mubr.msk.bf16.gmra.mxu0 %vm8856_vm9, %v5623_v27  ;;  %v6463_v61 = vpop.permute.xlu0 %6462 }
  0xc1   :  { %v9373_v10 = vsel %vm1135_vm3, %v12747_v42, %v12746_v38  ;;  %v9379_v63 = vsel %vm1135_vm3, %v12749_v47, %v12748_v33  ;;  %v9392_v50 = vsel %vm1135_vm3, %v12752_v14, %v12751_v58  ;;  %v12753_v45 = vmov %v12747_v42 }
  0xc2   :  { %6742 = vrot.lane.b32.xlu0 %v12750_v54, %s7664_s11  ;;  %v9397_v57 = vsel %vm1135_vm3, %v1234_v34, %v12753_v45  ;;  %v12754_v5 = vrot.slane %v9287_v4, 1  ;;  %v12755_v31 = vrot.slane %v9067_v37, 1  ;;  %v9417_v34 = vsel %vm157_vm1, %v263_v56, %v265_v3  ;;  %v9475_v45 = vld [vmem:[%s12595_s0 + $0x1c0] sm:$0xff] }
  0xc3   :  { %v12640_v53 = vrot.slane %v9324_v8, 2  ;;  %v9432_v62 = vsel %vm483_vm0, %v593_v36, %v12638_v46  ;;  %v6459_v3 = vunpack.i.l.bf16 %v9342_v22  ;;  %v917_v54 = vrot.slane %v9275_v55, 3  ;;  %v9457_v14 = vpop.permute.xlu1 %6477 }
  0xc4   :  { %v9409_v16 = vsel %vm157_vm1, %v267_v43, %v12754_v5  ;;  %v9414_v52 = vsel %vm157_vm1, %v12755_v31, %v263_v56  ;;  %v9427_v43 = vsel %vm483_vm0, %v12641_v32, %v593_v36  ;;  %12758 = vst [vmem:[#allocation12_spill] sm:$0xff] %v9432_v62  ;;  %v12759_v56 = vpack.i.bf16 %v9089_v48, %v9084_v7  ;;  %v6473_v48 = vpop.permute.xlu0 %6472 }
  0xc5   :  { %12756 = vst [vmem:[#allocation10_spill] sm:$0xff] %v9414_v52  ;;  %12757 = vst [vmem:[#allocation9_spill] sm:$0xff] %v9427_v43  ;;  %v12760_v36 = vpack.i.bf16 %v9101_v9, %v9094_v18  ;;  %v6454_v58 = vunpack.i.l.bf16 %v9345_v39  ;;  %v12761_v18 = vrot.slane %v9067_v37, 2  ;;  %v919_v5 = vrot.slane %v9282_v29, 3 }
  0xc6   :  { %6757 = vrot.lane.b32.xlu1 %v12759_v56, %s7667_s21  ;;  %v6455_v31 = vunpack.i.h.bf16 %v9345_v39  ;;  %v6469_v56 = vunpack.i.l.bf16 %v9404_v44  ;;  %v6465_v42 = vunpack.i.h.bf16 %v6463_v61  ;;  %v6479_v39 = vunpack.i.l.bf16 %v9457_v14 }
  0xc7   :  { %6752 = vrot.lane.b32.xlu0 %v12760_v36, %s7667_s21  ;;  %v9466_v9 = vsel %vm483_vm0, %v12761_v18, %v12640_v53  ;;  %v6464_v36 = vunpack.i.l.bf16 %v6463_v61  ;;  %v7590_v18 = vld [vmem:[%s12595_s0 + $0x88] sm:$0xff]  ;;  %v12762_v38 = vpack.i.bf16 %v9116_v13, %v9111_v60  ;;  %v915_v59 = vrot.slane %v9324_v8, 3  ;;  %v9497_v13 = vpop.permute.xlu1 %6487 }
  0xc8   :  { %v1480_v47 = vsel %vm1461_vm4, %v7590_v18, %v6459_v3  ;;  %v6475_v46 = vunpack.i.h.bf16 %v6473_v48  ;;  %v6474_v2 = vunpack.i.l.bf16 %v6473_v48  ;;  %v12763_v21 = vpack.i.bf16 %v9124_v19, %v9121_v24  ;;  %v7591_v3 = vld [vmem:[%s12595_s0 + $0x78] sm:$0xff]  ;;  %v9504_v24 = vld [vmem:[%s12595_s0 + $0x1c8] sm:$0xff]  ;;  %v6483_v27 = vpop.permute.xlu0 %6482 }
  0xc9   :  { %v1243_v7 = vrot.slane %v9275_v55, 4  ;;  %v1245_v61 = vrot.slane %v9282_v29, 4  ;;  %v1478_v60 = vsel %vm1461_vm4, %v7591_v3, %v6454_v58  ;;  %v1241_v48 = vrot.slane %v9324_v8, 4 }
  0xca   :  { %6767 = vrot.lane.b32.xlu1 %v12762_v38, %s7668_s26  ;;  %v1247_v38 = vrot.slane %v9287_v4, 4  ;;  %v598_v19 = vrot.slane %v9475_v45, 2  ;;  %v1546_v58 = vsel %vm1527_vm5, %v1480_v47, %v6469_v56  ;;  %v1544_v18 = vsel %vm1527_vm5, %v1478_v60, %v6464_v36 }
  0xcb   :  { %6762 = vrot.lane.b32.xlu0 %v12763_v21, %s7668_s26  ;;  %v7592_v21 = vld [vmem:[%s12595_s0 + $0x80] sm:$0xff]  ;;  %v6489_v3 = vunpack.i.l.bf16 %v9497_v13  ;;  %v1612_v32 = vsel %vm1593_vm6, %v1546_v58, %v6479_v39  ;;  %v6485_v43 = vunpack.i.h.bf16 %v6483_v27  ;;  %v6484_v62 = vunpack.i.l.bf16 %v6483_v27  ;;  %v9530_v60 = vpop.permute.xlu1 %6497 }
  0xcc   :  { %v1479_v29 = vsel %vm1461_vm4, %v7592_v21, %v6455_v31  ;;  %v12764_v52 = vpack.i.bf16 %v9151_v6, %v9146_v11  ;;  %v1610_v31 = vsel %vm1593_vm6, %v1544_v18, %v6474_v2  ;;  %v12765_v36 = vpack.i.bf16 %v9197_v51, %v9194_v40 }
  0xcd   :  { %v1545_v53 = vsel %vm1527_vm5, %v1479_v29, %v6465_v42  ;;  %v1678_v56 = vsel %vm1659_vm7, %v1612_v32, %v6489_v3  ;;  %v12645_v42 = vrot.slane %v9504_v24, 2  ;;  %v1676_v27 = vsel %vm1659_vm7, %v1610_v31, %v6484_v62 }
  0xce   :  { %6777 = vrot.lane.b32.xlu1 %v12764_v52, %s7665_s12  ;;  %v1611_v47 = vsel %vm1593_vm6, %v1545_v53, %v6475_v46  ;;  %v272_v11 = vrot.slane %v9475_v45, 1  ;;  %v12646_v6 = vrot.slane %v9504_v24, 1  ;;  %v9534_v46 = vpop.permute.xlu0 %6492  ;;  %v5626_v32 = vpack.c.bf16 %v9183_v41, %v1676_v27 }
  0xcf   :  { %6772 = vrot.lane.b32.xlu0 %v12765_v36, %s7665_s12  ;;  %v1677_v39 = vsel %vm1659_vm7, %v1611_v47, %v6485_v43  ;;  %v12766_v40 = vrot.slane %v9275_v55, 2  ;;  %v12767_v51 = vrot.slane %v9324_v8, 2  ;;  %v9545_v2 = vsel %vm809_vm2, %v917_v54, %v919_v5 }
  0xd0   :  { %v5629_v52 = vpack.c.bf16 %v1678_v56, %v1677_v39  ;;  %v12768_v43 = vpack.i.bf16 %v9235_v35, %v9230_v0  ;;  %v12769_v62 = vrot.slane %v9287_v4, 3  ;;  %v12770_v55 = vrot.slane %v9067_v37, 3  ;;  %6061 = vmatprep.mubr.msk.bf16.mxu0 %vm8856_vm9, %v5626_v32 }
  0xd1   :  { %v9542_v53 = vsel %vm483_vm0, %v12767_v51, %v12766_v40  ;;  %v9562_v29 = vsel %vm809_vm2, %v915_v59, %v917_v54  ;;  %v9565_v58 = vsel %vm1135_vm3, %v1243_v7, %v1245_v61  ;;  %v12771_v0 = vpack.i.bf16 %v9248_v30, %v9241_v20  ;;  %v9586_v54 = vpop.permute.xlu1 %6507 }
  0xd2   :  { %6787 = vrot.lane.b32.xlu1 %v12768_v43, %s7664_s11  ;;  %v9554_v21 = vsel %vm809_vm2, %v919_v5, %v12769_v62  ;;  %v9559_v8 = vsel %vm809_vm2, %v12770_v55, %v915_v59  ;;  %v9574_v35 = vsel %vm1135_vm3, %v1245_v61, %v1247_v38  ;;  %v12772_v5 = vrot.slane %v9067_v37, 4  ;;  %6062 = vmatmul.mubr.msk.bf16.gmra.mxu0 %vm8856_vm9, %v5629_v52  ;;  %v6503_v31 = vpop.permute.xlu0 %6502  ;;  %v9654_v55 = vld [vmem:[%s12595_s0 + $0x1d8] sm:$0xff] }
  0xd3   :  { %6782 = vrot.lane.b32.xlu0 %v12771_v0, %s7664_s11  ;;  %v9582_v59 = vsel %vm1135_vm3, %v1241_v48, %v1243_v7  ;;  %v12773_v20 = vrot.slane %v9287_v4, 2  ;;  %v9597_v37 = vsel %vm483_vm0, %v598_v19, %v12645_v42  ;;  %v12774_v7 = vrot.slane %v9287_v4, 1 }
  0xd4   :  { %v9579_v18 = vsel %vm1135_vm3, %v12772_v5, %v1241_v48  ;;  %v9608_v48 = vsel %vm157_vm1, %v272_v11, %v12646_v6  ;;  %v6460_v3 = vunpack.i.h.bf16 %v9342_v22  ;;  %v6821_v47 = vpack.i.bf16 %v9542_v53, %v9466_v9  ;;  %v7598_v9 = vld [vmem:[%s12595_s0 + $0xc0] sm:$0xff] }
  0xd5   :  { %v9592_v30 = vsel %vm483_vm0, %v12773_v20, %v12727_v49  ;;  %v9603_v61 = vsel %vm157_vm1, %v12774_v7, %v12723_v17  ;;  %v6836_v19 = vpack.i.bf16 %v9554_v21, %v9545_v2  ;;  %v6831_v56 = vpack.i.bf16 %v9562_v29, %v9559_v8  ;;  %v9642_v43 = vpop.permute.xlu1 %6517 }
  0xd6   :  { %v6499_v36 = vunpack.i.l.bf16 %v9530_v60  ;;  %v12775_v27 = vpack.i.bf16 %v9359_v26, %v9255_v25  ;;  %v9628_v11 = vsel %vm1135_vm3, %v1247_v38, %v12748_v33  ;;  %v12776_v32 = vpack.i.bf16 %v9366_v28, %v9262_v15  ;;  %v6513_v7 = vpop.permute.xlu0 %6512 }
  0xd7   :  { %v1250_v26 = vrot.slane %v9475_v45, 4  ;;  %v1251_v40 = vrot.slane %v9504_v24, 4  ;;  %v6470_v51 = vunpack.i.h.bf16 %v9404_v44  ;;  %v6494_v38 = vunpack.i.l.bf16 %v9534_v46  ;;  %v7593_v44 = vld [vmem:[%s12595_s0 + $0x90] sm:$0xff] }
  0xd8   :  { %6797 = vrot.lane.b32.xlu1 %v12775_v27, %s7667_s21  ;;  %6792 = vrot.lane.b32.xlu0 %v12776_v32, %s7667_s21  ;;  %v12777_v15 = vmov %v12769_v62  ;;  %v924_v62 = vrot.slane %v9475_v45, 3  ;;  %v1481_v0 = vsel %vm1461_vm4, %v7593_v44, %v6460_v3  ;;  %v6495_v5 = vunpack.i.h.bf16 %v9534_v46  ;;  %v9665_v45 = vld [vmem:[%s12595_s0 + $0x1e0] sm:$0xff]  ;;  %v7594_v27 = vld [vmem:[%s12595_s0 + $0xa8] sm:$0xff] }
  0xd9   :  { %v9648_v28 = vsel %vm809_vm2, %v12777_v15, %v12730_v23  ;;  %v6509_v4 = vunpack.i.l.bf16 %v9586_v54  ;;  %v6504_v20 = vunpack.i.l.bf16 %v6503_v31  ;;  %v1484_v32 = vsel %vm1461_vm4, %v7594_v27, %v6499_v36 }
  0xda   :  { %v6505_v15 = vunpack.i.h.bf16 %v6503_v31  ;;  %v6519_v3 = vunpack.i.l.bf16 %v9642_v43  ;;  %v12778_v46 = vpack.i.bf16 %v9392_v50, %v9373_v10  ;;  %v925_v44 = vrot.slane %v9504_v24, 3  ;;  %v7595_v10 = vld [vmem:[%s12595_s0 + $0x98] sm:$0xff] }
  0xdb   :  { %v6480_v25 = vunpack.i.h.bf16 %v9457_v14  ;;  %v6515_v52 = vunpack.i.h.bf16 %v6513_v7  ;;  %v6514_v42 = vunpack.i.l.bf16 %v6513_v7  ;;  %v12779_v39 = vpack.i.bf16 %v9397_v57, %v9379_v63  ;;  %v9689_v14 = vpop.permute.xlu1 %6527  ;;  %v7596_v63 = vld [vmem:[%s12595_s0 + $0xa0] sm:$0xff] }
  0xdc   :  { %6807 = vrot.lane.b32.xlu1 %v12778_v46, %s7668_s26  ;;  %v277_v31 = vrot.slane %v9654_v55, 1  ;;  %v1547_v36 = vsel %vm1527_vm5, %v1481_v0, %v6470_v51  ;;  %v6490_v27 = vunpack.i.h.bf16 %v9497_v13  ;;  %v1482_v50 = vsel %vm1461_vm4, %v7595_v10, %v6494_v38  ;;  %v6523_v0 = vpop.permute.xlu0 %6522 }
  0xdd   :  { %6802 = vrot.lane.b32.xlu0 %v12779_v39, %s7668_s26  ;;  %v279_v7 = vrot.slane %v9665_v45, 1  ;;  %v1483_v57 = vsel %vm1461_vm4, %v7596_v63, %v6495_v5  ;;  %v1550_v39 = vsel %vm1527_vm5, %v1484_v32, %v6509_v4  ;;  %v1548_v13 = vsel %vm1527_vm5, %v1482_v50, %v6504_v20 }
  0xde   :  { %v6529_v51 = vunpack.i.l.bf16 %v9689_v14  ;;  %v1549_v46 = vsel %vm1527_vm5, %v1483_v57, %v6505_v15  ;;  %v1616_v38 = vsel %vm1593_vm6, %v1550_v39, %v6519_v3  ;;  %v6525_v10 = vunpack.i.h.bf16 %v6523_v0  ;;  %v12781_v15 = vld [vmem:[#allocation10_spill] sm:$0xff]  ;;  %v9716_v3 = vld [vmem:[%s12595_s0 + $0x1e8] sm:$0xff] }
  0xdf   :  { %v6524_v22 = vunpack.i.l.bf16 %v6523_v0  ;;  %v12780_v6 = vpack.i.bf16 %v9409_v16, %v9400_v1  ;;  %v1613_v5 = vsel %vm1593_vm6, %v1547_v36, %v6480_v25  ;;  %v1614_v4 = vsel %vm1593_vm6, %v1548_v13, %v6514_v42  ;;  %v9721_v1 = vld [vmem:[%s12595_s0 + $0x1d0] sm:$0xff]  ;;  %v12784_v13 = vld [vmem:[#allocation9_spill] sm:$0xff] }
  0xe0   :  { %v1615_v20 = vsel %vm1593_vm6, %v1549_v46, %v6515_v52  ;;  %v1682_v32 = vsel %vm1659_vm7, %v1616_v38, %v6529_v51  ;;  %v12782_v50 = vpack.i.bf16 %v9417_v34, %v12781_v15  ;;  %v1679_v16 = vsel %vm1659_vm7, %v1613_v5, %v6490_v27  ;;  %v6538_v34 = vpop.permute.xlu1 %6537  ;;  %v6533_v25 = vpop.permute.xlu0 %6532  ;;  %v7597_v5 = vld [vmem:[%s12595_s0 + $0xb0] sm:$0xff] }
  0xe1   :  { %6817 = vrot.lane.b32.xlu1 %v12780_v6, %s7665_s12  ;;  %v6500_v42 = vunpack.i.h.bf16 %v9530_v60  ;;  %v1680_v6 = vsel %vm1659_vm7, %v1614_v4, %v6524_v22  ;;  %v1681_v52 = vsel %vm1659_vm7, %v1615_v20, %v6525_v10  ;;  %v9730_v57 = vsel %vm1135_vm3, %v1250_v26, %v1251_v40  ;;  %v12783_v22 = vld [vmem:[#allocation12_spill] sm:$0xff] }
  0xe2   :  { %6812 = vrot.lane.b32.xlu0 %v12782_v50, %s7665_s12  ;;  %v5632_v36 = vpack.c.bf16 %v1680_v6, %v1679_v16  ;;  %v5635_v63 = vpack.c.bf16 %v1682_v32, %v1681_v52  ;;  %v9735_v39 = vsel %vm809_vm2, %v924_v62, %v925_v44  ;;  %v6535_v27 = vunpack.i.h.bf16 %v6533_v25 }
  0xe3   :  { %v6534_v60 = vunpack.i.l.bf16 %v6533_v25  ;;  %v12785_v51 = vpack.i.bf16 %v12783_v22, %v12784_v13  ;;  %v281_v0 = vrot.slane %v9716_v3, 1  ;;  %v275_v46 = vrot.slane %v9721_v1, 1 }
  0xe4   :  { %v6510_v38 = vunpack.i.h.bf16 %v9586_v54  ;;  %v6540_v26 = vunpack.i.h.bf16 %v6538_v34  ;;  %v6539_v10 = vunpack.i.l.bf16 %v6538_v34  ;;  %6065 = vmatprep.mubr.msk.bf16.mxu0 %vm8856_vm9, %v5632_v36  ;;  %v9753_v62 = vsel %vm157_vm1, %v277_v31, %v279_v7  ;;  %v6548_v32 = vpop.permute.xlu1 %6547  ;;  %v6543_v16 = vpop.permute.xlu0 %6542 }
  0xe5   :  { %6827 = vrot.lane.b32.xlu1 %v12785_v51, %s7664_s11  ;;  %v1485_v54 = vsel %vm1461_vm4, %v7597_v5, %v6500_v42  ;;  %v6520_v4 = vunpack.i.h.bf16 %v9642_v43  ;;  %v1487_v53 = vsel %vm1461_vm4, %v7598_v9, %v6535_v27  ;;  %6066 = vmatmul.mubr.msk.bf16.gmra.mxu0 %vm8856_vm9, %v5635_v63  ;;  %v6530_v15 = vunpack.i.h.bf16 %v9689_v14 }
  0xe6   :  { %6822 = vrot.lane.b32.xlu0 %v6821_v47, %s7664_s11  ;;  %v7599_v47 = vld [vmem:[%s12595_s0 + $0xb8] sm:$0xff]  ;;  %v6550_v50 = vunpack.i.h.bf16 %v6548_v32  ;;  %v6549_v43 = vunpack.i.l.bf16 %v6548_v32  ;;  %v603_v42 = vrot.slane %v9654_v55, 2  ;;  %v6545_v6 = vunpack.i.h.bf16 %v6543_v16 }
  0xe7   :  { %v1486_v20 = vsel %vm1461_vm4, %v7599_v47, %v6534_v60  ;;  %v6544_v52 = vunpack.i.l.bf16 %v6543_v16  ;;  %v9779_v34 = vsel %vm157_vm1, %v279_v7, %v281_v0  ;;  %v605_v25 = vrot.slane %v9665_v45, 2 }
  0xe8   :  { %v1551_v14 = vsel %vm1527_vm5, %v1485_v54, %v6510_v38  ;;  %v1552_v36 = vsel %vm1527_vm5, %v1486_v20, %v6539_v10  ;;  %v1553_v63 = vsel %vm1527_vm5, %v1487_v53, %v6540_v26  ;;  %v607_v2 = vrot.slane %v9716_v3, 2  ;;  %v6558_v27 = vpop.permute.xlu1 %6557  ;;  %v6553_v13 = vpop.permute.xlu0 %6552 }
  0xe9   :  { %6837 = vrot.lane.b32.xlu1 %v6836_v19, %s7667_s21  ;;  %v1617_v21 = vsel %vm1593_vm6, %v1551_v14, %v6520_v4  ;;  %v1618_v19 = vsel %vm1593_vm6, %v1552_v36, %v6544_v52  ;;  %v1619_v7 = vsel %vm1593_vm6, %v1553_v63, %v6545_v6  ;;  %v601_v60 = vrot.slane %v9721_v1, 2  ;;  %v7601_v36 = vld [vmem:[%s12595_s0 + $0xd8] sm:$0xff] }
  0xea   :  { %6832 = vrot.lane.b32.xlu0 %v6831_v56, %s7667_s21  ;;  %v1683_v22 = vsel %vm1659_vm7, %v1617_v21, %v6530_v15  ;;  %v1684_v51 = vsel %vm1659_vm7, %v1618_v19, %v6549_v43  ;;  %v1685_v38 = vsel %vm1659_vm7, %v1619_v7, %v6550_v50  ;;  %v12786_v8 = vrot.slane %v9504_v24, 1 }
  0xeb   :  { %v12787_v56 = vpack.i.bf16 %v9574_v35, %v9565_v58  ;;  %v5638_v26 = vpack.c.bf16 %v1684_v51, %v1683_v22  ;;  %v5641_v10 = vpack.c.bf16 %v1685_v38, %v9183_v41  ;;  %v9810_v5 = vsel %vm157_vm1, %v275_v46, %v277_v31 }
  0xec   :  { %v9800_v29 = vsel %vm157_vm1, %v12786_v8, %v275_v46  ;;  %v9813_v54 = vsel %vm483_vm0, %v603_v42, %v605_v25  ;;  %v12788_v4 = vpack.i.bf16 %v9582_v59, %v9579_v18  ;;  %v9822_v58 = vsel %vm483_vm0, %v605_v25, %v607_v2  ;;  %v6568_v46 = vpop.permute.xlu1 %6567  ;;  %v6563_v32 = vpop.permute.xlu0 %6562 }
  0xed   :  { %6847 = vrot.lane.b32.xlu1 %v12787_v56, %s7668_s26  ;;  %v929_v35 = vrot.slane %v9654_v55, 3  ;;  %v931_v9 = vrot.slane %v9665_v45, 3  ;;  %v933_v31 = vrot.slane %v9716_v3, 3  ;;  %6069 = vmatprep.mubr.msk.bf16.mxu0 %vm8856_vm9, %v5638_v26  ;;  %v12789_v53 = vrot.slane %v9504_v24, 2  ;;  %v7602_v56 = vld [vmem:[%s12595_s0 + $0xd0] sm:$0xff] }
  0xee   :  { %6842 = vrot.lane.b32.xlu0 %v12788_v4, %s7668_s26  ;;  %v9835_v59 = vsel %vm483_vm0, %v601_v60, %v603_v42  ;;  %v6560_v47 = vunpack.i.h.bf16 %v6558_v27  ;;  %v6559_v20 = vunpack.i.l.bf16 %v6558_v27  ;;  %6070 = vmatmul.mubr.msk.bf16.gmra.mxu0 %vm8856_vm9, %v5641_v10  ;;  %v6866_v15 = vpack.i.bf16 %v9730_v57, %v9628_v11 }
  0xef   :  { %v9832_v18 = vsel %vm483_vm0, %v12789_v53, %v601_v60  ;;  %v6861_v50 = vpack.i.bf16 %v9735_v39, %v9648_v28  ;;  %v12790_v43 = vpack.i.bf16 %v9597_v37, %v9592_v30  ;;  %v6876_v16 = vpack.i.bf16 %v9779_v34, %v9753_v62 }
  0xf0   :  { %v6871_v42 = vpack.i.bf16 %v9810_v5, %v9800_v29  ;;  %v6886_v6 = vpack.i.bf16 %v9822_v58, %v9813_v54  ;;  %v927_v52 = vrot.slane %v9721_v1, 3  ;;  %v12791_v11 = vpack.i.bf16 %v9608_v48, %v9603_v61  ;;  %v6578_v14 = vpop.permute.xlu1 %6577  ;;  %v7600_v61 = vld [vmem:[%s12595_s0 + $0xe0] sm:$0xff]  ;;  %v6573_v7 = vpop.permute.xlu0 %6572 }
  0xf1   :  { %6857 = vrot.lane.b32.xlu1 %v12790_v43, %s7664_s11  ;;  %v6881_v30 = vpack.i.bf16 %v9835_v59, %v9832_v18  ;;  %v9861_v37 = vsel %vm809_vm2, %v929_v35, %v931_v9  ;;  %v9866_v28 = vsel %vm809_vm2, %v931_v9, %v933_v31  ;;  %v1255_v57 = vrot.slane %v9654_v55, 4 }
  0xf2   :  { %6852 = vrot.lane.b32.xlu0 %v12791_v11, %s7665_s12  ;;  %v6555_v39 = vunpack.i.h.bf16 %v6553_v13  ;;  %v6554_v62 = vunpack.i.l.bf16 %v6553_v13  ;;  %v6570_v34 = vunpack.i.h.bf16 %v6568_v46  ;;  %v6569_v25 = vunpack.i.l.bf16 %v6568_v46 }
  0xf3   :  { %v1491_v48 = vsel %vm1461_vm4, %v7600_v61, %v6560_v47  ;;  %v1490_v63 = vsel %vm1461_vm4, %v7601_v36, %v6559_v20  ;;  %v6565_v21 = vunpack.i.h.bf16 %v6563_v32  ;;  %v6564_v19 = vunpack.i.l.bf16 %v6563_v32 }
  0xf4   :  { %v6580_v27 = vunpack.i.h.bf16 %v6578_v14  ;;  %v6579_v60 = vunpack.i.l.bf16 %v6578_v14  ;;  %v928_v22 = vsel %vm809_vm2, %v925_v44, %v927_v52  ;;  %v930_v13 = vsel %vm809_vm2, %v927_v52, %v929_v35  ;;  %v7603_v44 = vld [vmem:[%s12595_s0 + $0xc8] sm:$0xff]  ;;  %v6588_v4 = vpop.permute.xlu1 %6587  ;;  %v6583_v46 = vpop.permute.xlu0 %6582 }
  0xf5   :  { %6867 = vrot.lane.b32.xlu1 %v6866_v15, %s7668_s26  ;;  %v6575_v51 = vunpack.i.h.bf16 %v6573_v7  ;;  %v6574_v38 = vunpack.i.l.bf16 %v6573_v7  ;;  %v1257_v8 = vrot.slane %v9665_v45, 4  ;;  %v1259_v29 = vrot.slane %v9716_v3, 4 }
  0xf6   :  { %6862 = vrot.lane.b32.xlu0 %v6861_v50, %s7667_s21  ;;  %v1489_v26 = vsel %vm1461_vm4, %v7602_v56, %v6555_v39  ;;  %v1488_v10 = vsel %vm1461_vm4, %v7603_v44, %v6554_v62  ;;  %v1556_v5 = vsel %vm1527_vm5, %v1490_v63, %v6569_v25  ;;  %v1557_v54 = vsel %vm1527_vm5, %v1491_v48, %v6570_v34  ;;  %v9918_v34 = vld [vmem:[%s12595_s0 + $0x1f0] sm:$0xff]  ;;  %v7604_v44 = vld [vmem:[%s12595_s0 + $0xf8] sm:$0xff] }
  0xf7   :  { %v1554_v45 = vsel %vm1527_vm5, %v1488_v10, %v6564_v19  ;;  %v1555_v58 = vsel %vm1527_vm5, %v1489_v26, %v6565_v21  ;;  %v6590_v35 = vunpack.i.h.bf16 %v6588_v4  ;;  %v6589_v9 = vunpack.i.l.bf16 %v6588_v4 }
  0xf8   :  { %v1622_v53 = vsel %vm1593_vm6, %v1556_v5, %v6579_v60  ;;  %v1623_v18 = vsel %vm1593_vm6, %v1557_v54, %v6580_v27  ;;  %v6585_v59 = vunpack.i.h.bf16 %v6583_v46  ;;  %v6584_v47 = vunpack.i.l.bf16 %v6583_v46  ;;  %v9907_v11 = vpop.permute.xlu1 %6597 }
  0xf9   :  { %6877 = vrot.lane.b32.xlu1 %v6876_v16, %s7665_s12  ;;  %v1620_v20 = vsel %vm1593_vm6, %v1554_v45, %v6574_v38  ;;  %v1621_v32 = vsel %vm1593_vm6, %v1555_v58, %v6575_v51  ;;  %v1688_v15 = vsel %vm1659_vm7, %v1622_v53, %v6589_v9  ;;  %v1689_v50 = vsel %vm1659_vm7, %v1623_v18, %v6590_v35  ;;  %v9913_v16 = vld [vmem:[%s12595_s0 + $0x1f8] sm:$0xff]  ;;  %v7605_v35 = vld [vmem:[%s12595_s0 + $0xe8] sm:$0xff] }
  0xfa   :  { %6872 = vrot.lane.b32.xlu0 %v6871_v42, %s7665_s12  ;;  %v1686_v43 = vsel %vm1659_vm7, %v1620_v20, %v6584_v47  ;;  %v1687_v52 = vsel %vm1659_vm7, %v1621_v32, %v6585_v59  ;;  %v5647_v39 = vpack.c.bf16 %v1689_v50, %v1688_v15  ;;  %v1253_v62 = vrot.slane %v9721_v1, 4  ;;  %v6593_v42 = vpop.permute.xlu0 %6592  ;;  %v7606_v47 = vld [vmem:[%s12595_s0 + $0xf0] sm:$0xff] }
  0xfb   :  { %v5644_v25 = vpack.c.bf16 %v1687_v52, %v1686_v43  ;;  %v6896_v14 = vpack.i.bf16 %v9866_v28, %v9861_v37  ;;  %v6891_v61 = vpack.i.bf16 %v930_v13, %v928_v22  ;;  %v1258_v1 = vsel %vm1135_vm3, %v1255_v57, %v1257_v8 }
  0xfc   :  { %v1260_v48 = vsel %vm1135_vm3, %v1257_v8, %v1259_v29  ;;  %v285_v36 = vrot.slane %v9913_v16, 1  ;;  %v9936_v37 = vpop.permute.xlu1 %6607  ;;  %v1256_v28 = vsel %vm1135_vm3, %v1253_v62, %v1255_v57  ;;  %v609_v63 = vrot.slane %v9918_v34, 2 }
  0xfd   :  { %6887 = vrot.lane.b32.xlu1 %v6886_v6, %s7664_s11  ;;  %6073 = vmatprep.mubr.msk.bf16.mxu0 %vm8856_vm9, %v5644_v25  ;;  %v283_v6 = vrot.slane %v9918_v34, 1  ;;  %v611_v19 = vrot.slane %v9913_v16, 2  ;;  %v6599_v7 = vunpack.i.l.bf16 %v9907_v11  ;;  %v6906_v27 = vpack.i.bf16 %v1260_v48, %v1258_v1 }
  0xfe   :  { %6882 = vrot.lane.b32.xlu0 %v6881_v30, %s7664_s11  ;;  %6074 = vmatmul.mubr.msk.bf16.gmra.mxu0 %vm8856_vm9, %v5647_v39  ;;  %v1254_v30 = vsel %vm1135_vm3, %v1251_v40, %v1253_v62  ;;  %v6603_v21 = vpop.permute.xlu0 %6602  ;;  %v6594_v55 = vunpack.i.l.bf16 %v6593_v42  ;;  %v287_v22 = vsel %vm157_vm1, %v285_v36, %v12723_v17  ;;  %v610_v13 = vsel %vm483_vm0, %v607_v2, %v609_v63 }
  0xff   :  { %v6901_v60 = vpack.i.bf16 %v1256_v28, %v1254_v30  ;;  %v284_v24 = vsel %vm157_vm1, %v281_v0, %v283_v6  ;;  %v286_v40 = vsel %vm157_vm1, %v283_v6, %v285_v36  ;;  %v937_v51 = vrot.slane %v9913_v16, 3 }
 0x100   :  { %v9953_v57 = vpop.permute.xlu1 %6617  ;;  %v6595_v38 = vunpack.i.h.bf16 %v6593_v42  ;;  %v6609_v8 = vunpack.i.l.bf16 %v9936_v37  ;;  %v6604_v56 = vunpack.i.l.bf16 %v6603_v21  ;;  %v612_v0 = vsel %vm483_vm0, %v609_v63, %v611_v19 }
 0x101   :  { %6897 = vrot.lane.b32.xlu1 %v6896_v14, %s7667_s21  ;;  %v1494_v10 = vsel %vm1461_vm4, %v7604_v44, %v6599_v7  ;;  %v6605_v17 = vunpack.i.h.bf16 %v6603_v21  ;;  %v6619_v5 = vunpack.i.l.bf16 %v9953_v57  ;;  %v6911_v2 = vpack.i.bf16 %v286_v40, %v284_v24 }
 0x102   :  { %6892 = vrot.lane.b32.xlu0 %v6891_v61, %s7667_s21  ;;  %v6613_v26 = vpop.permute.xlu0 %6612  ;;  %v613_v45 = vsel %vm483_vm0, %v611_v19, %v12727_v49  ;;  %v935_v58 = vrot.slane %v9918_v34, 3  ;;  %v1492_v9 = vsel %vm1461_vm4, %v7605_v35, %v6594_v55  ;;  %v6916_v53 = vpack.i.bf16 %v612_v0, %v610_v13 }
 0x103   :  { %v6615_v54 = vunpack.i.h.bf16 %v6613_v26  ;;  %v6614_v4 = vunpack.i.l.bf16 %v6613_v26  ;;  %v1263_v18 = vrot.slane %v9913_v16, 4  ;;  %v1261_v59 = vrot.slane %v9918_v34, 4 }
 0x104   :  { %v9977_v46 = vpop.permute.xlu1 %6627  ;;  %v1493_v49 = vsel %vm1461_vm4, %v7606_v47, %v6595_v38  ;;  %v1560_v20 = vsel %vm1527_vm5, %v1494_v10, %v6609_v8  ;;  %v1558_v32 = vsel %vm1527_vm5, %v1492_v9, %v6604_v56  ;;  %v936_v25 = vsel %vm809_vm2, %v933_v31, %v935_v58 }
 0x105   :  { %6907 = vrot.lane.b32.xlu1 %v6906_v27, %s7668_s26  ;;  %v6629_v15 = vunpack.i.l.bf16 %v9977_v46  ;;  %v1559_v43 = vsel %vm1527_vm5, %v1493_v49, %v6605_v17  ;;  %v1626_v52 = vsel %vm1593_vm6, %v1560_v20, %v6619_v5  ;;  %v1624_v16 = vsel %vm1593_vm6, %v1558_v32, %v6614_v4  ;;  %v7609_v5 = vld [vmem:[%s12595_s0 + $0x108] sm:$0xff] }
 0x106   :  { %6902 = vrot.lane.b32.xlu0 %v6901_v60, %s7668_s26  ;;  %v6623_v50 = vpop.permute.xlu0 %6622  ;;  %v1625_v34 = vsel %vm1593_vm6, %v1559_v43, %v6615_v54  ;;  %v938_v36 = vsel %vm809_vm2, %v935_v58, %v937_v51  ;;  %v939_v31 = vsel %vm809_vm2, %v937_v51, %v12730_v23  ;;  %v1262_v21 = vsel %vm1135_vm3, %v1259_v29, %v1261_v59  ;;  %v7607_v29 = vld [vmem:[%s12595_s0 + $0x100] sm:$0xff] }
 0x107   :  { %v6625_v39 = vunpack.i.h.bf16 %v6623_v50  ;;  %v6624_v62 = vunpack.i.l.bf16 %v6623_v50  ;;  %v1692_v42 = vsel %vm1659_vm7, %v1626_v52, %v6629_v15  ;;  %v6921_v28 = vpack.i.bf16 %v938_v36, %v936_v25  ;;  %v7611_v36 = vld [vmem:[%s12595_s0 + $0x120] sm:$0xff] }
 0x108   :  { %v10000_v1 = vpop.permute.xlu1 %6637  ;;  %v5653_v48 = vpack.c.bf16 %v9183_v41, %v1692_v42  ;;  %v1264_v19 = vsel %vm1135_vm3, %v1261_v59, %v1263_v18  ;;  %v6600_v7 = vunpack.i.h.bf16 %v9907_v11  ;;  %v1265_v23 = vsel %vm1135_vm3, %v1263_v18, %v12748_v33  ;;  %v7608_v33 = vld [vmem:[%s12595_s0 + $0x118] sm:$0xff] }
 0x109   :  { %416 = vrot.lane.b32.xlu1 %v287_v22, %s7665_s12  ;;  %v1690_v14 = vsel %vm1659_vm7, %v1624_v16, %v6624_v62  ;;  %v1691_v61 = vsel %vm1659_vm7, %v1625_v34, %v6625_v39  ;;  %v6639_v60 = vunpack.i.l.bf16 %v10000_v1  ;;  %v6926_v24 = vpack.i.bf16 %v1264_v19, %v1262_v21  ;;  %v7612_v19 = vld [vmem:[%s12595_s0 + $0x138] sm:$0xff] }
 0x10a   :  { %6912 = vrot.lane.b32.xlu0 %v6911_v2, %s7665_s12  ;;  %v6633_v6 = vpop.permute.xlu0 %6632  ;;  %v5650_v30 = vpack.c.bf16 %v1691_v61, %v1690_v14  ;;  %v6610_v40 = vunpack.i.h.bf16 %v9936_v37  ;;  %v1495_v11 = vsel %vm1461_vm4, %v7607_v29, %v6600_v7  ;;  %v6620_v26 = vunpack.i.h.bf16 %v9953_v57  ;;  %v7610_v57 = vld [vmem:[%s12595_s0 + $0x110] sm:$0xff] }
 0x10b   :  { %v6634_v3 = vunpack.i.l.bf16 %v6633_v6  ;;  %v6635_v22 = vunpack.i.h.bf16 %v6633_v6  ;;  %v1498_v37 = vsel %vm1461_vm4, %v7608_v33, %v6639_v60  ;;  %v6630_v17 = vunpack.i.h.bf16 %v9977_v46 }
 0x10c   :  { %6077 = vmatprep.mubr.msk.bf16.mxu0 %vm8856_vm9, %v5650_v30  ;;  %v10012_v63 = vpop.permute.xlu1 %6647  ;;  %v1561_v10 = vsel %vm1527_vm5, %v1495_v11, %v6610_v40  ;;  %v6640_v34 = vunpack.i.h.bf16 %v10000_v1  ;;  %vm5540_vm1 = vcmask 1043459  }
 0x10d   :  { %742 = vrot.lane.b32.xlu1 %v613_v45, %s7664_s11  ;;  %6078 = vmatmul.mubr.msk.bf16.gmra.mxu0 %vm8856_vm9, %v5653_v48  ;;  %v6649_v13 = vunpack.i.l.bf16 %v10012_v63  ;;  %v1496_v2 = vsel %vm1461_vm4, %v7609_v5, %v6634_v3  ;;  %v1497_v4 = vsel %vm1461_vm4, %v7610_v57, %v6635_v22  ;;  %v1627_v47 = vsel %vm1593_vm6, %v1561_v10, %v6620_v26 }
 0x10e   :  { %6917 = vrot.lane.b32.xlu0 %v6916_v53, %s7664_s11  ;;  %v6643_v27 = vpop.permute.xlu0 %6642  ;;  %v1693_v15 = vsel %vm1659_vm7, %v1627_v47, %v6630_v17  ;;  %v6650_v61 = vunpack.i.h.bf16 %v10012_v63  ;;  %v1499_v6 = vsel %vm1461_vm4, %v7611_v36, %v6640_v34  ;;  %v7617_v34 = vld [vmem:[%s12595_s0 + $0x148] sm:$0xff] }
 0x10f   :  { %v6644_v51 = vunpack.i.l.bf16 %v6643_v27  ;;  %v6645_v8 = vunpack.i.h.bf16 %v6643_v27  ;;  %v1564_v45 = vsel %vm1527_vm5, %v1498_v37, %v6649_v13  ;;  %v7615_v37 = vld [vmem:[%s12595_s0 + $0x128] sm:$0xff] }
 0x110   :  { %v10025_v55 = vpop.permute.xlu1 %6657 }
 0x111   :  { %1068 = vrot.lane.b32.xlu1 %v939_v31, %s7667_s21  ;;  %v6659_v56 = vunpack.i.l.bf16 %v10025_v55  ;;  %v1562_v58 = vsel %vm1527_vm5, %v1496_v2, %v6644_v51  ;;  %v1563_v46 = vsel %vm1527_vm5, %v1497_v4, %v6645_v8  ;;  %v6660_v1 = vunpack.i.h.bf16 %v10025_v55 }
 0x112   :  { %6922 = vrot.lane.b32.xlu0 %v6921_v28, %s7667_s21  ;;  %v6653_v38 = vpop.permute.xlu0 %6652 }
 0x113   :  { %v6655_v0 = vunpack.i.h.bf16 %v6653_v38  ;;  %v6654_v44 = vunpack.i.l.bf16 %v6653_v38  ;;  %v1630_v53 = vsel %vm1593_vm6, %v1564_v45, %v6659_v56  ;;  %v7614_v38 = vld [vmem:[%s12595_s0 + $0x130] sm:$0xff] }
 0x114   :  { %v10046_v54 = vpop.permute.xlu1 %6667 }
 0x115   :  { %1394 = vrot.lane.b32.xlu1 %v1265_v23, %s7668_s26  ;;  %v6669_v35 = vunpack.i.l.bf16 %v10046_v54  ;;  %v1628_v49 = vsel %vm1593_vm6, %v1562_v58, %v6654_v44  ;;  %v1629_v20 = vsel %vm1593_vm6, %v1563_v46, %v6655_v0  ;;  %v1565_v23 = vsel %vm1527_vm5, %v1499_v6, %v6650_v61 }
 0x116   :  { %6927 = vrot.lane.b32.xlu0 %v6926_v24, %s7668_s26  ;;  %v6663_v9 = vpop.permute.xlu0 %6662  ;;  %v7613_v24 = vld [vmem:[%s12595_s0 + $0x140] sm:$0xff]  ;;  %v1631_v29 = vsel %vm1593_vm6, %v1565_v23, %v6660_v1  ;;  %v6670_v51 = vunpack.i.h.bf16 %v10046_v54 }
 0x117   :  { %v6665_v18 = vunpack.i.h.bf16 %v6663_v9  ;;  %v6664_v59 = vunpack.i.l.bf16 %v6663_v9  ;;  %v1696_v32 = vsel %vm1659_vm7, %v1630_v53, %v6669_v35 }
 0x118   :  { %v6678_v52 = vpop.permute.xlu1 %6677  ;;  %v1697_v46 = vsel %vm1659_vm7, %v1631_v29, %v6670_v51 }
 0x119   :  { %v1694_v50 = vsel %vm1659_vm7, %v1628_v49, %v6664_v59  ;;  %v1695_v43 = vsel %vm1659_vm7, %v1629_v20, %v6665_v18  ;;  %v6679_v25 = vunpack.i.l.bf16 %v6678_v52  ;;  %v6680_v48 = vunpack.i.h.bf16 %v6678_v52 }
 0x11a   :  { %v6673_v39 = vpop.permute.xlu0 %6672  ;;  %v5656_v62 = vpack.c.bf16 %v1694_v50, %v1693_v15  ;;  %v5659_v16 = vpack.c.bf16 %v1696_v32, %v1695_v43 }
 0x11b   :  { %v6675_v30 = vunpack.i.h.bf16 %v6673_v39  ;;  %v6674_v31 = vunpack.i.l.bf16 %v6673_v39  ;;  %v1502_v7 = vsel %vm1461_vm4, %v7612_v19, %v6679_v25  ;;  %v1503_v40 = vsel %vm1461_vm4, %v7613_v24, %v6680_v48 }
 0x11c   :  { %6081 = vmatprep.mubr.msk.bf16.mxu0 %vm8856_vm9, %v5656_v62  ;;  %v6688_v42 = vpop.permute.xlu1 %6687  ;;  %v7616_v62 = vld [vmem:[%s12595_s0 + $0x150] sm:$0xff] }
 0x11d   :  { %6082 = vmatmul.mubr.msk.bf16.gmra.mxu0 %vm8856_vm9, %v5659_v16  ;;  %v6689_v28 = vunpack.i.l.bf16 %v6688_v42  ;;  %v6690_v63 = vunpack.i.h.bf16 %v6688_v42  ;;  %v1501_v33 = vsel %vm1461_vm4, %v7614_v38, %v6675_v30  ;;  %v1500_v8 = vsel %vm1461_vm4, %v7615_v37, %v6674_v31  ;;  %v7619_v38 = vld [vmem:[%s12595_s0 + $0x168] sm:$0xff] }
 0x11e   :  { %v6683_v14 = vpop.permute.xlu0 %6682 }
 0x11f   :  { %v6684_v27 = vunpack.i.l.bf16 %v6683_v14  ;;  %v6685_v3 = vunpack.i.h.bf16 %v6683_v14  ;;  %v1568_v56 = vsel %vm1527_vm5, %v1502_v7, %v6689_v28  ;;  %v1569_v0 = vsel %vm1527_vm5, %v1503_v40, %v6690_v63 }
 0x120   :  { %v6698_v21 = vpop.permute.xlu1 %6697 }
 0x121   :  { %v6699_v55 = vunpack.i.l.bf16 %v6698_v21  ;;  %v6700_v11 = vunpack.i.h.bf16 %v6698_v21  ;;  %v1566_v44 = vsel %vm1527_vm5, %v1500_v8, %v6684_v27  ;;  %v1567_v2 = vsel %vm1527_vm5, %v1501_v33, %v6685_v3 }
 0x122   :  { %v6693_v60 = vpop.permute.xlu0 %6692 }
 0x123   :  { %v6695_v22 = vunpack.i.h.bf16 %v6693_v60  ;;  %v6694_v13 = vunpack.i.l.bf16 %v6693_v60  ;;  %v1634_v54 = vsel %vm1593_vm6, %v1568_v56, %v6699_v55  ;;  %v1635_v45 = vsel %vm1593_vm6, %v1569_v0, %v6700_v11 }
 0x124   :  { %v6708_v26 = vpop.permute.xlu1 %6707 }
 0x125   :  { %v6710_v10 = vunpack.i.h.bf16 %v6708_v26  ;;  %v6709_v17 = vunpack.i.l.bf16 %v6708_v26  ;;  %v1632_v58 = vsel %vm1593_vm6, %v1566_v44, %v6694_v13  ;;  %v1633_v35 = vsel %vm1593_vm6, %v1567_v2, %v6695_v22  ;;  %v7618_v13 = vld [vmem:[%s12595_s0 + $0x170] sm:$0xff]  ;;  %v7621_v2 = vld [vmem:[%s12595_s0 + $0x158] sm:$0xff] }
 0x126   :  { %v6703_v5 = vpop.permute.xlu0 %6702 }
 0x127   :  { %v6705_v57 = vunpack.i.h.bf16 %v6703_v5  ;;  %v6704_v4 = vunpack.i.l.bf16 %v6703_v5  ;;  %v1700_v9 = vsel %vm1659_vm7, %v1634_v54, %v6709_v17  ;;  %v1701_v53 = vsel %vm1659_vm7, %v1635_v45, %v6710_v10  ;;  %v7620_v17 = vld [vmem:[%s12595_s0 + $0x160] sm:$0xff] }
 0x128   :  { %v6718_v47 = vpop.permute.xlu1 %6717  ;;  %v5668_v39 = vpack.c.bf16 %v1701_v53, %v9183_v41 }
 0x129   :  { %v1698_v18 = vsel %vm1659_vm7, %v1632_v58, %v6704_v4  ;;  %v1699_v59 = vsel %vm1659_vm7, %v1633_v35, %v6705_v57  ;;  %v6720_v43 = vunpack.i.h.bf16 %v6718_v47  ;;  %v6719_v52 = vunpack.i.l.bf16 %v6718_v47 }
 0x12a   :  { %v6713_v49 = vpop.permute.xlu0 %6712  ;;  %v5662_v20 = vpack.c.bf16 %v1698_v18, %v1697_v46  ;;  %v5665_v32 = vpack.c.bf16 %v1700_v9, %v1699_v59 }
 0x12b   :  { %v6715_v15 = vunpack.i.h.bf16 %v6713_v49  ;;  %v6714_v50 = vunpack.i.l.bf16 %v6713_v49 }
 0x12c   :  { %6085 = vmatprep.mubr.msk.bf16.mxu0 %vm8856_vm9, %v5662_v20  ;;  %v6728_v25 = vpop.permute.xlu1 %6727 }
 0x12d   :  { %v1505_v16 = vsel %vm1461_vm4, %v7616_v62, %v6715_v15  ;;  %v1504_v42 = vsel %vm1461_vm4, %v7617_v34, %v6714_v50  ;;  %6086 = vmatmul.mubr.msk.bf16.gmra.mxu0 %vm8856_vm9, %v5665_v32  ;;  %v6730_v14 = vunpack.i.h.bf16 %v6728_v25  ;;  %v6729_v61 = vunpack.i.l.bf16 %v6728_v25 }
 0x12e   :  { %v6723_v48 = vpop.permute.xlu0 %6722  ;;  %6089 = vmatprep.mubr.msk.bf16.mxu0 %vm8856_vm9, %v5668_v39  ;;  %v1570_v1 = vsel %vm1527_vm5, %v1504_v42, %v6719_v52  ;;  %v1571_v30 = vsel %vm1527_vm5, %v1505_v16, %v6720_v43 }
 0x12f   :  { %v6725_v36 = vunpack.i.h.bf16 %v6723_v48  ;;  %v6724_v6 = vunpack.i.l.bf16 %v6723_v48 }
 0x130   :  { %v6738_v21 = vpop.permute.xlu1 %6737 }
 0x131   :  { %v1636_v31 = vsel %vm1593_vm6, %v1570_v1, %v6724_v6  ;;  %v1637_v28 = vsel %vm1593_vm6, %v1571_v30, %v6725_v36  ;;  %v6740_v23 = vunpack.i.h.bf16 %v6738_v21  ;;  %v6739_v24 = vunpack.i.l.bf16 %v6738_v21 }
 0x132   :  { %v6733_v19 = vpop.permute.xlu0 %6732  ;;  %v1702_v7 = vsel %vm1659_vm7, %v1636_v31, %v6729_v61  ;;  %v1703_v63 = vsel %vm1659_vm7, %v1637_v28, %v6730_v14  ;;  %v7622_v31 = vld [vmem:[%s12595_s0 + $0x188] sm:$0xff] }
 0x133   :  { %v5671_v27 = vpack.c.bf16 %v1703_v63, %v1702_v7  ;;  %v6735_v3 = vunpack.i.h.bf16 %v6733_v19  ;;  %v6734_v55 = vunpack.i.l.bf16 %v6733_v19  ;;  %v1509_v51 = vsel %vm1461_vm4, %v7618_v13, %v6740_v23 }
 0x134   :  { %v6748_v60 = vpop.permute.xlu1 %6747  ;;  %v1508_v33 = vsel %vm1461_vm4, %v7619_v38, %v6739_v24  ;;  %v7624_v24 = vld [vmem:[%s12595_s0 + $0x180] sm:$0xff] }
 0x135   :  { %6090 = vmatmul.mubr.msk.bf16.gmra.mxu0 %vm8856_vm9, %v5671_v27  ;;  %v6750_v29 = vunpack.i.h.bf16 %v6748_v60  ;;  %v6749_v11 = vunpack.i.l.bf16 %v6748_v60  ;;  %v1507_v5 = vsel %vm1461_vm4, %v7620_v17, %v6735_v3  ;;  %v1506_v54 = vsel %vm1461_vm4, %v7621_v2, %v6734_v55  ;;  %v7623_v27 = vld [vmem:[%s12595_s0 + $0x178] sm:$0xff] }
 0x136   :  { %v6743_v40 = vpop.permute.xlu0 %6742  ;;  %v7539_v2 = vld [vmem:[%s12598_s3 + $0x38] sm:$0xff]  }
 0x137   :  { %v6745_v37 = vunpack.i.h.bf16 %v6743_v40  ;;  %v6744_v8 = vunpack.i.l.bf16 %v6743_v40  ;;  %v1574_v57 = vsel %vm1527_vm5, %v1508_v33, %v6749_v11  ;;  %v1575_v4 = vsel %vm1527_vm5, %v1509_v51, %v6750_v29  ;;  %6117 = vmatprep.subr.bf16.mxu0 %v7539_v2  ;;  %6269 = vmatprep.subr.bf16.mxu1 %v7539_v2 }
 0x138   :  { %v6758_v22 = vpop.permute.xlu1 %6757  ;;  %6118 = vmatpush3.bf16.msra.mxu0 %v7539_v2  ;;  %6277 = vmatpush3.bf16.msra.mxu1 %v7539_v2 }
 0x139   :  { %v6760_v26 = vunpack.i.h.bf16 %v6758_v22  ;;  %v6759_v0 = vunpack.i.l.bf16 %v6758_v22  ;;  %v1572_v58 = vsel %vm1527_vm5, %v1506_v54, %v6744_v8  ;;  %v1573_v35 = vsel %vm1527_vm5, %v1507_v5, %v6745_v37 }
 0x13a   :  { %v6753_v56 = vpop.permute.xlu0 %6752 }
 0x13b   :  { %v6755_v44 = vunpack.i.h.bf16 %v6753_v56  ;;  %v6754_v10 = vunpack.i.l.bf16 %v6753_v56  ;;  %v1640_v18 = vsel %vm1593_vm6, %v1574_v57, %v6759_v0  ;;  %v1641_v59 = vsel %vm1593_vm6, %v1575_v4, %v6760_v26  ;;  %v10190_v57 = vld [vmem:[%s12597_s2] ss:$0 sm:$0xff]  ;;  %v7625_v4 = vld [vmem:[%s12595_s0 + $0x190] sm:$0xff] }
 0x13c   :  { %v6768_v45 = vpop.permute.xlu1 %6767 }
 0x13d   :  { %v6770_v9 = vunpack.i.h.bf16 %v6768_v45  ;;  %v6769_v46 = vunpack.i.l.bf16 %v6768_v45  ;;  %v1638_v20 = vsel %vm1593_vm6, %v1572_v58, %v6754_v10  ;;  %v1639_v32 = vsel %vm1593_vm6, %v1573_v35, %v6755_v44 }
 0x13e   :  { %v6763_v53 = vpop.permute.xlu0 %6762 }
 0x13f   :  { %v6765_v47 = vunpack.i.h.bf16 %v6763_v53  ;;  %v6764_v49 = vunpack.i.l.bf16 %v6763_v53  ;;  %v1706_v15 = vsel %vm1659_vm7, %v1640_v18, %v6769_v46  ;;  %v1707_v50 = vsel %vm1659_vm7, %v1641_v59, %v6770_v9 }
 0x140   :  { %v6778_v39 = vpop.permute.xlu1 %6777  ;;  %v5677_v62 = vpack.c.bf16 %v1707_v50, %v1706_v15 }
 0x141   :  { %v1704_v43 = vsel %vm1659_vm7, %v1638_v20, %v6764_v49  ;;  %v1705_v52 = vsel %vm1659_vm7, %v1639_v32, %v6765_v47  ;;  %v6779_v14 = vunpack.i.l.bf16 %v6778_v39  ;;  %v6780_v33 = vunpack.i.h.bf16 %v6778_v39  ;;  %v7541_v39 = vld [vmem:[%s12598_s3 + $0x28] sm:$0xff]  }
 0x142   :  { %v6773_v16 = vpop.permute.xlu0 %6772  ;;  %v5674_v34 = vpack.c.bf16 %v1705_v52, %v1704_v43  ;;  %v7540_v52 = vld [vmem:[%s12598_s3 + $0x30] sm:$0xff]  }
 0x143   :  { %v6774_v61 = vunpack.i.l.bf16 %v6773_v16  ;;  %v6775_v36 = vunpack.i.h.bf16 %v6773_v16  ;;  %v1512_v28 = vsel %vm1461_vm4, %v7622_v31, %v6779_v14  ;;  %v1513_v45 = vsel %vm1461_vm4, %v7625_v4, %v6780_v33  ;;  %6119 = vmatprep.subr.bf16.mxu0 %v7540_v52  ;;  %6270 = vmatprep.subr.bf16.mxu1 %v7540_v52 }
 0x144   :  { %6093 = vmatprep.mubr.msk.bf16.mxu0 %vm8856_vm9, %v5674_v34  ;;  %v6788_v42 = vpop.permute.xlu1 %6787  ;;  %6120 = vmatpush3.bf16.msra.mxu0 %v7540_v52 }
 0x145   :  { %6094 = vmatmul.mubr.msk.bf16.gmra.mxu0 %vm8856_vm9, %v5677_v62  ;;  %v6789_v6 = vunpack.i.l.bf16 %v6788_v42  ;;  %v1510_v60 = vsel %vm1461_vm4, %v7623_v27, %v6774_v61  ;;  %v1511_v40 = vsel %vm1461_vm4, %v7624_v24, %v6775_v36  ;;  %v6790_v54 = vunpack.i.h.bf16 %v6788_v42  ;;  %v7626_v61 = vld [vmem:[%s12595_s0 + $0x1b0] sm:$0xff]  ;;  %v7627_v36 = vld [vmem:[%s12595_s0 + $0x1a8] sm:$0xff]  ;;  %6278 = vmatpush3.bf16.msra.mxu1 %v7540_v52 }
 0x146   :  { %v6783_v25 = vpop.permute.xlu0 %6782  ;;  %6121 = vmatprep.subr.bf16.mxu0 %v7541_v39  ;;  %6271 = vmatprep.subr.bf16.mxu1 %v7541_v39 }
 0x147   :  { %v6784_v1 = vunpack.i.l.bf16 %v6783_v25  ;;  %v6785_v21 = vunpack.i.h.bf16 %v6783_v25  ;;  %v1578_v3 = vsel %vm1527_vm5, %v1512_v28, %v6789_v6  ;;  %v1579_v49 = vsel %vm1527_vm5, %v1513_v45, %v6790_v54  ;;  %v7628_v28 = vld [vmem:[%s12595_s0 + $0x1a0] sm:$0xff] }
 0x148   :  { %6122 = vmatpush3.bf16.msra.mxu0 %v7541_v39 }
 0x149   :  { %v1576_v55 = vsel %vm1527_vm5, %v1510_v60, %v6784_v1  ;;  %v1577_v22 = vsel %vm1527_vm5, %v1511_v40, %v6785_v21  ;;  %6279 = vmatpush3.bf16.msra.mxu1 %v7541_v39 }
 0x14a   :  { %v6798_v48 = vpop.permute.xlu1 %6797  ;;  %v6793_v30 = vpop.permute.xlu0 %6792 }
 0x14b   :  { %v6799_v19 = vunpack.i.l.bf16 %v6798_v48  ;;  %v6795_v7 = vunpack.i.h.bf16 %v6793_v30  ;;  %v6794_v63 = vunpack.i.l.bf16 %v6793_v30  ;;  %v6800_v58 = vunpack.i.h.bf16 %v6798_v48 }
 0x14d   :  { %v1644_v13 = vsel %vm1593_vm6, %v1578_v3, %v6799_v19  ;;  %v1642_v37 = vsel %vm1593_vm6, %v1576_v55, %v6794_v63  ;;  %v1643_v8 = vsel %vm1593_vm6, %v1577_v22, %v6795_v7  ;;  %v6047_v9 = vpop.f32.mrf.mxu0  ;;  %v1645_v50 = vsel %vm1593_vm6, %v1579_v49, %v6800_v58  ;;  %v7629_v19 = vld [vmem:[%s12595_s0 + $0x198] sm:$0xff]  ;;  %v7542_v3 = vld [vmem:[%s12598_s3 + $0x20] sm:$0xff]  }
 0x14e   :  { %v6808_v23 = vpop.permute.xlu1 %6807  ;;  %v1941_v59 = vadd.f32 %v6047_v9, %v10190_v57  ;;  %6123 = vmatprep.subr.bf16.mxu0 %v7542_v3  ;;  %6272 = vmatprep.subr.bf16.mxu1 %v7542_v3 }
 0x14f   :  { %v6809_v29 = vunpack.i.l.bf16 %v6808_v23  ;;  %v6803_v11 = vpop.permute.xlu0 %6802  ;;  %v6810_v35 = vunpack.i.h.bf16 %v6808_v23  ;;  %v1932_v15 = vpop.f32.mrf.mxu0  ;;  %6124 = vmatpush3.bf16.msra.mxu0 %v7542_v3  ;;  %6280 = vmatpush3.bf16.msra.mxu1 %v7542_v3 }
 0x150   :  { %v6805_v51 = vunpack.i.h.bf16 %v6803_v11  ;;  %v6804_v38 = vunpack.i.l.bf16 %v6803_v11  ;;  %v1933_v43 = vadd.f32 %v10190_v57, %v1932_v15  ;;  %v10228_v1 = vmax.f32 %v1941_v59, 0.0 }
 0x151   :  { %v1710_v56 = vsel %vm1659_vm7, %v1644_v13, %v6809_v29  ;;  %v10213_v62 = vsel %vm1659_vm7, %v1645_v50, %v6810_v35  ;;  %v6048_v25 = vpop.f32.mrf.mxu0 }
 0x152   :  { %v1708_v26 = vsel %vm1659_vm7, %v1642_v37, %v6804_v38  ;;  %v1709_v0 = vsel %vm1659_vm7, %v1643_v8, %v6805_v51  ;;  %v10230_v30 = vmax.f32 %v1933_v43, 0.0  ;;  %v1944_v63 = vadd.f32 %v6048_v25, %v10190_v57 }
 0x153   :  { %v6818_v44 = vpop.permute.xlu1 %6817  ;;  %v5680_v17 = vpack.c.bf16 %v9183_v41, %v1708_v26  ;;  %v5683_v5 = vpack.c.bf16 %v1710_v56, %v1709_v0  ;;  %v1935_v27 = vpop.f32.mrf.mxu0  ;;  %v2366_v51 = vrot.slane %v10228_v1, 2  ;;  %v2694_v38 = vrot.slane %v10228_v1, 4 }
 0x154   :  { %v6813_v10 = vpop.permute.xlu0 %6812  ;;  %v6820_v53 = vunpack.i.h.bf16 %v6818_v44  ;;  %v6819_v18 = vunpack.i.l.bf16 %v6818_v44  ;;  %v1936_v40 = vadd.f32 %v10190_v57, %v1935_v27  ;;  %v2363_v33 = vrot.slane %v10230_v30, 2 }
 0x155   :  { %6097 = vmatprep.mubr.msk.bf16.mxu0 %vm8856_vm9, %v5680_v17  ;;  %v6815_v20 = vunpack.i.h.bf16 %v6813_v10  ;;  %v6814_v32 = vunpack.i.l.bf16 %v6813_v10  ;;  %v10257_v56 = vmax.f32 %v1944_v63, 0.0  ;;  %v2691_v9 = vrot.slane %v10230_v30, 4 }
 0x156   :  { %6098 = vmatmul.mubr.msk.bf16.gmra.mxu0 %vm8856_vm9, %v5683_v5  ;;  %v10222_v48 = vsel %vm1461_vm4, %v7626_v61, %v6820_v53  ;;  %v1516_v6 = vsel %vm1461_vm4, %v7627_v36, %v6819_v18  ;;  %v10255_v37 = vmax.f32 %v1936_v40, 0.0 }
 0x157   :  { %v10200_v46 = vpop.permute.xlu1 %6827  ;;  %v1515_v21 = vsel %vm1461_vm4, %v7628_v28, %v6815_v20  ;;  %v1514_v7 = vsel %vm1461_vm4, %v7629_v19, %v6814_v32  ;;  %v2368_v39 = vrot.slane %v10257_v56, 2  ;;  %v7630_v28 = vld [vmem:[%s12595_s0 + $0x1c0] sm:$0xff]  ;;  %v7631_v19 = vld [vmem:[%s12595_s0 + $0x1b8] sm:$0xff] }
 0x158   :  { %v6823_v47 = vpop.permute.xlu0 %6822  ;;  %v6829_v16 = vunpack.i.l.bf16 %v10200_v46  ;;  %v6830_v55 = vunpack.i.h.bf16 %v10200_v46  ;;  %v2364_v2 = vrot.slane %v10255_v37, 2  ;;  %v2692_v54 = vrot.slane %v10255_v37, 4 }
 0x159   :  { %v6825_v34 = vunpack.i.h.bf16 %v6823_v47  ;;  %v6824_v42 = vunpack.i.l.bf16 %v6823_v47  ;;  %v7543_v47 = vld [vmem:[%s12598_s3 + $0x18] sm:$0xff]  }
 0x15a   :  { %v1582_v29 = vsel %vm1527_vm5, %v1516_v6, %v6829_v16  ;;  %v2365_v32 = vsel %vm483_vm0, %v2363_v33, %v2364_v2  ;;  %v2367_v15 = vsel %vm483_vm0, %v2364_v2, %v2366_v51  ;;  %v1583_v50 = vsel %vm1527_vm5, %v10222_v48, %v6830_v55  ;;  %6125 = vmatprep.subr.bf16.mxu0 %v7543_v47 }
 0x15b   :  { %v10216_v14 = vpop.permute.xlu1 %6837  ;;  %v1580_v11 = vsel %vm1527_vm5, %v1514_v7, %v6824_v42  ;;  %v1581_v22 = vsel %vm1527_vm5, %v1515_v21, %v6825_v34  ;;  %v6931_v52 = vpack.i.bf16 %v2367_v15, %v2365_v32  ;;  %v2693_v42 = vsel %vm1135_vm3, %v2691_v9, %v2692_v54  ;;  %6273 = vmatprep.subr.bf16.mxu1 %v7543_v47 }
 0x15c   :  { %v6833_v31 = vpop.permute.xlu0 %6832  ;;  %v6839_v60 = vunpack.i.l.bf16 %v10216_v14  ;;  %v6840_v46 = vunpack.i.h.bf16 %v10216_v14  ;;  %v2695_v25 = vsel %vm1135_vm3, %v2692_v54, %v2694_v38  ;;  %6126 = vmatpush3.bf16.msra.mxu0 %v7543_v47  ;;  %6281 = vmatpush3.bf16.msra.mxu1 %v7543_v47  ;;  %v7632_v47 = vld [vmem:[%s12595_s0 + $0x1e0] sm:$0xff] }
 0x15d   :  { %v6835_v23 = vunpack.i.h.bf16 %v6833_v31  ;;  %v6834_v24 = vunpack.i.l.bf16 %v6833_v31  ;;  %6932 = vrot.lane.b32.xlu0 %v6931_v52, %s7664_s11  ;;  %v7544_v31 = vld [vmem:[%s12598_s3 + $0x10] sm:$0xff]   ;;  %v6936_v3 = vpack.i.bf16 %v2695_v25, %v2693_v42  ;;  %v7546_v25 = vld [vmem:[%s12598_s3] sm:$0xff]  }
 0x15e   :  { %v1648_v10 = vsel %vm1593_vm6, %v1582_v29, %v6839_v60  ;;  %v6051_v16 = vpop.f32.mrf.mxu0  ;;  %v1649_v14 = vsel %vm1593_vm6, %v1583_v50, %v6840_v46  ;;  %6127 = vmatprep.subr.bf16.mxu0 %v7544_v31  ;;  %6274 = vmatprep.subr.bf16.mxu1 %v7544_v31 }
 0x15f   :  { %v10250_v13 = vpop.permute.xlu1 %6847  ;;  %v1646_v17 = vsel %vm1593_vm6, %v1580_v11, %v6834_v24  ;;  %v1647_v5 = vsel %vm1593_vm6, %v1581_v22, %v6835_v23  ;;  %v1957_v36 = vadd.f32 %v6051_v16, %v10190_v57 }
 0x160   :  { %v6843_v8 = vpop.permute.xlu0 %6842  ;;  %v6849_v26 = vunpack.i.l.bf16 %v10250_v13  ;;  %v6850_v43 = vunpack.i.h.bf16 %v10250_v13  ;;  %v1948_v60 = vpop.f32.mrf.mxu0  ;;  %v10318_v13 = vsel %vm483_vm0, %v2366_v51, %v2368_v39  ;;  %v7545_v51 = vld [vmem:[%s12598_s3 + $0x8] sm:$0xff]   ;;  %6128 = vmatpush3.bf16.msra.mxu0 %v7544_v31  ;;  %6282 = vmatpush3.bf16.msra.mxu1 %v7544_v31 }
 0x161   :  { %v6845_v0 = vunpack.i.h.bf16 %v6843_v8  ;;  %v6844_v44 = vunpack.i.l.bf16 %v6843_v8  ;;  %v10308_v24 = vmax.f32 %v1957_v36, 0.0  ;;  %v1949_v40 = vadd.f32 %v10190_v57, %v1948_v60  ;;  %6937 = vrot.lane.b32.xlu0 %v6936_v3, %s7668_s26  ;;  %6129 = vmatprep.subr.bf16.mxu0 %v7545_v51  ;;  %v7635_v31 = vld [vmem:[%s12595_s0 + $0x1c8] sm:$0xff] }
 0x162   :  { %v1714_v4 = vsel %vm1659_vm7, %v1648_v10, %v6849_v26  ;;  %v1715_v23 = vsel %vm1659_vm7, %v1649_v14, %v6850_v43  ;;  %v6052_v11 = vpop.f32.mrf.mxu0  ;;  %6275 = vmatprep.subr.bf16.mxu1 %v7545_v51  ;;  %v7634_v14 = vld [vmem:[%s12595_s0 + $0x1d0] sm:$0xff] }
 0x163   :  { %v1712_v45 = vsel %vm1659_vm7, %v1646_v17, %v6844_v44  ;;  %v1713_v58 = vsel %vm1659_vm7, %v1647_v5, %v6845_v0  ;;  %v6858_v35 = vpop.permute.xlu1 %6857  ;;  %v10329_v0 = vmax.f32 %v1949_v40, 0.0  ;;  %v1960_v44 = vadd.f32 %v6052_v11, %v10190_v57 }
 0x164   :  { %v6853_v53 = vpop.permute.xlu0 %6852  ;;  %v5686_v18 = vpack.c.bf16 %v1712_v45, %v10213_v62  ;;  %v5689_v59 = vpack.c.bf16 %v1714_v4, %v1713_v58  ;;  %v2696_v62 = vrot.slane %v10257_v56, 4  ;;  %v6860_v61 = vunpack.i.h.bf16 %v6858_v35  ;;  %v1951_v54 = vpop.f32.mrf.mxu0  ;;  %6130 = vmatpush3.bf16.msra.mxu0 %v7545_v51  ;;  %6283 = vmatpush3.bf16.msra.mxu1 %v7545_v51 }
 0x165   :  { %v6855_v49 = vunpack.i.h.bf16 %v6853_v53  ;;  %v6854_v20 = vunpack.i.l.bf16 %v6853_v53  ;;  %v6859_v48 = vunpack.i.l.bf16 %v6858_v35  ;;  %v2374_v4 = vrot.slane %v10308_v24, 2  ;;  %6131 = vmatprep.subr.bf16.mxu0 %v7546_v25  ;;  %6276 = vmatprep.subr.bf16.mxu1 %v7546_v25 }
 0x166   :  { %6101 = vmatprep.mubr.msk.bf16.mxu0 %vm8856_vm9, %v5686_v18  ;;  %v10325_v33 = vsel %vm1135_vm3, %v2694_v38, %v2696_v62  ;;  %v2702_v45 = vrot.slane %v10308_v24, 4  ;;  %v1952_v35 = vadd.f32 %v10190_v57, %v1951_v54  ;;  %v2370_v9 = vrot.slane %v10329_v0, 2 }
 0x167   :  { %6102 = vmatmul.mubr.msk.bf16.gmra.mxu0 %vm8856_vm9, %v5689_v59  ;;  %v10287_v34 = vpop.permute.xlu1 %6867  ;;  %v1519_v21 = vsel %vm1461_vm4, %v7630_v28, %v6855_v49  ;;  %v1518_v7 = vsel %vm1461_vm4, %v7631_v19, %v6854_v20  ;;  %v2698_v46 = vrot.slane %v10329_v0, 4  ;;  %v10343_v53 = vmax.f32 %v1960_v44, 0.0  ;;  %v7633_v20 = vld [vmem:[%s12595_s0 + $0x1d8] sm:$0xff] }
 0x168   :  { %v6863_v6 = vpop.permute.xlu0 %6862  ;;  %v6870_v55 = vunpack.i.h.bf16 %v10287_v34  ;;  %v6869_v29 = vunpack.i.l.bf16 %v10287_v34  ;;  %v1584_v8 = vsel %vm1527_vm5, %v1518_v7, %v6859_v48  ;;  %v1585_v26 = vsel %vm1527_vm5, %v1519_v21, %v6860_v61  ;;  %6284 = vmatpush3.bf16.msra.mxu1 %v7546_v25  ;;  %6132 = vmatpush3.bf16.msra.mxu0 %v7546_v25 }
 0x169   :  { %v6865_v63 = vunpack.i.h.bf16 %v6863_v6  ;;  %v6864_v27 = vunpack.i.l.bf16 %v6863_v6  ;;  %v10353_v15 = vmax.f32 %v1952_v35, 0.0  ;;  %v2371_v60 = vsel %vm483_vm0, %v2368_v39, %v2370_v9 }
 0x16b   :  { %v6878_v22 = vpop.permute.xlu1 %6877  ;;  %v1650_v17 = vsel %vm1593_vm6, %v1584_v8, %v6864_v27  ;;  %v1651_v38 = vsel %vm1593_vm6, %v1585_v26, %v6865_v63  ;;  %v2372_v48 = vrot.slane %v10353_v15, 2  ;;  %v2700_v21 = vrot.slane %v10353_v15, 4 }
 0x16c   :  { %v6873_v10 = vpop.permute.xlu0 %6872  ;;  %v6880_v5 = vunpack.i.h.bf16 %v6878_v22  ;;  %v6879_v2 = vunpack.i.l.bf16 %v6878_v22  ;;  %v1716_v50 = vsel %vm1659_vm7, %v1650_v17, %v6869_v29  ;;  %v1717_v6 = vsel %vm1659_vm7, %v1651_v38, %v6870_v55 }
 0x16d   :  { %v6875_v58 = vunpack.i.h.bf16 %v6873_v10  ;;  %v6874_v18 = vunpack.i.l.bf16 %v6873_v10  ;;  %v5692_v52 = vpack.c.bf16 %v1716_v50, %v1715_v23  ;;  %v5695_v7 = vpack.c.bf16 %v1717_v6, %v9183_v41 }
 0x16e   :  { %v1523_v49 = vsel %vm1461_vm4, %v7632_v47, %v6880_v5  ;;  %v1522_v32 = vsel %vm1461_vm4, %v7633_v20, %v6879_v2  ;;  %v6941_v29 = vpack.i.bf16 %v2371_v60, %v10318_v13  ;;  %v2699_v22 = vsel %vm1135_vm3, %v2696_v62, %v2698_v46 }
 0x16f   :  { %v6888_v59 = vpop.permute.xlu1 %6887  ;;  %v1521_v61 = vsel %vm1461_vm4, %v7634_v14, %v6875_v58  ;;  %v1520_v28 = vsel %vm1461_vm4, %v7635_v31, %v6874_v18  ;;  %6105 = vmatprep.mubr.msk.bf16.mxu0 %vm8856_vm9, %v5692_v52  ;;  %v2373_v44 = vsel %vm483_vm0, %v2370_v9, %v2372_v48  ;;  %v6946_v17 = vpack.i.bf16 %v2699_v22, %v10325_v33 }
 0x170   :  { %v6883_v43 = vpop.permute.xlu0 %6882  ;;  %v6890_v16 = vunpack.i.h.bf16 %v6888_v59  ;;  %v6889_v34 = vunpack.i.l.bf16 %v6888_v59  ;;  %6106 = vmatmul.mubr.msk.bf16.gmra.mxu0 %vm8856_vm9, %v5695_v7  ;;  %6942 = vrot.lane.b32.xlu1 %v6941_v29, %s7664_s11  ;;  %v6055_v51 = vpop.f32.mrf.mxu0  ;;  %v2375_v62 = vsel %vm483_vm0, %v2372_v48, %v2374_v4  ;;  %v2701_v35 = vsel %vm1135_vm3, %v2698_v46, %v2700_v21 }
 0x171   :  { %v6885_v42 = vunpack.i.h.bf16 %v6883_v43  ;;  %v6884_v36 = vunpack.i.l.bf16 %v6883_v43  ;;  %v6951_v5 = vpack.i.bf16 %v2375_v62, %v2373_v44  ;;  %v1973_v9 = vadd.f32 %v6055_v51, %v10190_v57 }
 0x172   :  { %v1588_v19 = vsel %vm1527_vm5, %v1522_v32, %v6889_v34  ;;  %v1589_v27 = vsel %vm1527_vm5, %v1523_v49, %v6890_v16  ;;  %v1964_v47 = vpop.f32.mrf.mxu0  ;;  %v2703_v33 = vsel %vm1135_vm3, %v2700_v21, %v2702_v45  ;;  %v2376_v48 = vrot.slane %v10343_v53, 2 }
 0x173   :  { %v6898_v63 = vpop.permute.xlu1 %6897  ;;  %v1587_v55 = vsel %vm1527_vm5, %v1521_v61, %v6885_v42  ;;  %v1586_v39 = vsel %vm1527_vm5, %v1520_v28, %v6884_v36  ;;  %6952 = vrot.lane.b32.xlu0 %v6951_v5, %s7664_s11  ;;  %v1965_v50 = vadd.f32 %v10190_v57, %v1964_v47  ;;  %v6956_v25 = vpack.i.bf16 %v2703_v33, %v2701_v35  ;;  %v7637_v33 = vld [vmem:[%s12595_s0 + $0x1f0] sm:$0xff] }
 0x174   :  { %v6900_v23 = vunpack.i.h.bf16 %v6898_v63  ;;  %v6899_v40 = vunpack.i.l.bf16 %v6898_v63  ;;  %v6893_v3 = vpop.permute.xlu0 %6892  ;;  %6947 = vrot.lane.b32.xlu1 %v6946_v17, %s7668_s26  ;;  %v6056_v52 = vpop.f32.mrf.mxu0  ;;  %v10410_v36 = vmax.f32 %v1973_v9, 0.0  ;;  %v2377_v29 = vsel %vm483_vm0, %v2374_v4, %v2376_v48 }
 0x175   :  { %v6894_v11 = vunpack.i.l.bf16 %v6893_v3  ;;  %v6895_v26 = vunpack.i.h.bf16 %v6893_v3  ;;  %v2227_v34 = vmax.f32 %v1965_v50, 0.0  ;;  %v1976_v42 = vadd.f32 %v6056_v52, %v10190_v57 }
 0x176   :  { %v1654_v8 = vsel %vm1593_vm6, %v1588_v19, %v6899_v40  ;;  %v1655_v10 = vsel %vm1593_vm6, %v1589_v27, %v6900_v23  ;;  %v1967_v6 = vpop.f32.mrf.mxu0  ;;  %v2704_v27 = vrot.slane %v10343_v53, 4  ;;  %v2381_v40 = vrot.slane %v10410_v36, 2 }
 0x177   :  { %v1652_v13 = vsel %vm1593_vm6, %v1586_v39, %v6894_v11  ;;  %v6908_v38 = vpop.permute.xlu1 %6907  ;;  %v1653_v49 = vsel %vm1593_vm6, %v1587_v55, %v6895_v26  ;;  %v2378_v28 = vrot.slane %v2227_v34, 2  ;;  %v2706_v21 = vrot.slane %v2227_v34, 4  ;;  %6957 = vrot.lane.b32.xlu0 %v6956_v25, %s7668_s26  ;;  %v7636_v39 = vld [vmem:[%s12595_s0 + $0x1f8] sm:$0xff] }
 0x178   :  { %v6910_v2 = vunpack.i.h.bf16 %v6908_v38  ;;  %v6909_v54 = vunpack.i.l.bf16 %v6908_v38  ;;  %v6903_v58 = vpop.permute.xlu0 %6902  ;;  %v10412_v19 = vmax.f32 %v1976_v42, 0.0  ;;  %v1968_v7 = vadd.f32 %v10190_v57, %v1967_v6 }
 0x179   :  { %v6905_v18 = vunpack.i.h.bf16 %v6903_v58  ;;  %v6904_v59 = vunpack.i.l.bf16 %v6903_v58  ;;  %v2379_v60 = vsel %vm483_vm0, %v2376_v48, %v2378_v28  ;;  %v2709_v11 = vrot.slane %v10410_v36, 4 }
 0x17a   :  { %v1720_v20 = vsel %vm1659_vm7, %v1654_v8, %v6909_v54  ;;  %v1721_v32 = vsel %vm1659_vm7, %v1655_v10, %v6910_v2  ;;  %v2383_v3 = vrot.slane %v10412_v19, 2  ;;  %v10424_v55 = vmax.f32 %v1968_v7, 0.0 }
 0x17b   :  { %v1718_v46 = vsel %vm1659_vm7, %v1652_v13, %v6904_v59  ;;  %v1719_v43 = vsel %vm1659_vm7, %v1653_v49, %v6905_v18  ;;  %v417_v16 = vpop.permute.xlu1 %416  ;;  %v5701_v61 = vpack.c.bf16 %v1721_v32, %v1720_v20  ;;  %v2707_v22 = vsel %vm1135_vm3, %v2704_v27, %v2706_v21 }
 0x17c   :  { %v6913_v14 = vpop.permute.xlu0 %6912  ;;  %v5698_v31 = vpack.c.bf16 %v1719_v43, %v1718_v46  ;;  %v1526_v8 = vsel %vm1461_vm4, %v7636_v39, %v417_v16  ;;  %v6961_v26 = vpack.i.bf16 %v2379_v60, %v2377_v29  ;;  %v2380_v13 = vrot.slane %v10424_v55, 2 }
 0x17d   :  { %v6915_v44 = vunpack.i.h.bf16 %v6913_v14  ;;  %v6914_v10 = vunpack.i.l.bf16 %v6913_v14  ;;  %v2708_v51 = vrot.slane %v10424_v55, 4  ;;  %v2711_v4 = vrot.slane %v10412_v19, 4 }
 0x17e   :  { %6109 = vmatprep.mubr.msk.bf16.mxu0 %vm8856_vm9, %v5698_v31  ;;  %6962 = vrot.lane.b32.xlu1 %v6961_v26, %s7664_s11  ;;  %v2705_v2 = vsel %vm1135_vm3, %v2702_v45, %v2704_v27  ;;  %v2382_v58 = vsel %vm483_vm0, %v2380_v13, %v2381_v40  ;;  %v2384_v35 = vsel %vm483_vm0, %v2381_v40, %v2383_v3  ;;  %v7638_v45 = vld [vmem:[%s12595_s0 + $0x1e8] sm:$0xff] }
 0x17f   :  { %v743_v63 = vpop.permute.xlu1 %742  ;;  %6110 = vmatmul.mubr.msk.bf16.gmra.mxu0 %vm8856_vm9, %v5701_v61  ;;  %v6966_v54 = vpack.i.bf16 %v2707_v22, %v2705_v2  ;;  %v6971_v59 = vpack.i.bf16 %v2384_v35, %v2382_v58  ;;  %v2710_v47 = vsel %vm1135_vm3, %v2708_v51, %v2709_v11  ;;  %v1525_v49 = vsel %vm1461_vm4, %v7637_v33, %v6915_v44 }
 0x180   :  { %v6918_v23 = vpop.permute.xlu0 %6917  ;;  %v1524_v20 = vsel %vm1461_vm4, %v7638_v45, %v6914_v10  ;;  %v1592_v32 = vsel %vm1527_vm5, %v1526_v8, %v743_v63  ;;  %v6059_v50 = vpop.f32.mrf.mxu0  ;;  %v2712_v34 = vsel %vm1135_vm3, %v2709_v11, %v2711_v4 }
 0x181   :  { %v6920_v62 = vunpack.i.h.bf16 %v6918_v23  ;;  %v6919_v38 = vunpack.i.l.bf16 %v6918_v23  ;;  %6972 = vrot.lane.b32.xlu0 %v6971_v59, %s7664_s11  ;;  %v6976_v48 = vpack.i.bf16 %v2712_v34, %v2710_v47  ;;  %v1989_v28 = vadd.f32 %v6059_v50, %v10190_v57 }
 0x182   :  { %6967 = vrot.lane.b32.xlu1 %v6966_v54, %s7668_s26  ;;  %v1980_v61 = vpop.f32.mrf.mxu0 }
 0x183   :  { %v1069_v17 = vpop.permute.xlu1 %1068  ;;  %v1590_v46 = vsel %vm1527_vm5, %v1524_v20, %v6919_v38  ;;  %v1591_v43 = vsel %vm1527_vm5, %v1525_v49, %v6920_v62  ;;  %v1981_v21 = vadd.f32 %v10190_v57, %v1980_v61  ;;  %v10475_v22 = vmax.f32 %v1989_v28, 0.0 }
 0x184   :  { %v6923_v5 = vpop.permute.xlu0 %6922  ;;  %v1658_v42 = vsel %vm1593_vm6, %v1592_v32, %v1069_v17  ;;  %v6060_v60 = vpop.f32.mrf.mxu0 }
 0x185   :  { %v6925_v9 = vunpack.i.h.bf16 %v6923_v5  ;;  %v6924_v18 = vunpack.i.l.bf16 %v6923_v5  ;;  %v10471_v23 = vmax.f32 %v1981_v21, 0.0  ;;  %v1992_v40 = vadd.f32 %v6060_v60, %v10190_v57  ;;  %6977 = vrot.lane.b32.xlu0 %v6976_v48, %s7668_s26 }
 0x186   :  { %v1983_v29 = vpop.f32.mrf.mxu0  ;;  %v2389_v51 = vrot.slane %v10475_v22, 2  ;;  %v2717_v62 = vrot.slane %v10475_v22, 4 }
 0x187   :  { %v1395_v52 = vpop.permute.xlu1 %1394  ;;  %v1656_v6 = vsel %vm1593_vm6, %v1590_v46, %v6924_v18  ;;  %v1657_v31 = vsel %vm1593_vm6, %v1591_v43, %v6925_v9  ;;  %v10478_v8 = vmax.f32 %v1992_v40, 0.0  ;;  %v1984_v26 = vadd.f32 %v10190_v57, %v1983_v29 }
 0x188   :  { %v6928_v16 = vpop.permute.xlu0 %6927  ;;  %v1724_v7 = vsel %vm1659_vm7, %v1658_v42, %v1395_v52  ;;  %v2385_v44 = vrot.slane %v10471_v23, 2  ;;  %v2713_v38 = vrot.slane %v10471_v23, 4 }
 0x189   :  { %v6930_v25 = vunpack.i.h.bf16 %v6928_v16  ;;  %v6929_v14 = vunpack.i.l.bf16 %v6928_v16  ;;  %v5707_v39 = vpack.c.bf16 %v9183_v41, %v1724_v7  ;;  %v2391_v10 = vrot.slane %v10478_v8, 2 }
 0x18a   :  { %v10485_v13 = vmax.f32 %v1984_v26, 0.0  ;;  %v2719_v5 = vrot.slane %v10478_v8, 4  ;;  %v2386_v2 = vsel %vm483_vm0, %v2383_v3, %v2385_v44  ;;  %v2714_v3 = vsel %vm1135_vm3, %v2711_v4, %v2713_v38 }
 0x18b   :  { %v1722_v63 = vsel %vm1659_vm7, %v1656_v6, %v6929_v14  ;;  %v1723_v27 = vsel %vm1659_vm7, %v1657_v31, %v6930_v25  ;;  %v2392_v58 = vsel %vm483_vm0, %v2389_v51, %v2391_v10 }
 0x18c   :  { %v5704_v11 = vpack.c.bf16 %v1723_v27, %v1722_v63  ;;  %v2387_v41 = vrot.slane %v10485_v13, 2  ;;  %v2715_v17 = vrot.slane %v10485_v13, 4  ;;  %v2720_v33 = vsel %vm1135_vm3, %v2717_v62, %v2719_v5 }
 0x18e   :  { %6113 = vmatprep.mubr.msk.bf16.mxu0 %vm8856_vm9, %v5704_v11  ;;  %v2388_v54 = vsel %vm483_vm0, %v2385_v44, %v2387_v41  ;;  %v2390_v12 = vsel %vm483_vm0, %v2387_v41, %v2389_v51  ;;  %v2716_v18 = vsel %vm1135_vm3, %v2713_v38, %v2715_v17  ;;  %v2718_v59 = vsel %vm1135_vm3, %v2715_v17, %v2717_v62 }
 0x18f   :  { %6114 = vmatmul.mubr.msk.bf16.gmra.mxu0 %vm8856_vm9, %v5707_v39  ;;  %v6981_v35 = vpack.i.bf16 %v2388_v54, %v2386_v2  ;;  %v6991_v9 = vpack.i.bf16 %v2392_v58, %v2390_v12  ;;  %v6986_v45 = vpack.i.bf16 %v2716_v18, %v2714_v3  ;;  %v6996_v20 = vpack.i.bf16 %v2720_v33, %v2718_v59 }
 0x191   :  { %6982 = vrot.lane.b32.xlu1 %v6981_v35, %s7664_s11  ;;  %6992 = vrot.lane.b32.xlu0 %v6991_v9, %s7664_s11 }
 0x192   :  { %v6063_v47 = vpop.f32.mrf.mxu0 }
 0x193   :  { %v2005_v6 = vadd.f32 %v6063_v47, %v10190_v57 }
 0x194   :  { %v1996_v49 = vpop.f32.mrf.mxu0 }
 0x195   :  { %v1997_v32 = vadd.f32 %v10190_v57, %v1996_v49  ;;  %6987 = vrot.lane.b32.xlu1 %v6986_v45, %s7668_s26  ;;  %6997 = vrot.lane.b32.xlu0 %v6996_v20, %s7668_s26  ;;  %v10526_v27 = vmax.f32 %v2005_v6, 0.0 }
 0x196   :  { %v6064_v50 = vpop.f32.mrf.mxu0 }
 0x197   :  { %v10512_v46 = vmax.f32 %v1997_v32, 0.0  ;;  %v2008_v14 = vadd.f32 %v6064_v50, %v10190_v57  ;;  %v2725_v35 = vrot.slane %v10526_v27, 4 }
 0x198   :  { %v1999_v43 = vpop.f32.mrf.mxu0 }
 0x199   :  { %v2000_v52 = vadd.f32 %v10190_v57, %v1999_v43  ;;  %v2393_v16 = vrot.slane %v10512_v46, 2  ;;  %v2721_v25 = vrot.slane %v10512_v46, 4  ;;  %v10523_v7 = vmax.f32 %v2008_v14, 0.0 }
 0x19b   :  { %v2236_v4 = vmax.f32 %v2000_v52, 0.0  ;;  %v2394_v48 = vsel %vm483_vm0, %v2391_v10, %v2393_v16  ;;  %v2722_v63 = vsel %vm1135_vm3, %v2719_v5, %v2721_v25  ;;  %v2398_v26 = vrot.slane %v10523_v7, 2 }
 0x19c   :  { %v2397_v10 = vrot.slane %v10526_v27, 2  ;;  %v2726_v5 = vrot.slane %v10523_v7, 4 }
 0x19d   :  { %v2395_v34 = vrot.slane %v2236_v4, 2  ;;  %v2723_v42 = vrot.slane %v2236_v4, 4 }
 0x19e   :  { %v2399_v12 = vsel %vm483_vm0, %v2397_v10, %v2398_v26  ;;  %v2727_v52 = vsel %vm1135_vm3, %v2725_v35, %v2726_v5 }
 0x19f   :  { %v2396_v61 = vsel %vm483_vm0, %v2393_v16, %v2395_v34  ;;  %v2724_v28 = vsel %vm1135_vm3, %v2721_v25, %v2723_v42 }
 0x1a0   :  { %v7001_v31 = vpack.i.bf16 %v2396_v61, %v2394_v48  ;;  %v7006_v40 = vpack.i.bf16 %v2724_v28, %v2722_v63 }
 0x1a2   :  { %7002 = vrot.lane.b32.xlu1 %v7001_v31, %s7664_s11 }
 0x1a5   :  { %v6067_v21 = vpop.f32.mrf.mxu0 }
 0x1a6   :  { %v2021_v29 = vadd.f32 %v6067_v21, %v10190_v57  ;;  %7007 = vrot.lane.b32.xlu1 %v7006_v40, %s7668_s26 }
 0x1a7   :  { %v2012_v60 = vpop.f32.mrf.mxu0 }
 0x1a8   :  { %v2013_v11 = vadd.f32 %v10190_v57, %v2012_v60  ;;  %v10535_v41 = vmax.f32 %v2021_v29, 0.0 }
 0x1a9   :  { %v6068_v39 = vpop.f32.mrf.mxu0 }
 0x1aa   :  { %v10532_v44 = vmax.f32 %v2013_v11, 0.0  ;;  %v2024_v9 = vadd.f32 %v6068_v39, %v10190_v57  ;;  %v2404_v59 = vrot.slane %v10535_v41, 2  ;;  %v2732_v16 = vrot.slane %v10535_v41, 4 }
 0x1ab   :  { %v2015_v51 = vpop.f32.mrf.mxu0 }
 0x1ac   :  { %v2400_v17 = vrot.slane %v10532_v44, 2  ;;  %v2728_v62 = vrot.slane %v10532_v44, 4  ;;  %v2016_v38 = vadd.f32 %v10190_v57, %v2015_v51  ;;  %v10560_v4 = vmax.f32 %v2024_v9, 0.0 }
 0x1ae   :  { %v10541_v2 = vmax.f32 %v2016_v38, 0.0  ;;  %v6071_v54 = vpop.f32.mrf.mxu0  ;;  %v2401_v58 = vsel %vm483_vm0, %v2398_v26, %v2400_v17  ;;  %v2729_v49 = vsel %vm1135_vm3, %v2726_v5, %v2728_v62  ;;  %v2406_v21 = vrot.slane %v10560_v4, 2 }
 0x1af   :  { %v7011_v18 = vpack.i.bf16 %v2401_v58, %v2399_v12  ;;  %v10550_v3 = vadd.f32 %v6071_v54, %v10190_v57  ;;  %v7016_v42 = vpack.i.bf16 %v2729_v49, %v2727_v52  ;;  %v2734_v26 = vrot.slane %v10560_v4, 4 }
 0x1b0   :  { %v2402_v47 = vrot.slane %v10541_v2, 2  ;;  %v2028_v33 = vpop.f32.mrf.mxu0  ;;  %v2730_v45 = vrot.slane %v10541_v2, 4  ;;  %v2407_v10 = vsel %vm483_vm0, %v2404_v59, %v2406_v21 }
 0x1b1   :  { %v2029_v20 = vadd.f32 %v10190_v57, %v2028_v33  ;;  %7012 = vrot.lane.b32.xlu0 %v7011_v18, %s7664_s11  ;;  %v2245_v25 = vmax.f32 %v10550_v3, 0.0  ;;  %v2735_v35 = vsel %vm1135_vm3, %v2732_v16, %v2734_v26 }
 0x1b2   :  { %v6072_v32 = vpop.f32.mrf.mxu0  ;;  %v2403_v50 = vsel %vm483_vm0, %v2400_v17, %v2402_v47  ;;  %v2405_v43 = vsel %vm483_vm0, %v2402_v47, %v2404_v59  ;;  %v2731_v31 = vsel %vm1135_vm3, %v2728_v62, %v2730_v45  ;;  %v2733_v28 = vsel %vm1135_vm3, %v2730_v45, %v2732_v16 }
 0x1b3   :  { %v10562_v34 = vmax.f32 %v2029_v20, 0.0  ;;  %v7021_v61 = vpack.i.bf16 %v2405_v43, %v2403_v50  ;;  %v7026_v60 = vpack.i.bf16 %v2733_v28, %v2731_v31  ;;  %v2412_v40 = vrot.slane %v2245_v25, 2 }
 0x1b4   :  { %v2031_v14 = vpop.f32.mrf.mxu0  ;;  %v2040_v12 = vadd.f32 %v6072_v32, %v10190_v57  ;;  %v2740_v31 = vrot.slane %v2245_v25, 4 }
 0x1b5   :  { %v2408_v48 = vrot.slane %v10562_v34, 2  ;;  %v2032_v6 = vadd.f32 %v10190_v57, %v2031_v14  ;;  %7017 = vrot.lane.b32.xlu0 %v7016_v42, %s7668_s26  ;;  %7022 = vrot.lane.b32.xlu1 %v7021_v61, %s7664_s11  ;;  %v2736_v29 = vrot.slane %v10562_v34, 4 }
 0x1b6   :  { %v10593_v49 = vmax.f32 %v2040_v12, 0.0 }
 0x1b7   :  { %v10572_v63 = vmax.f32 %v2032_v6, 0.0  ;;  %v2409_v39 = vsel %vm483_vm0, %v2406_v21, %v2408_v48  ;;  %v2737_v54 = vsel %vm1135_vm3, %v2734_v26, %v2736_v29 }
 0x1b8   :  { %v7031_v62 = vpack.i.bf16 %v2409_v39, %v2407_v10  ;;  %v7036_v18 = vpack.i.bf16 %v2737_v54, %v2735_v35  ;;  %v2414_v42 = vrot.slane %v10593_v49, 2  ;;  %v2742_v14 = vrot.slane %v10593_v49, 4 }
 0x1b9   :  { %v2410_v11 = vrot.slane %v10572_v63, 2  ;;  %7027 = vrot.lane.b32.xlu1 %v7026_v60, %s7668_s26  ;;  %v2738_v61 = vrot.slane %v10572_v63, 4 }
 0x1bb   :  { %v2411_v51 = vsel %vm483_vm0, %v2408_v48, %v2410_v11  ;;  %v2413_v17 = vsel %vm483_vm0, %v2410_v11, %v2412_v40 }
 0x1bc   :  { %v7041_v38 = vpack.i.bf16 %v2413_v17, %v2411_v51  ;;  %v2739_v51 = vsel %vm1135_vm3, %v2736_v29, %v2738_v61  ;;  %v2741_v17 = vsel %vm1135_vm3, %v2738_v61, %v2740_v31 }
 0x1bd   :  { %7032 = vrot.lane.b32.xlu1 %v7031_v62, %s7664_s11  ;;  %v7061_v35 = vpack.i.bf16 %v2741_v17, %v2739_v51 }
 0x1be   :  { %v6075_v5 = vpop.f32.mrf.mxu0  ;;  %7042 = vrot.lane.b32.xlu0 %v7041_v38, %s7664_s11 }
 0x1bf   :  { %v2053_v59 = vadd.f32 %v6075_v5, %v10190_v57 }
 0x1c0   :  { %v2044_v58 = vpop.f32.mrf.mxu0 }
 0x1c1   :  { %v2045_v9 = vadd.f32 %v10190_v57, %v2044_v58  ;;  %7037 = vrot.lane.b32.xlu1 %v7036_v18, %s7668_s26  ;;  %v10596_v32 = vmax.f32 %v2053_v59, 0.0 }
 0x1c2   :  { %v6076_v47 = vpop.f32.mrf.mxu0 }
 0x1c3   :  { %v10589_v3 = vmax.f32 %v2045_v9, 0.0  ;;  %v2056_v33 = vadd.f32 %v6076_v47, %v10190_v57  ;;  %v2419_v28 = vrot.slane %v10596_v32, 2  ;;  %v2747_v38 = vrot.slane %v10596_v32, 4 }
 0x1c4   :  { %v2047_v45 = vpop.f32.mrf.mxu0 }
 0x1c5   :  { %v2048_v20 = vadd.f32 %v10190_v57, %v2047_v45  ;;  %v10598_v50 = vmax.f32 %v2056_v33, 0.0  ;;  %v2415_v43 = vrot.slane %v10589_v3, 2  ;;  %v2743_v52 = vrot.slane %v10589_v3, 4 }
 0x1c7   :  { %v10602_v16 = vmax.f32 %v2048_v20, 0.0  ;;  %v2421_v21 = vrot.slane %v10598_v50, 2  ;;  %v2744_v60 = vsel %vm1135_vm3, %v2742_v14, %v2743_v52  ;;  %v2416_v11 = vsel %vm483_vm0, %v2414_v42, %v2415_v43 }
 0x1c8   :  { %v2749_v5 = vrot.slane %v10598_v50, 4 }
 0x1c9   :  { %v2417_v48 = vrot.slane %v10602_v16, 2  ;;  %v2745_v6 = vrot.slane %v10602_v16, 4  ;;  %v2422_v54 = vsel %vm483_vm0, %v2419_v28, %v2421_v21 }
 0x1ca   :  { %v2750_v45 = vsel %vm1135_vm3, %v2747_v38, %v2749_v5 }
 0x1cb   :  { %v2746_v40 = vsel %vm1135_vm3, %v2743_v52, %v2745_v6  ;;  %v2418_v39 = vsel %vm483_vm0, %v2415_v43, %v2417_v48  ;;  %v2420_v25 = vsel %vm483_vm0, %v2417_v48, %v2419_v28  ;;  %v2748_v18 = vsel %vm1135_vm3, %v2745_v6, %v2747_v38 }
 0x1cc   :  { %v7056_v26 = vpack.i.bf16 %v2746_v40, %v2744_v60  ;;  %v7046_v10 = vpack.i.bf16 %v2418_v39, %v2416_v11  ;;  %v7051_v29 = vpack.i.bf16 %v2422_v54, %v2420_v25  ;;  %v7066_v52 = vpack.i.bf16 %v2750_v45, %v2748_v18 }
 0x1cd   :  { %v6079_v62 = vpop.f32.mrf.mxu0 }
 0x1ce   :  { %7057 = vrot.lane.b32.xlu1 %v7056_v26, %s7668_s26  ;;  %7047 = vrot.lane.b32.xlu0 %v7046_v10, %s7664_s11  ;;  %v2069_v12 = vadd.f32 %v6079_v62, %v10190_v57 }
 0x1cf   :  { %v2060_v58 = vpop.f32.mrf.mxu0  ;;  %v6933_v11 = vpop.permute.xlu0 %6932 }
 0x1d0   :  { %v2061_v9 = vadd.f32 %v10190_v57, %v2060_v58  ;;  %v10632_v20 = vmax.f32 %v2069_v12, 0.0  ;;  %v6935_v17 = vunpack.i.h.bf16 %v6933_v11  ;;  %v6934_v25 = vunpack.i.l.bf16 %v6933_v11 }
 0x1d1   :  { %v6080_v59 = vpop.f32.mrf.mxu0 }
 0x1d2   :  { %7062 = vrot.lane.b32.xlu1 %v7061_v35, %s7668_s26  ;;  %7052 = vrot.lane.b32.xlu0 %v7051_v29, %s7664_s11  ;;  %v10628_v47 = vmax.f32 %v2061_v9, 0.0  ;;  %v2072_v33 = vadd.f32 %v6080_v59, %v10190_v57  ;;  %v2427_v31 = vrot.slane %v10632_v20, 2  ;;  %v2755_v28 = vrot.slane %v10632_v20, 4 }
 0x1d3   :  { %v2063_v43 = vpop.f32.mrf.mxu0  ;;  %v6938_v58 = vpop.permute.xlu0 %6937  ;;  %v3019_v45 = vsel %vm1527_vm5, %v10230_v30, %v6934_v25 }
 0x1d4   :  { %v2254_v42 = vmax.f32 %v2072_v33, 0.0  ;;  %v2064_v14 = vadd.f32 %v10190_v57, %v2063_v43  ;;  %v2423_v61 = vrot.slane %v10628_v47, 2  ;;  %v2751_v39 = vrot.slane %v10628_v47, 4 }
 0x1d5   :  { %v6940_v9 = vunpack.i.h.bf16 %v6938_v58  ;;  %v6939_v18 = vunpack.i.l.bf16 %v6938_v58  ;;  %v3020_v33 = vsel %vm1527_vm5, %v10255_v37, %v6935_v17 }
 0x1d6   :  { %7067 = vrot.lane.b32.xlu0 %v7066_v52, %s7668_s26  ;;  %v2429_v48 = vrot.slane %v2254_v42, 2  ;;  %v10637_v6 = vmax.f32 %v2064_v14, 0.0  ;;  %v2757_v10 = vrot.slane %v2254_v42, 4  ;;  %v2424_v51 = vsel %vm483_vm0, %v2421_v21, %v2423_v61 }
 0x1d7   :  { %v2752_v43 = vsel %vm1135_vm3, %v2749_v5, %v2751_v39  ;;  %v3083_v52 = vsel %vm1659_vm7, %v3019_v45, %v6939_v18  ;;  %v3084_v42 = vsel %vm1659_vm7, %v3020_v33, %v6940_v9 }
 0x1d8   :  { %v2425_v60 = vrot.slane %v10637_v6, 2  ;;  %v2753_v40 = vrot.slane %v10637_v6, 4  ;;  %v2430_v26 = vsel %vm483_vm0, %v2427_v31, %v2429_v48  ;;  %v2758_v21 = vsel %vm1135_vm3, %v2755_v28, %v2757_v10 }
 0x1da   :  { %v2428_v62 = vsel %vm483_vm0, %v2425_v60, %v2427_v31  ;;  %v2426_v38 = vsel %vm483_vm0, %v2423_v61, %v2425_v60  ;;  %v2756_v35 = vsel %vm1135_vm3, %v2753_v40, %v2755_v28  ;;  %v2754_v29 = vsel %vm1135_vm3, %v2751_v39, %v2753_v40  ;;  %v10677_v39 = vld [vmem:[%s12597_s2] ss:$0 sm:$0xff] }
 0x1db   :  { %v7076_v54 = vpack.i.bf16 %v2430_v26, %v2428_v62  ;;  %v7071_v12 = vpack.i.bf16 %v2426_v38, %v2424_v51  ;;  %v7086_v61 = vpack.i.bf16 %v2758_v21, %v2756_v35  ;;  %v7081_v48 = vpack.i.bf16 %v2754_v29, %v2752_v43 }
 0x1dc   :  { %v5719_v60 = vpack.c.bf16 %v3084_v42, %v3083_v52 }
 0x1dd   :  { %v6083_v59 = vpop.f32.mrf.mxu0  ;;  %7077 = vrot.lane.b32.xlu1 %v7076_v54, %s7664_s11  ;;  %7072 = vrot.lane.b32.xlu0 %v7071_v12, %s7664_s11 }
 0x1de   :  { %v2085_v28 = vadd.f32 %v6083_v59, %v10190_v57  ;;  %6133 = vmatprep.mubr.msk.bf16.mxu0 %vm10660_vm11, %v5719_v60 }
 0x1df   :  { %v2076_v14 = vpop.f32.mrf.mxu0 }
 0x1e0   :  { %v2077_v37 = vadd.f32 %v10190_v57, %v2076_v14  ;;  %v10670_v5 = vmax.f32 %v2085_v28, 0.0 }
 0x1e1   :  { %v6084_v40 = vpop.f32.mrf.mxu0  ;;  %7087 = vrot.lane.b32.xlu1 %v7086_v61, %s7668_s26  ;;  %7082 = vrot.lane.b32.xlu0 %v7081_v48, %s7668_s26 }
 0x1e2   :  { %12794 = vst [vmem:[#allocation11_spill] sm:$0xff] %v10670_v5  ;;  %v10672_v11 = vmax.f32 %v2077_v37, 0.0  ;;  %v6943_v10 = vpop.permute.xlu1 %6942  ;;  %v2434_v51 = vrot.slane %v10670_v5, 2  ;;  %v2088_v38 = vadd.f32 %v10677_v39, %v6084_v40  ;;  %v2762_v58 = vrot.slane %v10670_v5, 4 }
 0x1e3   :  { %v2079_v30 = vpop.f32.mrf.mxu0  ;;  %v6945_v54 = vunpack.i.h.bf16 %v6943_v10  ;;  %v6944_v12 = vunpack.i.l.bf16 %v6943_v10 }
 0x1e4   :  { %v2080_v57 = vadd.f32 %v10677_v39, %v2079_v30  ;;  %v2431_v17 = vrot.slane %v10672_v11, 2  ;;  %v2759_v35 = vrot.slane %v10672_v11, 4  ;;  %v10693_v61 = vmax.f32 %v2088_v38, 0.0 }
 0x1e5   :  { %v6953_v29 = vpop.permute.xlu0 %6952  ;;  %v3022_v48 = vsel %vm1527_vm5, %v10257_v56, %v6945_v54  ;;  %v3021_v28 = vsel %vm1527_vm5, %v10228_v1, %v6944_v12 }
 0x1e6   :  { %v10680_v26 = vmax.f32 %v2080_v57, 0.0  ;;  %v6948_v59 = vpop.permute.xlu1 %6947  ;;  %v6955_v21 = vunpack.i.h.bf16 %v6953_v29  ;;  %v6954_v33 = vunpack.i.l.bf16 %v6953_v29  ;;  %v2436_v12 = vrot.slane %v10693_v61, 2 }
 0x1e7   :  { %v6950_v43 = vunpack.i.h.bf16 %v6948_v59  ;;  %v6949_v52 = vunpack.i.l.bf16 %v6948_v59 }
 0x1e8   :  { %v2432_v25 = vrot.slane %v10680_v26, 2  ;;  %v2760_v62 = vrot.slane %v10680_v26, 4  ;;  %v3024_v56 = vsel %vm1527_vm5, %v10353_v15, %v6955_v21  ;;  %v3023_v1 = vsel %vm1527_vm5, %v10329_v0, %v6954_v33 }
 0x1e9   :  { %v3085_v60 = vsel %vm1659_vm7, %v3021_v28, %v6949_v52  ;;  %v3086_v40 = vsel %vm1659_vm7, %v3022_v48, %v6950_v43  ;;  %v6958_v30 = vpop.permute.xlu0 %6957 }
 0x1ea   :  { %v2433_v9 = vsel %vm483_vm0, %v2431_v17, %v2432_v25  ;;  %v2435_v18 = vsel %vm483_vm0, %v2432_v25, %v2434_v51  ;;  %v2761_v42 = vsel %vm1135_vm3, %v2759_v35, %v2760_v62  ;;  %v2763_v14 = vsel %vm1135_vm3, %v2760_v62, %v2762_v58 }
 0x1eb   :  { %v7091_v45 = vpack.i.bf16 %v2435_v18, %v2433_v9  ;;  %v5722_v10 = vpack.c.bf16 %v3086_v40, %v3085_v60  ;;  %v6960_v17 = vunpack.i.h.bf16 %v6958_v30  ;;  %v6959_v25 = vunpack.i.l.bf16 %v6958_v30 }
 0x1ec   :  { %v7096_v38 = vpack.i.bf16 %v2763_v14, %v2761_v42  ;;  %v2764_v18 = vrot.slane %v10693_v61, 4  ;;  %v2437_v60 = vsel %vm483_vm0, %v2434_v51, %v2436_v12 }
 0x1ed   :  { %v6087_v37 = vpop.f32.mrf.mxu0  ;;  %7092 = vrot.lane.b32.xlu0 %v7091_v45, %s7664_s11  ;;  %v3087_v35 = vsel %vm1659_vm7, %v3023_v1, %v6959_v25  ;;  %v3088_v29 = vsel %vm1659_vm7, %v3024_v56, %v6960_v17  ;;  %6134 = vmatmul.mubr.msk.bf16.vlgmr.msra.gmra.mxu0 %vm10660_vm11, %v5722_v10 }
 0x1ee   :  { %v2101_v57 = vadd.f32 %v10677_v39, %v6087_v37  ;;  %v5725_v21 = vpack.c.bf16 %v3088_v29, %v3087_v35  ;;  %v2765_v40 = vsel %vm1135_vm3, %v2762_v58, %v2764_v18 }
 0x1ef   :  { %v2092_v62 = vpop.f32.mrf.mxu0 }
 0x1f0   :  { %v2093_v54 = vadd.f32 %v10677_v39, %v2092_v62  ;;  %v10715_v15 = vmax.f32 %v2101_v57, 0.0  ;;  %v6963_v52 = vpop.permute.xlu1 %6962  ;;  %6137 = vmatprep.mubr.msk.bf16.mxu0 %vm10660_vm11, %v5725_v21 }
 0x1f1   :  { %v6088_v9 = vpop.f32.mrf.mxu0  ;;  %7097 = vrot.lane.b32.xlu0 %v7096_v38, %s7668_s26  ;;  %v6965_v14 = vunpack.i.h.bf16 %v6963_v52  ;;  %v6964_v17 = vunpack.i.l.bf16 %v6963_v52 }
 0x1f2   :  { %v10717_v59 = vmax.f32 %v2093_v54, 0.0  ;;  %v2104_v0 = vadd.f32 %v10677_v39, %v6088_v9  ;;  %v2442_v28 = vrot.slane %v10715_v15, 2 }
 0x1f3   :  { %v2095_v33 = vpop.f32.mrf.mxu0  ;;  %v6973_v51 = vpop.permute.xlu0 %6972  ;;  %v3026_v58 = vsel %vm1527_vm5, %v10343_v53, %v6965_v14 }
 0x1f4   :  { %12795 = vst [vmem:[#allocation14_spill] sm:$0xff] %v10717_v59  ;;  %v10720_v45 = vmax.f32 %v2104_v0, 0.0  ;;  %v2096_v43 = vadd.f32 %v10677_v39, %v2095_v33  ;;  %v2438_v42 = vrot.slane %v10717_v59, 2  ;;  %v2766_v57 = vrot.slane %v10717_v59, 4  ;;  %v6968_v54 = vpop.permute.xlu1 %6967 }
 0x1f5   :  { %v6091_v48 = vpop.f32.mrf.mxu0  ;;  %v6970_v35 = vunpack.i.h.bf16 %v6968_v54  ;;  %v6969_v29 = vunpack.i.l.bf16 %v6968_v54  ;;  %v6975_v33 = vunpack.i.h.bf16 %v6973_v51 }
 0x1f6   :  { %v2117_v37 = vadd.f32 %v10677_v39, %v6091_v48  ;;  %v10732_v10 = vmax.f32 %v2096_v43, 0.0  ;;  %v2444_v62 = vrot.slane %v10720_v45, 2  ;;  %v2439_v0 = vsel %vm483_vm0, %v2436_v12, %v2438_v42 }
 0x1f7   :  { %v2108_v25 = vpop.f32.mrf.mxu0  ;;  %v6974_v43 = vunpack.i.l.bf16 %v6973_v51  ;;  %v2767_v53 = vsel %vm1135_vm3, %v2764_v18, %v2766_v57  ;;  %v6978_v30 = vpop.permute.xlu0 %6977  ;;  %v3090_v51 = vsel %vm1659_vm7, %v3026_v58, %v6970_v35 }
 0x1f8   :  { %12796 = vst [vmem:[#allocation13_spill] sm:$0xff] %v10732_v10  ;;  %v10736_v56 = vmax.f32 %v2117_v37, 0.0  ;;  %v2109_v1 = vadd.f32 %v10677_v39, %v2108_v25  ;;  %v2440_v48 = vrot.slane %v10732_v10, 2  ;;  %v2768_v37 = vrot.slane %v10732_v10, 4 }
 0x1f9   :  { %v6092_v9 = vpop.f32.mrf.mxu0  ;;  %v3025_v25 = vsel %vm1527_vm5, %v10308_v24, %v6964_v17  ;;  %v6980_v59 = vunpack.i.h.bf16 %v6978_v30  ;;  %v6979_v5 = vunpack.i.l.bf16 %v6978_v30  ;;  %v3028_v24 = vsel %vm1527_vm5, %v10410_v36, %v6975_v33 }
 0x1fa   :  { %v2263_v21 = vmax.f32 %v2109_v1, 0.0  ;;  %v2120_v52 = vadd.f32 %v10677_v39, %v6092_v9  ;;  %v2449_v14 = vrot.slane %v10736_v56, 2  ;;  %v3089_v12 = vsel %vm1659_vm7, %v3025_v25, %v6969_v29 }
 0x1fb   :  { %v2111_v38 = vpop.f32.mrf.mxu0  ;;  %v7101_v1 = vpack.i.bf16 %v2439_v0, %v2437_v60  ;;  %v3027_v18 = vsel %vm1527_vm5, %v10424_v55, %v6974_v43  ;;  %v2441_v30 = vsel %vm483_vm0, %v2438_v42, %v2440_v48  ;;  %v7106_v29 = vpack.i.bf16 %v2767_v53, %v2765_v40 }
 0x1fc   :  { %v2446_v54 = vrot.slane %v2263_v21, 2  ;;  %v2112_v9 = vadd.f32 %v10677_v39, %v2111_v38  ;;  %v10757_v17 = vmax.f32 %v2120_v52, 0.0  ;;  %v3091_v58 = vsel %vm1659_vm7, %v3027_v18, %v6979_v5 }
 0x1fd   :  { %7102 = vrot.lane.b32.xlu1 %v7101_v1, %s7664_s11  ;;  %v3092_v38 = vsel %vm1659_vm7, %v3028_v24, %v6980_v59  ;;  %v2774_v35 = vrot.slane %v2263_v21, 4  ;;  %v2443_v0 = vsel %vm483_vm0, %v2440_v48, %v2442_v28  ;;  %v5728_v36 = vpack.c.bf16 %v3090_v51, %v3089_v12 }
 0x1fe   :  { %v2447_v10 = vsel %vm483_vm0, %v2444_v62, %v2446_v54  ;;  %v10760_v60 = vmax.f32 %v2112_v9, 0.0  ;;  %v7111_v55 = vpack.i.bf16 %v2443_v0, %v2441_v30  ;;  %v2445_v43 = vsel %vm483_vm0, %v2442_v28, %v2444_v62 }
 0x1ff   :  { %v2769_v52 = vsel %vm1135_vm3, %v2766_v57, %v2768_v37  ;;  %v2451_v25 = vrot.slane %v10757_v17, 2  ;;  %6138 = vmatmul.mubr.msk.bf16.gmra.mxu0 %vm10660_vm11, %v5728_v36  ;;  %v7121_v5 = vpack.i.bf16 %v2447_v10, %v2445_v43  ;;  %v12797_v59 = vrot.slane %v10715_v15, 4 }
 0x200   :  { %v2448_v33 = vrot.slane %v10760_v60, 2  ;;  %v5731_v40 = vpack.c.bf16 %v3092_v38, %v3091_v58  ;;  %7112 = vrot.lane.b32.xlu0 %v7111_v55, %s7664_s11  ;;  %v12798_v21 = vrot.slane %v10720_v45, 4  ;;  %v2776_v57 = vrot.slane %v10760_v60, 4 }
 0x201   :  { %7107 = vrot.lane.b32.xlu1 %v7106_v29, %s7668_s26  ;;  %v2771_v42 = vsel %vm1135_vm3, %v2768_v37, %v12797_v59  ;;  %v2777_v10 = vrot.slane %v10736_v56, 4  ;;  %v2779_v37 = vrot.slane %v10757_v17, 4  ;;  %v12800_v1 = vmov %v12797_v59 }
 0x202   :  { %v2775_v28 = vsel %vm1135_vm3, %v12798_v21, %v2774_v35  ;;  %6141 = vmatprep.mubr.msk.bf16.mxu0 %vm10660_vm11, %v5731_v40  ;;  %v2450_v62 = vsel %vm483_vm0, %v2448_v33, %v2449_v14  ;;  %v7116_v48 = vpack.i.bf16 %v2771_v42, %v2769_v52  ;;  %v12799_v12 = vmov %v12798_v21 }
 0x203   :  { %v2773_v51 = vsel %vm1135_vm3, %v12800_v1, %v12799_v12  ;;  %v2452_v9 = vsel %vm483_vm0, %v2449_v14, %v2451_v25  ;;  %v6983_v38 = vpop.permute.xlu1 %6982  ;;  %v6993_v0 = vpop.permute.xlu0 %6992  ;;  %v2778_v36 = vsel %vm1135_vm3, %v2776_v57, %v2777_v10  ;;  %v2780_v52 = vsel %vm1135_vm3, %v2777_v10, %v2779_v37 }
 0x204   :  { %7117 = vrot.lane.b32.xlu0 %v7116_v48, %s7668_s26  ;;  %v7126_v24 = vpack.i.bf16 %v2775_v28, %v2773_v51  ;;  %v7131_v18 = vpack.i.bf16 %v2452_v9, %v2450_v62  ;;  %v6985_v29 = vunpack.i.h.bf16 %v6983_v38  ;;  %v6984_v14 = vunpack.i.l.bf16 %v6983_v38 }
 0x205   :  { %v6095_v53 = vpop.f32.mrf.mxu0  ;;  %7122 = vrot.lane.b32.xlu1 %v7121_v5, %s7664_s11  ;;  %v6994_v43 = vunpack.i.l.bf16 %v6993_v0  ;;  %v6995_v59 = vunpack.i.h.bf16 %v6993_v0  ;;  %v7136_v40 = vpack.i.bf16 %v2780_v52, %v2778_v36 }
 0x206   :  { %v2133_v54 = vadd.f32 %v10677_v39, %v6095_v53  ;;  %v3030_v62 = vsel %vm1527_vm5, %v10471_v23, %v6985_v29  ;;  %v3029_v9 = vsel %vm1527_vm5, %v10412_v19, %v6984_v14 }
 0x207   :  { %v2124_v58 = vpop.f32.mrf.mxu0  ;;  %v6988_v28 = vpop.permute.xlu1 %6987  ;;  %v3032_v23 = vsel %vm1527_vm5, %v10475_v22, %v6995_v59 }
 0x208   :  { %v10797_v30 = vmax.f32 %v2133_v54, 0.0  ;;  %v2125_v35 = vadd.f32 %v10677_v39, %v2124_v58  ;;  %7132 = vrot.lane.b32.xlu0 %v7131_v18, %s7664_s11  ;;  %v6990_v53 = vunpack.i.h.bf16 %v6988_v28  ;;  %v6998_v54 = vpop.permute.xlu0 %6997  ;;  %v6989_v12 = vunpack.i.l.bf16 %v6988_v28 }
 0x209   :  { %v6096_v33 = vpop.f32.mrf.mxu0  ;;  %7127 = vrot.lane.b32.xlu1 %v7126_v24, %s7668_s26  ;;  %v7000_v1 = vunpack.i.h.bf16 %v6998_v54  ;;  %v6999_v51 = vunpack.i.l.bf16 %v6998_v54  ;;  %v3031_v24 = vsel %vm1527_vm5, %v10485_v13, %v6994_v43 }
 0x20a   :  { %v10802_v55 = vmax.f32 %v2125_v35, 0.0  ;;  %v2457_v5 = vrot.slane %v10797_v30, 2  ;;  %v2136_v42 = vadd.f32 %v10677_v39, %v6096_v33  ;;  %v3094_v58 = vsel %vm1659_vm7, %v3030_v62, %v6990_v53 }
 0x20b   :  { %v2127_v21 = vpop.f32.mrf.mxu0  ;;  %v3093_v35 = vsel %vm1659_vm7, %v3029_v9, %v6989_v12  ;;  %v3095_v29 = vsel %vm1659_vm7, %v3031_v24, %v6999_v51  ;;  %v3096_v13 = vsel %vm1659_vm7, %v3032_v23, %v7000_v1  ;;  %v2785_v33 = vrot.slane %v10797_v30, 4 }
 0x20c   :  { %v2453_v57 = vrot.slane %v10802_v55, 2  ;;  %v2128_v48 = vadd.f32 %v10677_v39, %v2127_v21  ;;  %v10814_v10 = vmax.f32 %v2136_v42, 0.0  ;;  %7137 = vrot.lane.b32.xlu0 %v7136_v40, %s7668_s26  ;;  %v5734_v36 = vpack.c.bf16 %v3094_v58, %v3093_v35 }
 0x20d   :  { %v2781_v14 = vrot.slane %v10802_v55, 4  ;;  %v5737_v22 = vpack.c.bf16 %v3096_v13, %v3095_v29 }
 0x20e   :  { %v10820_v18 = vmax.f32 %v2128_v48, 0.0  ;;  %v2459_v38 = vrot.slane %v10814_v10, 2  ;;  %v2454_v43 = vsel %vm483_vm0, %v2451_v25, %v2453_v57  ;;  %v2787_v52 = vrot.slane %v10814_v10, 4  ;;  %6142 = vmatmul.mubr.msk.bf16.gmra.mxu0 %vm10660_vm11, %v5734_v36 }
 0x20f   :  { %6145 = vmatprep.mubr.msk.bf16.mxu0 %vm10660_vm11, %v5737_v22 }
 0x210   :  { %v2455_v19 = vrot.slane %v10820_v18, 2  ;;  %v2783_v0 = vrot.slane %v10820_v18, 4  ;;  %v2460_v40 = vsel %vm483_vm0, %v2457_v5, %v2459_v38 }
 0x212   :  { %v2456_v59 = vsel %vm483_vm0, %v2453_v57, %v2455_v19  ;;  %v2458_v42 = vsel %vm483_vm0, %v2455_v19, %v2457_v5  ;;  %v2784_v62 = vsel %vm1135_vm3, %v2781_v14, %v2783_v0  ;;  %v2786_v25 = vsel %vm1135_vm3, %v2783_v0, %v2785_v33 }
 0x213   :  { %v7141_v21 = vpack.i.bf16 %v2456_v59, %v2454_v43  ;;  %v7151_v28 = vpack.i.bf16 %v2460_v40, %v2458_v42  ;;  %v2782_v57 = vsel %vm1135_vm3, %v2779_v37, %v2781_v14  ;;  %v2788_v5 = vsel %vm1135_vm3, %v2785_v33, %v2787_v52 }
 0x214   :  { %v7003_v54 = vpop.permute.xlu1 %7002  ;;  %v7146_v12 = vpack.i.bf16 %v2784_v62, %v2782_v57  ;;  %v7156_v1 = vpack.i.bf16 %v2788_v5, %v2786_v25 }
 0x215   :  { %7142 = vrot.lane.b32.xlu1 %v7141_v21, %s7664_s11  ;;  %7152 = vrot.lane.b32.xlu0 %v7151_v28, %s7664_s11  ;;  %v7005_v9 = vunpack.i.h.bf16 %v7003_v54  ;;  %v7004_v23 = vunpack.i.l.bf16 %v7003_v54 }
 0x216   :  { %v6099_v48 = vpop.f32.mrf.mxu0 }
 0x217   :  { %v3034_v0 = vsel %vm1527_vm5, %v10512_v46, %v7005_v9  ;;  %v3033_v33 = vsel %vm1527_vm5, %v10478_v8, %v7004_v23  ;;  %v2149_v57 = vadd.f32 %v10677_v39, %v6099_v48 }
 0x218   :  { %v2140_v53 = vpop.f32.mrf.mxu0  ;;  %v7008_v29 = vpop.permute.xlu1 %7007 }
 0x219   :  { %v2141_v51 = vadd.f32 %v10677_v39, %v2140_v53  ;;  %7147 = vrot.lane.b32.xlu1 %v7146_v12, %s7668_s26  ;;  %7157 = vrot.lane.b32.xlu0 %v7156_v1, %s7668_s26  ;;  %v7010_v19 = vunpack.i.h.bf16 %v7008_v29  ;;  %v7009_v13 = vunpack.i.l.bf16 %v7008_v29 }
 0x21a   :  { %v6100_v24 = vpop.f32.mrf.mxu0 }
 0x21b   :  { %v10856_v58 = vmax.f32 %v2141_v51, 0.0  ;;  %v3098_v22 = vsel %vm1659_vm7, %v3034_v0, %v7010_v19  ;;  %v3097_v43 = vsel %vm1659_vm7, %v3033_v33, %v7009_v13  ;;  %v2152_v62 = vadd.f32 %v10677_v39, %v6100_v24 }
 0x21c   :  { %v2143_v35 = vpop.f32.mrf.mxu0  ;;  %v5740_v40 = vpack.c.bf16 %v3098_v22, %v3097_v43 }
 0x21d   :  { %v2144_v37 = vadd.f32 %v10677_v39, %v2143_v35  ;;  %v2461_v36 = vrot.slane %v10856_v58, 2  ;;  %v2789_v21 = vrot.slane %v10856_v58, 4  ;;  %v10876_v51 = vmax.f32 %v2152_v62, 0.0 }
 0x21e   :  { %6146 = vmatmul.mubr.msk.bf16.gmra.mxu0 %vm10660_vm11, %v5740_v40  ;;  %v10879_v35 = vmax.f32 %v2149_v57, 0.0 }
 0x21f   :  { %v2272_v14 = vmax.f32 %v2144_v37, 0.0  ;;  %v2462_v46 = vsel %vm483_vm0, %v2459_v38, %v2461_v36  ;;  %v2790_v1 = vsel %vm1135_vm3, %v2787_v52, %v2789_v21  ;;  %v2466_v43 = vrot.slane %v10876_v51, 2 }
 0x220   :  { %v2794_v62 = vrot.slane %v10876_v51, 4 }
 0x221   :  { %v2463_v59 = vrot.slane %v2272_v14, 2  ;;  %v2791_v42 = vrot.slane %v2272_v14, 4 }
 0x223   :  { %v2464_v28 = vsel %vm483_vm0, %v2461_v36, %v2463_v59  ;;  %v7013_v8 = vpop.permute.xlu0 %7012  ;;  %v2792_v5 = vsel %vm1135_vm3, %v2789_v21, %v2791_v42 }
 0x224   :  { %v7161_v25 = vpack.i.bf16 %v2464_v28, %v2462_v46  ;;  %v7015_v53 = vunpack.i.h.bf16 %v7013_v8  ;;  %v7014_v54 = vunpack.i.l.bf16 %v7013_v8  ;;  %v7166_v24 = vpack.i.bf16 %v2792_v5, %v2790_v1 }
 0x226   :  { %7162 = vrot.lane.b32.xlu1 %v7161_v25, %s7664_s11  ;;  %v3036_v0 = vsel %vm1527_vm5, %v10523_v7, %v7015_v53  ;;  %v3035_v52 = vsel %vm1527_vm5, %v10526_v27, %v7014_v54  ;;  %v2465_v7 = vrot.slane %v10879_v35, 2 }
 0x227   :  { %v6103_v12 = vpop.f32.mrf.mxu0  ;;  %v7018_v23 = vpop.permute.xlu0 %7017 }
 0x228   :  { %v2165_v9 = vadd.f32 %v10677_v39, %v6103_v12  ;;  %v7023_v29 = vpop.permute.xlu1 %7022  ;;  %v7020_v37 = vunpack.i.h.bf16 %v7018_v23  ;;  %v7019_v19 = vunpack.i.l.bf16 %v7018_v23  ;;  %v2467_v23 = vsel %vm483_vm0, %v2465_v7, %v2466_v43 }
 0x229   :  { %v2156_v38 = vpop.f32.mrf.mxu0  ;;  %v7025_v33 = vunpack.i.h.bf16 %v7023_v29  ;;  %v7024_v14 = vunpack.i.l.bf16 %v7023_v29 }
 0x22a   :  { %v2157_v48 = vadd.f32 %v10677_v39, %v2156_v38  ;;  %7167 = vrot.lane.b32.xlu1 %v7166_v24, %s7668_s26  ;;  %v3099_v22 = vsel %vm1659_vm7, %v3035_v52, %v7019_v19  ;;  %v10891_v59 = vmax.f32 %v2165_v9, 0.0  ;;  %v3100_v42 = vsel %vm1659_vm7, %v3036_v0, %v7020_v37 }
 0x22b   :  { %v6104_v13 = vpop.f32.mrf.mxu0  ;;  %v5743_v46 = vpack.c.bf16 %v3100_v42, %v3099_v22  ;;  %v3038_v5 = vsel %vm1527_vm5, %v10541_v2, %v7025_v33  ;;  %v3037_v53 = vsel %vm1527_vm5, %v10532_v44, %v7024_v14  ;;  %v2793_v37 = vrot.slane %v10879_v35, 4 }
 0x22c   :  { %v10887_v36 = vmax.f32 %v2157_v48, 0.0  ;;  %v7028_v28 = vpop.permute.xlu1 %7027  ;;  %v2472_v1 = vrot.slane %v10891_v59, 2  ;;  %v2168_v2 = vadd.f32 %v10677_v39, %v6104_v13  ;;  %v2800_v22 = vrot.slane %v10891_v59, 4 }
 0x22d   :  { %v2159_v40 = vpop.f32.mrf.mxu0  ;;  %v7030_v25 = vunpack.i.h.bf16 %v7028_v28  ;;  %v7029_v57 = vunpack.i.l.bf16 %v7028_v28  ;;  %6149 = vmatprep.mubr.msk.bf16.mxu0 %vm10660_vm11, %v5743_v46  ;;  %v2795_v42 = vsel %vm1135_vm3, %v2793_v37, %v2794_v62 }
 0x22e   :  { %v2468_v27 = vrot.slane %v10887_v36, 2  ;;  %v2160_v21 = vadd.f32 %v10677_v39, %v2159_v40  ;;  %v2796_v8 = vrot.slane %v10887_v36, 4  ;;  %v10924_v40 = vmax.f32 %v2168_v2, 0.0 }
 0x22f   :  { %v3101_v9 = vsel %vm1659_vm7, %v3037_v53, %v7029_v57  ;;  %v3102_v38 = vsel %vm1659_vm7, %v3038_v5, %v7030_v25 }
 0x230   :  { %v10903_v54 = vmax.f32 %v2160_v21, 0.0  ;;  %v2469_v12 = vsel %vm483_vm0, %v2466_v43, %v2468_v27  ;;  %v7033_v44 = vpop.permute.xlu1 %7032  ;;  %v5746_v29 = vpack.c.bf16 %v3102_v38, %v3101_v9  ;;  %v2797_v52 = vsel %vm1135_vm3, %v2794_v62, %v2796_v8  ;;  %v6107_v43 = vpop.f32.mrf.mxu0 }
 0x231   :  { %v7171_v48 = vpack.i.bf16 %v2469_v12, %v2467_v23  ;;  %v7035_v0 = vunpack.i.h.bf16 %v7033_v44  ;;  %v7034_v33 = vunpack.i.l.bf16 %v7033_v44  ;;  %v7176_v46 = vpack.i.bf16 %v2797_v52, %v2795_v42 }
 0x232   :  { %v2470_v24 = vrot.slane %v10903_v54, 2  ;;  %v2798_v19 = vrot.slane %v10903_v54, 4  ;;  %6150 = vmatmul.mubr.msk.bf16.gmra.mxu0 %vm10660_vm11, %v5746_v29  ;;  %v2172_v25 = vpop.f32.mrf.mxu0  ;;  %v2181_v12 = vadd.f32 %v10677_v39, %v6107_v43 }
 0x233   :  { %7172 = vrot.lane.b32.xlu0 %v7171_v48, %s7664_s11  ;;  %v3040_v7 = vsel %vm1527_vm5, %v10560_v4, %v7035_v0  ;;  %v3039_v62 = vsel %vm1527_vm5, %v10535_v41, %v7034_v33  ;;  %v2173_v9 = vadd.f32 %v10677_v39, %v2172_v25  ;;  %v2802_v33 = vrot.slane %v10924_v40, 4 }
 0x234   :  { %v2471_v13 = vsel %vm483_vm0, %v2468_v27, %v2470_v24  ;;  %v2473_v14 = vsel %vm483_vm0, %v2470_v24, %v2472_v1  ;;  %v7038_v21 = vpop.permute.xlu1 %7037  ;;  %v2799_v27 = vsel %vm1135_vm3, %v2796_v8, %v2798_v19  ;;  %v2801_v53 = vsel %vm1135_vm3, %v2798_v19, %v2800_v22  ;;  %v6108_v4 = vpop.f32.mrf.mxu0 }
 0x235   :  { %v7181_v28 = vpack.i.bf16 %v2473_v14, %v2471_v13  ;;  %v7040_v57 = vunpack.i.h.bf16 %v7038_v21  ;;  %v7039_v5 = vunpack.i.l.bf16 %v7038_v21  ;;  %v2474_v8 = vrot.slane %v10924_v40, 2  ;;  %v7043_v24 = vpop.permute.xlu0 %7042 }
 0x236   :  { %v10939_v2 = vmax.f32 %v2173_v9, 0.0  ;;  %v2184_v44 = vadd.f32 %v10677_v39, %v6108_v4  ;;  %v7186_v48 = vpack.i.bf16 %v2801_v53, %v2799_v27  ;;  %v2175_v29 = vpop.f32.mrf.mxu0  ;;  %v2281_v37 = vmax.f32 %v2181_v12, 0.0 }
 0x237   :  { %7182 = vrot.lane.b32.xlu1 %v7181_v28, %s7664_s11  ;;  %7177 = vrot.lane.b32.xlu0 %v7176_v46, %s7668_s26  ;;  %v3103_v38 = vsel %vm1659_vm7, %v3039_v62, %v7039_v5  ;;  %v3104_v23 = vsel %vm1659_vm7, %v3040_v7, %v7040_v57  ;;  %v2176_v52 = vadd.f32 %v10677_v39, %v2175_v29  ;;  %v7045_v13 = vunpack.i.h.bf16 %v7043_v24 }
 0x238   :  { %v5749_v41 = vpack.c.bf16 %v3104_v23, %v3103_v38  ;;  %v2476_v19 = vrot.slane %v10939_v2, 2  ;;  %v2804_v0 = vrot.slane %v10939_v2, 4  ;;  %v7044_v14 = vunpack.i.l.bf16 %v7043_v24 }
 0x239   :  { %v10949_v43 = vmax.f32 %v2184_v44, 0.0  ;;  %v10951_v42 = vmax.f32 %v2176_v52, 0.0  ;;  %v2475_v7 = vsel %vm483_vm0, %v2472_v1, %v2474_v8  ;;  %v2480_v46 = vrot.slane %v2281_v37, 2 }
 0x23a   :  { %6153 = vmatprep.mubr.msk.bf16.mxu0 %vm10660_vm11, %v5749_v41  ;;  %v2477_v21 = vsel %vm483_vm0, %v2474_v8, %v2476_v19  ;;  %v2805_v27 = vsel %vm1135_vm3, %v2802_v33, %v2804_v0  ;;  %v3042_v53 = vsel %vm1527_vm5, %v10572_v63, %v7045_v13  ;;  %v3041_v12 = vsel %vm1527_vm5, %v10562_v34, %v7044_v14 }
 0x23b   :  { %7187 = vrot.lane.b32.xlu1 %v7186_v48, %s7668_s26  ;;  %v7191_v28 = vpack.i.bf16 %v2477_v21, %v2475_v7  ;;  %v2478_v25 = vrot.slane %v10951_v42, 2  ;;  %v2806_v57 = vrot.slane %v10951_v42, 4  ;;  %v2803_v62 = vsel %vm1135_vm3, %v2800_v22, %v2802_v33 }
 0x23c   :  { %v2808_v38 = vrot.slane %v2281_v37, 4  ;;  %v2482_v23 = vrot.slane %v10949_v43, 2  ;;  %v7196_v34 = vpack.i.bf16 %v2805_v27, %v2803_v62 }
 0x23d   :  { %7192 = vrot.lane.b32.xlu0 %v7191_v28, %s7664_s11  ;;  %v2479_v8 = vsel %vm483_vm0, %v2476_v19, %v2478_v25  ;;  %v2481_v24 = vsel %vm483_vm0, %v2478_v25, %v2480_v46  ;;  %v2807_v22 = vsel %vm1135_vm3, %v2804_v0, %v2806_v57 }
 0x23e   :  { %v7201_v48 = vpack.i.bf16 %v2481_v24, %v2479_v8  ;;  %v2809_v37 = vsel %vm1135_vm3, %v2806_v57, %v2808_v38 }
 0x23f   :  { %v6111_v5 = vpop.f32.mrf.mxu0  ;;  %v7206_v62 = vpack.i.bf16 %v2809_v37, %v2807_v22 }
 0x240   :  { %v2197_v1 = vadd.f32 %v10677_v39, %v6111_v5  ;;  %v7058_v9 = vpop.permute.xlu1 %7057  ;;  %v7048_v4 = vpop.permute.xlu0 %7047  ;;  %7202 = vrot.lane.b32.xlu1 %v7201_v48, %s7664_s11 }
 0x241   :  { %v2188_v44 = vpop.f32.mrf.mxu0  ;;  %v7060_v29 = vunpack.i.h.bf16 %v7058_v9  ;;  %v7059_v52 = vunpack.i.l.bf16 %v7058_v9  ;;  %7197 = vrot.lane.b32.xlu0 %v7196_v34, %s7668_s26  ;;  %v7050_v33 = vunpack.i.h.bf16 %v7048_v4  ;;  %v7049_v14 = vunpack.i.l.bf16 %v7048_v4 }
 0x242   :  { %v10968_v63 = vmax.f32 %v2197_v1, 0.0  ;;  %v2189_v41 = vadd.f32 %v10677_v39, %v2188_v44 }
 0x243   :  { %v6112_v13 = vpop.f32.mrf.mxu0  ;;  %v3043_v37 = vsel %vm1527_vm5, %v10593_v49, %v7049_v14 }
 0x244   :  { %v10975_v19 = vmax.f32 %v2189_v41, 0.0  ;;  %v2200_v7 = vadd.f32 %v10677_v39, %v6112_v13  ;;  %v7063_v21 = vpop.permute.xlu1 %7062  ;;  %v7053_v28 = vpop.permute.xlu0 %7052  ;;  %v2487_v46 = vrot.slane %v10968_v63, 2  ;;  %v2815_v57 = vrot.slane %v10968_v63, 4  ;;  %7207 = vrot.lane.b32.xlu1 %v7206_v62, %s7668_s26 }
 0x245   :  { %v2191_v25 = vpop.f32.mrf.mxu0  ;;  %v7065_v5 = vunpack.i.h.bf16 %v7063_v21  ;;  %v7064_v27 = vunpack.i.l.bf16 %v7063_v21  ;;  %v7055_v0 = vunpack.i.h.bf16 %v7053_v28  ;;  %v7054_v24 = vunpack.i.l.bf16 %v7053_v28 }
 0x246   :  { %v10980_v1 = vmax.f32 %v2200_v7, 0.0  ;;  %v2192_v9 = vadd.f32 %v10677_v39, %v2191_v25  ;;  %v2483_v38 = vrot.slane %v10975_v19, 2  ;;  %v3107_v28 = vsel %vm1659_vm7, %v3043_v37, %v7059_v52 }
 0x247   :  { %v3105_v4 = vsel %vm1659_vm7, %v3041_v12, %v7064_v27  ;;  %v3106_v8 = vsel %vm1659_vm7, %v3042_v53, %v7065_v5  ;;  %v3046_v41 = vsel %vm1527_vm5, %v10596_v32, %v7055_v0  ;;  %v3044_v53 = vsel %vm1527_vm5, %v10589_v3, %v7050_v33 }
 0x248   :  { %v2489_v44 = vrot.slane %v10980_v1, 2  ;;  %v10988_v48 = vmax.f32 %v2192_v9, 0.0  ;;  %v5752_v34 = vpack.c.bf16 %v3106_v8, %v3105_v4  ;;  %v7068_v13 = vpop.permute.xlu0 %7067  ;;  %v2817_v22 = vrot.slane %v10980_v1, 4 }
 0x249   :  { %v7070_v12 = vunpack.i.h.bf16 %v7068_v13  ;;  %v3108_v25 = vsel %vm1659_vm7, %v3044_v53, %v7060_v29  ;;  %v3045_v32 = vsel %vm1527_vm5, %v10602_v16, %v7054_v24  ;;  %v7069_v49 = vunpack.i.l.bf16 %v7068_v13 }
 0x24a   :  { %v2485_v7 = vrot.slane %v10988_v48, 2  ;;  %v2813_v21 = vrot.slane %v10988_v48, 4  ;;  %6154 = vmatmul.mubr.msk.bf16.gmra.mxu0 %vm10660_vm11, %v5752_v34  ;;  %v5755_v5 = vpack.c.bf16 %v3108_v25, %v3107_v28  ;;  %v2490_v33 = vsel %vm483_vm0, %v2487_v46, %v2489_v44 }
 0x24b   :  { %v3110_v14 = vsel %vm1659_vm7, %v3046_v41, %v7070_v12  ;;  %v2484_v52 = vsel %vm483_vm0, %v2482_v23, %v2483_v38  ;;  %v2811_v27 = vrot.slane %v10975_v19, 4  ;;  %v3109_v16 = vsel %vm1659_vm7, %v3045_v32, %v7069_v49 }
 0x24c   :  { %v2488_v3 = vsel %vm483_vm0, %v2485_v7, %v2487_v46  ;;  %v2486_v29 = vsel %vm483_vm0, %v2483_v38, %v2485_v7  ;;  %6157 = vmatprep.mubr.msk.bf16.mxu1 %vm10660_vm11, %v5755_v5  ;;  %v5758_v9 = vpack.c.bf16 %v3110_v14, %v3109_v16  ;;  %v2816_v4 = vsel %vm1135_vm3, %v2813_v21, %v2815_v57 }
 0x24d   :  { %v7216_v0 = vpack.i.bf16 %v2490_v33, %v2488_v3  ;;  %v7211_v62 = vpack.i.bf16 %v2486_v29, %v2484_v52  ;;  %v2810_v8 = vrot.slane %v10949_v43, 4  ;;  %v2814_v23 = vsel %vm1135_vm3, %v2811_v27, %v2813_v21 }
 0x24e   :  { %6158 = vmatmul.mubr.msk.bf16.vlgmr.msra.gmra.mxu1 %vm10660_vm11, %v5758_v9  ;;  %v2818_v41 = vsel %vm1135_vm3, %v2815_v57, %v2817_v22 }
 0x24f   :  { %v6115_v24 = vpop.f32.mrf.mxu0  ;;  %7217 = vrot.lane.b32.xlu1 %v7216_v0, %s7664_s11  ;;  %7212 = vrot.lane.b32.xlu0 %v7211_v62, %s7664_s11  ;;  %v7078_v38 = vpop.permute.xlu1 %7077  ;;  %v7226_v12 = vpack.i.bf16 %v2818_v41, %v2816_v4  ;;  %v2812_v7 = vsel %vm1135_vm3, %v2810_v8, %v2811_v27 }
 0x250   :  { %v2213_v46 = vadd.f32 %v10677_v39, %v6115_v24  ;;  %v7073_v34 = vpop.permute.xlu0 %7072  ;;  %v7080_v37 = vunpack.i.h.bf16 %v7078_v38  ;;  %v7079_v53 = vunpack.i.l.bf16 %v7078_v38  ;;  %v7221_v32 = vpack.i.bf16 %v2814_v23, %v2812_v7 }
 0x251   :  { %v2204_v13 = vpop.f32.mrf.mxu0  ;;  %v7075_v21 = vunpack.i.h.bf16 %v7073_v34  ;;  %v7074_v25 = vunpack.i.l.bf16 %v7073_v34 }
 0x252   :  { %v2205_v28 = vadd.f32 %v10677_v39, %v2204_v13  ;;  %v11029_v5 = vmax.f32 %v2213_v46, 0.0  ;;  %v3050_v57 = vsel %vm1527_vm5, %v10632_v20, %v7080_v37  ;;  %v3049_v3 = vsel %vm1527_vm5, %v10637_v6, %v7079_v53 }
 0x253   :  { %v6116_v49 = vpop.f32.mrf.mxu0  ;;  %7227 = vrot.lane.b32.xlu1 %v7226_v12, %s7668_s26  ;;  %7222 = vrot.lane.b32.xlu0 %v7221_v32, %s7668_s26  ;;  %v7088_v52 = vpop.permute.xlu1 %7087  ;;  %v3048_v4 = vsel %vm1527_vm5, %v10628_v47, %v7075_v21  ;;  %v3047_v20 = vsel %vm1527_vm5, %v10598_v50, %v7074_v25 }
 0x254   :  { %v11032_v14 = vmax.f32 %v2205_v28, 0.0  ;;  %v2216_v33 = vadd.f32 %v10677_v39, %v6116_v49  ;;  %v7083_v29 = vpop.permute.xlu0 %7082  ;;  %v7090_v16 = vunpack.i.h.bf16 %v7088_v52  ;;  %v7089_v0 = vunpack.i.l.bf16 %v7088_v52 }
 0x255   :  { %v2207_v27 = vpop.f32.mrf.mxu0  ;;  %v7085_v62 = vunpack.i.h.bf16 %v7083_v29  ;;  %v7084_v9 = vunpack.i.l.bf16 %v7083_v29  ;;  %v2495_v50 = vrot.slane %v11029_v5, 2  ;;  %v2823_v12 = vrot.slane %v11029_v5, 4 }
 0x256   :  { %v2290_v8 = vmax.f32 %v2216_v33, 0.0  ;;  %v2208_v6 = vadd.f32 %v10677_v39, %v2207_v27  ;;  %v3113_v24 = vsel %vm1659_vm7, %v3049_v3, %v7089_v0  ;;  %v3114_v23 = vsel %vm1659_vm7, %v3050_v57, %v7090_v16 }
 0x257   :  { %v3111_v46 = vsel %vm1659_vm7, %v3047_v20, %v7084_v9  ;;  %v3112_v38 = vsel %vm1659_vm7, %v3048_v4, %v7085_v62  ;;  %v2491_v34 = vrot.slane %v11032_v14, 2  ;;  %v5764_v47 = vpack.c.bf16 %v3114_v23, %v3113_v24 }
 0x258   :  { %v2497_v41 = vrot.slane %v2290_v8, 2  ;;  %v11050_v13 = vmax.f32 %v2208_v6, 0.0  ;;  %v5761_v37 = vpack.c.bf16 %v3112_v38, %v3111_v46  ;;  %v2819_v7 = vrot.slane %v11032_v14, 4 }
 0x259   :  { %v2825_v28 = vrot.slane %v2290_v8, 4  ;;  %v2492_v32 = vsel %vm483_vm0, %v2489_v44, %v2491_v34 }
 0x25a   :  { %v2493_v53 = vrot.slane %v11050_v13, 2  ;;  %v2821_v39 = vrot.slane %v11050_v13, 4  ;;  %6161 = vmatprep.mubr.msk.bf16.mxu1 %vm10660_vm11, %v5761_v37  ;;  %v2498_v21 = vsel %vm483_vm0, %v2495_v50, %v2497_v41  ;;  %v2820_v16 = vsel %vm1135_vm3, %v2817_v22, %v2819_v7 }
 0x25b   :  { %6162 = vmatmul.mubr.msk.bf16.gmra.mxu1 %vm10660_vm11, %v5764_v47  ;;  %v2826_v29 = vsel %vm1135_vm3, %v2823_v12, %v2825_v28 }
 0x25c   :  { %v2496_v25 = vsel %vm483_vm0, %v2493_v53, %v2495_v50  ;;  %v2494_v49 = vsel %vm483_vm0, %v2491_v34, %v2493_v53  ;;  %v2824_v33 = vsel %vm1135_vm3, %v2821_v39, %v2823_v12  ;;  %v2822_v52 = vsel %vm1135_vm3, %v2819_v7, %v2821_v39  ;;  %v12801_v39 = vld [vmem:[#allocation11_spill] sm:$0xff] }
 0x25d   :  { %v7236_v57 = vpack.i.bf16 %v2498_v21, %v2496_v25  ;;  %v7231_v3 = vpack.i.bf16 %v2494_v49, %v2492_v32  ;;  %v7246_v44 = vpack.i.bf16 %v2826_v29, %v2824_v33  ;;  %v7241_v0 = vpack.i.bf16 %v2822_v52, %v2820_v16 }
 0x25f   :  { %7237 = vrot.lane.b32.xlu1 %v7236_v57, %s7664_s11  ;;  %7232 = vrot.lane.b32.xlu0 %v7231_v3, %s7664_s11  ;;  %v7093_v27 = vpop.permute.xlu0 %7092 }
 0x260   :  { %v7095_v62 = vunpack.i.h.bf16 %v7093_v27  ;;  %v7094_v9 = vunpack.i.l.bf16 %v7093_v27  ;;  %v12803_v27 = vld [vmem:[#allocation14_spill] sm:$0xff] }
 0x262   :  { %v3052_v6 = vsel %vm1527_vm5, %v10680_v26, %v7095_v62  ;;  %v3051_v24 = vsel %vm1527_vm5, %v10672_v11, %v7094_v9 }
 0x263   :  { %7247 = vrot.lane.b32.xlu1 %v7246_v44, %s7668_s26  ;;  %7242 = vrot.lane.b32.xlu0 %v7241_v0, %s7668_s26  ;;  %v7098_v4 = vpop.permute.xlu0 %7097 }
 0x264   :  { %v7100_v20 = vunpack.i.h.bf16 %v7098_v4  ;;  %v7099_v8 = vunpack.i.l.bf16 %v7098_v4 }
 0x266   :  { %v3115_v23 = vsel %vm1659_vm7, %v3051_v24, %v7099_v8  ;;  %v3116_v22 = vsel %vm1659_vm7, %v3052_v6, %v7100_v20 }
 0x267   :  { %v5767_v46 = vpack.c.bf16 %v3116_v22, %v3115_v23 }
 0x269   :  { %6165 = vmatprep.mubr.msk.bf16.mxu1 %vm10660_vm11, %v5767_v46 }
 0x26f   :  { %v7103_v38 = vpop.permute.xlu1 %7102 }
 0x270   :  { %v7105_v34 = vunpack.i.h.bf16 %v7103_v38  ;;  %v7104_v41 = vunpack.i.l.bf16 %v7103_v38 }
 0x272   :  { %v7113_v53 = vpop.permute.xlu0 %7112  ;;  %v3054_v26 = vsel %vm1527_vm5, %v10693_v61, %v7105_v34  ;;  %v3053_v11 = vsel %vm1527_vm5, %v12801_v39, %v7104_v41  ;;  %v12802_v61 = vld [vmem:[#allocation13_spill] sm:$0xff] }
 0x273   :  { %v7108_v47 = vpop.permute.xlu1 %7107  ;;  %v7115_v28 = vunpack.i.h.bf16 %v7113_v53  ;;  %v7114_v21 = vunpack.i.l.bf16 %v7113_v53 }
 0x274   :  { %v7110_v37 = vunpack.i.h.bf16 %v7108_v47  ;;  %v7109_v50 = vunpack.i.l.bf16 %v7108_v47 }
 0x275   :  { %v3056_v29 = vsel %vm1527_vm5, %v12802_v61, %v7115_v28  ;;  %v3055_v16 = vsel %vm1527_vm5, %v12803_v27, %v7114_v21 }
 0x276   :  { %v3117_v12 = vsel %vm1659_vm7, %v3053_v11, %v7109_v50  ;;  %v3118_v7 = vsel %vm1659_vm7, %v3054_v26, %v7110_v37  ;;  %v7118_v49 = vpop.permute.xlu0 %7117 }
 0x277   :  { %v5770_v25 = vpack.c.bf16 %v3118_v7, %v3117_v12  ;;  %v7123_v32 = vpop.permute.xlu1 %7122  ;;  %v7120_v33 = vunpack.i.h.bf16 %v7118_v49  ;;  %v7119_v52 = vunpack.i.l.bf16 %v7118_v49 }
 0x278   :  { %v7125_v57 = vunpack.i.h.bf16 %v7123_v32  ;;  %v7124_v3 = vunpack.i.l.bf16 %v7123_v32 }
 0x279   :  { %6166 = vmatmul.mubr.msk.bf16.gmra.mxu1 %vm10660_vm11, %v5770_v25  ;;  %v3119_v44 = vsel %vm1659_vm7, %v3055_v16, %v7119_v52  ;;  %v3120_v0 = vsel %vm1659_vm7, %v3056_v29, %v7120_v33 }
 0x27a   :  { %v5773_v9 = vpack.c.bf16 %v3120_v0, %v3119_v44  ;;  %v7133_v8 = vpop.permute.xlu0 %7132  ;;  %v3058_v6 = vsel %vm1527_vm5, %v10720_v45, %v7125_v57  ;;  %v3057_v24 = vsel %vm1527_vm5, %v10715_v15, %v7124_v3 }
 0x27b   :  { %v7128_v62 = vpop.permute.xlu1 %7127  ;;  %v7135_v46 = vunpack.i.h.bf16 %v7133_v8  ;;  %v7134_v38 = vunpack.i.l.bf16 %v7133_v8 }
 0x27c   :  { %v7130_v4 = vunpack.i.h.bf16 %v7128_v62  ;;  %v7129_v20 = vunpack.i.l.bf16 %v7128_v62  ;;  %6169 = vmatprep.mubr.msk.bf16.mxu1 %vm10660_vm11, %v5773_v9 }
 0x27d   :  { %v3060_v45 = vsel %vm1527_vm5, %v10736_v56, %v7135_v46  ;;  %v3059_v15 = vsel %vm1527_vm5, %v10760_v60, %v7134_v38 }
 0x27e   :  { %v3121_v23 = vsel %vm1659_vm7, %v3057_v24, %v7129_v20  ;;  %v3122_v22 = vsel %vm1659_vm7, %v3058_v6, %v7130_v4  ;;  %v7138_v41 = vpop.permute.xlu0 %7137 }
 0x27f   :  { %v5776_v34 = vpack.c.bf16 %v3122_v22, %v3121_v23  ;;  %v7140_v47 = vunpack.i.h.bf16 %v7138_v41  ;;  %v7139_v37 = vunpack.i.l.bf16 %v7138_v41 }
 0x281   :  { %6170 = vmatmul.mubr.msk.bf16.gmra.mxu1 %vm10660_vm11, %v5776_v34  ;;  %v3123_v50 = vsel %vm1659_vm7, %v3059_v15, %v7139_v37  ;;  %v3124_v53 = vsel %vm1659_vm7, %v3060_v45, %v7140_v47  ;;  %v7547_v34 = vld [vmem:[%s12600_s5 + $0x38] sm:$0xff]  }
 0x282   :  { %v5779_v26 = vpack.c.bf16 %v3124_v53, %v3123_v50  ;;  %6197 = vmatprep.subr.bf16.mxu1 %v7547_v34 }
 0x283   :  { %6198 = vmatpush3.bf16.msra.mxu1 %v7547_v34 }
 0x284   :  { %6173 = vmatprep.mubr.msk.bf16.mxu1 %vm10660_vm11, %v5779_v26 }
 0x287   :  { %v7143_v39 = vpop.permute.xlu1 %7142  ;;  %v7153_v11 = vpop.permute.xlu0 %7152 }
 0x288   :  { %v7145_v12 = vunpack.i.h.bf16 %v7143_v39  ;;  %v7144_v7 = vunpack.i.l.bf16 %v7143_v39  ;;  %v7155_v28 = vunpack.i.h.bf16 %v7153_v11  ;;  %v7154_v21 = vunpack.i.l.bf16 %v7153_v11  ;;  %v7549_v11 = vld [vmem:[%s12600_s5 + $0x28] sm:$0xff]  }
 0x28a   :  { %v3062_v3 = vsel %vm1527_vm5, %v10802_v55, %v7145_v12  ;;  %v3061_v33 = vsel %vm1527_vm5, %v10757_v17, %v7144_v7  ;;  %v3064_v52 = vsel %vm1527_vm5, %v10797_v30, %v7155_v28  ;;  %v3063_v61 = vsel %vm1527_vm5, %v10820_v18, %v7154_v21 }
 0x28b   :  { %v7148_v25 = vpop.permute.xlu1 %7147  ;;  %v7158_v32 = vpop.permute.xlu0 %7157 }
 0x28c   :  { %v7150_v56 = vunpack.i.h.bf16 %v7148_v25  ;;  %v7149_v49 = vunpack.i.l.bf16 %v7148_v25  ;;  %v7160_v57 = vunpack.i.h.bf16 %v7158_v32  ;;  %v7159_v60 = vunpack.i.l.bf16 %v7158_v32 }
 0x28e   :  { %v3125_v29 = vsel %vm1659_vm7, %v3061_v33, %v7149_v49  ;;  %v3126_v27 = vsel %vm1659_vm7, %v3062_v3, %v7150_v56  ;;  %v3127_v16 = vsel %vm1659_vm7, %v3063_v61, %v7159_v60  ;;  %v3128_v44 = vsel %vm1659_vm7, %v3064_v52, %v7160_v57  ;;  %v11167_v60 = vld [vmem:[%s12599_s4] ss:$0 sm:$0xff] }
 0x28f   :  { %v5782_v0 = vpack.c.bf16 %v3126_v27, %v3125_v29  ;;  %v5785_v62 = vpack.c.bf16 %v3128_v44, %v3127_v16 }
 0x291   :  { %6174 = vmatmul.mubr.msk.bf16.gmra.mxu1 %vm10660_vm11, %v5782_v0 }
 0x292   :  { %6177 = vmatprep.mubr.msk.bf16.mxu1 %vm10660_vm11, %v5785_v62 }
 0x298   :  { %v7163_v17 = vpop.permute.xlu1 %7162 }
 0x299   :  { %v7165_v30 = vunpack.i.h.bf16 %v7163_v17  ;;  %v7164_v55 = vunpack.i.l.bf16 %v7163_v17 }
 0x29b   :  { %v3066_v20 = vsel %vm1527_vm5, %v10856_v58, %v7165_v30  ;;  %v3065_v8 = vsel %vm1527_vm5, %v10814_v10, %v7164_v55  ;;  %v7548_v58 = vld [vmem:[%s12600_s5 + $0x30] sm:$0xff]  }
 0x29c   :  { %v7168_v18 = vpop.permute.xlu1 %7167  ;;  %6199 = vmatprep.subr.bf16.mxu1 %v7548_v58 }
 0x29d   :  { %v7170_v9 = vunpack.i.h.bf16 %v7168_v18  ;;  %v7169_v4 = vunpack.i.l.bf16 %v7168_v18  ;;  %6200 = vmatpush3.bf16.msra.mxu1 %v7548_v58  ;;  %v7550_v18 = vld [vmem:[%s12600_s5 + $0x20] sm:$0xff]  }
 0x29e   :  { %6201 = vmatprep.subr.bf16.mxu1 %v7549_v11 }
 0x29f   :  { %v3129_v6 = vsel %vm1659_vm7, %v3065_v8, %v7169_v4  ;;  %v3130_v24 = vsel %vm1659_vm7, %v3066_v20, %v7170_v9 }
 0x2a0   :  { %v5788_v23 = vpack.c.bf16 %v3130_v24, %v3129_v6 }
 0x2a1   :  { %6202 = vmatpush3.bf16.msra.mxu1 %v7549_v11 }
 0x2a2   :  { %6178 = vmatmul.mubr.msk.bf16.gmra.mxu1 %vm10660_vm11, %v5788_v23  ;;  %6203 = vmatprep.subr.bf16.mxu1 %v7550_v18 }
 0x2a5   :  { %v7173_v22 = vpop.permute.xlu0 %7172  ;;  %6204 = vmatpush3.bf16.msra.mxu1 %v7550_v18 }
 0x2a6   :  { %v7175_v46 = vunpack.i.h.bf16 %v7173_v22  ;;  %v7174_v38 = vunpack.i.l.bf16 %v7173_v22 }
 0x2a8   :  { %v3068_v45 = vsel %vm1527_vm5, %v10876_v51, %v7175_v46  ;;  %v3067_v15 = vsel %vm1527_vm5, %v10879_v35, %v7174_v38 }
 0x2a9   :  { %v7183_v10 = vpop.permute.xlu1 %7182  ;;  %v7178_v41 = vpop.permute.xlu0 %7177 }
 0x2aa   :  { %v7180_v47 = vunpack.i.h.bf16 %v7178_v41  ;;  %v7179_v37 = vunpack.i.l.bf16 %v7178_v41  ;;  %v7185_v50 = vunpack.i.h.bf16 %v7183_v10  ;;  %v7184_v53 = vunpack.i.l.bf16 %v7183_v10 }
 0x2ac   :  { %v3131_v26 = vsel %vm1659_vm7, %v3067_v15, %v7179_v37  ;;  %v3132_v39 = vsel %vm1659_vm7, %v3068_v45, %v7180_v47  ;;  %v3070_v51 = vsel %vm1527_vm5, %v10903_v54, %v7185_v50  ;;  %v3069_v35 = vsel %vm1527_vm5, %v10887_v36, %v7184_v53  ;;  %v7551_v15 = vld [vmem:[%s12600_s5 + $0x18] sm:$0xff]  }
 0x2ad   :  { %v5791_v12 = vpack.c.bf16 %v3132_v39, %v3131_v26  ;;  %v7188_v7 = vpop.permute.xlu1 %7187  ;;  %v6135_v57 = vpop.f32.mrf.mxu0  ;;  %6205 = vmatprep.subr.bf16.mxu1 %v7551_v15 }
 0x2ae   :  { %v7190_v28 = vunpack.i.h.bf16 %v7188_v7  ;;  %v7189_v21 = vunpack.i.l.bf16 %v7188_v7  ;;  %v3358_v33 = vadd.f32 %v6135_v57, %v11167_v60  ;;  %6206 = vmatpush3.bf16.msra.mxu1 %v7551_v15 }
 0x2af   :  { %6181 = vmatprep.mubr.msk.bf16.mxu1 %vm10660_vm11, %v5791_v12  ;;  %v7193_v49 = vpop.permute.xlu0 %7192  ;;  %v3349_v36 = vpop.f32.mrf.mxu0 }
 0x2b0   :  { %v3133_v25 = vsel %vm1659_vm7, %v3069_v35, %v7189_v21  ;;  %v3134_v32 = vsel %vm1659_vm7, %v3070_v51, %v7190_v28  ;;  %v7195_v54 = vunpack.i.h.bf16 %v7193_v49  ;;  %v7194_v3 = vunpack.i.l.bf16 %v7193_v49  ;;  %v7552_v49 = vld [vmem:[%s12600_s5 + $0x10] sm:$0xff]  }
 0x2b1   :  { %v5794_v56 = vpack.c.bf16 %v3134_v32, %v3133_v25  ;;  %v3350_v52 = vadd.f32 %v11167_v60, %v3349_v36  ;;  %v6136_v27 = vpop.f32.mrf.mxu0  ;;  %v11180_v9 = vmax.f32 %v3358_v33, 0.0  ;;  %6207 = vmatprep.subr.bf16.mxu1 %v7552_v49 }
 0x2b2   :  { %v7203_v61 = vpop.permute.xlu1 %7202  ;;  %v3072_v17 = vsel %vm1527_vm5, %v10924_v40, %v7195_v54  ;;  %v3071_v30 = vsel %vm1527_vm5, %v10891_v59, %v7194_v3  ;;  %v3361_v38 = vadd.f32 %v6136_v27, %v11167_v60  ;;  %6208 = vmatpush3.bf16.msra.mxu1 %v7552_v49 }
 0x2b3   :  { %6182 = vmatmul.mubr.msk.bf16.gmra.mxu1 %vm10660_vm11, %v5794_v56  ;;  %v7198_v29 = vpop.permute.xlu0 %7197  ;;  %v7205_v16 = vunpack.i.h.bf16 %v7203_v61  ;;  %v7204_v44 = vunpack.i.l.bf16 %v7203_v61  ;;  %v3352_v55 = vpop.f32.mrf.mxu0  ;;  %v11182_v4 = vmax.f32 %v3350_v52, 0.0  ;;  %v3735_v47 = vrot.slane %v11180_v9, 3 }
 0x2b4   :  { %v7200_v0 = vunpack.i.h.bf16 %v7198_v29  ;;  %v7199_v62 = vunpack.i.l.bf16 %v7198_v29  ;;  %v3353_v40 = vadd.f32 %v11167_v60, %v3352_v55  ;;  %v4024_v45 = vrot.slane %v11180_v9, 6 }
 0x2b5   :  { %v3074_v59 = vsel %vm1527_vm5, %v10951_v42, %v7205_v16  ;;  %v3073_v46 = vsel %vm1527_vm5, %v10939_v2, %v7204_v44  ;;  %v3732_v42 = vrot.slane %v11182_v4, 3  ;;  %v4021_v50 = vrot.slane %v11182_v4, 6 }
 0x2b6   :  { %v3135_v20 = vsel %vm1659_vm7, %v3071_v30, %v7199_v62  ;;  %v3136_v8 = vsel %vm1659_vm7, %v3072_v17, %v7200_v0  ;;  %v7208_v6 = vpop.permute.xlu1 %7207  ;;  %v11192_v34 = vmax.f32 %v3353_v40, 0.0  ;;  %v11209_v53 = vmax.f32 %v3361_v38, 0.0 }
 0x2b7   :  { %v5797_v24 = vpack.c.bf16 %v3136_v8, %v3135_v20  ;;  %v7210_v23 = vunpack.i.h.bf16 %v7208_v6  ;;  %v7209_v22 = vunpack.i.l.bf16 %v7208_v6 }
 0x2b8   :  { %v3733_v37 = vrot.slane %v11192_v34, 3  ;;  %v4022_v2 = vrot.slane %v11192_v34, 6  ;;  %v3737_v57 = vrot.slane %v11209_v53, 3 }
 0x2b9   :  { %v3137_v58 = vsel %vm1659_vm7, %v3073_v46, %v7209_v22  ;;  %v3138_v10 = vsel %vm1659_vm7, %v3074_v59, %v7210_v23  ;;  %6185 = vmatprep.mubr.msk.bf16.mxu1 %vm10660_vm11, %v5797_v24  ;;  %v4026_v46 = vrot.slane %v11209_v53, 6 }
 0x2ba   :  { %v5800_v41 = vpack.c.bf16 %v3138_v10, %v3137_v58  ;;  %v3734_v26 = vsel %vm809_vm2, %v3732_v42, %v3733_v37  ;;  %v3736_v39 = vsel %vm809_vm2, %v3733_v37, %v3735_v47  ;;  %v4023_v51 = vsel %vm4020_vm12, %v4021_v50, %v4022_v2  ;;  %v7554_v42 = vld [vmem:[%s12600_s5] sm:$0xff]  }
 0x2bb   :  { %v7251_v7 = vpack.i.bf16 %v3736_v39, %v3734_v26  ;;  %v4025_v35 = vsel %vm4020_vm12, %v4022_v2, %v4024_v45  ;;  %v3738_v38 = vsel %vm809_vm2, %v3735_v47, %v3737_v57  ;;  %v4027_v26 = vsel %vm4020_vm12, %v4024_v45, %v4026_v46 }
 0x2bc   :  { %6186 = vmatmul.mubr.msk.bf16.gmra.mxu1 %vm10660_vm11, %v5800_v41  ;;  %v7256_v33 = vpack.i.bf16 %v4025_v35, %v4023_v51 }
 0x2bd   :  { %7252 = vrot.lane.b32.xlu0 %v7251_v7, %s7664_s11 }
 0x2bf   :  { %v6139_v28 = vpop.f32.mrf.mxu0 }
 0x2c0   :  { %v3374_v27 = vadd.f32 %v6139_v28, %v11167_v60 }
 0x2c1   :  { %v7218_v11 = vpop.permute.xlu1 %7217  ;;  %v7213_v12 = vpop.permute.xlu0 %7212  ;;  %7257 = vrot.lane.b32.xlu0 %v7256_v33, %s7668_s26 }
 0x2c2   :  { %v7220_v21 = vunpack.i.h.bf16 %v7218_v11  ;;  %v7219_v25 = vunpack.i.l.bf16 %v7218_v11  ;;  %v7215_v32 = vunpack.i.h.bf16 %v7213_v12  ;;  %v7214_v56 = vunpack.i.l.bf16 %v7213_v12  ;;  %v3365_v36 = vpop.f32.mrf.mxu0 }
 0x2c3   :  { %v3366_v3 = vadd.f32 %v11167_v60, %v3365_v36  ;;  %v11244_v23 = vmax.f32 %v3374_v27, 0.0 }
 0x2c4   :  { %v3078_v16 = vsel %vm1527_vm5, %v10968_v63, %v7220_v21  ;;  %v6140_v44 = vpop.f32.mrf.mxu0  ;;  %v3077_v17 = vsel %vm1527_vm5, %v10988_v48, %v7219_v25  ;;  %v3076_v30 = vsel %vm1527_vm5, %v10975_v19, %v7215_v32  ;;  %v3075_v55 = vsel %vm1527_vm5, %v10949_v43, %v7214_v56  ;;  %v7553_v63 = vld [vmem:[%s12600_s5 + $0x8] sm:$0xff]  }
 0x2c5   :  { %v7228_v54 = vpop.permute.xlu1 %7227  ;;  %v7223_v29 = vpop.permute.xlu0 %7222  ;;  %v11232_v18 = vmax.f32 %v3366_v3, 0.0  ;;  %6209 = vmatprep.subr.bf16.mxu1 %v7553_v63  ;;  %v3743_v2 = vrot.slane %v11244_v23, 3  ;;  %v4032_v50 = vrot.slane %v11244_v23, 6  ;;  %v3377_v39 = vadd.f32 %v6140_v44, %v11167_v60 }
 0x2c6   :  { %v7230_v52 = vunpack.i.h.bf16 %v7228_v54  ;;  %v7229_v61 = vunpack.i.l.bf16 %v7228_v54  ;;  %v7225_v0 = vunpack.i.h.bf16 %v7223_v29  ;;  %v7224_v62 = vunpack.i.l.bf16 %v7223_v29  ;;  %v3368_v19 = vpop.f32.mrf.mxu0  ;;  %6210 = vmatpush3.bf16.msra.mxu1 %v7553_v63 }
 0x2c7   :  { %v3739_v24 = vrot.slane %v11232_v18, 3  ;;  %v4028_v43 = vrot.slane %v11232_v18, 6  ;;  %v3369_v59 = vadd.f32 %v11167_v60, %v3368_v19  ;;  %6211 = vmatprep.subr.bf16.mxu1 %v7554_v42  ;;  %v3611_v36 = vmax.f32 %v3377_v39, 0.0 }
 0x2c8   :  { %v3141_v20 = vsel %vm1659_vm7, %v3077_v17, %v7229_v61  ;;  %v3142_v8 = vsel %vm1659_vm7, %v3078_v16, %v7230_v52  ;;  %v3139_v48 = vsel %vm1659_vm7, %v3075_v55, %v7224_v62  ;;  %v3140_v6 = vsel %vm1659_vm7, %v3076_v30, %v7225_v0 }
 0x2c9   :  { %v5806_v40 = vpack.c.bf16 %v3142_v8, %v3141_v20  ;;  %v5803_v22 = vpack.c.bf16 %v3140_v6, %v3139_v48  ;;  %v3740_v58 = vsel %vm809_vm2, %v3737_v57, %v3739_v24  ;;  %v11250_v10 = vmax.f32 %v3369_v59, 0.0 }
 0x2ca   :  { %v7261_v41 = vpack.i.bf16 %v3740_v58, %v3738_v38  ;;  %v4029_v37 = vsel %vm4020_vm12, %v4026_v46, %v4028_v43  ;;  %6212 = vmatpush3.bf16.msra.mxu1 %v7554_v42 }
 0x2cb   :  { %6189 = vmatprep.mubr.msk.bf16.mxu1 %vm10660_vm11, %v5803_v22  ;;  %v3741_v47 = vrot.slane %v11250_v10, 3  ;;  %v4030_v15 = vrot.slane %v11250_v10, 6  ;;  %v7266_v11 = vpack.i.bf16 %v4029_v37, %v4027_v26 }
 0x2cc   :  { %6190 = vmatmul.mubr.msk.bf16.gmra.mxu1 %vm10660_vm11, %v5806_v40  ;;  %7262 = vrot.lane.b32.xlu1 %v7261_v41, %s7664_s11  ;;  %v3745_v40 = vrot.slane %v3611_v36, 3 }
 0x2cd   :  { %v3742_v12 = vsel %vm809_vm2, %v3739_v24, %v3741_v47  ;;  %v3744_v7 = vsel %vm809_vm2, %v3741_v47, %v3743_v2  ;;  %v4031_v25 = vsel %vm4020_vm12, %v4028_v43, %v4030_v15  ;;  %v4033_v45 = vsel %vm4020_vm12, %v4030_v15, %v4032_v50 }
 0x2ce   :  { %v7271_v51 = vpack.i.bf16 %v3744_v7, %v3742_v12  ;;  %v6143_v56 = vpop.f32.mrf.mxu0  ;;  %v7276_v54 = vpack.i.bf16 %v4033_v45, %v4031_v25  ;;  %v3746_v37 = vsel %vm809_vm2, %v3743_v2, %v3745_v40  ;;  %v4034_v47 = vrot.slane %v3611_v36, 6 }
 0x2cf   :  { %v3390_v0 = vadd.f32 %v6143_v56, %v11167_v60 }
 0x2d0   :  { %7267 = vrot.lane.b32.xlu1 %v7266_v11, %s7668_s26  ;;  %7272 = vrot.lane.b32.xlu0 %v7271_v51, %s7664_s11  ;;  %v3381_v16 = vpop.f32.mrf.mxu0  ;;  %v4035_v25 = vsel %vm4020_vm12, %v4032_v50, %v4034_v47 }
 0x2d1   :  { %v7238_v28 = vpop.permute.xlu1 %7237  ;;  %v7233_v21 = vpop.permute.xlu0 %7232  ;;  %v3382_v17 = vadd.f32 %v11167_v60, %v3381_v16 }
 0x2d2   :  { %v7240_v35 = vunpack.i.h.bf16 %v7238_v28  ;;  %v7239_v32 = vunpack.i.l.bf16 %v7238_v28  ;;  %v7235_v49 = vunpack.i.h.bf16 %v7233_v21  ;;  %v7234_v57 = vunpack.i.l.bf16 %v7233_v21  ;;  %v6144_v20 = vpop.f32.mrf.mxu0 }
 0x2d3   :  { %v3393_v19 = vadd.f32 %v6144_v20, %v11167_v60  ;;  %v11297_v43 = vmax.f32 %v3382_v17, 0.0 }
 0x2d4   :  { %v3082_v52 = vsel %vm1527_vm5, %v11029_v5, %v7240_v35  ;;  %v3081_v44 = vsel %vm1527_vm5, %v11050_v13, %v7239_v32  ;;  %v3080_v30 = vsel %vm1527_vm5, %v11032_v14, %v7235_v49  ;;  %v3079_v55 = vsel %vm1527_vm5, %v10980_v1, %v7234_v57  ;;  %7277 = vrot.lane.b32.xlu0 %v7276_v54, %s7668_s26  ;;  %v3384_v24 = vpop.f32.mrf.mxu0 }
 0x2d5   :  { %v7248_v3 = vpop.permute.xlu1 %7247  ;;  %v7243_v33 = vpop.permute.xlu0 %7242  ;;  %v11295_v14 = vmax.f32 %v3390_v0, 0.0  ;;  %v3385_v1 = vadd.f32 %v11167_v60, %v3384_v24  ;;  %v11300_v22 = vmax.f32 %v3393_v19, 0.0  ;;  %v3747_v58 = vrot.slane %v11297_v43, 3 }
 0x2d6   :  { %v7250_v61 = vunpack.i.h.bf16 %v7248_v3  ;;  %v7249_v29 = vunpack.i.l.bf16 %v7248_v3  ;;  %v7245_v27 = vunpack.i.h.bf16 %v7243_v33  ;;  %v7244_v62 = vunpack.i.l.bf16 %v7243_v33 }
 0x2d7   :  { %v11304_v59 = vmax.f32 %v3385_v1, 0.0  ;;  %v3752_v46 = vrot.slane %v11300_v22, 3  ;;  %v3750_v38 = vrot.slane %v11295_v14, 3  ;;  %v4039_v15 = vrot.slane %v11295_v14, 6 }
 0x2d8   :  { %v3145_v5 = vsel %vm1659_vm7, %v3081_v44, %v7249_v29  ;;  %v3146_v63 = vsel %vm1659_vm7, %v3082_v52, %v7250_v61  ;;  %v3143_v13 = vsel %vm1659_vm7, %v3079_v55, %v7244_v62  ;;  %v3144_v48 = vsel %vm1659_vm7, %v3080_v30, %v7245_v27 }
 0x2d9   :  { %v5812_v8 = vpack.c.bf16 %v3146_v63, %v3145_v5  ;;  %v5809_v6 = vpack.c.bf16 %v3144_v48, %v3143_v13  ;;  %v3748_v41 = vrot.slane %v11304_v59, 3  ;;  %v4037_v42 = vrot.slane %v11304_v59, 6 }
 0x2da   :  { %v4036_v26 = vrot.slane %v11297_v43, 6  ;;  %v4041_v39 = vrot.slane %v11300_v22, 6  ;;  %v3753_v7 = vsel %vm809_vm2, %v3750_v38, %v3752_v46 }
 0x2db   :  { %6193 = vmatprep.mubr.msk.bf16.mxu1 %vm10660_vm11, %v5809_v6  ;;  %v3749_v11 = vsel %vm809_vm2, %v3747_v58, %v3748_v41  ;;  %v3751_v12 = vsel %vm809_vm2, %v3748_v41, %v3750_v38  ;;  %v4040_v2 = vsel %vm4020_vm12, %v4037_v42, %v4039_v15 }
 0x2dc   :  { %6194 = vmatmul.mubr.msk.bf16.gmra.mxu1 %vm10660_vm11, %v5812_v8  ;;  %v7281_v28 = vpack.i.bf16 %v3749_v11, %v3746_v37  ;;  %v7291_v21 = vpack.i.bf16 %v3753_v7, %v3751_v12  ;;  %v4038_v35 = vsel %vm4020_vm12, %v4036_v26, %v4037_v42  ;;  %v4042_v32 = vsel %vm4020_vm12, %v4039_v15, %v4041_v39 }
 0x2dd   :  { %v7286_v57 = vpack.i.bf16 %v4038_v35, %v4035_v25  ;;  %v7296_v36 = vpack.i.bf16 %v4042_v32, %v4040_v2 }
 0x2de   :  { %v6147_v51 = vpop.f32.mrf.mxu0  ;;  %7282 = vrot.lane.b32.xlu1 %v7281_v28, %s7664_s11  ;;  %7292 = vrot.lane.b32.xlu0 %v7291_v21, %s7664_s11 }
 0x2df   :  { %v3406_v56 = vadd.f32 %v6147_v51, %v11167_v60 }
 0x2e0   :  { %v3397_v45 = vpop.f32.mrf.mxu0 }
 0x2e1   :  { %v3398_v49 = vadd.f32 %v11167_v60, %v3397_v45  ;;  %v11337_v50 = vmax.f32 %v3406_v56, 0.0 }
 0x2e2   :  { %v6148_v54 = vpop.f32.mrf.mxu0  ;;  %7287 = vrot.lane.b32.xlu1 %v7286_v57, %s7668_s26  ;;  %7297 = vrot.lane.b32.xlu0 %v7296_v36, %s7668_s26 }
 0x2e3   :  { %v11332_v3 = vmax.f32 %v3398_v49, 0.0  ;;  %v3409_v33 = vadd.f32 %v6148_v54, %v11167_v60  ;;  %v3758_v0 = vrot.slane %v11337_v50, 3  ;;  %v4047_v30 = vrot.slane %v11337_v50, 6 }
 0x2e4   :  { %v3400_v52 = vpop.f32.mrf.mxu0 }
 0x2e5   :  { %v3619_v61 = vmax.f32 %v3409_v33, 0.0  ;;  %v3401_v29 = vadd.f32 %v11167_v60, %v3400_v52  ;;  %v3754_v27 = vrot.slane %v11332_v3, 3  ;;  %v4043_v55 = vrot.slane %v11332_v3, 6 }
 0x2e7   :  { %v3760_v16 = vrot.slane %v3619_v61, 3  ;;  %v11341_v44 = vmax.f32 %v3401_v29, 0.0  ;;  %v4049_v5 = vrot.slane %v3619_v61, 6  ;;  %v3755_v20 = vsel %vm809_vm2, %v3752_v46, %v3754_v27 }
 0x2e8   :  { %v4044_v38 = vsel %vm4020_vm12, %v4041_v39, %v4043_v55 }
 0x2e9   :  { %v3756_v62 = vrot.slane %v11341_v44, 3  ;;  %v4045_v17 = vrot.slane %v11341_v44, 6  ;;  %v3761_v63 = vsel %vm809_vm2, %v3758_v0, %v3760_v16  ;;  %v4050_v40 = vsel %vm4020_vm12, %v4047_v30, %v4049_v5 }
 0x2eb   :  { %v3757_v8 = vsel %vm809_vm2, %v3754_v27, %v3756_v62  ;;  %v3759_v13 = vsel %vm809_vm2, %v3756_v62, %v3758_v0  ;;  %v4046_v19 = vsel %vm4020_vm12, %v4043_v55, %v4045_v17  ;;  %v4048_v24 = vsel %vm4020_vm12, %v4045_v17, %v4047_v30 }
 0x2ec   :  { %v7301_v48 = vpack.i.bf16 %v3757_v8, %v3755_v20  ;;  %v7311_v6 = vpack.i.bf16 %v3761_v63, %v3759_v13  ;;  %v7306_v58 = vpack.i.bf16 %v4046_v19, %v4044_v38  ;;  %v7316_v41 = vpack.i.bf16 %v4050_v40, %v4048_v24 }
 0x2ee   :  { %7302 = vrot.lane.b32.xlu1 %v7301_v48, %s7664_s11  ;;  %7312 = vrot.lane.b32.xlu0 %v7311_v6, %s7664_s11 }
 0x2f2   :  { %v6151_v1 = vpop.f32.mrf.mxu0  ;;  %7307 = vrot.lane.b32.xlu1 %v7306_v58, %s7668_s26  ;;  %7317 = vrot.lane.b32.xlu0 %v7316_v41, %s7668_s26 }
 0x2f3   :  { %v3422_v42 = vadd.f32 %v6151_v1, %v11167_v60 }
 0x2f4   :  { %v3413_v46 = vpop.f32.mrf.mxu0 }
 0x2f5   :  { %v3414_v37 = vadd.f32 %v11167_v60, %v3413_v46  ;;  %v11362_v26 = vmax.f32 %v3422_v42, 0.0 }
 0x2f6   :  { %v6152_v47 = vpop.f32.mrf.mxu0 }
 0x2f7   :  { %v11364_v11 = vmax.f32 %v3414_v37, 0.0  ;;  %v3765_v7 = vrot.slane %v11362_v26, 3  ;;  %v4054_v35 = vrot.slane %v11362_v26, 6  ;;  %v3425_v36 = vadd.f32 %v6152_v47, %v11167_v60 }
 0x2f8   :  { %v3416_v15 = vpop.f32.mrf.mxu0 }
 0x2f9   :  { %v3417_v12 = vadd.f32 %v11167_v60, %v3416_v15  ;;  %v3762_v28 = vrot.slane %v11364_v11, 3  ;;  %v4051_v2 = vrot.slane %v11364_v11, 6  ;;  %v11382_v52 = vmax.f32 %v3425_v36, 0.0 }
 0x2fb   :  { %v11367_v39 = vmax.f32 %v3417_v12, 0.0  ;;  %v3767_v30 = vrot.slane %v11382_v52, 3  ;;  %v4056_v48 = vrot.slane %v11382_v52, 6 }
 0x2fd   :  { %v3763_v21 = vrot.slane %v11367_v39, 3  ;;  %v4052_v51 = vrot.slane %v11367_v39, 6  ;;  %v3768_v38 = vsel %vm809_vm2, %v3765_v7, %v3767_v30 }
 0x2ff   :  { %v3764_v25 = vsel %vm809_vm2, %v3762_v28, %v3763_v21  ;;  %v3766_v45 = vsel %vm809_vm2, %v3763_v21, %v3765_v7  ;;  %v4053_v56 = vsel %vm4020_vm12, %v4051_v2, %v4052_v51  ;;  %v4055_v49 = vsel %vm4020_vm12, %v4052_v51, %v4054_v35 }
 0x300   :  { %v7321_v32 = vpack.i.bf16 %v3766_v45, %v3764_v25  ;;  %v7326_v57 = vpack.i.bf16 %v4055_v49, %v4053_v56  ;;  %v4057_v2 = vsel %vm4020_vm12, %v4054_v35, %v4056_v48 }
 0x302   :  { %7322 = vrot.lane.b32.xlu1 %v7321_v32, %s7664_s11 }
 0x306   :  { %7327 = vrot.lane.b32.xlu1 %v7326_v57, %s7668_s26 }
 0x30a   :  { %v6155_v54 = vpop.f32.mrf.mxu0 }
 0x30b   :  { %v3438_v29 = vadd.f32 %v6155_v54, %v11167_v60 }
 0x30c   :  { %v3429_v33 = vpop.f32.mrf.mxu0 }
 0x30d   :  { %v3430_v61 = vadd.f32 %v11167_v60, %v3429_v33  ;;  %v11391_v5 = vmax.f32 %v3438_v29, 0.0 }
 0x30e   :  { %v6156_v27 = vpop.f32.mrf.mxu0  ;;  %v6159_v62 = vpop.f32.mrf.mxu1 }
 0x30f   :  { %v11386_v16 = vmax.f32 %v3430_v61, 0.0  ;;  %v3441_v0 = vadd.f32 %v6156_v27, %v11167_v60  ;;  %v3454_v40 = vadd.f32 %v6159_v62, %v11167_v60  ;;  %v3773_v46 = vrot.slane %v11391_v5, 3 }
 0x310   :  { %v3432_v17 = vpop.f32.mrf.mxu0  ;;  %v3445_v20 = vpop.f32.mrf.mxu1  ;;  %v4062_v21 = vrot.slane %v11391_v5, 6 }
 0x311   :  { %v3769_v55 = vrot.slane %v11386_v16, 3  ;;  %v3433_v63 = vadd.f32 %v11167_v60, %v3432_v17  ;;  %v4058_v8 = vrot.slane %v11386_v16, 6  ;;  %v3446_v13 = vadd.f32 %v11167_v60, %v3445_v20 }
 0x312   :  { %v3627_v6 = vmax.f32 %v3441_v0, 0.0  ;;  %v6160_v24 = vpop.f32.mrf.mxu1  ;;  %v11413_v25 = vmax.f32 %v3454_v40, 0.0 }
 0x313   :  { %v11397_v19 = vmax.f32 %v3433_v63, 0.0  ;;  %v3770_v1 = vsel %vm809_vm2, %v3767_v30, %v3769_v55  ;;  %v11404_v41 = vmax.f32 %v3446_v13, 0.0  ;;  %v3457_v42 = vadd.f32 %v6160_v24, %v11167_v60 }
 0x314   :  { %v3448_v37 = vpop.f32.mrf.mxu1  ;;  %v7331_v12 = vpack.i.bf16 %v3770_v1, %v3768_v38  ;;  %v4059_v28 = vsel %vm4020_vm12, %v4056_v48, %v4058_v8  ;;  %v3775_v51 = vrot.slane %v3627_v6, 3  ;;  %v4064_v27 = vrot.slane %v3627_v6, 6 }
 0x315   :  { %v3771_v58 = vrot.slane %v11397_v19, 3  ;;  %v4060_v47 = vrot.slane %v11397_v19, 6  ;;  %v3449_v15 = vadd.f32 %v11167_v60, %v3448_v37  ;;  %v11415_v45 = vmax.f32 %v3457_v42, 0.0 }
 0x316   :  { %7332 = vrot.lane.b32.xlu0 %v7331_v12, %s7664_s11  ;;  %v3777_v49 = vrot.slane %v11404_v41, 3  ;;  %v7336_v36 = vpack.i.bf16 %v4059_v28, %v4057_v2  ;;  %v3776_v29 = vsel %vm809_vm2, %v3773_v46, %v3775_v51  ;;  %v3780_v62 = vrot.slane %v11413_v25, 3 }
 0x317   :  { %v3772_v7 = vsel %vm809_vm2, %v3769_v55, %v3771_v58  ;;  %v11417_v32 = vmax.f32 %v3449_v15, 0.0  ;;  %v3774_v56 = vsel %vm809_vm2, %v3771_v58, %v3773_v46  ;;  %v4061_v35 = vsel %vm4020_vm12, %v4058_v8, %v4060_v47 }
 0x318   :  { %v7341_v57 = vpack.i.bf16 %v3774_v56, %v3772_v7  ;;  %v4063_v61 = vsel %vm4020_vm12, %v4060_v47, %v4062_v21  ;;  %v4066_v17 = vrot.slane %v11404_v41, 6  ;;  %v3782_v30 = vrot.slane %v11415_v45, 3 }
 0x319   :  { %v3778_v54 = vrot.slane %v11417_v32, 3  ;;  %v4067_v33 = vrot.slane %v11417_v32, 6  ;;  %v7346_v20 = vpack.i.bf16 %v4063_v61, %v4061_v35  ;;  %v4065_v1 = vsel %vm4020_vm12, %v4062_v21, %v4064_v27 }
 0x31a   :  { %7342 = vrot.lane.b32.xlu1 %v7341_v57, %s7664_s11  ;;  %7337 = vrot.lane.b32.xlu0 %v7336_v36, %s7668_s26  ;;  %v4069_v40 = vrot.slane %v11413_v25, 6  ;;  %v4071_v46 = vrot.slane %v11415_v45, 6  ;;  %v3783_v37 = vsel %vm809_vm2, %v3780_v62, %v3782_v30 }
 0x31b   :  { %v6163_v0 = vpop.f32.mrf.mxu1  ;;  %v3779_v55 = vsel %vm809_vm2, %v3777_v49, %v3778_v54  ;;  %v3781_v6 = vsel %vm809_vm2, %v3778_v54, %v3780_v62  ;;  %v4068_v24 = vsel %vm4020_vm12, %v4066_v17, %v4067_v33 }
 0x31c   :  { %v7351_v8 = vpack.i.bf16 %v3779_v55, %v3776_v29  ;;  %v3470_v13 = vadd.f32 %v6163_v0, %v11167_v60  ;;  %v7356_v15 = vpack.i.bf16 %v3783_v37, %v3781_v6  ;;  %v7361_v12 = vpack.i.bf16 %v4068_v24, %v4065_v1 }
 0x31d   :  { %v3461_v63 = vpop.f32.mrf.mxu1  ;;  %v4070_v7 = vsel %vm4020_vm12, %v4067_v33, %v4069_v40  ;;  %v4072_v57 = vsel %vm4020_vm12, %v4069_v40, %v4071_v46 }
 0x31e   :  { %v3462_v48 = vadd.f32 %v11167_v60, %v3461_v63  ;;  %7347 = vrot.lane.b32.xlu1 %v7346_v20, %s7668_s26  ;;  %7352 = vrot.lane.b32.xlu0 %v7351_v8, %s7664_s11  ;;  %v11446_v28 = vmax.f32 %v3470_v13, 0.0  ;;  %v7366_v36 = vpack.i.bf16 %v4072_v57, %v4070_v7 }
 0x31f   :  { %v6164_v38 = vpop.f32.mrf.mxu1 }
 0x320   :  { %v11441_v58 = vmax.f32 %v3462_v48, 0.0  ;;  %v3473_v42 = vadd.f32 %v6164_v38, %v11167_v60  ;;  %v3788_v54 = vrot.slane %v11446_v28, 3  ;;  %v4077_v33 = vrot.slane %v11446_v28, 6 }
 0x321   :  { %v3464_v47 = vpop.f32.mrf.mxu1 }
 0x322   :  { %v3635_v21 = vmax.f32 %v3473_v42, 0.0  ;;  %v3465_v51 = vadd.f32 %v11167_v60, %v3464_v47  ;;  %7357 = vrot.lane.b32.xlu1 %v7356_v15, %s7664_s11  ;;  %v3784_v2 = vrot.slane %v11441_v58, 3  ;;  %7362 = vrot.lane.b32.xlu0 %v7361_v12, %s7668_s26  ;;  %v4073_v29 = vrot.slane %v11441_v58, 6 }
 0x324   :  { %v3790_v56 = vrot.slane %v3635_v21, 3  ;;  %v11452_v49 = vmax.f32 %v3465_v51, 0.0  ;;  %v4079_v27 = vrot.slane %v3635_v21, 6  ;;  %v3785_v17 = vsel %vm809_vm2, %v3782_v30, %v3784_v2 }
 0x325   :  { %v4074_v6 = vsel %vm4020_vm12, %v4071_v46, %v4073_v29 }
 0x326   :  { %v3786_v35 = vrot.slane %v11452_v49, 3  ;;  %v4075_v61 = vrot.slane %v11452_v49, 6  ;;  %7367 = vrot.lane.b32.xlu1 %v7366_v36, %s7668_s26  ;;  %v3791_v0 = vsel %vm809_vm2, %v3788_v54, %v3790_v56  ;;  %v4080_v48 = vsel %vm4020_vm12, %v4077_v33, %v4079_v27 }
 0x328   :  { %v3789_v62 = vsel %vm809_vm2, %v3786_v35, %v3788_v54  ;;  %v3787_v55 = vsel %vm809_vm2, %v3784_v2, %v3786_v35  ;;  %v4078_v8 = vsel %vm4020_vm12, %v4075_v61, %v4077_v33  ;;  %v4076_v13 = vsel %vm4020_vm12, %v4073_v29, %v4075_v61 }
 0x329   :  { %v7376_v63 = vpack.i.bf16 %v3791_v0, %v3789_v62  ;;  %v7371_v20 = vpack.i.bf16 %v3787_v55, %v3785_v17  ;;  %v7386_v24 = vpack.i.bf16 %v4080_v48, %v4078_v8  ;;  %v7381_v1 = vpack.i.bf16 %v4076_v13, %v4074_v6 }
 0x32b   :  { %7377 = vrot.lane.b32.xlu1 %v7376_v63, %s7664_s11  ;;  %7372 = vrot.lane.b32.xlu0 %v7371_v20, %s7664_s11 }
 0x32f   :  { %7387 = vrot.lane.b32.xlu1 %v7386_v24, %s7668_s26  ;;  %7382 = vrot.lane.b32.xlu0 %v7381_v1, %s7668_s26  ;;  %v7253_v30 = vpop.permute.xlu0 %7252 }
 0x330   :  { %v7255_v40 = vunpack.i.h.bf16 %v7253_v30  ;;  %v7254_v38 = vunpack.i.l.bf16 %v7253_v30 }
 0x332   :  { %v4310_v12 = vsel %vm1527_vm5, %v11192_v34, %v7255_v40  ;;  %v4309_v21 = vsel %vm1527_vm5, %v11182_v4, %v7254_v38 }
 0x333   :  { %v7258_v42 = vpop.permute.xlu0 %7257 }
 0x334   :  { %v7260_v37 = vunpack.i.h.bf16 %v7258_v42  ;;  %v7259_v47 = vunpack.i.l.bf16 %v7258_v42 }
 0x336   :  { %v4365_v46 = vsel %vm1659_vm7, %v4309_v21, %v7259_v47  ;;  %v4366_v51 = vsel %vm1659_vm7, %v4310_v12, %v7260_v37 }
 0x337   :  { %v5824_v56 = vpack.c.bf16 %v4366_v51, %v4365_v46 }
 0x339   :  { %v6167_v15 = vpop.f32.mrf.mxu1  ;;  %6213 = vmatprep.mubr.msk.bf16.mxu1 %vm10660_vm11, %v5824_v56 }
 0x33a   :  { %v3486_v7 = vadd.f32 %v6167_v15, %v11167_v60 }
 0x33b   :  { %v3477_v2 = vpop.f32.mrf.mxu1 }
 0x33c   :  { %v3478_v57 = vadd.f32 %v11167_v60, %v3477_v2  ;;  %v11484_v54 = vmax.f32 %v3486_v7, 0.0 }
 0x33d   :  { %v6168_v36 = vpop.f32.mrf.mxu1 }
 0x33e   :  { %v3489_v34 = vadd.f32 %v6168_v36, %v11167_v60  ;;  %v7263_v4 = vpop.permute.xlu1 %7262  ;;  %v11487_v61 = vmax.f32 %v3478_v57, 0.0  ;;  %v3795_v17 = vrot.slane %v11484_v54, 3  ;;  %v4084_v8 = vrot.slane %v11484_v54, 6 }
 0x33f   :  { %v3480_v35 = vpop.f32.mrf.mxu1  ;;  %v7265_v29 = vunpack.i.h.bf16 %v7263_v4  ;;  %v7264_v62 = vunpack.i.l.bf16 %v7263_v4 }
 0x340   :  { %v3481_v33 = vadd.f32 %v11167_v60, %v3480_v35  ;;  %v11493_v55 = vmax.f32 %v3489_v34, 0.0  ;;  %v3792_v13 = vrot.slane %v11487_v61, 3  ;;  %v4081_v21 = vrot.slane %v11487_v61, 6 }
 0x341   :  { %v6171_v27 = vpop.f32.mrf.mxu1  ;;  %v4312_v30 = vsel %vm1527_vm5, %v11209_v53, %v7265_v29  ;;  %v4311_v37 = vsel %vm1527_vm5, %v11180_v9, %v7264_v62 }
 0x342   :  { %v11490_v0 = vmax.f32 %v3481_v33, 0.0  ;;  %v7268_v20 = vpop.permute.xlu1 %7267  ;;  %v3502_v48 = vadd.f32 %v6171_v27, %v11167_v60  ;;  %v7273_v24 = vpop.permute.xlu0 %7272  ;;  %v3797_v46 = vrot.slane %v11493_v55, 3 }
 0x343   :  { %v3493_v63 = vpop.f32.mrf.mxu1  ;;  %v7270_v40 = vunpack.i.h.bf16 %v7268_v20  ;;  %v7269_v38 = vunpack.i.l.bf16 %v7268_v20  ;;  %v7275_v15 = vunpack.i.h.bf16 %v7273_v24  ;;  %v7274_v12 = vunpack.i.l.bf16 %v7273_v24 }
 0x344   :  { %v3494_v6 = vadd.f32 %v11167_v60, %v3493_v63  ;;  %v3793_v1 = vrot.slane %v11490_v0, 3  ;;  %v4082_v53 = vrot.slane %v11490_v0, 6  ;;  %v11511_v56 = vmax.f32 %v3502_v48, 0.0 }
 0x345   :  { %v6172_v42 = vpop.f32.mrf.mxu1  ;;  %v4367_v51 = vsel %vm1659_vm7, %v4311_v37, %v7269_v38  ;;  %v4368_v7 = vsel %vm1659_vm7, %v4312_v30, %v7270_v40  ;;  %v4314_v27 = vsel %vm1527_vm5, %v11250_v10, %v7275_v15  ;;  %v4313_v62 = vsel %vm1527_vm5, %v11232_v18, %v7274_v12 }
 0x346   :  { %v11504_v47 = vmax.f32 %v3494_v6, 0.0  ;;  %v5827_v9 = vpack.c.bf16 %v4368_v7, %v4367_v51  ;;  %v7278_v36 = vpop.permute.xlu0 %7277  ;;  %v3794_v33 = vsel %vm809_vm2, %v3792_v13, %v3793_v1  ;;  %v3796_v63 = vsel %vm809_vm2, %v3793_v1, %v3795_v17 }
 0x347   :  { %v3496_v2 = vpop.f32.mrf.mxu1  ;;  %v7280_v35 = vunpack.i.h.bf16 %v7278_v36  ;;  %v7279_v4 = vunpack.i.l.bf16 %v7278_v36  ;;  %v7391_v13 = vpack.i.bf16 %v3796_v63, %v3794_v33  ;;  %v4086_v24 = vrot.slane %v11493_v55, 6 }
 0x348   :  { %v3799_v57 = vrot.slane %v11504_v47, 3  ;;  %v3497_v34 = vadd.f32 %v11167_v60, %v3496_v2  ;;  %v4088_v29 = vrot.slane %v11504_v47, 6  ;;  %6214 = vmatmul.mubr.msk.bf16.vlgmr.msra.gmra.mxu1 %vm10660_vm11, %v5827_v9  ;;  %v3798_v10 = vsel %vm809_vm2, %v3795_v17, %v3797_v46 }
 0x349   :  { %v4369_v48 = vsel %vm1659_vm7, %v4313_v62, %v7279_v4  ;;  %v4370_v6 = vsel %vm1659_vm7, %v4314_v27, %v7280_v35  ;;  %v3803_v18 = vrot.slane %v11511_v56, 3  ;;  %7392 = vrot.lane.b32.xlu0 %v7391_v13, %s7664_s11  ;;  %v4083_v37 = vsel %vm4020_vm12, %v4081_v21, %v4082_v53 }
 0x34a   :  { %v11524_v20 = vmax.f32 %v3497_v34, 0.0  ;;  %v5830_v30 = vpack.c.bf16 %v4370_v6, %v4369_v48  ;;  %v3800_v40 = vsel %vm809_vm2, %v3797_v46, %v3799_v57  ;;  %v4085_v15 = vsel %vm4020_vm12, %v4082_v53, %v4084_v8 }
 0x34b   :  { %v7401_v38 = vpack.i.bf16 %v3800_v40, %v3798_v10  ;;  %v4089_v12 = vsel %vm4020_vm12, %v4086_v24, %v4088_v29  ;;  %v3505_v17 = vadd.f32 %v6172_v42, %v11167_v60  ;;  %v7396_v46 = vpack.i.bf16 %v4085_v15, %v4083_v37 }
 0x34c   :  { %v3801_v1 = vrot.slane %v11524_v20, 3  ;;  %6217 = vmatprep.mubr.msk.bf16.mxu1 %vm10660_vm11, %v5830_v30  ;;  %v4090_v21 = vrot.slane %v11524_v20, 6  ;;  %v4087_v2 = vsel %vm4020_vm12, %v4084_v8, %v4086_v24  ;;  %v4092_v42 = vrot.slane %v11511_v56, 6 }
 0x34d   :  { %7402 = vrot.lane.b32.xlu1 %v7401_v38, %s7664_s11  ;;  %7397 = vrot.lane.b32.xlu0 %v7396_v46, %s7668_s26  ;;  %v7406_v9 = vpack.i.bf16 %v4089_v12, %v4087_v2  ;;  %v3643_v35 = vmax.f32 %v3505_v17, 0.0 }
 0x34e   :  { %v3802_v51 = vsel %vm809_vm2, %v3799_v57, %v3801_v1  ;;  %v3804_v7 = vsel %vm809_vm2, %v3801_v1, %v3803_v18  ;;  %v4091_v4 = vsel %vm4020_vm12, %v4088_v29, %v4090_v21  ;;  %v4093_v33 = vsel %vm4020_vm12, %v4090_v21, %v4092_v42 }
 0x34f   :  { %v7411_v36 = vpack.i.bf16 %v3804_v7, %v3802_v51  ;;  %v3805_v10 = vrot.slane %v3643_v35, 3  ;;  %v7416_v29 = vpack.i.bf16 %v4093_v33, %v4091_v4 }
 0x350   :  { %v7283_v27 = vpop.permute.xlu1 %7282  ;;  %v7293_v62 = vpop.permute.xlu0 %7292 }
 0x351   :  { %v6175_v53 = vpop.f32.mrf.mxu1  ;;  %7407 = vrot.lane.b32.xlu1 %v7406_v9, %s7668_s26  ;;  %7412 = vrot.lane.b32.xlu0 %v7411_v36, %s7664_s11  ;;  %v7285_v63 = vunpack.i.h.bf16 %v7283_v27  ;;  %v7284_v6 = vunpack.i.l.bf16 %v7283_v27  ;;  %v7295_v13 = vunpack.i.h.bf16 %v7293_v62  ;;  %v7294_v24 = vunpack.i.l.bf16 %v7293_v62 }
 0x352   :  { %v3518_v57 = vadd.f32 %v6175_v53, %v11167_v60 }
 0x353   :  { %v3509_v34 = vpop.f32.mrf.mxu1  ;;  %v4316_v37 = vsel %vm1527_vm5, %v11297_v43, %v7285_v63  ;;  %v4315_v15 = vsel %vm1527_vm5, %v11244_v23, %v7284_v6  ;;  %v4318_v53 = vsel %vm1527_vm5, %v11295_v14, %v7295_v13  ;;  %v4317_v43 = vsel %vm1527_vm5, %v11304_v59, %v7294_v24 }
 0x354   :  { %v3510_v8 = vadd.f32 %v11167_v60, %v3509_v34  ;;  %v11558_v40 = vmax.f32 %v3518_v57, 0.0  ;;  %v7288_v17 = vpop.permute.xlu1 %7287  ;;  %v7298_v46 = vpop.permute.xlu0 %7297  ;;  %v3806_v63 = vsel %vm809_vm2, %v3803_v18, %v3805_v10 }
 0x355   :  { %v6176_v48 = vpop.f32.mrf.mxu1  ;;  %7417 = vrot.lane.b32.xlu0 %v7416_v29, %s7668_s26  ;;  %v7290_v7 = vunpack.i.h.bf16 %v7288_v17  ;;  %v7289_v21 = vunpack.i.l.bf16 %v7288_v17  ;;  %v7300_v2 = vunpack.i.h.bf16 %v7298_v46  ;;  %v7299_v23 = vunpack.i.l.bf16 %v7298_v46 }
 0x356   :  { %v3521_v30 = vadd.f32 %v6176_v48, %v11167_v60  ;;  %v11560_v38 = vmax.f32 %v3510_v8, 0.0  ;;  %v3810_v4 = vrot.slane %v11558_v40, 3  ;;  %v4094_v48 = vrot.slane %v3643_v35, 6 }
 0x357   :  { %v3512_v1 = vpop.f32.mrf.mxu1  ;;  %v4371_v34 = vsel %vm1659_vm7, %v4315_v15, %v7289_v21  ;;  %v4372_v57 = vsel %vm1659_vm7, %v4316_v37, %v7290_v7  ;;  %v4373_v8 = vsel %vm1659_vm7, %v4317_v43, %v7299_v23  ;;  %v4099_v18 = vrot.slane %v11558_v40, 6  ;;  %v11604_v15 = vld [vmem:[%s12599_s4] ss:$0 sm:$0xff] }
 0x358   :  { %v11566_v12 = vmax.f32 %v3521_v30, 0.0  ;;  %v3513_v51 = vadd.f32 %v11167_v60, %v3512_v1  ;;  %v4374_v60 = vsel %vm1659_vm7, %v4318_v53, %v7300_v2  ;;  %v5833_v33 = vpack.c.bf16 %v4372_v57, %v4371_v34 }
 0x359   :  { %v3807_v14 = vrot.slane %v11560_v38, 3  ;;  %v5836_v62 = vpack.c.bf16 %v4374_v60, %v4373_v8  ;;  %v4096_v6 = vrot.slane %v11560_v38, 6  ;;  %v4095_v7 = vsel %vm4020_vm12, %v4092_v42, %v4094_v48 }
 0x35a   :  { %v3812_v9 = vrot.slane %v11566_v12, 3  ;;  %v11575_v36 = vmax.f32 %v3513_v51, 0.0  ;;  %6218 = vmatmul.mubr.msk.bf16.gmra.mxu1 %vm10660_vm11, %v5833_v33  ;;  %v4101_v13 = vrot.slane %v11566_v12, 6 }
 0x35b   :  { %6221 = vmatprep.mubr.msk.bf16.mxu1 %vm10660_vm11, %v5836_v62 }
 0x35c   :  { %v3808_v59 = vrot.slane %v11575_v36, 3  ;;  %v4097_v27 = vrot.slane %v11575_v36, 6  ;;  %v3813_v29 = vsel %vm809_vm2, %v3810_v4, %v3812_v9  ;;  %v4102_v43 = vsel %vm4020_vm12, %v4099_v18, %v4101_v13 }
 0x35e   :  { %v3809_v24 = vsel %vm809_vm2, %v3807_v14, %v3808_v59  ;;  %v3811_v30 = vsel %vm809_vm2, %v3808_v59, %v3810_v4  ;;  %v4098_v37 = vsel %vm4020_vm12, %v4096_v6, %v4097_v27  ;;  %v4100_v51 = vsel %vm4020_vm12, %v4097_v27, %v4099_v18 }
 0x35f   :  { %v7421_v10 = vpack.i.bf16 %v3809_v24, %v3806_v63  ;;  %v7431_v1 = vpack.i.bf16 %v3813_v29, %v3811_v30  ;;  %v7426_v4 = vpack.i.bf16 %v4098_v37, %v4095_v7  ;;  %v7436_v59 = vpack.i.bf16 %v4102_v43, %v4100_v51 }
 0x360   :  { %v7303_v2 = vpop.permute.xlu1 %7302  ;;  %v7313_v53 = vpop.permute.xlu0 %7312 }
 0x361   :  { %7422 = vrot.lane.b32.xlu1 %v7421_v10, %s7664_s11  ;;  %7432 = vrot.lane.b32.xlu0 %v7431_v1, %s7664_s11  ;;  %v7305_v23 = vunpack.i.h.bf16 %v7303_v2  ;;  %v7304_v34 = vunpack.i.l.bf16 %v7303_v2  ;;  %v7315_v57 = vunpack.i.h.bf16 %v7313_v53  ;;  %v7314_v8 = vunpack.i.l.bf16 %v7313_v53 }
 0x362   :  { %v6179_v35 = vpop.f32.mrf.mxu1 }
 0x363   :  { %v3534_v17 = vadd.f32 %v11604_v15, %v6179_v35  ;;  %v4320_v27 = vsel %vm1527_vm5, %v11332_v3, %v7305_v23  ;;  %v4319_v63 = vsel %vm1527_vm5, %v11300_v22, %v7304_v34  ;;  %v4322_v48 = vsel %vm1527_vm5, %v11337_v50, %v7315_v57 }
 0x364   :  { %v3525_v46 = vpop.f32.mrf.mxu1  ;;  %v7308_v30 = vpop.permute.xlu1 %7307  ;;  %v4321_v37 = vsel %vm1527_vm5, %v11341_v44, %v7314_v8 }
 0x365   :  { %v3526_v21 = vadd.f32 %v11604_v15, %v3525_v46  ;;  %v11620_v42 = vmax.f32 %v3534_v17, 0.0  ;;  %7427 = vrot.lane.b32.xlu1 %v7426_v4, %s7668_s26  ;;  %7437 = vrot.lane.b32.xlu0 %v7436_v59, %s7668_s26  ;;  %v7318_v29 = vpop.permute.xlu0 %7317  ;;  %v7310_v18 = vunpack.i.h.bf16 %v7308_v30  ;;  %v7309_v35 = vunpack.i.l.bf16 %v7308_v30 }
 0x366   :  { %v6180_v60 = vpop.f32.mrf.mxu1  ;;  %v7320_v10 = vunpack.i.h.bf16 %v7318_v29  ;;  %v7319_v3 = vunpack.i.l.bf16 %v7318_v29 }
 0x367   :  { %v11617_v33 = vmax.f32 %v3526_v21, 0.0  ;;  %v3537_v14 = vadd.f32 %v11604_v15, %v6180_v60  ;;  %v4375_v50 = vsel %vm1659_vm7, %v4319_v63, %v7309_v35  ;;  %v4376_v46 = vsel %vm1659_vm7, %v4320_v27, %v7310_v18 }
 0x368   :  { %v3528_v62 = vpop.f32.mrf.mxu1  ;;  %v4377_v51 = vsel %vm1659_vm7, %v4321_v37, %v7319_v3  ;;  %v4378_v7 = vsel %vm1659_vm7, %v4322_v48, %v7320_v10  ;;  %v3818_v21 = vrot.slane %v11620_v42, 3  ;;  %v4107_v2 = vrot.slane %v11620_v42, 6 }
 0x369   :  { %v3651_v6 = vmax.f32 %v3537_v14, 0.0  ;;  %v3529_v24 = vadd.f32 %v11604_v15, %v3528_v62  ;;  %v3814_v1 = vrot.slane %v11617_v33, 3  ;;  %v4103_v44 = vrot.slane %v11617_v33, 6 }
 0x36a   :  { %v5839_v34 = vpack.c.bf16 %v4376_v46, %v4375_v50  ;;  %v5842_v57 = vpack.c.bf16 %v4378_v7, %v4377_v51 }
 0x36b   :  { %v3820_v22 = vrot.slane %v3651_v6, 3  ;;  %v11634_v17 = vmax.f32 %v3529_v24, 0.0  ;;  %v4109_v23 = vrot.slane %v3651_v6, 6  ;;  %v3815_v4 = vsel %vm809_vm2, %v3812_v9, %v3814_v1 }
 0x36c   :  { %6222 = vmatmul.mubr.msk.bf16.gmra.mxu1 %vm10660_vm11, %v5839_v34  ;;  %v4104_v6 = vsel %vm4020_vm12, %v4101_v13, %v4103_v44 }
 0x36d   :  { %v3816_v53 = vrot.slane %v11634_v17, 3  ;;  %v4105_v43 = vrot.slane %v11634_v17, 6  ;;  %v3821_v60 = vsel %vm809_vm2, %v3818_v21, %v3820_v22  ;;  %6225 = vmatprep.mubr.msk.bf16.mxu1 %vm10660_vm11, %v5842_v57  ;;  %v4110_v9 = vsel %vm4020_vm12, %v4107_v2, %v4109_v23 }
 0x36f   :  { %v3817_v8 = vsel %vm809_vm2, %v3814_v1, %v3816_v53  ;;  %v3819_v14 = vsel %vm809_vm2, %v3816_v53, %v3818_v21  ;;  %v4106_v62 = vsel %vm4020_vm12, %v4103_v44, %v4105_v43  ;;  %v4108_v63 = vsel %vm4020_vm12, %v4105_v43, %v4107_v2 }
 0x370   :  { %v7441_v59 = vpack.i.bf16 %v3817_v8, %v3815_v4  ;;  %v7451_v27 = vpack.i.bf16 %v3821_v60, %v3819_v14  ;;  %v7446_v24 = vpack.i.bf16 %v4106_v62, %v4104_v6  ;;  %v7456_v30 = vpack.i.bf16 %v4110_v9, %v4108_v63 }
 0x372   :  { %7442 = vrot.lane.b32.xlu1 %v7441_v59, %s7664_s11  ;;  %7452 = vrot.lane.b32.xlu0 %v7451_v27, %s7664_s11 }
 0x373   :  { %v6183_v48 = vpop.f32.mrf.mxu1 }
 0x374   :  { %v3550_v29 = vadd.f32 %v11604_v15, %v6183_v48  ;;  %v7323_v35 = vpop.permute.xlu1 %7322 }
 0x375   :  { %v3541_v18 = vpop.f32.mrf.mxu1  ;;  %v7325_v3 = vunpack.i.h.bf16 %v7323_v35  ;;  %v7324_v37 = vunpack.i.l.bf16 %v7323_v35 }
 0x376   :  { %v3542_v10 = vadd.f32 %v11604_v15, %v3541_v18  ;;  %7447 = vrot.lane.b32.xlu1 %v7446_v24, %s7668_s26  ;;  %7457 = vrot.lane.b32.xlu0 %v7456_v30, %s7668_s26  ;;  %v11667_v22 = vmax.f32 %v3550_v29, 0.0 }
 0x377   :  { %v6184_v1 = vpop.f32.mrf.mxu1  ;;  %v4324_v21 = vsel %vm1527_vm5, %v11367_v39, %v7325_v3  ;;  %v4323_v53 = vsel %vm1527_vm5, %v11364_v11, %v7324_v37 }
 0x378   :  { %v7328_v46 = vpop.permute.xlu1 %7327  ;;  %v11669_v13 = vmax.f32 %v3542_v10, 0.0  ;;  %v3825_v23 = vrot.slane %v11667_v22, 3  ;;  %v3553_v34 = vadd.f32 %v11604_v15, %v6184_v1  ;;  %v4114_v14 = vrot.slane %v11667_v22, 6 }
 0x379   :  { %v3544_v50 = vpop.f32.mrf.mxu1  ;;  %v7330_v7 = vunpack.i.h.bf16 %v7328_v46  ;;  %v7329_v2 = vunpack.i.l.bf16 %v7328_v46 }
 0x37a   :  { %v3545_v51 = vadd.f32 %v11604_v15, %v3544_v50  ;;  %v3822_v60 = vrot.slane %v11669_v13, 3  ;;  %v4111_v11 = vrot.slane %v11669_v13, 6  ;;  %v11691_v63 = vmax.f32 %v3553_v34, 0.0 }
 0x37b   :  { %v4380_v44 = vsel %vm1659_vm7, %v4324_v21, %v7330_v7  ;;  %v4379_v57 = vsel %vm1659_vm7, %v4323_v53, %v7329_v2 }
 0x37c   :  { %v11676_v43 = vmax.f32 %v3545_v51, 0.0  ;;  %v5845_v8 = vpack.c.bf16 %v4380_v44, %v4379_v57  ;;  %v6187_v59 = vpop.f32.mrf.mxu1  ;;  %v3827_v35 = vrot.slane %v11691_v63, 3  ;;  %v4116_v21 = vrot.slane %v11691_v63, 6 }
 0x37d   :  { %v3566_v30 = vadd.f32 %v11604_v15, %v6187_v59 }
 0x37e   :  { %v3823_v4 = vrot.slane %v11676_v43, 3  ;;  %v4112_v39 = vrot.slane %v11676_v43, 6  ;;  %6226 = vmatmul.mubr.msk.bf16.gmra.mxu1 %vm10660_vm11, %v5845_v8  ;;  %v3557_v48 = vpop.f32.mrf.mxu1  ;;  %v3828_v53 = vsel %vm809_vm2, %v3825_v23, %v3827_v35 }
 0x37f   :  { %v3558_v29 = vadd.f32 %v11604_v15, %v3557_v48  ;;  %v11702_v50 = vmax.f32 %v3566_v30, 0.0 }
 0x380   :  { %v3824_v27 = vsel %vm809_vm2, %v3822_v60, %v3823_v4  ;;  %v3826_v62 = vsel %vm809_vm2, %v3823_v4, %v3825_v23  ;;  %v4113_v6 = vsel %vm4020_vm12, %v4111_v11, %v4112_v39  ;;  %v4115_v24 = vsel %vm4020_vm12, %v4112_v39, %v4114_v14  ;;  %v6188_v18 = vpop.f32.mrf.mxu1 }
 0x381   :  { %v7461_v9 = vpack.i.bf16 %v3826_v62, %v3824_v27  ;;  %v11699_v10 = vmax.f32 %v3558_v29, 0.0  ;;  %v7466_v3 = vpack.i.bf16 %v4115_v24, %v4113_v6  ;;  %v3569_v1 = vadd.f32 %v11604_v15, %v6188_v18 }
 0x382   :  { %v3560_v37 = vpop.f32.mrf.mxu1  ;;  %v3833_v60 = vrot.slane %v11702_v50, 3  ;;  %v4122_v59 = vrot.slane %v11702_v50, 6  ;;  %v4117_v27 = vsel %vm4020_vm12, %v4114_v14, %v4116_v21 }
 0x383   :  { %7462 = vrot.lane.b32.xlu1 %v7461_v9, %s7664_s11  ;;  %v3829_v46 = vrot.slane %v11699_v10, 3  ;;  %v4118_v51 = vrot.slane %v11699_v10, 6  ;;  %v3561_v7 = vadd.f32 %v11604_v15, %v3560_v37  ;;  %v3659_v34 = vmax.f32 %v3569_v1, 0.0 }
 0x385   :  { %v11709_v2 = vmax.f32 %v3561_v7, 0.0  ;;  %v3830_v44 = vsel %vm809_vm2, %v3827_v35, %v3829_v46  ;;  %v4119_v11 = vsel %vm4020_vm12, %v4116_v21, %v4118_v51  ;;  %v3835_v6 = vrot.slane %v3659_v34, 3 }
 0x386   :  { %v7471_v57 = vpack.i.bf16 %v3830_v44, %v3828_v53  ;;  %v7476_v29 = vpack.i.bf16 %v4119_v11, %v4117_v27  ;;  %v11727_v21 = vrot.slane %v3659_v34, 6 }
 0x387   :  { %7467 = vrot.lane.b32.xlu1 %v7466_v3, %s7668_s26  ;;  %v3831_v4 = vrot.slane %v11709_v2, 3  ;;  %v4120_v39 = vrot.slane %v11709_v2, 6  ;;  %v11739_v34 = vsel %vm809_vm2, %v3833_v60, %v3835_v6 }
 0x388   :  { %v7333_v8 = vpop.permute.xlu0 %7332  ;;  %7472 = vrot.lane.b32.xlu0 %v7471_v57, %s7664_s11 }
 0x389   :  { %v7335_v23 = vunpack.i.h.bf16 %v7333_v8  ;;  %v7334_v62 = vunpack.i.l.bf16 %v7333_v8  ;;  %v3832_v9 = vsel %vm809_vm2, %v3829_v46, %v3831_v4  ;;  %v3834_v48 = vsel %vm809_vm2, %v3831_v4, %v3833_v60 }
 0x38a   :  { %v7481_v30 = vpack.i.bf16 %v3834_v48, %v3832_v9  ;;  %v4121_v35 = vsel %vm4020_vm12, %v4118_v51, %v4120_v39  ;;  %v4123_v14 = vsel %vm4020_vm12, %v4120_v39, %v4122_v59 }
 0x38b   :  { %v4326_v51 = vsel %vm1527_vm5, %v11382_v52, %v7335_v23  ;;  %v4325_v57 = vsel %vm1527_vm5, %v11362_v26, %v7334_v62  ;;  %v7486_v9 = vpack.i.bf16 %v4123_v14, %v4121_v35 }
 0x38c   :  { %v6191_v24 = vpop.f32.mrf.mxu1  ;;  %v7343_v18 = vpop.permute.xlu1 %7342  ;;  %7482 = vrot.lane.b32.xlu1 %v7481_v30, %s7664_s11  ;;  %7477 = vrot.lane.b32.xlu0 %v7476_v29, %s7668_s26 }
 0x38d   :  { %v3582_v3 = vadd.f32 %v11604_v15, %v6191_v24  ;;  %v7345_v1 = vunpack.i.h.bf16 %v7343_v18  ;;  %v7344_v37 = vunpack.i.l.bf16 %v7343_v18  ;;  %v7338_v7 = vpop.permute.xlu0 %7337 }
 0x38e   :  { %v7340_v46 = vunpack.i.h.bf16 %v7338_v7  ;;  %v7339_v53 = vunpack.i.l.bf16 %v7338_v7  ;;  %v3573_v44 = vpop.f32.mrf.mxu1 }
 0x38f   :  { %v11735_v4 = vmax.f32 %v3582_v3, 0.0  ;;  %v3574_v8 = vadd.f32 %v11604_v15, %v3573_v44  ;;  %v4328_v52 = vsel %vm1527_vm5, %v11397_v19, %v7345_v1  ;;  %v4327_v26 = vsel %vm1527_vm5, %v11386_v16, %v7344_v37 }
 0x390   :  { %v4381_v39 = vsel %vm1659_vm7, %v4325_v57, %v7339_v53  ;;  %v4382_v11 = vsel %vm1659_vm7, %v4326_v51, %v7340_v46  ;;  %v6192_v27 = vpop.f32.mrf.mxu1  ;;  %v7348_v48 = vpop.permute.xlu1 %7347  ;;  %7487 = vrot.lane.b32.xlu1 %v7486_v9, %s7668_s26 }
 0x391   :  { %v5848_v23 = vpack.c.bf16 %v4382_v11, %v4381_v39  ;;  %v11747_v62 = vmax.f32 %v3574_v8, 0.0  ;;  %v7353_v24 = vpop.permute.xlu0 %7352  ;;  %v3585_v60 = vadd.f32 %v11604_v15, %v6192_v27  ;;  %v7350_v6 = vunpack.i.h.bf16 %v7348_v48 }
 0x392   :  { %v7349_v30 = vunpack.i.l.bf16 %v7348_v48  ;;  %v7355_v29 = vunpack.i.h.bf16 %v7353_v24  ;;  %v3576_v18 = vpop.f32.mrf.mxu1  ;;  %v3840_v35 = vrot.slane %v11735_v4, 3  ;;  %v4129_v3 = vrot.slane %v11735_v4, 6 }
 0x393   :  { %v7354_v19 = vunpack.i.l.bf16 %v7353_v24  ;;  %v3577_v1 = vadd.f32 %v11604_v15, %v3576_v18  ;;  %6229 = vmatprep.mubr.msk.bf16.mxu1 %vm10660_vm11, %v5848_v23  ;;  %v3837_v16 = vrot.slane %v11747_v62, 3  ;;  %v11757_v37 = vmax.f32 %v3585_v60, 0.0 }
 0x394   :  { %v4383_v7 = vsel %vm1659_vm7, %v4327_v26, %v7349_v30  ;;  %v4384_v14 = vsel %vm1659_vm7, %v4328_v52, %v7350_v6  ;;  %v7358_v46 = vpop.permute.xlu1 %7357  ;;  %v4126_v53 = vrot.slane %v11747_v62, 6  ;;  %v4330_v11 = vsel %vm1527_vm5, %v11404_v41, %v7355_v29 }
 0x395   :  { %v5851_v44 = vpack.c.bf16 %v4384_v14, %v4383_v7  ;;  %v11762_v51 = vmax.f32 %v3577_v1, 0.0  ;;  %v7360_v57 = vunpack.i.h.bf16 %v7358_v46  ;;  %v7363_v8 = vpop.permute.xlu0 %7362  ;;  %v3842_v39 = vrot.slane %v11757_v37, 3 }
 0x396   :  { %v7359_v27 = vunpack.i.l.bf16 %v7358_v46  ;;  %v7365_v9 = vunpack.i.h.bf16 %v7363_v8  ;;  %v4329_v48 = vsel %vm1527_vm5, %v11391_v5, %v7354_v19  ;;  %v7364_v23 = vunpack.i.l.bf16 %v7363_v8 }
 0x397   :  { %v3838_v52 = vrot.slane %v11762_v51, 3  ;;  %v4127_v26 = vrot.slane %v11762_v51, 6  ;;  %6230 = vmatmul.mubr.msk.bf16.gmra.mxu1 %vm10660_vm11, %v5851_v44  ;;  %v4131_v24 = vrot.slane %v11757_v37, 6  ;;  %v4332_v60 = vsel %vm1527_vm5, %v11413_v25, %v7360_v57 }
 0x398   :  { %v4386_v41 = vsel %vm1659_vm7, %v4330_v11, %v7365_v9  ;;  %v7368_v6 = vpop.permute.xlu1 %7367  ;;  %v3843_v5 = vsel %vm809_vm2, %v3840_v35, %v3842_v39  ;;  %v4385_v30 = vsel %vm1659_vm7, %v4329_v48, %v7364_v23  ;;  %v4331_v1 = vsel %vm1527_vm5, %v11417_v32, %v7359_v27 }
 0x399   :  { %v7370_v29 = vunpack.i.h.bf16 %v7368_v6  ;;  %v7369_v18 = vunpack.i.l.bf16 %v7368_v6  ;;  %v3841_v19 = vsel %vm809_vm2, %v3838_v52, %v3840_v35  ;;  %v5854_v7 = vpack.c.bf16 %v4386_v41, %v4385_v30 }
 0x39a   :  { %v7496_v14 = vpack.i.bf16 %v3843_v5, %v3841_v19  ;;  %v3839_v25 = vsel %vm809_vm2, %v3837_v16, %v3838_v52  ;;  %v4130_v11 = vsel %vm4020_vm12, %v4127_v26, %v4129_v3  ;;  %v4128_v16 = vsel %vm4020_vm12, %v4126_v53, %v4127_v26 }
 0x39b   :  { %v4387_v46 = vsel %vm1659_vm7, %v4331_v1, %v7369_v18  ;;  %v4388_v44 = vsel %vm1659_vm7, %v4332_v60, %v7370_v29  ;;  %v7491_v8 = vpack.i.bf16 %v3839_v25, %v11739_v34  ;;  %6233 = vmatprep.mubr.msk.bf16.mxu1 %vm10660_vm11, %v5854_v7  ;;  %v4125_v48 = vsel %vm4020_vm12, %v4122_v59, %v11727_v21 }
 0x39c   :  { %v6195_v57 = vpop.f32.mrf.mxu1  ;;  %v5857_v9 = vpack.c.bf16 %v4388_v44, %v4387_v46  ;;  %7497 = vrot.lane.b32.xlu1 %v7496_v14, %s7664_s11  ;;  %v4132_v60 = vsel %vm4020_vm12, %v4129_v3, %v4131_v24  ;;  %v7501_v21 = vpack.i.bf16 %v4128_v16, %v4125_v48 }
 0x39d   :  { %v3598_v35 = vadd.f32 %v11604_v15, %v6195_v57  ;;  %v7378_v32 = vpop.permute.xlu1 %7377  ;;  %v7373_v27 = vpop.permute.xlu0 %7372  ;;  %7492 = vrot.lane.b32.xlu0 %v7491_v8, %s7664_s11  ;;  %v7506_v30 = vpack.i.bf16 %v4132_v60, %v4130_v11 }
 0x39e   :  { %v3589_v34 = vpop.f32.mrf.mxu1  ;;  %v7380_v52 = vunpack.i.h.bf16 %v7378_v32  ;;  %v7379_v23 = vunpack.i.l.bf16 %v7378_v32  ;;  %v7375_v6 = vunpack.i.h.bf16 %v7373_v27  ;;  %v7374_v5 = vunpack.i.l.bf16 %v7373_v27 }
 0x39f   :  { %v3590_v41 = vadd.f32 %v11604_v15, %v3589_v34  ;;  %v11803_v53 = vmax.f32 %v3598_v35, 0.0  ;;  %6234 = vmatmul.mubr.msk.bf16.gmra.mxu1 %vm10660_vm11, %v5857_v9 }
 0x3a0   :  { %v6196_v59 = vpop.f32.mrf.mxu1  ;;  %v4336_v29 = vsel %vm1527_vm5, %v11446_v28, %v7380_v52  ;;  %v4335_v3 = vsel %vm1527_vm5, %v11452_v49, %v7379_v23  ;;  %7507 = vrot.lane.b32.xlu1 %v7506_v30, %s7668_s26  ;;  %v4334_v57 = vsel %vm1527_vm5, %v11441_v58, %v7375_v6  ;;  %v4333_v28 = vsel %vm1527_vm5, %v11415_v45, %v7374_v5 }
 0x3a1   :  { %v11807_v26 = vmax.f32 %v3590_v41, 0.0  ;;  %v3601_v18 = vadd.f32 %v11604_v15, %v6196_v59  ;;  %v7388_v19 = vpop.permute.xlu1 %7387  ;;  %v7383_v1 = vpop.permute.xlu0 %7382  ;;  %7502 = vrot.lane.b32.xlu0 %v7501_v21, %s7668_s26  ;;  %v3848_v45 = vrot.slane %v11803_v53, 3  ;;  %v4137_v23 = vrot.slane %v11803_v53, 6 }
 0x3a2   :  { %v3592_v7 = vpop.f32.mrf.mxu1  ;;  %v7390_v14 = vunpack.i.h.bf16 %v7388_v19  ;;  %v7389_v25 = vunpack.i.l.bf16 %v7388_v19  ;;  %v7385_v46 = vunpack.i.h.bf16 %v7383_v1  ;;  %v7384_v44 = vunpack.i.l.bf16 %v7383_v1 }
 0x3a3   :  { %v3667_v49 = vmax.f32 %v3601_v18, 0.0  ;;  %v3593_v8 = vadd.f32 %v11604_v15, %v3592_v7  ;;  %v3844_v27 = vrot.slane %v11807_v26, 3  ;;  %v4133_v60 = vrot.slane %v11807_v26, 6 }
 0x3a4   :  { %v4391_v11 = vsel %vm1659_vm7, %v4335_v3, %v7389_v25  ;;  %v4392_v9 = vsel %vm1659_vm7, %v4336_v29, %v7390_v14  ;;  %v4389_v35 = vsel %vm1659_vm7, %v4333_v28, %v7384_v44  ;;  %v4390_v32 = vsel %vm1659_vm7, %v4334_v57, %v7385_v46 }
 0x3a5   :  { %v3850_v16 = vrot.slane %v3667_v49, 3  ;;  %v11826_v48 = vmax.f32 %v3593_v8, 0.0  ;;  %v5863_v58 = vpack.c.bf16 %v4392_v9, %v4391_v11  ;;  %v5860_v34 = vpack.c.bf16 %v4390_v32, %v4389_v35 }
 0x3a6   :  { %v4139_v41 = vrot.slane %v3667_v49, 6  ;;  %v3845_v30 = vsel %vm809_vm2, %v3842_v39, %v3844_v27  ;;  %v4134_v1 = vsel %vm4020_vm12, %v4131_v24, %v4133_v60 }
 0x3a7   :  { %v3846_v52 = vrot.slane %v11826_v48, 3  ;;  %v4135_v15 = vrot.slane %v11826_v48, 6  ;;  %6237 = vmatprep.mubr.msk.bf16.mxu1 %vm10660_vm11, %v5860_v34  ;;  %v3851_v6 = vsel %vm809_vm2, %v3848_v45, %v3850_v16 }
 0x3a8   :  { %6238 = vmatmul.mubr.msk.bf16.gmra.mxu1 %vm10660_vm11, %v5863_v58  ;;  %v4140_v19 = vsel %vm4020_vm12, %v4137_v23, %v4139_v41 }
 0x3a9   :  { %v3849_v5 = vsel %vm809_vm2, %v3846_v52, %v3848_v45  ;;  %v3847_v59 = vsel %vm809_vm2, %v3844_v27, %v3846_v52  ;;  %v4138_v3 = vsel %vm4020_vm12, %v4135_v15, %v4137_v23  ;;  %v4136_v18 = vsel %vm4020_vm12, %v4133_v60, %v4135_v15 }
 0x3aa   :  { %v7516_v21 = vpack.i.bf16 %v3851_v6, %v3849_v5  ;;  %v7511_v29 = vpack.i.bf16 %v3847_v59, %v3845_v30  ;;  %v7526_v7 = vpack.i.bf16 %v4140_v19, %v4138_v3  ;;  %v7521_v39 = vpack.i.bf16 %v4136_v18, %v4134_v1 }
 0x3ab   :  { %vm5544_vm12 = vcmask 1045509  }
 0x3ac   :  { %7517 = vrot.lane.b32.xlu1 %v7516_v21, %s7664_s11  ;;  %7512 = vrot.lane.b32.xlu0 %v7511_v29, %s7664_s11 }
 0x3b0   :  { %7527 = vrot.lane.b32.xlu1 %v7526_v7, %s7668_s26  ;;  %7522 = vrot.lane.b32.xlu0 %v7521_v39, %s7668_s26 }
 0x3bb   :  { %v7393_v14 = vpop.permute.xlu0 %7392 }
 0x3bc   :  { %v7395_v25 = vunpack.i.h.bf16 %v7393_v14  ;;  %v7394_v46 = vunpack.i.l.bf16 %v7393_v14 }
 0x3be   :  { %v4338_v9 = vsel %vm1527_vm5, %v11490_v0, %v7395_v25  ;;  %v4337_v24 = vsel %vm1527_vm5, %v11487_v61, %v7394_v46 }
 0x3bf   :  { %v7403_v44 = vpop.permute.xlu1 %7402  ;;  %v7398_v49 = vpop.permute.xlu0 %7397 }
 0x3c0   :  { %v7405_v57 = vunpack.i.h.bf16 %v7403_v44  ;;  %v7404_v28 = vunpack.i.l.bf16 %v7403_v44  ;;  %v7400_v8 = vunpack.i.h.bf16 %v7398_v49  ;;  %v7399_v11 = vunpack.i.l.bf16 %v7398_v49 }
 0x3c2   :  { %v4393_v32 = vsel %vm1659_vm7, %v4337_v24, %v7399_v11  ;;  %v4394_v27 = vsel %vm1659_vm7, %v4338_v9, %v7400_v8  ;;  %v4340_v34 = vsel %vm1527_vm5, %v11493_v55, %v7405_v57  ;;  %v4339_v45 = vsel %vm1527_vm5, %v11484_v54, %v7404_v28 }
 0x3c3   :  { %v7408_v35 = vpop.permute.xlu1 %7407  ;;  %v5866_v52 = vpack.c.bf16 %v4394_v27, %v4393_v32  ;;  %v7413_v15 = vpop.permute.xlu0 %7412 }
 0x3c4   :  { %v7410_v16 = vunpack.i.h.bf16 %v7408_v35  ;;  %v7409_v58 = vunpack.i.l.bf16 %v7408_v35  ;;  %v7415_v60 = vunpack.i.h.bf16 %v7413_v15  ;;  %v7414_v41 = vunpack.i.l.bf16 %v7413_v15 }
 0x3c5   :  { %6241 = vmatprep.mubr.msk.bf16.mxu1 %vm10660_vm11, %v5866_v52 }
 0x3c6   :  { %v4395_v0 = vsel %vm1659_vm7, %v4339_v45, %v7409_v58  ;;  %v4396_v23 = vsel %vm1659_vm7, %v4340_v34, %v7410_v16  ;;  %v4342_v54 = vsel %vm1527_vm5, %v11524_v20, %v7415_v60  ;;  %v4341_v30 = vsel %vm1527_vm5, %v11504_v47, %v7414_v41 }
 0x3c7   :  { %v5869_v61 = vpack.c.bf16 %v4396_v23, %v4395_v0  ;;  %v7418_v6 = vpop.permute.xlu0 %7417 }
 0x3c8   :  { %v7420_v55 = vunpack.i.h.bf16 %v7418_v6  ;;  %v7419_v5 = vunpack.i.l.bf16 %v7418_v6 }
 0x3c9   :  { %6242 = vmatmul.mubr.msk.bf16.gmra.mxu1 %vm10660_vm11, %v5869_v61 }
 0x3ca   :  { %v4397_v59 = vsel %vm1659_vm7, %v4341_v30, %v7419_v5  ;;  %v4398_v21 = vsel %vm1659_vm7, %v4342_v54, %v7420_v55 }
 0x3cb   :  { %v5872_v29 = vpack.c.bf16 %v4398_v21, %v4397_v59 }
 0x3cd   :  { %6245 = vmatprep.mubr.msk.bf16.mxu1 %vm10660_vm11, %v5872_v29 }
 0x3d3   :  { %v7423_v3 = vpop.permute.xlu1 %7422  ;;  %v7433_v18 = vpop.permute.xlu0 %7432 }
 0x3d4   :  { %v7425_v19 = vunpack.i.h.bf16 %v7423_v3  ;;  %v7424_v1 = vunpack.i.l.bf16 %v7423_v3  ;;  %v7435_v7 = vunpack.i.h.bf16 %v7433_v18  ;;  %v7434_v39 = vunpack.i.l.bf16 %v7433_v18 }
 0x3d6   :  { %v4344_v47 = vsel %vm1527_vm5, %v11560_v38, %v7425_v19  ;;  %v4343_v44 = vsel %vm1527_vm5, %v11511_v56, %v7424_v1  ;;  %v4346_v49 = vsel %vm1527_vm5, %v11558_v40, %v7435_v7  ;;  %v4345_v8 = vsel %vm1527_vm5, %v11575_v36, %v7434_v39 }
 0x3d7   :  { %v7428_v14 = vpop.permute.xlu1 %7427  ;;  %v7438_v46 = vpop.permute.xlu0 %7437 }
 0x3d8   :  { %v7430_v25 = vunpack.i.h.bf16 %v7428_v14  ;;  %v7429_v20 = vunpack.i.l.bf16 %v7428_v14  ;;  %v7440_v57 = vunpack.i.h.bf16 %v7438_v46  ;;  %v7439_v28 = vunpack.i.l.bf16 %v7438_v46 }
 0x3da   :  { %v4399_v11 = vsel %vm1659_vm7, %v4343_v44, %v7429_v20  ;;  %v4400_v9 = vsel %vm1659_vm7, %v4344_v47, %v7430_v25  ;;  %v4401_v35 = vsel %vm1659_vm7, %v4345_v8, %v7439_v28  ;;  %v4402_v38 = vsel %vm1659_vm7, %v4346_v49, %v7440_v57 }
 0x3db   :  { %v5875_v24 = vpack.c.bf16 %v4400_v9, %v4399_v11  ;;  %v5878_v32 = vpack.c.bf16 %v4402_v38, %v4401_v35 }
 0x3dd   :  { %6246 = vmatmul.mubr.msk.bf16.gmra.mxu1 %vm10660_vm11, %v5875_v24 }
 0x3de   :  { %6249 = vmatprep.mubr.msk.bf16.mxu1 %vm10660_vm11, %v5878_v32 }
 0x3e4   :  { %v7443_v56 = vpop.permute.xlu1 %7442  ;;  %v7453_v40 = vpop.permute.xlu0 %7452 }
 0x3e5   :  { %v7445_v27 = vunpack.i.h.bf16 %v7443_v56  ;;  %v7444_v36 = vunpack.i.l.bf16 %v7443_v56  ;;  %v7455_v16 = vunpack.i.h.bf16 %v7453_v40  ;;  %v7454_v58 = vunpack.i.l.bf16 %v7453_v40 }
 0x3e7   :  { %v4348_v61 = vsel %vm1527_vm5, %v11617_v33, %v7445_v27  ;;  %v4347_v60 = vsel %vm1527_vm5, %v11566_v12, %v7444_v36  ;;  %v4350_v41 = vsel %vm1527_vm5, %v11620_v42, %v7455_v16  ;;  %v4349_v6 = vsel %vm1527_vm5, %v11634_v17, %v7454_v58  ;;  %v11936_v36 = vld [vmem:[%s12601_s6] ss:$0 sm:$0xff] }
 0x3e8   :  { %v7448_v34 = vpop.permute.xlu1 %7447  ;;  %v7458_v45 = vpop.permute.xlu0 %7457  ;;  %v4889_v16 = vlaneseq }
 0x3e9   :  { %v7450_v52 = vunpack.i.h.bf16 %v7448_v34  ;;  %v7449_v15 = vunpack.i.l.bf16 %v7448_v34  ;;  %v7460_v0 = vunpack.i.h.bf16 %v7458_v45  ;;  %v7459_v23 = vunpack.i.l.bf16 %v7458_v45 }
 0x3eb   :  { %v4403_v55 = vsel %vm1659_vm7, %v4347_v60, %v7449_v15  ;;  %v4404_v5 = vsel %vm1659_vm7, %v4348_v61, %v7450_v52  ;;  %v4405_v54 = vsel %vm1659_vm7, %v4349_v6, %v7459_v23  ;;  %v4406_v30 = vsel %vm1659_vm7, %v4350_v41, %v7460_v0 }
 0x3ec   :  { %v5881_v59 = vpack.c.bf16 %v4404_v5, %v4403_v55  ;;  %v5884_v21 = vpack.c.bf16 %v4406_v30, %v4405_v54  ;;  %v4890_v5 = vshrl.u32 %v4889_v16, 7 }
 0x3ee   :  { %6250 = vmatmul.mubr.msk.bf16.gmra.mxu1 %vm10660_vm11, %v5881_v59 }
 0x3ef   :  { %6253 = vmatprep.mubr.msk.bf16.mxu1 %vm10660_vm11, %v5884_v21 }
 0x3f5   :  { %v7463_v12 = vpop.permute.xlu1 %7462 }
 0x3f6   :  { %v7465_v33 = vunpack.i.h.bf16 %v7463_v12  ;;  %v7464_v42 = vunpack.i.l.bf16 %v7463_v12 }
 0x3f8   :  { %v4352_v18 = vsel %vm1527_vm5, %v11676_v43, %v7465_v33  ;;  %v4351_v19 = vsel %vm1527_vm5, %v11669_v13, %v7464_v42 }
 0x3f9   :  { %v7468_v17 = vpop.permute.xlu1 %7467 }
 0x3fa   :  { %v7470_v29 = vunpack.i.h.bf16 %v7468_v17  ;;  %v7469_v3 = vunpack.i.l.bf16 %v7468_v17  ;;  %v7473_v14 = vpop.permute.xlu0 %7472 }
 0x3fb   :  { %v7475_v25 = vunpack.i.h.bf16 %v7473_v14  ;;  %v7474_v20 = vunpack.i.l.bf16 %v7473_v14 }
 0x3fc   :  { %v4407_v1 = vsel %vm1659_vm7, %v4351_v19, %v7469_v3  ;;  %v4408_v7 = vsel %vm1659_vm7, %v4352_v18, %v7470_v29 }
 0x3fd   :  { %v5887_v39 = vpack.c.bf16 %v4408_v7, %v4407_v1  ;;  %v4354_v43 = vsel %vm1527_vm5, %v11691_v63, %v7475_v25  ;;  %v4353_v13 = vsel %vm1527_vm5, %v11667_v22, %v7474_v20 }
 0x3fe   :  { %v7483_v46 = vpop.permute.xlu1 %7482  ;;  %v7478_v47 = vpop.permute.xlu0 %7477 }
 0x3ff   :  { %6254 = vmatmul.mubr.msk.bf16.gmra.mxu1 %vm10660_vm11, %v5887_v39  ;;  %v7480_v44 = vunpack.i.h.bf16 %v7478_v47  ;;  %v7479_v57 = vunpack.i.l.bf16 %v7478_v47  ;;  %v7485_v28 = vunpack.i.h.bf16 %v7483_v46  ;;  %v7484_v49 = vunpack.i.l.bf16 %v7483_v46 }
 0x401   :  { %v4409_v8 = vsel %vm1659_vm7, %v4353_v13, %v7479_v57  ;;  %v4410_v11 = vsel %vm1659_vm7, %v4354_v43, %v7480_v44  ;;  %v4356_v32 = vsel %vm1527_vm5, %v11709_v2, %v7485_v28  ;;  %v4355_v56 = vsel %vm1527_vm5, %v11699_v10, %v7484_v49 }
 0x402   :  { %v5890_v9 = vpack.c.bf16 %v4410_v11, %v4409_v8  ;;  %v7488_v24 = vpop.permute.xlu1 %7487  ;;  %v4896_v57 = vadd.s32 48, %v4890_v5 }
 0x403   :  { %v7490_v35 = vunpack.i.h.bf16 %v7488_v24  ;;  %v7489_v38 = vunpack.i.l.bf16 %v7488_v24 }
 0x404   :  { %6257 = vmatprep.mubr.msk.bf16.mxu1 %vm10660_vm11, %v5890_v9  ;;  %vm4903_vm13 = vcmp.lt.s32.totalorder %v4896_v57, 50 }
 0x405   :  { %v4411_v22 = vsel %vm1659_vm7, %v4355_v56, %v7489_v38  ;;  %v4412_v63 = vsel %vm1659_vm7, %v4356_v32, %v7490_v35  ;;  %v12804_v38 = vmov 0.0  }
 0x406   :  { %v5893_v40 = vpack.c.bf16 %v4412_v63, %v4411_v22  ;;  %v11986_v32 = vsel %vm4903_vm13, 1.0, %v12804_v38 }
 0x408   :  { %v6215_v27 = vpop.f32.mrf.mxu1  ;;  %6258 = vmatmul.mubr.msk.bf16.gmra.mxu1 %vm10660_vm11, %v5893_v40 }
 0x409   :  { %v11942_v58 = vadd.f32 %v6215_v27, %v11936_v36 }
 0x40a   :  { %v4610_v2 = vpop.f32.mrf.mxu1 }
 0x40b   :  { %v11939_v10 = vadd.f32 %v11936_v36, %v4610_v2  ;;  %v4835_v54 = vmax.f32 %v11942_v58, 0.0 }
 0x40c   :  { %v6216_v34 = vpop.f32.mrf.mxu1 }
 0x40d   :  { %v4833_v52 = vmax.f32 %v11939_v10, 0.0  ;;  %v11946_v15 = vadd.f32 %v6216_v34, %v11936_v36 }
 0x40e   :  { %v7498_v45 = vpop.permute.xlu1 %7497  ;;  %v4613_v61 = vpop.f32.mrf.mxu1 }
 0x40f   :  { %v7500_v0 = vunpack.i.h.bf16 %v7498_v45  ;;  %v7493_v23 = vpop.permute.xlu0 %7492  ;;  %v7499_v60 = vunpack.i.l.bf16 %v7498_v45  ;;  %v11949_v6 = vadd.f32 %v11936_v36, %v4613_v61  ;;  %v4974_v30 = vsel %vm1527_vm5, %v4833_v52, 0.0 }
 0x410   :  { %v7495_v41 = vunpack.i.h.bf16 %v7493_v23  ;;  %v7494_v55 = vunpack.i.l.bf16 %v7493_v23  ;;  %v4836_v59 = vmax.f32 %v11946_v15, 0.0 }
 0x411   :  { %v4834_v12 = vmax.f32 %v11949_v6, 0.0  ;;  %v4360_v33 = vsel %vm1527_vm5, %v11735_v4, %v7500_v0  ;;  %v4359_v3 = vsel %vm1527_vm5, %v11762_v51, %v7499_v60 }
 0x412   :  { %v7508_v21 = vpop.permute.xlu1 %7507  ;;  %v4358_v18 = vsel %vm1527_vm5, %v11747_v62, %v7495_v41  ;;  %v4357_v39 = vsel %vm1527_vm5, %v11702_v50, %v7494_v55  ;;  %v4977_v62 = vsel %vm1527_vm5, %v4835_v54, 0.0  ;;  %v4979_v50 = vsel %vm1527_vm5, %v4836_v59, 0.0 }
 0x413   :  { %v7510_v42 = vunpack.i.h.bf16 %v7508_v21  ;;  %v7509_v17 = vunpack.i.l.bf16 %v7508_v21  ;;  %v7503_v29 = vpop.permute.xlu0 %7502  ;;  %v4975_v7 = vsel %vm1527_vm5, %v4834_v12, 0.0 }
 0x414   :  { %v7505_v19 = vunpack.i.h.bf16 %v7503_v29  ;;  %v7504_v1 = vunpack.i.l.bf16 %v7503_v29  ;;  %v4976_v25 = vadd.f32 %v4975_v7, %v4974_v30 }
 0x415   :  { %v4415_v4 = vsel %vm1659_vm7, %v4359_v3, %v7509_v17  ;;  %v4416_v14 = vsel %vm1659_vm7, %v4360_v33, %v7510_v42 }
 0x416   :  { %v5899_v20 = vpack.c.bf16 %v4416_v14, %v4415_v4  ;;  %v4413_v51 = vsel %vm1659_vm7, %v4357_v39, %v7504_v1  ;;  %v4414_v46 = vsel %vm1659_vm7, %v4358_v18, %v7505_v19  ;;  %v4978_v44 = vadd.f32 %v4977_v62, %v4976_v25 }
 0x417   :  { %v5896_v47 = vpack.c.bf16 %v4414_v46, %v4413_v51 }
 0x418   :  { %v4980_v43 = vadd.f32 %v4979_v50, %v4978_v44 }
 0x419   :  { %6261 = vmatprep.mubr.msk.bf16.mxu1 %vm10660_vm11, %v5896_v47 }
 0x41a   :  { %6262 = vmatmul.mubr.msk.bf16.gmra.mxu1 %vm10660_vm11, %v5899_v20  ;;  %v6219_v11 = vpop.f32.mrf.mxu1 }
 0x41b   :  { %v11983_v35 = vadd.f32 %v6219_v11, %v11936_v36 }
 0x41c   :  { %v4626_v56 = vpop.f32.mrf.mxu1 }
 0x41d   :  { %v4839_v40 = vmax.f32 %v11983_v35, 0.0  ;;  %v11994_v27 = vadd.f32 %v11936_v36, %v4626_v56 }
 0x41e   :  { %v7518_v13 = vpop.permute.xlu1 %7517  ;;  %v7513_v28 = vpop.permute.xlu0 %7512 }
 0x41f   :  { %v7520_v49 = vunpack.i.h.bf16 %v7518_v13  ;;  %v7519_v8 = vunpack.i.l.bf16 %v7518_v13  ;;  %v7515_v9 = vunpack.i.h.bf16 %v7513_v28  ;;  %v7514_v24 = vunpack.i.l.bf16 %v7513_v28  ;;  %v6220_v61 = vpop.f32.mrf.mxu1 }
 0x420   :  { %v4837_v41 = vmax.f32 %v11994_v27, 0.0  ;;  %v12017_v7 = vadd.f32 %v6220_v61, %v11936_v36 }
 0x421   :  { %v4364_v22 = vsel %vm1527_vm5, %v11803_v53, %v7520_v49  ;;  %v4363_v63 = vsel %vm1527_vm5, %v11826_v48, %v7519_v8  ;;  %v4362_v60 = vsel %vm1527_vm5, %v11807_v26, %v7515_v9  ;;  %v4361_v53 = vsel %vm1527_vm5, %v11757_v37, %v7514_v24  ;;  %v4629_v33 = vpop.f32.mrf.mxu1 }
 0x422   :  { %v7528_v2 = vpop.permute.xlu1 %7527  ;;  %v7523_v16 = vpop.permute.xlu0 %7522  ;;  %v4924_v48 = vmul.f32 %v11986_v32, %v4839_v40  ;;  %v4981_v26 = vsel %vm1527_vm5, %v4837_v41, 0.0  ;;  %v4630_v29 = vadd.f32 %v11936_v36, %v4629_v33  ;;  %v4840_v20 = vmax.f32 %v12017_v7, 0.0 }
 0x423   :  { %v7530_v34 = vunpack.i.h.bf16 %v7528_v2  ;;  %v7529_v45 = vunpack.i.l.bf16 %v7528_v2  ;;  %v7525_v0 = vunpack.i.h.bf16 %v7523_v16  ;;  %v7524_v23 = vunpack.i.l.bf16 %v7523_v16 }
 0x424   :  { %v4982_v37 = vadd.f32 %v4981_v26, %v4980_v43  ;;  %v4838_v3 = vmax.f32 %v4630_v29, 0.0  ;;  %v4985_v1 = vsel %vm1527_vm5, %v4924_v48, 0.0  ;;  %v4993_v43 = vsel %vm1527_vm5, %v4840_v20, 0.0 }
 0x425   :  { %v4419_v55 = vsel %vm1659_vm7, %v4363_v63, %v7529_v45  ;;  %v4420_v5 = vsel %vm1659_vm7, %v4364_v22, %v7530_v34  ;;  %v4417_v30 = vsel %vm1659_vm7, %v4361_v53, %v7524_v23  ;;  %v4418_v21 = vsel %vm1659_vm7, %v4362_v60, %v7525_v0 }
 0x426   :  { %v5905_v42 = vpack.c.bf16 %v4420_v5, %v4419_v55  ;;  %v5902_v17 = vpack.c.bf16 %v4418_v21, %v4417_v30  ;;  %v4983_v18 = vsel %vm1527_vm5, %v4838_v3, 0.0 }
 0x427   :  { %v4984_v19 = vadd.f32 %v4983_v18, %v4982_v37 }
 0x428   :  { %6265 = vmatprep.mubr.msk.bf16.mxu1 %vm10660_vm11, %v5902_v17 }
 0x429   :  { %6266 = vmatmul.mubr.msk.bf16.gmra.mxu1 %vm10660_vm11, %v5905_v42  ;;  %v4986_v39 = vadd.f32 %v4985_v1, %v4984_v19  ;;  %vm5542_vm11 = vcmask 1044484  }
 0x42b   :  { %v4987_v14 = vrot.slane %v4986_v39, 4 }
 0x42c   :  { %v6223_v4 = vpop.f32.mrf.mxu1 }
 0x42d   :  { %v4988_v51 = vadd.f32 %v4987_v14, %v4986_v39  ;;  %v12024_v47 = vadd.f32 %v6223_v4, %v11936_v36 }
 0x42e   :  { %v4642_v25 = vpop.f32.mrf.mxu1 }
 0x42f   :  { %v12021_v46 = vadd.f32 %v11936_v36, %v4642_v25  ;;  %v4989_v62 = vrot.slane %v4988_v51, 2  ;;  %v4843_v9 = vmax.f32 %v12024_v47, 0.0 }
 0x430   :  { %v6224_v31 = vpop.f32.mrf.mxu1 }
 0x431   :  { %v4841_v44 = vmax.f32 %v12021_v46, 0.0  ;;  %v12028_v57 = vadd.f32 %v6224_v31, %v11936_v36  ;;  %v4990_v13 = vadd.f32 %v4989_v62, %v4988_v51  ;;  %v4998_v2 = vsel %vm1527_vm5, %v4843_v9, 0.0 }
 0x432   :  { %v4645_v50 = vpop.f32.mrf.mxu1 }
 0x433   :  { %v4994_v28 = vsel %vm1527_vm5, %v4841_v44, 0.0  ;;  %v12037_v49 = vadd.f32 %v11936_v36, %v4645_v50  ;;  %v4991_v11 = vrot.slane %v4990_v13, 1  ;;  %v4844_v38 = vmax.f32 %v12028_v57, 0.0 }
 0x434   :  { %v4995_v8 = vadd.f32 %v4994_v28, %v4993_v43 }
 0x435   :  { %v4842_v24 = vmax.f32 %v12037_v49, 0.0  ;;  %v4992_v56 = vadd.f32 %v4991_v11, %v4990_v13  ;;  %v5000_v16 = vsel %vm1527_vm5, %v4844_v38, 0.0 }
 0x437   :  { %v4996_v22 = vsel %vm1527_vm5, %v4842_v24, 0.0  ;;  %v12045_v27 = vmul.f32 0.02, %v4992_v56 }
 0x438   :  { %v4997_v63 = vadd.f32 %v4996_v22, %v4995_v8 }
 0x439   :  { %v5135_v45 = vsub.f32 %v4833_v52, %v12045_v27  ;;  %v5136_v0 = vsub.f32 %v4834_v12, %v12045_v27  ;;  %v5137_v23 = vsub.f32 %v4835_v54, %v12045_v27  ;;  %v5138_v61 = vsub.f32 %v4836_v59, %v12045_v27 }
 0x43a   :  { %v4999_v34 = vadd.f32 %v4998_v2, %v4997_v63  ;;  %v5139_v60 = vsub.f32 %v4837_v41, %v12045_v27  ;;  %v5140_v53 = vsub.f32 %v4838_v3, %v12045_v27  ;;  %v5141_v10 = vsub.f32 %v4839_v40, %v12045_v27 }
 0x43b   :  { %v5247_v6 = vmul.f32 %v5135_v45, %v5135_v45  ;;  %v5248_v12 = vmul.f32 %v5136_v0, %v5136_v0  ;;  %v5249_v55 = vmul.f32 %v5137_v23, %v5137_v23  ;;  %v5250_v59 = vmul.f32 %v5138_v61, %v5138_v61 }
 0x43c   :  { %v5001_v48 = vadd.f32 %v5000_v16, %v4999_v34  ;;  %v5197_v58 = vmul.f32 %v11986_v32, %v5141_v10  ;;  %v5251_v30 = vmul.f32 %v5139_v60, %v5139_v60  ;;  %v5252_v17 = vmul.f32 %v5140_v53, %v5140_v53 }
 0x43d   :  { %v5303_v41 = vsel %vm1527_vm5, %v5247_v6, 0.0  ;;  %v5304_v5 = vsel %vm1527_vm5, %v5248_v12, 0.0  ;;  %v5306_v40 = vsel %vm1527_vm5, %v5249_v55, 0.0  ;;  %v5308_v3 = vsel %vm1527_vm5, %v5250_v59, 0.0 }
 0x43e   :  { %v6227_v52 = vpop.f32.mrf.mxu1  ;;  %v5305_v21 = vadd.f32 %v5304_v5, %v5303_v41  ;;  %v5253_v39 = vmul.f32 %v5197_v58, %v5197_v58  ;;  %v5310_v14 = vsel %vm1527_vm5, %v5251_v30, 0.0  ;;  %v5312_v28 = vsel %vm1527_vm5, %v5252_v17, 0.0 }
 0x43f   :  { %v12072_v54 = vadd.f32 %v6227_v52, %v11936_v36 }
 0x440   :  { %v4658_v15 = vpop.f32.mrf.mxu1  ;;  %v5307_v37 = vadd.f32 %v5306_v40, %v5305_v21  ;;  %v5314_v56 = vsel %vm1527_vm5, %v5253_v39, 0.0 }
 0x441   :  { %v4847_v33 = vmax.f32 %v12072_v54, 0.0  ;;  %v4659_v26 = vadd.f32 %v11936_v36, %v4658_v15 }
 0x442   :  { %v6228_v35 = vpop.f32.mrf.mxu1  ;;  %v5309_v4 = vadd.f32 %v5308_v3, %v5307_v37 }
 0x443   :  { %v12080_v42 = vadd.f32 %v6228_v35, %v11936_v36  ;;  %v4845_v18 = vmax.f32 %v4659_v26, 0.0  ;;  %v5012_v25 = vsel %vm1527_vm5, %v4847_v33, 0.0 }
 0x444   :  { %v4661_v29 = vpop.f32.mrf.mxu1  ;;  %v5311_v50 = vadd.f32 %v5310_v14, %v5309_v4 }
 0x445   :  { %v4848_v19 = vmax.f32 %v12080_v42, 0.0  ;;  %v4662_v1 = vadd.f32 %v11936_v36, %v4661_v29  ;;  %v5002_v51 = vsel %vm1527_vm5, %v4845_v18, 0.0 }
 0x446   :  { %v5003_v43 = vadd.f32 %v5002_v51, %v5001_v48  ;;  %v5313_v11 = vadd.f32 %v5312_v28, %v5311_v50 }
 0x447   :  { %v5013_v31 = vsel %vm1527_vm5, %v4848_v19, 0.0  ;;  %v4846_v62 = vmax.f32 %v4662_v1, 0.0 }
 0x448   :  { %v5014_v13 = vadd.f32 %v5013_v31, %v5012_v25  ;;  %v5315_v63 = vadd.f32 %v5314_v56, %v5313_v11 }
 0x449   :  { %v4931_v8 = vmul.f32 %v11986_v32, %v4846_v62 }
 0x44a   :  { %v5316_v0 = vrot.slane %v5315_v63, 4 }
 0x44b   :  { %v5004_v22 = vsel %vm1527_vm5, %v4931_v8, 0.0 }
 0x44c   :  { %v5005_v2 = vadd.f32 %v5004_v22, %v5003_v43  ;;  %v5317_v60 = vadd.f32 %v5316_v0, %v5315_v63 }
 0x44e   :  { %v5006_v16 = vrot.slane %v5005_v2, 4  ;;  %v5318_v6 = vrot.slane %v5317_v60, 2 }
 0x450   :  { %v5007_v34 = vadd.f32 %v5006_v16, %v5005_v2 }
 0x452   :  { %v5008_v45 = vrot.slane %v5007_v34, 2 }
 0x454   :  { %v5009_v23 = vadd.f32 %v5008_v45, %v5007_v34 }
 0x456   :  { %v5010_v61 = vrot.slane %v5009_v23, 1 }
 0x457   :  { %v6231_v53 = vpop.f32.mrf.mxu1 }
 0x458   :  { %v5011_v10 = vadd.f32 %v5010_v61, %v5009_v23  ;;  %v12109_v59 = vadd.f32 %v6231_v53, %v11936_v36 }
 0x459   :  { %v4674_v52 = vpop.f32.mrf.mxu1 }
 0x45a   :  { %v12097_v48 = vmul.f32 0.02, %v5011_v10  ;;  %v4851_v17 = vmax.f32 %v12109_v59, 0.0 }
 0x45b   :  { %v6232_v12 = vpop.f32.mrf.mxu1 }
 0x45c   :  { %v5142_v55 = vsub.f32 %v4840_v20, %v12097_v48  ;;  %v5143_v58 = vsub.f32 %v4841_v44, %v12097_v48  ;;  %v5144_v15 = vsub.f32 %v4842_v24, %v12097_v48  ;;  %v5145_v41 = vsub.f32 %v4843_v9, %v12097_v48 }
 0x45d   :  { %v5146_v7 = vsub.f32 %v4844_v38, %v12097_v48  ;;  %v5147_v20 = vsub.f32 %v4845_v18, %v12097_v48  ;;  %v5148_v46 = vsub.f32 %v4846_v62, %v12097_v48  ;;  %v4677_v44 = vpop.f32.mrf.mxu1  ;;  %v12120_v24 = vadd.f32 %v11936_v36, %v4674_v52 }
 0x45e   :  { %v5254_v5 = vmul.f32 %v5142_v55, %v5142_v55  ;;  %v5255_v30 = vmul.f32 %v5143_v58, %v5143_v58  ;;  %v5256_v49 = vmul.f32 %v5144_v15, %v5144_v15  ;;  %v5257_v47 = vmul.f32 %v5145_v41, %v5145_v41 }
 0x45f   :  { %v5204_v21 = vmul.f32 %v11986_v32, %v5148_v46  ;;  %v6235_v35 = vpop.f32.mrf.mxu1  ;;  %v5319_v38 = vadd.f32 %v5318_v6, %v5317_v60  ;;  %v5258_v40 = vmul.f32 %v5146_v7, %v5146_v7  ;;  %v4849_v3 = vmax.f32 %v12120_v24, 0.0 }
 0x460   :  { %v5322_v9 = vsel %vm1527_vm5, %v5254_v5, 0.0  ;;  %v5323_v57 = vsel %vm1527_vm5, %v5255_v30, 0.0  ;;  %v5325_v29 = vsel %vm1527_vm5, %v5256_v49, 0.0  ;;  %v12129_v18 = vadd.f32 %v6232_v12, %v11936_v36 }
 0x461   :  { %v5324_v26 = vadd.f32 %v5323_v57, %v5322_v9  ;;  %v4690_v37 = vpop.f32.mrf.mxu1  ;;  %v12132_v1 = vadd.f32 %v11936_v36, %v4677_v44  ;;  %v5259_v39 = vmul.f32 %v5147_v20, %v5147_v20  ;;  %v12135_v14 = vadd.f32 %v6235_v35, %v11936_v36 }
 0x462   :  { %v12138_v25 = vadd.f32 %v11936_v36, %v4690_v37  ;;  %v5260_v31 = vmul.f32 %v5204_v21, %v5204_v21  ;;  %v5327_v62 = vsel %vm1527_vm5, %v5257_v47, 0.0  ;;  %v5015_v50 = vsel %vm1527_vm5, %v4849_v3, 0.0 }
 0x463   :  { %v5326_v4 = vadd.f32 %v5325_v29, %v5324_v26  ;;  %v6236_v51 = vpop.f32.mrf.mxu1  ;;  %v4850_v43 = vmax.f32 %v12132_v1, 0.0  ;;  %v5329_v8 = vsel %vm1527_vm5, %v5258_v40, 0.0  ;;  %v5016_v11 = vadd.f32 %v5015_v50, %v5014_v13 }
 0x464   :  { %v4853_v56 = vmax.f32 %v12138_v25, 0.0  ;;  %v4852_v63 = vmax.f32 %v12129_v18, 0.0  ;;  %v12152_v16 = vadd.f32 %v6236_v51, %v11936_v36  ;;  %v4855_v23 = vmax.f32 %v12135_v14, 0.0 }
 0x465   :  { %v5328_v28 = vadd.f32 %v5327_v62, %v5326_v4  ;;  %v4693_v22 = vpop.f32.mrf.mxu1  ;;  %v5017_v2 = vsel %vm1527_vm5, %v4850_v43, 0.0  ;;  %v5331_v61 = vsel %vm1527_vm5, %v5259_v39, 0.0  ;;  %v5019_v60 = vsel %vm1527_vm5, %v4851_v17, 0.0 }
 0x466   :  { %v12155_v34 = vadd.f32 %v11936_v36, %v4693_v22  ;;  %v5018_v0 = vadd.f32 %v5017_v2, %v5016_v11  ;;  %v4938_v13 = vmul.f32 %v11986_v32, %v4853_v56  ;;  %v5320_v52 = vrot.slane %v5319_v38, 1 }
 0x467   :  { %v5330_v45 = vadd.f32 %v5329_v8, %v5328_v28  ;;  %v5333_v12 = vsel %vm1527_vm5, %v5260_v31, 0.0  ;;  %v5021_v58 = vsel %vm1527_vm5, %v4852_v63, 0.0  ;;  %v12177_v20 = vsel %vm5536_vm14, %v12097_v48, %v12045_v27 }
 0x468   :  { %v4854_v53 = vmax.f32 %v12155_v34, 0.0  ;;  %v6239_v10 = vpop.f32.mrf.mxu1  ;;  %v5020_v55 = vadd.f32 %v5019_v60, %v5018_v0  ;;  %v5023_v15 = vsel %vm1527_vm5, %v4938_v13, 0.0  ;;  %v5032_v44 = vsel %vm1527_vm5, %v4855_v23, 0.0 }
 0x469   :  { %v5332_v6 = vadd.f32 %v5331_v61, %v5330_v45  ;;  %v4856_v30 = vmax.f32 %v12152_v16, 0.0  ;;  %v12187_v57 = vadd.f32 %v6239_v10, %v11936_v36  ;;  %v5321_v27 = vadd.f32 %v5320_v52, %v5319_v38 }
 0x46a   :  { %v5031_v41 = vsel %vm1527_vm5, %v4854_v53, 0.0  ;;  %v4706_v7 = vpop.f32.mrf.mxu1  ;;  %v5022_v5 = vadd.f32 %v5021_v58, %v5020_v55 }
 0x46b   :  { %v5334_v46 = vadd.f32 %v5333_v12, %v5332_v6  ;;  %v5033_v49 = vadd.f32 %v5032_v44, %v5031_v41  ;;  %v12184_v21 = vadd.f32 %v11936_v36, %v4706_v7  ;;  %v5034_v39 = vsel %vm1527_vm5, %v4856_v30, 0.0 }
 0x46c   :  { %v6240_v35 = vpop.f32.mrf.mxu1  ;;  %v5024_v9 = vadd.f32 %v5023_v15, %v5022_v5  ;;  %v4859_v28 = vmax.f32 %v12187_v57, 0.0  ;;  %v5456_v11 = vmul.f32 0.020408163, %v5321_v27 }
 0x46d   :  { %v5335_v47 = vrot.slane %v5334_v46, 4  ;;  %v4857_v48 = vmax.f32 %v12184_v21, 0.0  ;;  %v12191_v40 = vadd.f32 %v6240_v35, %v11936_v36  ;;  %v5035_v51 = vadd.f32 %v5034_v39, %v5033_v49 }
 0x46e   :  { %v4709_v26 = vpop.f32.mrf.mxu1  ;;  %v5025_v29 = vrot.slane %v5024_v9, 4  ;;  %v5040_v52 = vsel %vm1527_vm5, %v4859_v28, 0.0  ;;  %v12214_v6 = vmax.f32 %v5456_v11, 0.0 }
 0x46f   :  { %v5336_v37 = vadd.f32 %v5335_v47, %v5334_v46  ;;  %v12197_v4 = vadd.f32 %v11936_v36, %v4709_v26  ;;  %v5036_v38 = vsel %vm1527_vm5, %v4857_v48, 0.0  ;;  %v4860_v31 = vmax.f32 %v12191_v40, 0.0 }
 0x470   :  { %v5026_v50 = vadd.f32 %v5025_v29, %v5024_v9  ;;  %v5037_v22 = vadd.f32 %v5036_v38, %v5035_v51  ;;  %7555 = vrsqrt.f32 %v12214_v6  ;;  %vm5474_vm0 = vcmp.eq.f32.partialorder %v12214_v6, inf }
 0x471   :  { %v5337_v62 = vrot.slane %v5336_v37, 2  ;;  %v4858_v8 = vmax.f32 %v12197_v4, 0.0  ;;  %v4945_v0 = vmul.f32 %v11986_v32, %v4860_v31  ;;  %vm5476_vm2 = vcmp.eq.f32.partialorder %v12214_v6, 0.0 }
 0x472   :  { %v5027_v45 = vrot.slane %v5026_v50, 2 }
 0x473   :  { %v5338_v2 = vadd.f32 %v5337_v62, %v5336_v37  ;;  %v5038_v13 = vsel %vm1527_vm5, %v4858_v8, 0.0  ;;  %v5042_v15 = vsel %vm1527_vm5, %v4945_v0, 0.0 }
 0x474   :  { %v5039_v61 = vadd.f32 %v5038_v13, %v5037_v22  ;;  %v5028_v10 = vadd.f32 %v5027_v45, %v5026_v50 }
 0x475   :  { %v5339_v60 = vrot.slane %v5338_v2, 1 }
 0x476   :  { %v5041_v12 = vadd.f32 %v5040_v52, %v5039_v61  ;;  %v5029_v58 = vrot.slane %v5028_v10, 1 }
 0x477   :  { %v5340_v55 = vadd.f32 %v5339_v60, %v5338_v2 }
 0x478   :  { %v5043_v41 = vadd.f32 %v5042_v15, %v5041_v12  ;;  %v5030_v46 = vadd.f32 %v5029_v58, %v5028_v10 }
 0x479   :  { %v5457_v7 = vmul.f32 0.020408163, %v5340_v55 }
 0x47a   :  { %v5044_v44 = vrot.slane %v5043_v41, 4  ;;  %v5129_v49 = vmul.f32 0.02, %v5030_v46 }
 0x47b   :  { %v12218_v5 = vmax.f32 %v5457_v7, 0.0 }
 0x47c   :  { %v5045_v35 = vadd.f32 %v5044_v44, %v5043_v41  ;;  %v5149_v47 = vsub.f32 %v4847_v33, %v5129_v49  ;;  %v5150_v9 = vsub.f32 %v4848_v19, %v5129_v49  ;;  %v5151_v27 = vsub.f32 %v4849_v3, %v5129_v49 }
 0x47d   :  { %7557 = vrsqrt.f32 %v12218_v5  ;;  %v5152_v26 = vsub.f32 %v4850_v43, %v5129_v49  ;;  %v5153_v37 = vsub.f32 %v4851_v17, %v5129_v49  ;;  %v5154_v29 = vsub.f32 %v4852_v63, %v5129_v49  ;;  %v7556_v2 = vpop.eup %7555 }
 0x47e   :  { %v5155_v39 = vsub.f32 %v4853_v56, %v5129_v49  ;;  %v5261_v54 = vmul.f32 %v5149_v47, %v5149_v47  ;;  %v5262_v33 = vmul.f32 %v5150_v9, %v5150_v9  ;;  %v5263_v51 = vmul.f32 %v5151_v27, %v5151_v27 }
 0x47f   :  { %v5046_v42 = vrot.slane %v5045_v35, 2  ;;  %v5264_v24 = vmul.f32 %v5152_v26, %v5152_v26  ;;  %v5265_v17 = vmul.f32 %v5153_v37, %v5153_v37  ;;  %v5266_v25 = vmul.f32 %v5154_v29, %v5154_v29 }
 0x480   :  { %v5211_v19 = vmul.f32 %v11986_v32, %v5155_v39  ;;  %v5341_v3 = vsel %vm1527_vm5, %v5261_v54, 0.0  ;;  %v5342_v1 = vsel %vm1527_vm5, %v5262_v33, 0.0  ;;  %v5344_v18 = vsel %vm1527_vm5, %v5263_v51, 0.0 }
 0x481   :  { %v5047_v43 = vadd.f32 %v5046_v42, %v5045_v35  ;;  %v5343_v59 = vadd.f32 %v5342_v1, %v5341_v3  ;;  %v5346_v38 = vsel %vm1527_vm5, %v5264_v24, 0.0  ;;  %v5539_v50 = vsel %vm5538_vm15, %v5129_v49, %v12177_v20 }
 0x482   :  { %v5267_v11 = vmul.f32 %v5211_v19, %v5211_v19  ;;  %v5348_v45 = vsel %vm1527_vm5, %v5265_v17, 0.0  ;;  %v5350_v61 = vsel %vm1527_vm5, %v5266_v25, 0.0  ;;  %v5473_v41 = vmul.f32 %v7556_v2, %v12214_v6 }
 0x483   :  { %v5048_v63 = vrot.slane %v5047_v43, 1  ;;  %v5345_v56 = vadd.f32 %v5344_v18, %v5343_v59  ;;  %vm5481_vm3 = vcmp.eq.f32.partialorder %v12218_v5, inf  ;;  %v5484_v27 = vand.u32 2147483648, %v12218_v5 }
 0x484   :  { %v5352_v58 = vsel %vm1527_vm5, %v5267_v11, 0.0  ;;  %v5477_v42 = vand.u32 2147483648, %v12214_v6  ;;  %vm5483_vm4 = vcmp.eq.f32.partialorder %v12218_v5, 0.0 }
 0x485   :  { %v5049_v62 = vadd.f32 %v5048_v63, %v5047_v43  ;;  %v5347_v22 = vadd.f32 %v5346_v38, %v5345_v56 }
 0x487   :  { %v5130_v0 = vmul.f32 0.02, %v5049_v62  ;;  %v5349_v13 = vadd.f32 %v5348_v45, %v5347_v22 }
 0x489   :  { %v5156_v60 = vsub.f32 %v4854_v53, %v5130_v0  ;;  %v5157_v10 = vsub.f32 %v4855_v23, %v5130_v0  ;;  %v5158_v52 = vsub.f32 %v4856_v30, %v5130_v0  ;;  %v5159_v20 = vsub.f32 %v4857_v48, %v5130_v0  ;;  %v6243_v16 = vpop.f32.mrf.mxu1 }
 0x48a   :  { %v7558_v12 = vpop.eup %7557  ;;  %v5351_v55 = vadd.f32 %v5350_v61, %v5349_v13  ;;  %v5160_v15 = vsub.f32 %v4858_v8, %v5130_v0  ;;  %v5162_v34 = vsub.f32 %v4860_v31, %v5130_v0  ;;  %v5161_v21 = vsub.f32 %v4859_v28, %v5130_v0 }
 0x48b   :  { %v5268_v14 = vmul.f32 %v5156_v60, %v5156_v60  ;;  %v5269_v23 = vmul.f32 %v5157_v10, %v5157_v10  ;;  %v5270_v53 = vmul.f32 %v5158_v52, %v5158_v52  ;;  %v5271_v48 = vmul.f32 %v5159_v20, %v5159_v20  ;;  %v4722_v7 = vpop.f32.mrf.mxu1 }
 0x48c   :  { %v5353_v30 = vadd.f32 %v5352_v58, %v5351_v55  ;;  %v5475_v31 = vsel %vm5474_vm0, %v12214_v6, %v5473_v41  ;;  %v5218_v44 = vmul.f32 %v11986_v32, %v5162_v34  ;;  %v5272_v49 = vmul.f32 %v5160_v15, %v5160_v15 }
 0x48d   :  { %v5360_v4 = vsel %vm1527_vm5, %v5268_v14, 0.0  ;;  %v5361_v8 = vsel %vm1527_vm5, %v5269_v23, 0.0  ;;  %v5363_v35 = vsel %vm1527_vm5, %v5270_v53, 0.0  ;;  %v6244_v47 = vpop.f32.mrf.mxu1  ;;  %v5480_v57 = vmul.f32 %v7558_v12, %v12218_v5 }
 0x48e   :  { %v5354_v46 = vrot.slane %v5353_v30, 4  ;;  %v5362_v40 = vadd.f32 %v5361_v8, %v5360_v4  ;;  %v5273_v26 = vmul.f32 %v5161_v21, %v5161_v21  ;;  %v5365_v37 = vsel %vm1527_vm5, %v5271_v48, 0.0 }
 0x48f   :  { %v4725_v29 = vpop.f32.mrf.mxu1  ;;  %v5482_v39 = vsel %vm5481_vm3, %v12218_v5, %v5480_v57  ;;  %v12273_v54 = vsel %vm5540_vm1, %v5130_v0, %v5539_v50  ;;  %v5274_v19 = vmul.f32 %v5218_v44, %v5218_v44  ;;  %v5367_v24 = vsel %vm1527_vm5, %v5272_v49, 0.0 }
 0x490   :  { %v5355_v28 = vadd.f32 %v5354_v46, %v5353_v30  ;;  %v5364_v9 = vadd.f32 %v5363_v35, %v5362_v40  ;;  %v12279_v3 = vadd.f32 %v11936_v36, %v4725_v29  ;;  %v5485_v1 = vsel %vm5483_vm4, %v5484_v27, %v5482_v39 }
 0x491   :  { %v5478_v17 = vsel %vm5476_vm2, %v5477_v42, %v5475_v31  ;;  %v5369_v18 = vsel %vm1527_vm5, %v5273_v26, 0.0  ;;  %v12285_v63 = vadd.f32 %v11936_v36, %v4722_v7  ;;  %v5371_v38 = vsel %vm1527_vm5, %v5274_v19, 0.0 }
 0x492   :  { %v5356_v33 = vrot.slane %v5355_v28, 2  ;;  %v5366_v51 = vadd.f32 %v5365_v37, %v5364_v9  ;;  %v5559_v25 = vsel %vm5536_vm14, %v5485_v1, %v5478_v17  ;;  %v4862_v62 = vmax.f32 %v12279_v3, 0.0 }
 0x493   :  { %v12291_v22 = vadd.f32 %v6243_v16, %v11936_v36  ;;  %v4861_v6 = vmax.f32 %v12285_v63, 0.0  ;;  %v12302_v52 = vadd.f32 %v6244_v47, %v11936_v36  ;;  %vm5548_vm0 = vcmask 1047559  }
 0x494   :  { %v5357_v43 = vadd.f32 %v5356_v33, %v5355_v28  ;;  %v5368_v59 = vadd.f32 %v5367_v24, %v5366_v51  ;;  %v5051_v0 = vsel %vm1527_vm5, %v4862_v62, 0.0 }
 0x495   :  { %v4863_v60 = vmax.f32 %v12291_v22, 0.0  ;;  %v5050_v10 = vsel %vm1527_vm5, %v4861_v6, 0.0  ;;  %v4864_v14 = vmax.f32 %v12302_v52, 0.0 }
 0x496   :  { %v5358_v5 = vrot.slane %v5357_v43, 1  ;;  %v5370_v56 = vadd.f32 %v5369_v18, %v5368_v59  ;;  %v5052_v12 = vadd.f32 %v5051_v0, %v5050_v10 }
 0x497   :  { %v5053_v34 = vsel %vm1527_vm5, %v4863_v60, 0.0  ;;  %v5055_v7 = vsel %vm1527_vm5, %v4864_v14, 0.0 }
 0x498   :  { %v5359_v50 = vadd.f32 %v5358_v5, %v5357_v43  ;;  %v5372_v11 = vadd.f32 %v5371_v38, %v5370_v56  ;;  %v5054_v16 = vadd.f32 %v5053_v34, %v5052_v12 }
 0x49a   :  { %v5458_v2 = vmul.f32 0.020408163, %v5359_v50  ;;  %v5373_v45 = vrot.slane %v5372_v11, 4  ;;  %v5056_v44 = vadd.f32 %v5055_v7, %v5054_v16 }
 0x49c   :  { %v5466_v13 = vmax.f32 %v5458_v2, 0.0  ;;  %v5374_v61 = vadd.f32 %v5373_v45, %v5372_v11 }
 0x49d   :  { %v6247_v55 = vpop.f32.mrf.mxu1 }
 0x49e   :  { %7559 = vrsqrt.f32 %v5466_v13  ;;  %v5375_v20 = vrot.slane %v5374_v61, 2  ;;  %v12305_v58 = vadd.f32 %v6247_v55, %v11936_v36  ;;  %vm5488_vm6 = vcmp.eq.f32.partialorder %v5466_v13, inf }
 0x49f   :  { %v4738_v41 = vpop.f32.mrf.mxu1  ;;  %v5491_v33 = vand.u32 2147483648, %v5466_v13  ;;  %vm5490_vm8 = vcmp.eq.f32.partialorder %v5466_v13, 0.0 }
 0x4a0   :  { %v5376_v15 = vadd.f32 %v5375_v20, %v5374_v61  ;;  %v12312_v23 = vadd.f32 %v11936_v36, %v4738_v41  ;;  %v4867_v21 = vmax.f32 %v12305_v58, 0.0 }
 0x4a1   :  { %v6248_v30 = vpop.f32.mrf.mxu1 }
 0x4a2   :  { %v5377_v53 = vrot.slane %v5376_v15, 1  ;;  %v4865_v48 = vmax.f32 %v12312_v23, 0.0  ;;  %v4952_v49 = vmul.f32 %v11986_v32, %v4867_v21  ;;  %v12327_v17 = vadd.f32 %v6248_v30, %v11936_v36 }
 0x4a3   :  { %v4741_v8 = vpop.f32.mrf.mxu1 }
 0x4a4   :  { %v5378_v4 = vadd.f32 %v5377_v53, %v5376_v15  ;;  %v5057_v46 = vsel %vm1527_vm5, %v4865_v48, 0.0  ;;  %v12319_v40 = vadd.f32 %v11936_v36, %v4741_v8  ;;  %v5061_v26 = vsel %vm1527_vm5, %v4952_v49, 0.0 }
 0x4a5   :  { %v5058_v57 = vadd.f32 %v5057_v46, %v5056_v44  ;;  %v4868_v11 = vmax.f32 %v12327_v17, 0.0 }
 0x4a6   :  { %v5459_v31 = vmul.f32 0.020408163, %v5378_v4  ;;  %v4866_v35 = vmax.f32 %v12319_v40, 0.0 }
 0x4a7   :  { %v5069_v52 = vsel %vm1527_vm5, %v4868_v11, 0.0 }
 0x4a8   :  { %v5467_v47 = vmax.f32 %v5459_v31, 0.0  ;;  %v5059_v28 = vsel %vm1527_vm5, %v4866_v35, 0.0 }
 0x4a9   :  { %v5060_v9 = vadd.f32 %v5059_v28, %v5058_v57 }
 0x4aa   :  { %7561 = vrsqrt.f32 %v5467_v47  ;;  %vm5495_vm9 = vcmp.eq.f32.partialorder %v5467_v47, inf  ;;  %vm5497_vm10 = vcmp.eq.f32.partialorder %v5467_v47, 0.0  ;;  %v5498_v15 = vand.u32 2147483648, %v5467_v47 }
 0x4ab   :  { %v7560_v27 = vpop.eup %7559  ;;  %v5062_v37 = vadd.f32 %v5061_v26, %v5060_v9 }
 0x4ac   :  { %v5487_v39 = vmul.f32 %v7560_v27, %v5466_v13 }
 0x4ad   :  { %v5063_v51 = vrot.slane %v5062_v37, 4 }
 0x4ae   :  { %v6251_v29 = vpop.f32.mrf.mxu1  ;;  %v5489_v19 = vsel %vm5488_vm6, %v5466_v13, %v5487_v39 }
 0x4af   :  { %v5492_v24 = vsel %vm5490_vm8, %v5491_v33, %v5489_v19  ;;  %v5064_v1 = vadd.f32 %v5063_v51, %v5062_v37  ;;  %v12339_v10 = vadd.f32 %v6251_v29, %v11936_v36 }
 0x4b0   :  { %v4754_v42 = vpop.f32.mrf.mxu1  ;;  %v5560_v59 = vsel %vm5538_vm15, %v5492_v24, %v5559_v25  ;;  %vm5546_vm15 = vcmask 1046534  }
 0x4b1   :  { %v5065_v18 = vrot.slane %v5064_v1, 2  ;;  %v12330_v5 = vadd.f32 %v11936_v36, %v4754_v42  ;;  %v4871_v30 = vmax.f32 %v12339_v10, 0.0 }
 0x4b2   :  { %v6252_v43 = vpop.f32.mrf.mxu1 }
 0x4b3   :  { %v5066_v50 = vadd.f32 %v5065_v18, %v5064_v1  ;;  %v4869_v45 = vmax.f32 %v12330_v5, 0.0  ;;  %v12358_v8 = vadd.f32 %v6252_v43, %v11936_v36 }
 0x4b4   :  { %v4757_v56 = vpop.f32.mrf.mxu1 }
 0x4b5   :  { %v12333_v38 = vadd.f32 %v11936_v36, %v4757_v56  ;;  %v5067_v2 = vrot.slane %v5066_v50, 1  ;;  %v5070_v12 = vsel %vm1527_vm5, %v4869_v45, 0.0  ;;  %v4872_v57 = vmax.f32 %v12358_v8, 0.0 }
 0x4b6   :  { %v5071_v4 = vadd.f32 %v5070_v12, %v5069_v52 }
 0x4b7   :  { %v7562_v0 = vpop.eup %7561  ;;  %v4870_v25 = vmax.f32 %v12333_v38, 0.0  ;;  %v5068_v13 = vadd.f32 %v5067_v2, %v5066_v50  ;;  %v5076_v1 = vsel %vm1527_vm5, %v4872_v57, 0.0 }
 0x4b8   :  { %v5494_v61 = vmul.f32 %v7562_v0, %v5467_v47 }
 0x4b9   :  { %v5131_v20 = vmul.f32 0.02, %v5068_v13  ;;  %v5072_v55 = vsel %vm1527_vm5, %v4870_v25, 0.0 }
 0x4ba   :  { %v5496_v58 = vsel %vm5495_vm9, %v5467_v47, %v5494_v61 }
 0x4bb   :  { %v5163_v41 = vsub.f32 %v4861_v6, %v5131_v20  ;;  %v5164_v34 = vsub.f32 %v4862_v62, %v5131_v20  ;;  %v5165_v23 = vsub.f32 %v4863_v60, %v5131_v20  ;;  %v5166_v53 = vsub.f32 %v4864_v14, %v5131_v20 }
 0x4bc   :  { %v5169_v16 = vsub.f32 %v4867_v21, %v5131_v20  ;;  %v5167_v46 = vsub.f32 %v4865_v48, %v5131_v20  ;;  %v5073_v6 = vadd.f32 %v5072_v55, %v5071_v4  ;;  %v5499_v3 = vsel %vm5497_vm10, %v5498_v15, %v5496_v58 }
 0x4bd   :  { %v5275_v40 = vmul.f32 %v5163_v41, %v5163_v41  ;;  %v5276_v31 = vmul.f32 %v5164_v34, %v5164_v34  ;;  %v5277_v63 = vmul.f32 %v5165_v23, %v5165_v23  ;;  %v5168_v62 = vsub.f32 %v4866_v35, %v5131_v20 }
 0x4be   :  { %v5278_v22 = vmul.f32 %v5166_v53, %v5166_v53  ;;  %v5225_v21 = vmul.f32 %v11986_v32, %v5169_v16  ;;  %v5074_v48 = vsel %vm1527_vm5, %v4871_v30, 0.0  ;;  %v5279_v9 = vmul.f32 %v5167_v46, %v5167_v46  ;;  %v12396_v53 = vld [vmem:[%s12601_s6] ss:$0 sm:$0xff]  ;;  %s7669_s6 = smov [#allocation2]  }
 0x4bf   :  { %v6255_v7 = vpop.f32.mrf.mxu1  ;;  %v5379_v60 = vsel %vm1527_vm5, %v5275_v40, 0.0  ;;  %v5380_v14 = vsel %vm1527_vm5, %v5276_v31, 0.0  ;;  %v5382_v47 = vsel %vm1527_vm5, %v5277_v63, 0.0  ;;  %v12373_v27 = vsel %vm5540_vm1, %v5499_v3, %v5560_v59  ;;  %s5584_s24 = sshll.u32 %s7669_s6, 4  ;;  %s5585_s24 = int_to_ptr.vmem [resolvable:$true] %s5584_s24 }
 0x4c0   :  { %v5381_v49 = vadd.f32 %v5380_v14, %v5379_v60  ;;  %v5075_v37 = vadd.f32 %v5074_v48, %v5073_v6  ;;  %v12377_v39 = vsel %vm5542_vm11, %v5131_v20, %v12273_v54  ;;  %v5280_v33 = vmul.f32 %v5168_v62, %v5168_v62  ;;  %s7642_s25 = scalar_lea.vmem %s5585_s24, 128  ;;  %p7647_p1 = scmp.lt.s32.totalorder %s5585_s24, %s5585_s24 }
 0x4c1   :  { %v4770_v44 = vpop.f32.mrf.mxu1  ;;  %v5384_v51 = vsel %vm1527_vm5, %v5278_v22, 0.0  ;;  %v5281_v43 = vmul.f32 %v5225_v21, %v5225_v21  ;;  %v5386_v59 = vsel %vm1527_vm5, %v5279_v9, 0.0  ;;  %v12402_v31 = vadd.f32 %v12396_v53, %v6255_v7  ;;  %p7643_p0 = scmp.ne.s32.totalorder %s5585_s24, %s7642_s25  ;;  %p7648_p2 = scmp.lt.s32.totalorder %s7642_s25, %s7642_s25 }
 0x4c2   :  { %v12370_v35 = vadd.f32 %v11936_v36, %v4770_v44  ;;  %v5383_v26 = vadd.f32 %v5382_v47, %v5381_v49  ;;  %v5077_v50 = vadd.f32 %v5076_v1, %v5075_v37  ;;  %v5388_v2 = vsel %vm1527_vm5, %v5280_v33, 0.0 }
 0x4c3   :  { %v6256_v28 = vpop.f32.mrf.mxu1  ;;  %v5390_v61 = vsel %vm1527_vm5, %v5281_v43, 0.0  ;;  %v4875_v14 = vmax.f32 %v12402_v31, 0.0  ;;  %p7649_p3 = por %p7648_p2, %p7647_p1 }
 0x4c4   :  { %v4873_v42 = vmax.f32 %v12370_v35, 0.0  ;;  %v5385_v24 = vadd.f32 %v5384_v51, %v5383_v26  ;;  %v12399_v16 = vadd.f32 %v12396_v53, %v6256_v28 }
 0x4c5   :  { %v4773_v29 = vpop.f32.mrf.mxu1  ;;  %v5088_v26 = vsel %vm1527_vm5, %v4875_v14, 0.0  ;;  %p7650_p4 = pnand %p7649_p3, %p7643_p0 }
 0x4c6   :  { %v4774_v19 = vadd.f32 %v11936_v36, %v4773_v29  ;;  %v5078_v54 = vsel %vm1527_vm5, %v4873_v42, 0.0  ;;  %v5387_v56 = vadd.f32 %v5386_v59, %v5385_v24  ;;  %v4876_v3 = vmax.f32 %v12399_v16, 0.0 }
 0x4c7   :  { %v5079_v13 = vadd.f32 %v5078_v54, %v5077_v50 }
 0x4c8   :  { %v4874_v18 = vmax.f32 %v4774_v19, 0.0  ;;  %v5389_v36 = vadd.f32 %v5388_v2, %v5387_v56  ;;  %v6259_v20 = vpop.f32.mrf.mxu1  ;;  %v5089_v28 = vsel %vm1527_vm5, %v4876_v3, 0.0 }
 0x4c9   :  { %v12414_v7 = vadd.f32 %v12396_v53, %v6259_v20  ;;  %v5090_v51 = vadd.f32 %v5089_v28, %v5088_v26 }
 0x4ca   :  { %v4959_v0 = vmul.f32 %v11986_v32, %v4874_v18  ;;  %v5391_v12 = vadd.f32 %v5390_v61, %v5389_v36  ;;  %v4786_v58 = vpop.f32.mrf.mxu1 }
 0x4cb   :  { %v12405_v6 = vadd.f32 %v12396_v53, %v4786_v58  ;;  %v4879_v19 = vmax.f32 %v12414_v7, 0.0 }
 0x4cc   :  { %v5080_v52 = vsel %vm1527_vm5, %v4959_v0, 0.0  ;;  %v5392_v15 = vrot.slane %v5391_v12, 4  ;;  %v6260_v34 = vpop.f32.mrf.mxu1 }
 0x4cd   :  { %v5081_v55 = vadd.f32 %v5080_v52, %v5079_v13  ;;  %v4877_v49 = vmax.f32 %v12405_v6, 0.0  ;;  %v12441_v17 = vadd.f32 %v12396_v53, %v6260_v34 }
 0x4ce   :  { %v5393_v23 = vadd.f32 %v5392_v15, %v5391_v12  ;;  %v4789_v46 = vpop.f32.mrf.mxu1 }
 0x4cf   :  { %v5082_v41 = vrot.slane %v5081_v55, 4  ;;  %v12409_v22 = vadd.f32 %v12396_v53, %v4789_v46  ;;  %v5091_v29 = vsel %vm1527_vm5, %v4877_v49, 0.0  ;;  %v4880_v52 = vmax.f32 %v12441_v17, 0.0 }
 0x4d0   :  { %v5394_v40 = vrot.slane %v5393_v23, 2  ;;  %v5092_v2 = vadd.f32 %v5091_v29, %v5090_v51 }
 0x4d1   :  { %v5083_v4 = vadd.f32 %v5082_v41, %v5081_v55  ;;  %v4878_v47 = vmax.f32 %v12409_v22, 0.0 }
 0x4d2   :  { %v5395_v44 = vadd.f32 %v5394_v40, %v5393_v23 }
 0x4d3   :  { %v5084_v63 = vrot.slane %v5083_v4, 2  ;;  %v5093_v54 = vsel %vm1527_vm5, %v4878_v47, 0.0 }
 0x4d4   :  { %v5396_v60 = vrot.slane %v5395_v44, 1  ;;  %v5094_v36 = vadd.f32 %v5093_v54, %v5092_v2 }
 0x4d5   :  { %v5085_v62 = vadd.f32 %v5084_v63, %v5083_v4  ;;  %v5097_v63 = vsel %vm1527_vm5, %v4880_v52, 0.0 }
 0x4d6   :  { %v5397_v48 = vadd.f32 %v5396_v60, %v5395_v44 }
 0x4d7   :  { %v5086_v21 = vrot.slane %v5085_v62, 1 }
 0x4d8   :  { %v5460_v33 = vmul.f32 0.020408163, %v5397_v48 }
 0x4d9   :  { %v5087_v9 = vadd.f32 %v5086_v21, %v5085_v62 }
 0x4da   :  { %v6263_v24 = vpop.f32.mrf.mxu1 }
 0x4db   :  { %v5132_v37 = vmul.f32 0.02, %v5087_v9  ;;  %v12464_v4 = vadd.f32 %v12396_v53, %v6263_v24 }
 0x4dd   :  { %v5170_v1 = vsub.f32 %v4868_v11, %v5132_v37  ;;  %v5171_v43 = vsub.f32 %v4869_v45, %v5132_v37  ;;  %v5172_v59 = vsub.f32 %v4870_v25, %v5132_v37  ;;  %v5173_v56 = vsub.f32 %v4871_v30, %v5132_v37  ;;  %v4802_v11 = vpop.f32.mrf.mxu1 }
 0x4de   :  { %v5174_v50 = vsub.f32 %v4872_v57, %v5132_v37  ;;  %v5176_v5 = vsub.f32 %v4874_v18, %v5132_v37  ;;  %v12443_v25 = vmax.f32 %v5460_v33, 0.0  ;;  %v5175_v10 = vsub.f32 %v4873_v42, %v5132_v37 }
 0x4df   :  { %v5282_v45 = vmul.f32 %v5170_v1, %v5170_v1  ;;  %v5283_v0 = vmul.f32 %v5171_v43, %v5171_v43  ;;  %v5284_v38 = vmul.f32 %v5172_v59, %v5172_v59  ;;  %v6264_v13 = vpop.f32.mrf.mxu1  ;;  %v5285_v30 = vmul.f32 %v5173_v56, %v5173_v56 }
 0x4e0   :  { %v5095_v18 = vsel %vm1527_vm5, %v4879_v19, 0.0  ;;  %v5232_v12 = vmul.f32 %v11986_v32, %v5176_v5  ;;  %v5286_v55 = vmul.f32 %v5174_v50, %v5174_v50  ;;  %v12456_v42 = vadd.f32 %v12396_v53, %v4802_v11 }
 0x4e1   :  { %v5398_v8 = vsel %vm1527_vm5, %v5282_v45, 0.0  ;;  %v5399_v57 = vsel %vm1527_vm5, %v5283_v0, 0.0  ;;  %v4805_v20 = vpop.f32.mrf.mxu1  ;;  %v5401_v35 = vsel %vm1527_vm5, %v5284_v38, 0.0  ;;  %v5096_v15 = vadd.f32 %v5095_v18, %v5094_v36 }
 0x4e2   :  { %v5400_v61 = vadd.f32 %v5399_v57, %v5398_v8  ;;  %v12459_v41 = vadd.f32 %v12396_v53, %v4805_v20  ;;  %7563 = vrsqrt.f32 %v12443_v25  ;;  %v5287_v34 = vmul.f32 %v5175_v10, %v5175_v10 }
 0x4e3   :  { %v5403_v23 = vsel %vm1527_vm5, %v5285_v30, 0.0  ;;  %v4881_v46 = vmax.f32 %v12456_v42, 0.0  ;;  %v12472_v44 = vsel %vm5544_vm12, %v5132_v37, %v12377_v39  ;;  %v5288_v62 = vmul.f32 %v5232_v12, %v5232_v12 }
 0x4e4   :  { %v5402_v58 = vadd.f32 %v5401_v35, %v5400_v61  ;;  %v5405_v60 = vsel %vm1527_vm5, %v5286_v55, 0.0  ;;  %v4882_v48 = vmax.f32 %v12459_v41, 0.0  ;;  %v5098_v9 = vadd.f32 %v5097_v63, %v5096_v15 }
 0x4e5   :  { %v4966_v21 = vmul.f32 %v11986_v32, %v4881_v46  ;;  %v12480_v26 = vadd.f32 %v12396_v53, %v6264_v13  ;;  %v5407_v29 = vsel %vm1527_vm5, %v5287_v34, 0.0  ;;  %v4883_v33 = vmax.f32 %v12464_v4, 0.0 }
 0x4e6   :  { %v5404_v40 = vadd.f32 %v5403_v23, %v5402_v58  ;;  %v5409_v1 = vsel %vm1527_vm5, %v5288_v62, 0.0  ;;  %v5107_v43 = vsel %vm1527_vm5, %v4882_v48, 0.0  ;;  %vm5502_vm13 = vcmp.eq.f32.partialorder %v12443_v25, inf }
 0x4e7   :  { %v5099_v39 = vsel %vm1527_vm5, %v4966_v21, 0.0  ;;  %v4884_v56 = vmax.f32 %v12480_v26, 0.0  ;;  %v5108_v2 = vsel %vm1527_vm5, %v4883_v33, 0.0  ;;  %vm5504_vm14 = vcmp.eq.f32.partialorder %v12443_v25, 0.0 }
 0x4e8   :  { %v5406_v28 = vadd.f32 %v5405_v60, %v5404_v40  ;;  %v5100_v51 = vadd.f32 %v5099_v39, %v5098_v9  ;;  %v5109_v0 = vadd.f32 %v5108_v2, %v5107_v43  ;;  %v5505_v23 = vand.u32 2147483648, %v12443_v25 }
 0x4e9   :  { %v6267_v24 = vpop.f32.mrf.mxu1  ;;  %v5110_v30 = vsel %vm1527_vm5, %v4884_v56, 0.0 }
 0x4ea   :  { %v5408_v37 = vadd.f32 %v5407_v29, %v5406_v28  ;;  %v5101_v54 = vrot.slane %v5100_v51, 4  ;;  %v12501_v61 = vadd.f32 %v12396_v53, %v6267_v24  ;;  %v5111_v58 = vadd.f32 %v5110_v30, %v5109_v0 }
 0x4eb   :  { %v4818_v50 = vpop.f32.mrf.mxu1 }
 0x4ec   :  { %v5410_v59 = vadd.f32 %v5409_v1, %v5408_v37  ;;  %v12494_v11 = vadd.f32 %v12396_v53, %v4818_v50  ;;  %v5102_v45 = vadd.f32 %v5101_v54, %v5100_v51 }
 0x4ed   :  { %v6268_v38 = vpop.f32.mrf.mxu1 }
 0x4ee   :  { %v5411_v5 = vrot.slane %v5410_v59, 4  ;;  %v4885_v36 = vmax.f32 %v12494_v11, 0.0  ;;  %v5103_v10 = vrot.slane %v5102_v45, 2  ;;  %v12507_v20 = vadd.f32 %v12396_v53, %v6268_v38 }
 0x4ef   :  { %v4821_v8 = vpop.f32.mrf.mxu1  ;;  %v7564_v57 = vpop.eup %7563 }
 0x4f0   :  { %v5412_v13 = vadd.f32 %v5411_v5, %v5410_v59  ;;  %v5112_v18 = vsel %vm1527_vm5, %v4885_v36, 0.0  ;;  %v12510_v12 = vadd.f32 %v12396_v53, %v4821_v8  ;;  %v5104_v35 = vadd.f32 %v5103_v10, %v5102_v45 }
 0x4f1   :  { %v5501_v15 = vmul.f32 %v7564_v57, %v12443_v25  ;;  %v5113_v62 = vadd.f32 %v5112_v18, %v5111_v58  ;;  %v4887_v53 = vmax.f32 %v12501_v61, 0.0  ;;  %v4888_v21 = vmax.f32 %v12507_v20, 0.0 }
 0x4f2   :  { %v5413_v55 = vrot.slane %v5412_v13, 2  ;;  %v4886_v34 = vmax.f32 %v12510_v12, 0.0  ;;  %v5105_v63 = vrot.slane %v5104_v35, 1 }
 0x4f3   :  { %v5503_v60 = vsel %vm5502_vm13, %v12443_v25, %v5501_v15  ;;  %v5116_v25 = vsel %vm1527_vm5, %v4887_v53, 0.0  ;;  %v4973_v43 = vmul.f32 %v11986_v32, %v4888_v21 }
 0x4f4   :  { %v5414_v40 = vadd.f32 %v5413_v55, %v5412_v13  ;;  %v5114_v28 = vsel %vm1527_vm5, %v4886_v34, 0.0  ;;  %v5506_v9 = vsel %vm5504_vm14, %v5505_v23, %v5503_v60  ;;  %v5106_v39 = vadd.f32 %v5105_v63, %v5104_v35 }
 0x4f5   :  { %v5115_v37 = vadd.f32 %v5114_v28, %v5113_v62  ;;  %v12525_v51 = vsel %vm5542_vm11, %v5506_v9, %v12373_v27  ;;  %v5118_v6 = vsel %vm1527_vm5, %v4973_v43, 0.0 }
 0x4f6   :  { %v5415_v29 = vrot.slane %v5414_v40, 1  ;;  %v5133_v1 = vmul.f32 0.02, %v5106_v39 }
 0x4f7   :  { %v5117_v2 = vadd.f32 %v5116_v25, %v5115_v37 }
 0x4f8   :  { %v5416_v24 = vadd.f32 %v5415_v29, %v5414_v40  ;;  %v5177_v59 = vsub.f32 %v4875_v14, %v5133_v1  ;;  %v5178_v54 = vsub.f32 %v4876_v3, %v5133_v1  ;;  %v5179_v50 = vsub.f32 %v4877_v49, %v5133_v1 }
 0x4f9   :  { %v5180_v5 = vsub.f32 %v4878_v47, %v5133_v1  ;;  %v5181_v45 = vsub.f32 %v4879_v19, %v5133_v1  ;;  %v5183_v0 = vsub.f32 %v4881_v46, %v5133_v1  ;;  %v5182_v16 = vsub.f32 %v4880_v52, %v5133_v1 }
 0x4fa   :  { %v5461_v27 = vmul.f32 0.020408163, %v5416_v24  ;;  %v5289_v38 = vmul.f32 %v5177_v59, %v5177_v59  ;;  %v5290_v31 = vmul.f32 %v5178_v54, %v5178_v54  ;;  %v5291_v14 = vmul.f32 %v5179_v50, %v5179_v50 }
 0x4fb   :  { %v5292_v3 = vmul.f32 %v5180_v5, %v5180_v5  ;;  %v5119_v47 = vadd.f32 %v5118_v6, %v5117_v2  ;;  %v5239_v19 = vmul.f32 %v11986_v32, %v5183_v0  ;;  %v5293_v42 = vmul.f32 %v5181_v45, %v5181_v45 }
 0x4fc   :  { %v5417_v49 = vsel %vm1527_vm5, %v5289_v38, 0.0  ;;  %v5418_v22 = vsel %vm1527_vm5, %v5290_v31, 0.0  ;;  %v12548_v13 = vmax.f32 %v5461_v27, 0.0  ;;  %v5420_v46 = vsel %vm1527_vm5, %v5291_v14, 0.0 }
 0x4fd   :  { %v5419_v7 = vadd.f32 %v5418_v22, %v5417_v49  ;;  %v5120_v10 = vrot.slane %v5119_v47, 4  ;;  %v5294_v52 = vmul.f32 %v5182_v16, %v5182_v16  ;;  %v5422_v30 = vsel %vm1527_vm5, %v5292_v3, 0.0 }
 0x4fe   :  { %v5547_v57 = vsel %vm5546_vm15, %v5133_v1, %v12472_v44  ;;  %v5295_v20 = vmul.f32 %v5239_v19, %v5239_v19  ;;  %v5424_v55 = vsel %vm1527_vm5, %v5293_v42, 0.0  ;;  %7565 = vrsqrt.f32 %v12548_v13 }
 0x4ff   :  { %v5421_v17 = vadd.f32 %v5420_v46, %v5419_v7  ;;  %v5121_v8 = vadd.f32 %v5120_v10, %v5119_v47  ;;  %v5426_v15 = vsel %vm1527_vm5, %v5294_v52, 0.0  ;;  %vm5509_vm1 = vcmp.eq.f32.partialorder %v12548_v13, inf }
 0x500   :  { %v5428_v63 = vsel %vm1527_vm5, %v5295_v20, 0.0  ;;  %v5512_v61 = vand.u32 2147483648, %v12548_v13  ;;  %vm5511_vm2 = vcmp.eq.f32.partialorder %v12548_v13, 0.0 }
 0x501   :  { %v5423_v18 = vadd.f32 %v5422_v30, %v5421_v17  ;;  %v5122_v35 = vrot.slane %v5121_v8, 2 }
 0x503   :  { %v5425_v58 = vadd.f32 %v5424_v55, %v5423_v18  ;;  %v5123_v23 = vadd.f32 %v5122_v35, %v5121_v8 }
 0x505   :  { %v5427_v40 = vadd.f32 %v5426_v15, %v5425_v58  ;;  %v5124_v62 = vrot.slane %v5123_v23, 1 }
 0x507   :  { %v5429_v60 = vadd.f32 %v5428_v63, %v5427_v40  ;;  %v5125_v28 = vadd.f32 %v5124_v62, %v5123_v23 }
 0x509   :  { %v5430_v9 = vrot.slane %v5429_v60, 4  ;;  %v5134_v29 = vmul.f32 0.02, %v5125_v28 }
 0x50b   :  { %v5431_v44 = vadd.f32 %v5430_v9, %v5429_v60  ;;  %v5184_v39 = vsub.f32 %v4882_v48, %v5134_v29  ;;  %v5185_v37 = vsub.f32 %v4883_v33, %v5134_v29  ;;  %v5186_v24 = vsub.f32 %v4884_v56, %v5134_v29  ;;  %v7566_v27 = vpop.eup %7565 }
 0x50c   :  { %v5187_v1 = vsub.f32 %v4885_v36, %v5134_v29  ;;  %v5190_v43 = vsub.f32 %v4888_v21, %v5134_v29  ;;  %v5188_v59 = vsub.f32 %v4886_v34, %v5134_v29  ;;  %v5189_v4 = vsub.f32 %v4887_v53, %v5134_v29 }
 0x50d   :  { %v5432_v25 = vrot.slane %v5431_v44, 2  ;;  %v5296_v54 = vmul.f32 %v5184_v39, %v5184_v39  ;;  %v5297_v50 = vmul.f32 %v5185_v37, %v5185_v37  ;;  %v5298_v2 = vmul.f32 %v5186_v24, %v5186_v24 }
 0x50e   :  { %v5299_v48 = vmul.f32 %v5187_v1, %v5187_v1  ;;  %v5246_v11 = vmul.f32 %v11986_v32, %v5190_v43  ;;  %v5300_v12 = vmul.f32 %v5188_v59, %v5188_v59  ;;  %v5508_v21 = vmul.f32 %v7566_v27, %v12548_v13 }
 0x50f   :  { %v5433_v41 = vadd.f32 %v5432_v25, %v5431_v44  ;;  %v5436_v26 = vsel %vm1527_vm5, %v5296_v54, 0.0  ;;  %v5437_v33 = vsel %vm1527_vm5, %v5297_v50, 0.0  ;;  %v5439_v34 = vsel %vm1527_vm5, %v5298_v2, 0.0 }
 0x510   :  { %v5438_v36 = vadd.f32 %v5437_v33, %v5436_v26  ;;  %v5549_v5 = vsel %vm5548_vm0, %v5134_v29, %v5547_v57  ;;  %v5301_v53 = vmul.f32 %v5189_v4, %v5189_v4  ;;  %v5441_v38 = vsel %vm1527_vm5, %v5299_v48, 0.0 }
 0x511   :  { %v5434_v56 = vrot.slane %v5433_v41, 1  ;;  %v5510_v31 = vsel %vm5509_vm1, %v12548_v13, %v5508_v21  ;;  %v5302_v6 = vmul.f32 %v5246_v11, %v5246_v11  ;;  %v5443_v3 = vsel %vm1527_vm5, %v5300_v12, 0.0 }
 0x512   :  { %v5440_v0 = vadd.f32 %v5439_v34, %v5438_v36  ;;  %v5513_v16 = vsel %vm5511_vm2, %v5512_v61, %v5510_v31  ;;  %v5445_v7 = vsel %vm1527_vm5, %v5301_v53, 0.0 }
 0x513   :  { %v5435_v45 = vadd.f32 %v5434_v56, %v5433_v41  ;;  %v5563_v49 = vsel %vm5544_vm12, %v5513_v16, %v12525_v51  ;;  %v5447_v42 = vsel %vm1527_vm5, %v5302_v6, 0.0 }
 0x514   :  { %v5442_v14 = vadd.f32 %v5441_v38, %v5440_v0 }
 0x515   :  { %v5462_v32 = vmul.f32 0.020408163, %v5435_v45 }
 0x516   :  { %v5444_v47 = vadd.f32 %v5443_v3, %v5442_v14 }
 0x517   :  { %v5470_v22 = vmax.f32 %v5462_v32, 0.0 }
 0x518   :  { %v5446_v19 = vadd.f32 %v5445_v7, %v5444_v47 }
 0x519   :  { %7567 = vrsqrt.f32 %v5470_v22  ;;  %vm5516_vm3 = vcmp.eq.f32.partialorder %v5470_v22, inf  ;;  %v5519_v20 = vand.u32 2147483648, %v5470_v22  ;;  %vm5518_vm4 = vcmp.eq.f32.partialorder %v5470_v22, 0.0 }
 0x51a   :  { %v5448_v46 = vadd.f32 %v5447_v42, %v5446_v19 }
 0x51c   :  { %v5449_v10 = vrot.slane %v5448_v46, 4 }
 0x51e   :  { %v5450_v13 = vadd.f32 %v5449_v10, %v5448_v46 }
 0x520   :  { %v5451_v17 = vrot.slane %v5450_v13, 2 }
 0x522   :  { %v5452_v52 = vadd.f32 %v5451_v17, %v5450_v13 }
 0x524   :  { %v5453_v30 = vrot.slane %v5452_v52, 1 }
 0x526   :  { %v7568_v8 = vpop.eup %7567  ;;  %v5454_v57 = vadd.f32 %v5453_v30, %v5452_v52 }
 0x527   :  { %v5515_v18 = vmul.f32 %v7568_v8, %v5470_v22 }
 0x528   :  { %v5463_v51 = vmul.f32 0.020408163, %v5454_v57 }
 0x529   :  { %v5517_v55 = vsel %vm5516_vm3, %v5470_v22, %v5515_v18 }
 0x52a   :  { %v5520_v35 = vsel %vm5518_vm4, %v5519_v20, %v5517_v55  ;;  %v5471_v58 = vmax.f32 %v5463_v51, 0.0 }
 0x52b   :  { %v5564_v15 = vsel %vm5546_vm15, %v5520_v35, %v5563_v49 }
 0x52c   :  { %7569 = vrsqrt.f32 %v5471_v58  ;;  %vm5523_vm6 = vcmp.eq.f32.partialorder %v5471_v58, inf  ;;  %v5526_v63 = vand.u32 2147483648, %v5471_v58  ;;  %vm5525_vm8 = vcmp.eq.f32.partialorder %v5471_v58, 0.0 }
 0x539   :  { %v7570_v23 = vpop.eup %7569 }
 0x53a   :  { %v5522_v40 = vmul.f32 %v7570_v23, %v5471_v58 }
 0x53c   :  { %v5524_v62 = vsel %vm5523_vm6, %v5471_v58, %v5522_v40 }
 0x53d   :  { %v5527_v60 = vsel %vm5525_vm8, %v5526_v63, %v5524_v62 }
 0x53e   :  { %v5565_v28 = vsel %vm5548_vm0, %v5527_v60, %v5564_v15 }
 0x53f   :  { %5566 = vrot.lane.b32.xlu0 %v5565_v28, %s7664_s11 }
 0x5b1   :  { %v5567_v9 = vpop.permute.xlu0 %5566 }
 0x5b2   :  { %v5569_v29 = vsel %vm1527_vm5, %v5549_v5, %v5567_v9 }
 0x5b3   :  { %v5570_v44 = vsel %vm1659_vm7, %v5569_v29, 0.0 }
 0x5b4   :  { %v5908_v39 = vmul.f32 -1.442695, %v5570_v44 }
 0x5b6   :  { %7571 = vpow2.f32 %v5908_v39 }
 0x5c3   :  { %v7572_v37 = vpop.eup %7571 }
 0x5c4   :  { %v5574_v24 = vadd.f32 1.0, %v7572_v37 }
 0x5c6   :  { %7573 = vrcp.f32 %v5574_v24 }
 0x5d3   :  { %v7574_v1 = vpop.eup %7573 }
 0x5d4   :  { %5577 = vst [vmem:[#allocation2] sm:$0xff] %v7574_v1 }
 0x5d5   :  { %7653 = shalt.err (!%p7650_p4)
}
 0x5d6   :  { %5587 = dma.vmem_to_hbm [thread:$0]  %s5585_s24, 128, %s12602_s7, [#allocation3]  }
 0x5d7   :  { %7662 = dma.done.wait [#allocation3], 128  }
 0x5d8   :  { %7663 = vsyncadd [#allocation3], 4294967168 }
 0x5d9   :  { %5591 = vsyncpa [#allocation3], 1 }

</bundles_post_ra>
